<compile_context>
chip_gen: v7x
topology: tpu7x:2x2x1
jax: 0.10.0
libtpu: 0.0.40
codegen_flags: <defaults>
</compile_context>

<pallas_src>
import jax
import jax.numpy as jnp
from jax.experimental import pallas as pl
from jax.experimental.pallas import tpu as pltpu


def _round_up(x, m):
    return ((x + m - 1) // m) * m


def _vmem_capacity_bytes():
    try:
        info = pltpu.get_tpu_info()
        cap = getattr(info, "vmem_capacity_bytes", None)
        if cap:
            return int(cap)
    except Exception:
        pass
    return 64 * 1024 * 1024  # conservative default (v7x per-TC VMEM)


# -------------------- fused multi-layer Pallas kernel ----------------------------


def _dncnn_fused_kernel(x_ref, w_ref, b_ref, o_ref, buf0, buf1):
    # x_ref : (1, H, W, Cin)   raw NHWC input image (original dtype)
    # w_ref : (L, 9*C, C)      BN-folded, channel-padded conv weights (compute dtype)
    # b_ref : (L, 1, C)        f32 folded-BN biases (zeros for first/last layer)
    # o_ref : (1, H, W, Cout)  final output (f32)
    # buf0/buf1 : (H+2, W+2, C) VMEM ping-pong activation buffers (compute dtype)
    L = w_ref.shape[0]
    C = w_ref.shape[2]
    H = x_ref.shape[1]
    W = x_ref.shape[2]
    Cin = x_ref.shape[3]
    Cout = o_ref.shape[3]

    # Zero both buffers: the 1-pixel halo ring (and channels >= Cin) stays exactly
    # zero for every layer, implementing 'same' zero padding with no extra work.
    buf0[...] = jnp.zeros_like(buf0)
    buf1[...] = jnp.zeros_like(buf1)
    buf0[1:H + 1, 1:W + 1, :Cin] = x_ref[0].astype(buf0.dtype)

    bufs = (buf0, buf1)
    src = 0
    for l in range(L):                       # static unroll; relu/last baked in
        x = bufs[src][...]                   # (H+2, W+2, C), VMEM resident
        # In-VMEM im2col: 9 shifted 3x3 taps fused along K -> one MXU pass, K=9*C.
        taps = [x[dy:dy + H, dx:dx + W, :] for dy in range(3) for dx in range(3)]
        lhs = jnp.concatenate(taps, axis=-1).reshape(H * W, 9 * C)
        acc = jnp.dot(lhs, w_ref[l], preferred_element_type=jnp.float32)
        acc = acc + b_ref[l]                 # f32 epilogue (bias from folded BN)
        if l < L - 1:
            acc = jnp.maximum(acc, 0.0)      # ReLU on all but the last layer
            dst = 1 - src
            bufs[dst][1:H + 1, 1:W + 1, :] = acc.reshape(H, W, C).astype(buf0.dtype)
            src = dst
        else:
            # Final layer: store only the true output channels (single small store).
            o_ref[0] = acc.reshape(H, W, C)[:, :, :Cout].astype(o_ref.dtype)


# -------------------- parameter init (deterministic, synthetic) ------------------


def init_dncnn_params(key, ch_n, layer_n=17, features=64):
    keys = jax.random.split(key, layer_n * 5 + 2)
    kidx = [0]

    def nk():
        k = keys[kidx[0]]
        kidx[0] += 1
        return k

    layers = []
    w0 = 0.05 * jax.random.normal(nk(), (features, ch_n, 3, 3), jnp.float32)
    layers.append(dict(w=w0, bn=None, relu=True))
    for _ in range(layer_n - 2):
        w = 0.05 * jax.random.normal(nk(), (features, features, 3, 3), jnp.float32)
        gamma = 1.0 + 0.1 * jax.random.normal(nk(), (features,), jnp.float32)
        beta = 0.1 * jax.random.normal(nk(), (features,), jnp.float32)
        mean = 0.1 * jax.random.normal(nk(), (features,), jnp.float32)
        var = jnp.abs(1.0 + 0.1 * jax.random.normal(nk(), (features,), jnp.float32))
        layers.append(dict(w=w, bn=(gamma, beta, mean, var), relu=True))
    wl = 0.05 * jax.random.normal(nk(), (ch_n, features, 3, 3), jnp.float32)
    layers.append(dict(w=wl, bn=None, relu=False))
    return layers


def _folded_bn(bn, eps=1e-5):
    gamma, beta, mean, var = bn
    scale = gamma / jnp.sqrt(var + eps)
    bias = beta - mean * scale
    return scale, bias


# -------------------- DnCNN_RL forward (fused Pallas) ----------------------------


def dncnn_rl_forward(x_nchw, params, compute_dtype=jnp.bfloat16):
    """Forward pass of DnCNN_RL (backbone only, like the reference PyTorch module).

    compute_dtype: bf16 (default, recommended on v6e/v7x) or f32 (prefer on v5e,
    which has no bf16 VPU).  Accumulation and the bias/ReLU epilogue are always f32.
    """
    N, Cin, H, W = x_nchw.shape
    L = len(params)
    features = params[0]["w"].shape[0]
    Cout = params[-1]["w"].shape[0]
    C = max(features, _round_up(max(Cin, Cout), 8))   # uniform padded channel width

    # ---- fold BN (eval) into weights; pad every layer to (9*C, C); stack over L.
    w_list, b_list = [], []
    for lyr in params:
        w4 = jnp.transpose(lyr["w"], (2, 3, 1, 0)).astype(jnp.float32)  # ky,kx,ci,co
        if lyr["bn"] is not None:
            scale, bias = _folded_bn(lyr["bn"])
            w4 = w4 * scale
            b = bias.astype(jnp.float32)
        else:
            b = jnp.zeros((w4.shape[-1],), jnp.float32)
        ci, co = w4.shape[2], w4.shape[3]
        w4 = jnp.pad(w4, ((0, 0), (0, 0), (0, C - ci), (0, C - co)))
        w_list.append(w4.reshape(9 * C, C))
        b_list.append(jnp.pad(b, (0, C - co)))
    w_all = jnp.stack(w_list).astype(compute_dtype)           # (L, 9*C, C)
    b_all = jnp.stack(b_list).reshape(L, 1, C).astype(jnp.float32)

    x_nhwc = jnp.transpose(x_nchw, (0, 2, 3, 1))               # NCHW -> NHWC (f32)

    # ---- VMEM budget: the fused path keeps the whole image resident in VMEM.
    itemsize = jnp.dtype(compute_dtype).itemsize
    buf_bytes = (H + 2) * (W + 2) * C * itemsize
    need = (2 * buf_bytes                                       # ping-pong activations
            + w_all.size * itemsize + b_all.size * 4            # resident weights/bias
            + 2 * H * W * Cin * x_nhwc.dtype.itemsize           # double-buffered input
            + 2 * H * W * Cout * 4                              # double-buffered output
            + H * W * 9 * C * itemsize                          # im2col LHS temp
            + 2 * H * W * C * 4)                                # f32 accumulator slack
    vmem_cap = _vmem_capacity_bytes()
    vmem_limit = int(min(max(need + (8 << 20), 32 << 20), int(vmem_cap * 0.8)))
    if need > vmem_limit:
        # TODO(synk): row-tiled fused path for images that exceed the VMEM budget.
        raise NotImplementedError(
            "image too large for the VMEM-resident fused DnCNN path")

    out = pl.pallas_call(
        _dncnn_fused_kernel,
        out_shape=jax.ShapeDtypeStruct((N, H, W, Cout), jnp.float32),
        grid_spec=pltpu.PrefetchScalarGridSpec(
            num_scalar_prefetch=0,
            grid=(N,),
            in_specs=[
                pl.BlockSpec((1, H, W, Cin), lambda n: (n, 0, 0, 0)),
                pl.BlockSpec((L, 9 * C, C), lambda n: (0, 0, 0)),   # resident weights
                pl.BlockSpec((L, 1, C), lambda n: (0, 0, 0)),       # resident biases
            ],
            out_specs=pl.BlockSpec((1, H, W, Cout), lambda n: (n, 0, 0, 0)),
            scratch_shapes=[
                pltpu.VMEM((H + 2, W + 2, C), compute_dtype),
                pltpu.VMEM((H + 2, W + 2, C), compute_dtype),
            ],
        ),
        compiler_params=pltpu.CompilerParams(
            dimension_semantics=("parallel",),
            vmem_limit_bytes=vmem_limit),
    )(x_nhwc, w_all, b_all)

    return jnp.transpose(out, (0, 3, 1, 2))                     # back to NCHW, f32


# -------------------- pure-JAX reference for validation --------------------------


def _ref_conv(x_nhwc, w_oihw):
    return jax.lax.conv_general_dilated(
        x_nhwc, jnp.transpose(w_oihw, (2, 3, 1, 0)),
        window_strides=(1, 1), padding="SAME",
        dimension_numbers=("NHWC", "HWIO", "NHWC"))


def dncnn_rl_reference(x_nchw, params):
    x = jnp.transpose(x_nchw, (0, 2, 3, 1))
    for lyr in params:
        x = _ref_conv(x, lyr["w"])
        if lyr["bn"] is not None:
            scale, bias = _folded_bn(lyr["bn"])
            x = x * scale + bias
        if lyr["relu"]:
            x = jnp.maximum(x, 0.0)
    return jnp.transpose(x, (0, 3, 1, 2))


if __name__ == "__main__":
    key = jax.random.PRNGKey(0)
    k_x, k_p = jax.random.split(key)

    N, C, H, W = 2, 4, 16, 16     # small NCHW input, matching PyTorch convention
    LAYER_N = 5                   # DnCNN_RL(ch_n=4, layer_n=5)

    x_nchw = jax.random.normal(k_x, (N, C, H, W), jnp.float32)
    params = init_dncnn_params(k_p, ch_n=C, layer_n=LAYER_N, features=64)

    y_ref = jax.block_until_ready(dncnn_rl_reference(x_nchw, params))

    # f32 compute path (tight check; recommended on v5e)
    y32 = jax.block_until_ready(
        dncnn_rl_forward(x_nchw, params, compute_dtype=jnp.float32))
    assert y32.shape == (N, C, H, W) and y32.dtype == jnp.float32
    assert jnp.allclose(y32, y_ref, atol=2e-4, rtol=2e-4), "f32 mismatch vs reference"

    # bf16 storage / bf16 MXU inputs, f32 accumulation (default; v6e/v7x path)
    y16 = jax.block_until_ready(
        dncnn_rl_forward(x_nchw, params, compute_dtype=jnp.bfloat16))
    assert y16.shape == (N, C, H, W)
    assert jnp.allclose(y16, y_ref, atol=1e-1, rtol=1e-1), "bf16 mismatch vs reference"

    print("KERNEL_OK")
</pallas_src>

<mosaic_0001>
module attributes {stable_mosaic.version = 11 : i64} {
  func.func @_dncnn_fused_kernel(%arg0: i32, %arg1: memref<1x16x16x4xf32, #tpu.memory_space<vmem>>, %arg2: memref<5x576x64xf32, #tpu.memory_space<vmem>>, %arg3: memref<5x1x64xf32, #tpu.memory_space<vmem>>, %arg4: memref<1x16x16x4xf32, #tpu.memory_space<vmem>>, %arg5: memref<18x18x64xf32, #tpu.memory_space<vmem>>, %arg6: memref<18x18x64xf32, #tpu.memory_space<vmem>>) attributes {dimension_semantics = [#tpu.dimension_semantics<parallel>], iteration_bounds = array<i64: 2>, scalar_prefetch = 0 : i64, scratch_operands = 2 : i64, tpu.core_type = #tpu.core_type<tc>, window_params = [{transform_indices = @transform_0, window_bounds = array<i64: 1, 16, 16, 4>}, {pipeline_mode = #tpu.pipeline_mode<synchronous>, transform_indices = @transform_1, window_bounds = array<i64: 5, 576, 64>}, {pipeline_mode = #tpu.pipeline_mode<synchronous>, transform_indices = @transform_2, window_bounds = array<i64: 5, 1, 64>}, {transform_indices = @transform_3, window_bounds = array<i64: 1, 16, 16, 4>}]} {
    %cst = arith.constant 0.000000e+00 : f32
    %0 = vector.broadcast %cst : f32 to vector<18x18x64xf32>
    %c0 = arith.constant 0 : index
    %c0_0 = arith.constant 0 : index
    %c0_1 = arith.constant 0 : index
    %1 = vector.load %arg5[%c0, %c0_0, %c0_1] : memref<18x18x64xf32, #tpu.memory_space<vmem>>, vector<18x18x64xf32>
    tpu.vector_store %arg5[%c0, %c0_0, %c0_1], %0 {strides = array<i32>} : memref<18x18x64xf32, #tpu.memory_space<vmem>>, vector<18x18x64xf32>,
    %cst_2 = arith.constant 0.000000e+00 : f32
    %2 = vector.broadcast %cst_2 : f32 to vector<18x18x64xf32>
    %c0_3 = arith.constant 0 : index
    %c0_4 = arith.constant 0 : index
    %c0_5 = arith.constant 0 : index
    %3 = vector.load %arg6[%c0_3, %c0_4, %c0_5] : memref<18x18x64xf32, #tpu.memory_space<vmem>>, vector<18x18x64xf32>
    tpu.vector_store %arg6[%c0_3, %c0_4, %c0_5], %2 {strides = array<i32>} : memref<18x18x64xf32, #tpu.memory_space<vmem>>, vector<18x18x64xf32>,
    %c0_6 = arith.constant 0 : index
    %c0_7 = arith.constant 0 : index
    %c0_8 = arith.constant 0 : index
    %c0_9 = arith.constant 0 : index
    %4 = vector.load %arg1[%c0_6, %c0_7, %c0_8, %c0_9] : memref<1x16x16x4xf32, #tpu.memory_space<vmem>>, vector<1x16x16x4xf32>
    %5 = vector.shape_cast %4 : vector<1x16x16x4xf32> to vector<16x16x4xf32>
    %c1 = arith.constant 1 : index
    %c1_10 = arith.constant 1 : index
    %c0_11 = arith.constant 0 : index
    %6 = vector.load %arg5[%c1, %c1_10, %c0_11] : memref<18x18x64xf32, #tpu.memory_space<vmem>>, vector<16x16x4xf32>
    tpu.vector_store %arg5[%c1, %c1_10, %c0_11], %5 {strides = array<i32>} : memref<18x18x64xf32, #tpu.memory_space<vmem>>, vector<16x16x4xf32>,
    %c0_12 = arith.constant 0 : index
    %c0_13 = arith.constant 0 : index
    %c0_14 = arith.constant 0 : index
    %7 = vector.load %arg5[%c0_12, %c0_13, %c0_14] : memref<18x18x64xf32, #tpu.memory_space<vmem>>, vector<18x18x64xf32>
    %8 = vector.extract_strided_slice %7 {offsets = [0, 0, 0], sizes = [16, 16, 64], strides = [1, 1, 1]} : vector<18x18x64xf32> to vector<16x16x64xf32>
    %9 = vector.extract_strided_slice %7 {offsets = [0, 1, 0], sizes = [16, 16, 64], strides = [1, 1, 1]} : vector<18x18x64xf32> to vector<16x16x64xf32>
    %10 = vector.extract_strided_slice %7 {offsets = [0, 2, 0], sizes = [16, 16, 64], strides = [1, 1, 1]} : vector<18x18x64xf32> to vector<16x16x64xf32>
    %11 = vector.extract_strided_slice %7 {offsets = [1, 0, 0], sizes = [16, 16, 64], strides = [1, 1, 1]} : vector<18x18x64xf32> to vector<16x16x64xf32>
    %12 = vector.extract_strided_slice %7 {offsets = [1, 1, 0], sizes = [16, 16, 64], strides = [1, 1, 1]} : vector<18x18x64xf32> to vector<16x16x64xf32>
    %13 = vector.extract_strided_slice %7 {offsets = [1, 2, 0], sizes = [16, 16, 64], strides = [1, 1, 1]} : vector<18x18x64xf32> to vector<16x16x64xf32>
    %14 = vector.extract_strided_slice %7 {offsets = [2, 0, 0], sizes = [16, 16, 64], strides = [1, 1, 1]} : vector<18x18x64xf32> to vector<16x16x64xf32>
    %15 = vector.extract_strided_slice %7 {offsets = [2, 1, 0], sizes = [16, 16, 64], strides = [1, 1, 1]} : vector<18x18x64xf32> to vector<16x16x64xf32>
    %16 = vector.extract_strided_slice %7 {offsets = [2, 2, 0], sizes = [16, 16, 64], strides = [1, 1, 1]} : vector<18x18x64xf32> to vector<16x16x64xf32>
    %17 = tpu.concatenate %8, %9, %10, %11, %12, %13, %14, %15, %16 in 2 : vector<16x16x64xf32>, vector<16x16x64xf32>, vector<16x16x64xf32>, vector<16x16x64xf32>, vector<16x16x64xf32>, vector<16x16x64xf32>, vector<16x16x64xf32>, vector<16x16x64xf32>, vector<16x16x64xf32> -> vector<16x16x576xf32>
    %18 = vector.shape_cast %17 : vector<16x16x576xf32> to vector<256x576xf32>
    %c0_15 = arith.constant 0 : index
    %c0_16 = arith.constant 0 : index
    %c0_17 = arith.constant 0 : index
    %19 = vector.load %arg2[%c0_15, %c0_16, %c0_17] : memref<5x576x64xf32, #tpu.memory_space<vmem>>, vector<1x576x64xf32>
    %20 = vector.shape_cast %19 : vector<1x576x64xf32> to vector<576x64xf32>
    %cst_18 = arith.constant dense<0.000000e+00> : vector<256x64xf32>
    %21 = tpu.matmul %18, %20, %cst_18 {dimension_numbers = #tpu.dot_dimension_numbers<[1], [0], [0], [1], [0, 0, 1, 1], [], []>} : vector<256x576xf32>, vector<576x64xf32>, vector<256x64xf32> -> vector<256x64xf32>
    %c0_19 = arith.constant 0 : index
    %c0_20 = arith.constant 0 : index
    %c0_21 = arith.constant 0 : index
    %22 = vector.load %arg3[%c0_19, %c0_20, %c0_21] : memref<5x1x64xf32, #tpu.memory_space<vmem>>, vector<1x1x64xf32>
    %23 = vector.shape_cast %22 : vector<1x1x64xf32> to vector<1x64xf32>
    %24 = vector.broadcast %23 : vector<1x64xf32> to vector<256x64xf32>
    %25 = arith.addf %21, %24 : vector<256x64xf32>
    %cst_22 = arith.constant 0.000000e+00 : f32
    %26 = vector.broadcast %cst_22 : f32 to vector<256x64xf32>
    %27 = arith.maximumf %25, %26 : vector<256x64xf32>
    %28 = vector.shape_cast %27 : vector<256x64xf32> to vector<16x16x64xf32>
    %c1_23 = arith.constant 1 : index
    %c1_24 = arith.constant 1 : index
    %c0_25 = arith.constant 0 : index
    %29 = vector.load %arg6[%c1_23, %c1_24, %c0_25] : memref<18x18x64xf32, #tpu.memory_space<vmem>>, vector<16x16x64xf32>
    tpu.vector_store %arg6[%c1_23, %c1_24, %c0_25], %28 {strides = array<i32>} : memref<18x18x64xf32, #tpu.memory_space<vmem>>, vector<16x16x64xf32>,
    %c0_26 = arith.constant 0 : index
    %c0_27 = arith.constant 0 : index
    %c0_28 = arith.constant 0 : index
    %30 = vector.load %arg6[%c0_26, %c0_27, %c0_28] : memref<18x18x64xf32, #tpu.memory_space<vmem>>, vector<18x18x64xf32>
    %31 = vector.extract_strided_slice %30 {offsets = [0, 0, 0], sizes = [16, 16, 64], strides = [1, 1, 1]} : vector<18x18x64xf32> to vector<16x16x64xf32>
    %32 = vector.extract_strided_slice %30 {offsets = [0, 1, 0], sizes = [16, 16, 64], strides = [1, 1, 1]} : vector<18x18x64xf32> to vector<16x16x64xf32>
    %33 = vector.extract_strided_slice %30 {offsets = [0, 2, 0], sizes = [16, 16, 64], strides = [1, 1, 1]} : vector<18x18x64xf32> to vector<16x16x64xf32>
    %34 = vector.extract_strided_slice %30 {offsets = [1, 0, 0], sizes = [16, 16, 64], strides = [1, 1, 1]} : vector<18x18x64xf32> to vector<16x16x64xf32>
    %35 = vector.extract_strided_slice %30 {offsets = [1, 1, 0], sizes = [16, 16, 64], strides = [1, 1, 1]} : vector<18x18x64xf32> to vector<16x16x64xf32>
    %36 = vector.extract_strided_slice %30 {offsets = [1, 2, 0], sizes = [16, 16, 64], strides = [1, 1, 1]} : vector<18x18x64xf32> to vector<16x16x64xf32>
    %37 = vector.extract_strided_slice %30 {offsets = [2, 0, 0], sizes = [16, 16, 64], strides = [1, 1, 1]} : vector<18x18x64xf32> to vector<16x16x64xf32>
    %38 = vector.extract_strided_slice %30 {offsets = [2, 1, 0], sizes = [16, 16, 64], strides = [1, 1, 1]} : vector<18x18x64xf32> to vector<16x16x64xf32>
    %39 = vector.extract_strided_slice %30 {offsets = [2, 2, 0], sizes = [16, 16, 64], strides = [1, 1, 1]} : vector<18x18x64xf32> to vector<16x16x64xf32>
    %40 = tpu.concatenate %31, %32, %33, %34, %35, %36, %37, %38, %39 in 2 : vector<16x16x64xf32>, vector<16x16x64xf32>, vector<16x16x64xf32>, vector<16x16x64xf32>, vector<16x16x64xf32>, vector<16x16x64xf32>, vector<16x16x64xf32>, vector<16x16x64xf32>, vector<16x16x64xf32> -> vector<16x16x576xf32>
    %41 = vector.shape_cast %40 : vector<16x16x576xf32> to vector<256x576xf32>
    %c1_29 = arith.constant 1 : index
    %c0_30 = arith.constant 0 : index
    %c0_31 = arith.constant 0 : index
    %42 = vector.load %arg2[%c1_29, %c0_30, %c0_31] : memref<5x576x64xf32, #tpu.memory_space<vmem>>, vector<1x576x64xf32>
    %43 = vector.shape_cast %42 : vector<1x576x64xf32> to vector<576x64xf32>
    %cst_32 = arith.constant dense<0.000000e+00> : vector<256x64xf32>
    %44 = tpu.matmul %41, %43, %cst_32 {dimension_numbers = #tpu.dot_dimension_numbers<[1], [0], [0], [1], [0, 0, 1, 1], [], []>} : vector<256x576xf32>, vector<576x64xf32>, vector<256x64xf32> -> vector<256x64xf32>
    %c1_33 = arith.constant 1 : index
    %c0_34 = arith.constant 0 : index
    %c0_35 = arith.constant 0 : index
    %45 = vector.load %arg3[%c1_33, %c0_34, %c0_35] : memref<5x1x64xf32, #tpu.memory_space<vmem>>, vector<1x1x64xf32>
    %46 = vector.shape_cast %45 : vector<1x1x64xf32> to vector<1x64xf32>
    %47 = vector.broadcast %46 : vector<1x64xf32> to vector<256x64xf32>
    %48 = arith.addf %44, %47 : vector<256x64xf32>
    %cst_36 = arith.constant 0.000000e+00 : f32
    %49 = vector.broadcast %cst_36 : f32 to vector<256x64xf32>
    %50 = arith.maximumf %48, %49 : vector<256x64xf32>
    %51 = vector.shape_cast %50 : vector<256x64xf32> to vector<16x16x64xf32>
    %c1_37 = arith.constant 1 : index
    %c1_38 = arith.constant 1 : index
    %c0_39 = arith.constant 0 : index
    %52 = vector.load %arg5[%c1_37, %c1_38, %c0_39] : memref<18x18x64xf32, #tpu.memory_space<vmem>>, vector<16x16x64xf32>
    tpu.vector_store %arg5[%c1_37, %c1_38, %c0_39], %51 {strides = array<i32>} : memref<18x18x64xf32, #tpu.memory_space<vmem>>, vector<16x16x64xf32>,
    %c0_40 = arith.constant 0 : index
    %c0_41 = arith.constant 0 : index
    %c0_42 = arith.constant 0 : index
    %53 = vector.load %arg5[%c0_40, %c0_41, %c0_42] : memref<18x18x64xf32, #tpu.memory_space<vmem>>, vector<18x18x64xf32>
    %54 = vector.extract_strided_slice %53 {offsets = [0, 0, 0], sizes = [16, 16, 64], strides = [1, 1, 1]} : vector<18x18x64xf32> to vector<16x16x64xf32>
    %55 = vector.extract_strided_slice %53 {offsets = [0, 1, 0], sizes = [16, 16, 64], strides = [1, 1, 1]} : vector<18x18x64xf32> to vector<16x16x64xf32>
    %56 = vector.extract_strided_slice %53 {offsets = [0, 2, 0], sizes = [16, 16, 64], strides = [1, 1, 1]} : vector<18x18x64xf32> to vector<16x16x64xf32>
    %57 = vector.extract_strided_slice %53 {offsets = [1, 0, 0], sizes = [16, 16, 64], strides = [1, 1, 1]} : vector<18x18x64xf32> to vector<16x16x64xf32>
    %58 = vector.extract_strided_slice %53 {offsets = [1, 1, 0], sizes = [16, 16, 64], strides = [1, 1, 1]} : vector<18x18x64xf32> to vector<16x16x64xf32>
    %59 = vector.extract_strided_slice %53 {offsets = [1, 2, 0], sizes = [16, 16, 64], strides = [1, 1, 1]} : vector<18x18x64xf32> to vector<16x16x64xf32>
    %60 = vector.extract_strided_slice %53 {offsets = [2, 0, 0], sizes = [16, 16, 64], strides = [1, 1, 1]} : vector<18x18x64xf32> to vector<16x16x64xf32>
    %61 = vector.extract_strided_slice %53 {offsets = [2, 1, 0], sizes = [16, 16, 64], strides = [1, 1, 1]} : vector<18x18x64xf32> to vector<16x16x64xf32>
    %62 = vector.extract_strided_slice %53 {offsets = [2, 2, 0], sizes = [16, 16, 64], strides = [1, 1, 1]} : vector<18x18x64xf32> to vector<16x16x64xf32>
    %63 = tpu.concatenate %54, %55, %56, %57, %58, %59, %60, %61, %62 in 2 : vector<16x16x64xf32>, vector<16x16x64xf32>, vector<16x16x64xf32>, vector<16x16x64xf32>, vector<16x16x64xf32>, vector<16x16x64xf32>, vector<16x16x64xf32>, vector<16x16x64xf32>, vector<16x16x64xf32> -> vector<16x16x576xf32>
    %64 = vector.shape_cast %63 : vector<16x16x576xf32> to vector<256x576xf32>
    %c2 = arith.constant 2 : index
    %c0_43 = arith.constant 0 : index
    %c0_44 = arith.constant 0 : index
    %65 = vector.load %arg2[%c2, %c0_43, %c0_44] : memref<5x576x64xf32, #tpu.memory_space<vmem>>, vector<1x576x64xf32>
    %66 = vector.shape_cast %65 : vector<1x576x64xf32> to vector<576x64xf32>
    %cst_45 = arith.constant dense<0.000000e+00> : vector<256x64xf32>
    %67 = tpu.matmul %64, %66, %cst_45 {dimension_numbers = #tpu.dot_dimension_numbers<[1], [0], [0], [1], [0, 0, 1, 1], [], []>} : vector<256x576xf32>, vector<576x64xf32>, vector<256x64xf32> -> vector<256x64xf32>
    %c2_46 = arith.constant 2 : index
    %c0_47 = arith.constant 0 : index
    %c0_48 = arith.constant 0 : index
    %68 = vector.load %arg3[%c2_46, %c0_47, %c0_48] : memref<5x1x64xf32, #tpu.memory_space<vmem>>, vector<1x1x64xf32>
    %69 = vector.shape_cast %68 : vector<1x1x64xf32> to vector<1x64xf32>
    %70 = vector.broadcast %69 : vector<1x64xf32> to vector<256x64xf32>
    %71 = arith.addf %67, %70 : vector<256x64xf32>
    %cst_49 = arith.constant 0.000000e+00 : f32
    %72 = vector.broadcast %cst_49 : f32 to vector<256x64xf32>
    %73 = arith.maximumf %71, %72 : vector<256x64xf32>
    %74 = vector.shape_cast %73 : vector<256x64xf32> to vector<16x16x64xf32>
    %c1_50 = arith.constant 1 : index
    %c1_51 = arith.constant 1 : index
    %c0_52 = arith.constant 0 : index
    %75 = vector.load %arg6[%c1_50, %c1_51, %c0_52] : memref<18x18x64xf32, #tpu.memory_space<vmem>>, vector<16x16x64xf32>
    tpu.vector_store %arg6[%c1_50, %c1_51, %c0_52], %74 {strides = array<i32>} : memref<18x18x64xf32, #tpu.memory_space<vmem>>, vector<16x16x64xf32>,
    %c0_53 = arith.constant 0 : index
    %c0_54 = arith.constant 0 : index
    %c0_55 = arith.constant 0 : index
    %76 = vector.load %arg6[%c0_53, %c0_54, %c0_55] : memref<18x18x64xf32, #tpu.memory_space<vmem>>, vector<18x18x64xf32>
    %77 = vector.extract_strided_slice %76 {offsets = [0, 0, 0], sizes = [16, 16, 64], strides = [1, 1, 1]} : vector<18x18x64xf32> to vector<16x16x64xf32>
    %78 = vector.extract_strided_slice %76 {offsets = [0, 1, 0], sizes = [16, 16, 64], strides = [1, 1, 1]} : vector<18x18x64xf32> to vector<16x16x64xf32>
    %79 = vector.extract_strided_slice %76 {offsets = [0, 2, 0], sizes = [16, 16, 64], strides = [1, 1, 1]} : vector<18x18x64xf32> to vector<16x16x64xf32>
    %80 = vector.extract_strided_slice %76 {offsets = [1, 0, 0], sizes = [16, 16, 64], strides = [1, 1, 1]} : vector<18x18x64xf32> to vector<16x16x64xf32>
    %81 = vector.extract_strided_slice %76 {offsets = [1, 1, 0], sizes = [16, 16, 64], strides = [1, 1, 1]} : vector<18x18x64xf32> to vector<16x16x64xf32>
    %82 = vector.extract_strided_slice %76 {offsets = [1, 2, 0], sizes = [16, 16, 64], strides = [1, 1, 1]} : vector<18x18x64xf32> to vector<16x16x64xf32>
    %83 = vector.extract_strided_slice %76 {offsets = [2, 0, 0], sizes = [16, 16, 64], strides = [1, 1, 1]} : vector<18x18x64xf32> to vector<16x16x64xf32>
    %84 = vector.extract_strided_slice %76 {offsets = [2, 1, 0], sizes = [16, 16, 64], strides = [1, 1, 1]} : vector<18x18x64xf32> to vector<16x16x64xf32>
    %85 = vector.extract_strided_slice %76 {offsets = [2, 2, 0], sizes = [16, 16, 64], strides = [1, 1, 1]} : vector<18x18x64xf32> to vector<16x16x64xf32>
    %86 = tpu.concatenate %77, %78, %79, %80, %81, %82, %83, %84, %85 in 2 : vector<16x16x64xf32>, vector<16x16x64xf32>, vector<16x16x64xf32>, vector<16x16x64xf32>, vector<16x16x64xf32>, vector<16x16x64xf32>, vector<16x16x64xf32>, vector<16x16x64xf32>, vector<16x16x64xf32> -> vector<16x16x576xf32>
    %87 = vector.shape_cast %86 : vector<16x16x576xf32> to vector<256x576xf32>
    %c3 = arith.constant 3 : index
    %c0_56 = arith.constant 0 : index
    %c0_57 = arith.constant 0 : index
    %88 = vector.load %arg2[%c3, %c0_56, %c0_57] : memref<5x576x64xf32, #tpu.memory_space<vmem>>, vector<1x576x64xf32>
    %89 = vector.shape_cast %88 : vector<1x576x64xf32> to vector<576x64xf32>
    %cst_58 = arith.constant dense<0.000000e+00> : vector<256x64xf32>
    %90 = tpu.matmul %87, %89, %cst_58 {dimension_numbers = #tpu.dot_dimension_numbers<[1], [0], [0], [1], [0, 0, 1, 1], [], []>} : vector<256x576xf32>, vector<576x64xf32>, vector<256x64xf32> -> vector<256x64xf32>
    %c3_59 = arith.constant 3 : index
    %c0_60 = arith.constant 0 : index
    %c0_61 = arith.constant 0 : index
    %91 = vector.load %arg3[%c3_59, %c0_60, %c0_61] : memref<5x1x64xf32, #tpu.memory_space<vmem>>, vector<1x1x64xf32>
    %92 = vector.shape_cast %91 : vector<1x1x64xf32> to vector<1x64xf32>
    %93 = vector.broadcast %92 : vector<1x64xf32> to vector<256x64xf32>
    %94 = arith.addf %90, %93 : vector<256x64xf32>
    %cst_62 = arith.constant 0.000000e+00 : f32
    %95 = vector.broadcast %cst_62 : f32 to vector<256x64xf32>
    %96 = arith.maximumf %94, %95 : vector<256x64xf32>
    %97 = vector.shape_cast %96 : vector<256x64xf32> to vector<16x16x64xf32>
    %c1_63 = arith.constant 1 : index
    %c1_64 = arith.constant 1 : index
    %c0_65 = arith.constant 0 : index
    %98 = vector.load %arg5[%c1_63, %c1_64, %c0_65] : memref<18x18x64xf32, #tpu.memory_space<vmem>>, vector<16x16x64xf32>
    tpu.vector_store %arg5[%c1_63, %c1_64, %c0_65], %97 {strides = array<i32>} : memref<18x18x64xf32, #tpu.memory_space<vmem>>, vector<16x16x64xf32>,
    %c0_66 = arith.constant 0 : index
    %c0_67 = arith.constant 0 : index
    %c0_68 = arith.constant 0 : index
    %99 = vector.load %arg5[%c0_66, %c0_67, %c0_68] : memref<18x18x64xf32, #tpu.memory_space<vmem>>, vector<18x18x64xf32>
    %100 = vector.extract_strided_slice %99 {offsets = [0, 0, 0], sizes = [16, 16, 64], strides = [1, 1, 1]} : vector<18x18x64xf32> to vector<16x16x64xf32>
    %101 = vector.extract_strided_slice %99 {offsets = [0, 1, 0], sizes = [16, 16, 64], strides = [1, 1, 1]} : vector<18x18x64xf32> to vector<16x16x64xf32>
    %102 = vector.extract_strided_slice %99 {offsets = [0, 2, 0], sizes = [16, 16, 64], strides = [1, 1, 1]} : vector<18x18x64xf32> to vector<16x16x64xf32>
    %103 = vector.extract_strided_slice %99 {offsets = [1, 0, 0], sizes = [16, 16, 64], strides = [1, 1, 1]} : vector<18x18x64xf32> to vector<16x16x64xf32>
    %104 = vector.extract_strided_slice %99 {offsets = [1, 1, 0], sizes = [16, 16, 64], strides = [1, 1, 1]} : vector<18x18x64xf32> to vector<16x16x64xf32>
    %105 = vector.extract_strided_slice %99 {offsets = [1, 2, 0], sizes = [16, 16, 64], strides = [1, 1, 1]} : vector<18x18x64xf32> to vector<16x16x64xf32>
    %106 = vector.extract_strided_slice %99 {offsets = [2, 0, 0], sizes = [16, 16, 64], strides = [1, 1, 1]} : vector<18x18x64xf32> to vector<16x16x64xf32>
    %107 = vector.extract_strided_slice %99 {offsets = [2, 1, 0], sizes = [16, 16, 64], strides = [1, 1, 1]} : vector<18x18x64xf32> to vector<16x16x64xf32>
    %108 = vector.extract_strided_slice %99 {offsets = [2, 2, 0], sizes = [16, 16, 64], strides = [1, 1, 1]} : vector<18x18x64xf32> to vector<16x16x64xf32>
    %109 = tpu.concatenate %100, %101, %102, %103, %104, %105, %106, %107, %108 in 2 : vector<16x16x64xf32>, vector<16x16x64xf32>, vector<16x16x64xf32>, vector<16x16x64xf32>, vector<16x16x64xf32>, vector<16x16x64xf32>, vector<16x16x64xf32>, vector<16x16x64xf32>, vector<16x16x64xf32> -> vector<16x16x576xf32>
    %110 = vector.shape_cast %109 : vector<16x16x576xf32> to vector<256x576xf32>
    %c4 = arith.constant 4 : index
    %c0_69 = arith.constant 0 : index
    %c0_70 = arith.constant 0 : index
    %111 = vector.load %arg2[%c4, %c0_69, %c0_70] : memref<5x576x64xf32, #tpu.memory_space<vmem>>, vector<1x576x64xf32>
    %112 = vector.shape_cast %111 : vector<1x576x64xf32> to vector<576x64xf32>
    %cst_71 = arith.constant dense<0.000000e+00> : vector<256x64xf32>
    %113 = tpu.matmul %110, %112, %cst_71 {dimension_numbers = #tpu.dot_dimension_numbers<[1], [0], [0], [1], [0, 0, 1, 1], [], []>} : vector<256x576xf32>, vector<576x64xf32>, vector<256x64xf32> -> vector<256x64xf32>
    %c4_72 = arith.constant 4 : index
    %c0_73 = arith.constant 0 : index
    %c0_74 = arith.constant 0 : index
    %114 = vector.load %arg3[%c4_72, %c0_73, %c0_74] : memref<5x1x64xf32, #tpu.memory_space<vmem>>, vector<1x1x64xf32>
    %115 = vector.shape_cast %114 : vector<1x1x64xf32> to vector<1x64xf32>
    %116 = vector.broadcast %115 : vector<1x64xf32> to vector<256x64xf32>
    %117 = arith.addf %113, %116 : vector<256x64xf32>
    %118 = vector.shape_cast %117 : vector<256x64xf32> to vector<16x16x64xf32>
    %119 = vector.extract_strided_slice %118 {offsets = [0, 0, 0], sizes = [16, 16, 4], strides = [1, 1, 1]} : vector<16x16x64xf32> to vector<16x16x4xf32>
    %c0_75 = arith.constant 0 : index
    %c0_76 = arith.constant 0 : index
    %c0_77 = arith.constant 0 : index
    %c0_78 = arith.constant 0 : index
    %120 = vector.load %arg4[%c0_75, %c0_76, %c0_77, %c0_78] : memref<1x16x16x4xf32, #tpu.memory_space<vmem>>, vector<1x16x16x4xf32>
    %121 = vector.shape_cast %120 : vector<1x16x16x4xf32> to vector<16x16x4xf32>
    %122 = vector.shape_cast %119 : vector<16x16x4xf32> to vector<1x16x16x4xf32>
    tpu.vector_store %arg4[%c0_75, %c0_76, %c0_77, %c0_78], %122 {strides = array<i32>} : memref<1x16x16x4xf32, #tpu.memory_space<vmem>>, vector<1x16x16x4xf32>,
    return
  }
  func.func @transform_0(%arg0: i32) -> (i32, i32, i32, i32) {
    %c0_i32 = arith.constant 0 : i32
    %c0_i32_0 = arith.constant 0 : i32
    %c0_i32_1 = arith.constant 0 : i32
    %c0_i32_2 = arith.constant 0 : i32
    return %arg0, %c0_i32, %c0_i32_0, %c0_i32_1 : i32, i32, i32, i32
  }
  func.func @transform_1(%arg0: i32) -> (i32, i32, i32) {
    %c0_i32 = arith.constant 0 : i32
    %c0_i32_0 = arith.constant 0 : i32
    %c0_i32_1 = arith.constant 0 : i32
    %c0_i32_2 = arith.constant 0 : i32
    return %c0_i32, %c0_i32_0, %c0_i32_1 : i32, i32, i32
  }
  func.func @transform_2(%arg0: i32) -> (i32, i32, i32) {
    %c0_i32 = arith.constant 0 : i32
    %c0_i32_0 = arith.constant 0 : i32
    %c0_i32_1 = arith.constant 0 : i32
    %c0_i32_2 = arith.constant 0 : i32
    return %c0_i32, %c0_i32_0, %c0_i32_1 : i32, i32, i32
  }
  func.func @transform_3(%arg0: i32) -> (i32, i32, i32, i32) {
    %c0_i32 = arith.constant 0 : i32
    %c0_i32_0 = arith.constant 0 : i32
    %c0_i32_1 = arith.constant 0 : i32
    %c0_i32_2 = arith.constant 0 : i32
    return %arg0, %c0_i32, %c0_i32_0, %c0_i32_1 : i32, i32, i32, i32
  }
}

</mosaic_0001>

<bundles_post_ra>
// kernel: tpu_custom_call.1
= control target key start
LH: loop header
LB: loop body
LE: loop exit
PB: predicated region body
PF: predicated region fallthrough
CT: control target
= control target key end

     0   :  { %s11609_s12 = smov 0   ;;  %s18562_s0 = inlined_call_operand.vmem [shape: f32[2,16,16,4], index: 0, kind: input, shape index: {}]   ;;  %s18563_s1 = inlined_call_operand.vmem [shape: f32[5,576,64], index: 1, kind: input, shape index: {}]   ;;  %s18564_s2 = inlined_call_operand.vmem [shape: f32[5,1,64], index: 2, kind: input, shape index: {}]   ;;  %s18565_s3 = inlined_call_operand.vmem [shape: f32[2,16,16,4], index: 3, kind: output, shape index: {}]  }
   0x1 LB: > { %s8551_s13 = sadd.s32 4294967295, %s11584_s12   ;;  %p8555_p0 = scmp.ge.s32.totalorder %s11584_s12, 1  ;;  %s11584_s12 = sphi %s11609_s12, %s13_s12  }
   0x2   : > { %p137_p1 = scmp.lt.s32.totalorder %s11584_s12, 3 }
   0x4   : > { %p138_p2 = pnand %p8555_p0, %p137_p1 }
   0x6   : > { %141 = sbr.rel (%p138_p2) target bundleno = 2528 (0x9e0), region = 32 }
   0xd   : > { %p11619_p3 = scmp.lt.s32.totalorder %s8551_s13, 1  ;;  %vm171_vm0 = vcmask 523264   ;;  %vm174_vm1 = vcmask 517120   ;;  %v11586_v0 = vmov 0.0   ;;  %v1101_v1 = vld [vmem:[%s18563_s1] sm:$0xff]  ;;  %v1102_v2 = vld [vmem:[%s18563_s1 + $0x8] sm:$0xff] }
   0xe   : > { %172 = vst.msk [vmem:[#allocation2] sm:$0xff] %vm171_vm0, %v11586_v0  ;;  %173 = vst.msk [vmem:[#allocation2 + $0x8] sm:$0xff] %vm171_vm0, %v11586_v0  ;;  %v1103_v3 = vld [vmem:[%s18563_s1 + $0x10] sm:$0xff]  ;;  %v18566_v4 = vmov 0.0|0.0   ;;  %v9542_v5 = vpack.c.bf16 %v1102_v2, %v1101_v1  ;;  %v1104_v6 = vld [vmem:[%s18563_s1 + $0x18] sm:$0xff]  ;;  %vm314_vm2 = vcmask 31744  }
   0xf   : > { %176 = vst.msk [vmem:[#allocation2 + $0x18] sm:$0xff] %vm171_vm0, %v11586_v0  ;;  %177 = vst.msk [vmem:[#allocation2 + $0x20] sm:$0xff] %vm171_vm0, %v11586_v0  ;;  %s19331_s13 = smov (!%p11619_p3, %s8551_s13), 1  ;;  %9541 = vmatprep.subr.bf16.mxu0 %v18566_v4  ;;  %v9545_v7 = vpack.c.bf16 %v1104_v6, %v1103_v3  ;;  %v1105_v8 = vld [vmem:[%s18563_s1 + $0x20] sm:$0xff]  ;;  %v1106_v9 = vld [vmem:[%s18563_s1 + $0x28] sm:$0xff]  ;;  %vm449_vm3 = vcmask 1046528  }
  0x10   : > { %178 = vst.msk [vmem:[#allocation2 + $0x28] sm:$0x3] %vm174_vm1, %v11586_v0  ;;  %175 = vst.msk [vmem:[#allocation2 + $0x10] sm:$0x3] %vm174_vm1, %v11586_v0  ;;  %s9019_s23 = sshll.u32 %s19331_s13, 8  ;;  %9543 = vmatpush1.bf16.msra.mxu0 %v9542_v5  ;;  %v11885_v16 = vld [vmem:[%s18563_s1 + $0x30] sm:$0xff]  ;;  %v9548_v21 = vpack.c.bf16 %v1106_v9, %v1105_v8 }
  0x11   : > { %179 = vst.msk [vmem:[#allocation2 + $0x30] sm:$0xff] %vm171_vm0, %v11586_v0  ;;  %180 = vst.msk [vmem:[#allocation2 + $0x38] sm:$0xff] %vm171_vm0, %v11586_v0  ;;  %s11864_s26 = scalar_lea.vmem %s18562_s0, %s9019_s23  ;;  %9544 = vmatprep.subr.bf16.mxu0 %v18566_v4  ;;  %v11890_v17 = vld [vmem:[%s18563_s1 + $0x38] sm:$0xff]  ;;  %v1109_v34 = vld [vmem:[%s18563_s1 + $0x40] sm:$0xff]  ;;  %s11588_s14 = smov 64   ;;  %vm626_vm4 = vcmask 1045504  }
  0x12   : > { %181 = vst.msk [vmem:[#allocation2 + $0x40] sm:$0x3] %vm174_vm1, %v11586_v0  ;;  %184 = vst.msk [vmem:[#allocation2 + $0x58] sm:$0x3] %vm174_vm1, %v11586_v0  ;;  %v281_v10 = vld [vmem:[%s11864_s26] sm:$0xff]  ;;  %v282_v11 = vld [vmem:[%s11864_s26 + $0x8] sm:$0xff]  ;;  %v9551_v39 = vpack.c.bf16 %v11890_v17, %v11885_v16  ;;  %s18430_s15 = scalar_lea.vmem %s18565_s3, %s9019_s23 }
  0x13   : > { %182 = vst.msk [vmem:[#allocation2 + $0x48] sm:$0xff] %vm171_vm0, %v11586_v0  ;;  %183 = vst.msk [vmem:[#allocation2 + $0x50] sm:$0xff] %vm171_vm0, %v11586_v0  ;;  %v283_v12 = vld [vmem:[%s11864_s26 + $0x10] sm:$0xff]  ;;  %v284_v13 = vld [vmem:[%s11864_s26 + $0x18] sm:$0xff] }
  0x14   : > { %185 = vst.msk [vmem:[#allocation2 + $0x60] sm:$0xff] %vm171_vm0, %v11586_v0  ;;  %186 = vst.msk [vmem:[#allocation2 + $0x68] sm:$0xff] %vm171_vm0, %v11586_v0  ;;  %v285_v14 = vld [vmem:[%s11864_s26 + $0x20] sm:$0xff]  ;;  %v286_v15 = vld [vmem:[%s11864_s26 + $0x28] sm:$0xff]  ;;  %9546 = vmatpush1.bf16.msra.mxu0 %v9545_v7 }
  0x15   : > { %187 = vst.msk [vmem:[#allocation2 + $0x70] sm:$0x3] %vm174_vm1, %v11586_v0  ;;  %190 = vst.msk [vmem:[#allocation2 + $0x88] sm:$0x3] %vm174_vm1, %v11586_v0  ;;  %v11892_v18 = vld [vmem:[#allocation2] sm:$0xff]  ;;  %v11894_v19 = vld [vmem:[#allocation2 + $0x8] sm:$0xff]  ;;  %9547 = vmatprep.subr.bf16.mxu0 %v18566_v4 }
  0x16   : > { %188 = vst.msk [vmem:[#allocation2 + $0x78] sm:$0xff] %vm171_vm0, %v11586_v0  ;;  %189 = vst.msk [vmem:[#allocation2 + $0x80] sm:$0xff] %vm171_vm0, %v11586_v0  ;;  %v450_v22 = vrot.slane %v11892_v18, 1  ;;  %v451_v23 = vrot.slane %v11894_v19, 1  ;;  %v287_v24 = vld [vmem:[%s11864_s26 + $0x30] sm:$0xff]  ;;  %v288_v25 = vld [vmem:[%s11864_s26 + $0x38] sm:$0xff] }
  0x17   : > { %191 = vst.msk [vmem:[#allocation2 + $0x90] sm:$0xff] %vm171_vm0, %v11586_v0  ;;  %192 = vst.msk [vmem:[#allocation2 + $0x98] sm:$0xff] %vm171_vm0, %v11586_v0  ;;  %v11896_v20 = vld [vmem:[#allocation2 + $0x10] sm:$0x3]  ;;  %v289_v26 = vld [vmem:[%s11864_s26 + $0x40] sm:$0xff] }
  0x18   : > { %193 = vst.msk [vmem:[#allocation2 + $0xa0] sm:$0x3] %vm174_vm1, %v11586_v0  ;;  %196 = vst.msk [vmem:[#allocation2 + $0xb8] sm:$0x3] %vm174_vm1, %v11586_v0  ;;  %v453_v27 = vrot.slane %v11896_v20, 1  ;;  %v290_v28 = vld [vmem:[%s11864_s26 + $0x48] sm:$0xff]  ;;  %v452_v36 = vsel %vm449_vm3, %v450_v22, %v451_v23  ;;  %9549 = vmatpush1.bf16.msra.mxu0 %v9548_v21 }
  0x19   : > { %194 = vst.msk [vmem:[#allocation2 + $0xa8] sm:$0xff] %vm171_vm0, %v11586_v0  ;;  %195 = vst.msk [vmem:[#allocation2 + $0xb0] sm:$0xff] %vm171_vm0, %v11586_v0  ;;  %v291_v29 = vld [vmem:[%s11864_s26 + $0x50] sm:$0xff]  ;;  %v292_v30 = vld [vmem:[%s11864_s26 + $0x58] sm:$0xff]  ;;  %9550 = vmatprep.subr.bf16.mxu0 %v18566_v4 }
  0x1a   : > { %197 = vst.msk [vmem:[#allocation2 + $0xc0] sm:$0xff] %vm171_vm0, %v11586_v0  ;;  %198 = vst.msk [vmem:[#allocation2 + $0xc8] sm:$0xff] %vm171_vm0, %v11586_v0  ;;  %v293_v31 = vld [vmem:[%s11864_s26 + $0x60] sm:$0xff]  ;;  %v294_v32 = vld [vmem:[%s11864_s26 + $0x68] sm:$0xff]  ;;  %v454_v46 = vsel %vm449_vm3, %v451_v23, %v453_v27 }
  0x1b   : > { %199 = vst.msk [vmem:[#allocation2 + $0xd0] sm:$0x3] %vm174_vm1, %v11586_v0  ;;  %202 = vst.msk [vmem:[#allocation2 + $0xe8] sm:$0x3] %vm174_vm1, %v11586_v0  ;;  %v295_v33 = vld [vmem:[%s11864_s26 + $0x70] sm:$0xff]  ;;  %v1110_v35 = vld [vmem:[%s18563_s1 + $0x48] sm:$0xff] }
  0x1c   : > { %200 = vst.msk [vmem:[#allocation2 + $0xd8] sm:$0xff] %vm171_vm0, %v11586_v0  ;;  %201 = vst.msk [vmem:[#allocation2 + $0xe0] sm:$0xff] %vm171_vm0, %v11586_v0  ;;  %v296_v37 = vld [vmem:[%s11864_s26 + $0x78] sm:$0xff]  ;;  %v297_v38 = vld [vmem:[%s11864_s26 + $0x80] sm:$0xff]  ;;  %9552 = vmatpush1.bf16.msra.mxu0 %v9551_v39  ;;  %v9554_v59 = vpack.c.bf16 %v1110_v35, %v1109_v34 }
  0x1d   : > { %203 = vst.msk [vmem:[#allocation2 + $0xf0] sm:$0xff] %vm171_vm0, %v11586_v0  ;;  %204 = vst.msk [vmem:[#allocation2 + $0xf8] sm:$0xff] %vm171_vm0, %v11586_v0  ;;  %v298_v40 = vld [vmem:[%s11864_s26 + $0x88] sm:$0xff]  ;;  %v299_v41 = vld [vmem:[%s11864_s26 + $0x90] sm:$0xff]  ;;  %9553 = vmatprep.subr.bf16.mxu0 %v18566_v4 }
  0x1e   : > { %205 = vst.msk [vmem:[#allocation2 + $0x100] sm:$0x3] %vm174_vm1, %v11586_v0  ;;  %208 = vst.msk [vmem:[#allocation2 + $0x118] sm:$0x3] %vm174_vm1, %v11586_v0  ;;  %v300_v42 = vld [vmem:[%s11864_s26 + $0x98] sm:$0xff]  ;;  %v301_v43 = vld [vmem:[%s11864_s26 + $0xa0] sm:$0xff] }
  0x1f   : > { %206 = vst.msk [vmem:[#allocation2 + $0x108] sm:$0xff] %vm171_vm0, %v11586_v0  ;;  %207 = vst.msk [vmem:[#allocation2 + $0x110] sm:$0xff] %vm171_vm0, %v11586_v0  ;;  %v1111_v7 = vld [vmem:[%s18563_s1 + $0x50] sm:$0xff]  ;;  %v1112_v8 = vld [vmem:[%s18563_s1 + $0x58] sm:$0xff] }
  0x20   : > { %209 = vst.msk [vmem:[#allocation2 + $0x120] sm:$0xff] %vm171_vm0, %v11586_v0  ;;  %210 = vst.msk [vmem:[#allocation2 + $0x128] sm:$0xff] %vm171_vm0, %v11586_v0  ;;  %9555 = vmatpush1.bf16.msra.mxu0 %v9554_v59  ;;  %v9557_v21 = vpack.c.bf16 %v1112_v8, %v1111_v7  ;;  %v1113_v23 = vld [vmem:[%s18563_s1 + $0x60] sm:$0xff]  ;;  %v1115_v39 = vld [vmem:[%s18563_s1 + $0x70] sm:$0xff] }
  0x21   : > { %211 = vst.msk [vmem:[#allocation2 + $0x130] sm:$0x3] %vm174_vm1, %v11586_v0  ;;  %214 = vst.msk [vmem:[#allocation2 + $0x148] sm:$0x3] %vm174_vm1, %v11586_v0  ;;  %9556 = vmatprep.subr.bf16.mxu0 %v18566_v4  ;;  %v308_v8 = vld [vmem:[%s11864_s26 + $0xd8] sm:$0xff] }
  0x22   : > { %212 = vst.msk [vmem:[#allocation2 + $0x138] sm:$0xff] %vm171_vm0, %v11586_v0  ;;  %213 = vst.msk [vmem:[#allocation2 + $0x140] sm:$0xff] %vm171_vm0, %v11586_v0 }
  0x23   : > { %215 = vst.msk [vmem:[#allocation2 + $0x150] sm:$0xff] %vm171_vm0, %v11586_v0  ;;  %216 = vst.msk [vmem:[#allocation2 + $0x158] sm:$0xff] %vm171_vm0, %v11586_v0 }
  0x24   : > { %217 = vst.msk [vmem:[#allocation2 + $0x160] sm:$0x3] %vm174_vm1, %v11586_v0  ;;  %220 = vst.msk [vmem:[#allocation2 + $0x178] sm:$0x3] %vm174_vm1, %v11586_v0  ;;  %9558 = vmatpush1.bf16.msra.mxu0 %v9557_v21 }
  0x25   : > { %218 = vst.msk [vmem:[#allocation2 + $0x168] sm:$0xff] %vm171_vm0, %v11586_v0  ;;  %219 = vst.msk [vmem:[#allocation2 + $0x170] sm:$0xff] %vm171_vm0, %v11586_v0  ;;  %9559 = vmatprep.subr.bf16.mxu0 %v18566_v4 }
  0x26   : > { %221 = vst.msk [vmem:[#allocation2 + $0x180] sm:$0xff] %vm171_vm0, %v11586_v0  ;;  %222 = vst.msk [vmem:[#allocation2 + $0x188] sm:$0xff] %vm171_vm0, %v11586_v0 }
  0x27   : > { %223 = vst.msk [vmem:[#allocation2 + $0x190] sm:$0x3] %vm174_vm1, %v11586_v0  ;;  %226 = vst.msk [vmem:[#allocation2 + $0x1a8] sm:$0x3] %vm174_vm1, %v11586_v0 }
  0x28   : > { %224 = vst.msk [vmem:[#allocation2 + $0x198] sm:$0xff] %vm171_vm0, %v11586_v0  ;;  %225 = vst.msk [vmem:[#allocation2 + $0x1a0] sm:$0xff] %vm171_vm0, %v11586_v0 }
  0x29   : > { %227 = vst.msk [vmem:[#allocation3] sm:$0xff] %vm171_vm0, %v11586_v0  ;;  %228 = vst.msk [vmem:[#allocation3 + $0x8] sm:$0xff] %vm171_vm0, %v11586_v0 }
  0x2a   : > { %229 = vst.msk [vmem:[#allocation3 + $0x10] sm:$0x3] %vm174_vm1, %v11586_v0  ;;  %232 = vst.msk [vmem:[#allocation3 + $0x28] sm:$0x3] %vm174_vm1, %v11586_v0 }
  0x2b   : > { %230 = vst.msk [vmem:[#allocation3 + $0x18] sm:$0xff] %vm171_vm0, %v11586_v0  ;;  %231 = vst.msk [vmem:[#allocation3 + $0x20] sm:$0xff] %vm171_vm0, %v11586_v0 }
  0x2c   : > { %233 = vst.msk [vmem:[#allocation3 + $0x30] sm:$0xff] %vm171_vm0, %v11586_v0  ;;  %234 = vst.msk [vmem:[#allocation3 + $0x38] sm:$0xff] %vm171_vm0, %v11586_v0 }
  0x2d   : > { %235 = vst.msk [vmem:[#allocation3 + $0x40] sm:$0x3] %vm174_vm1, %v11586_v0  ;;  %238 = vst.msk [vmem:[#allocation3 + $0x58] sm:$0x3] %vm174_vm1, %v11586_v0 }
  0x2e   : > { %236 = vst.msk [vmem:[#allocation3 + $0x48] sm:$0xff] %vm171_vm0, %v11586_v0  ;;  %237 = vst.msk [vmem:[#allocation3 + $0x50] sm:$0xff] %vm171_vm0, %v11586_v0 }
  0x2f   : > { %239 = vst.msk [vmem:[#allocation3 + $0x60] sm:$0xff] %vm171_vm0, %v11586_v0  ;;  %240 = vst.msk [vmem:[#allocation3 + $0x68] sm:$0xff] %vm171_vm0, %v11586_v0 }
  0x30   : > { %241 = vst.msk [vmem:[#allocation3 + $0x70] sm:$0x3] %vm174_vm1, %v11586_v0  ;;  %244 = vst.msk [vmem:[#allocation3 + $0x88] sm:$0x3] %vm174_vm1, %v11586_v0 }
  0x31   : > { %242 = vst.msk [vmem:[#allocation3 + $0x78] sm:$0xff] %vm171_vm0, %v11586_v0  ;;  %243 = vst.msk [vmem:[#allocation3 + $0x80] sm:$0xff] %vm171_vm0, %v11586_v0 }
  0x32   : > { %245 = vst.msk [vmem:[#allocation3 + $0x90] sm:$0xff] %vm171_vm0, %v11586_v0  ;;  %246 = vst.msk [vmem:[#allocation3 + $0x98] sm:$0xff] %vm171_vm0, %v11586_v0 }
  0x33   : > { %247 = vst.msk [vmem:[#allocation3 + $0xa0] sm:$0x3] %vm174_vm1, %v11586_v0  ;;  %250 = vst.msk [vmem:[#allocation3 + $0xb8] sm:$0x3] %vm174_vm1, %v11586_v0 }
  0x34   : > { %248 = vst.msk [vmem:[#allocation3 + $0xa8] sm:$0xff] %vm171_vm0, %v11586_v0  ;;  %249 = vst.msk [vmem:[#allocation3 + $0xb0] sm:$0xff] %vm171_vm0, %v11586_v0 }
  0x35   : > { %251 = vst.msk [vmem:[#allocation3 + $0xc0] sm:$0xff] %vm171_vm0, %v11586_v0  ;;  %252 = vst.msk [vmem:[#allocation3 + $0xc8] sm:$0xff] %vm171_vm0, %v11586_v0 }
  0x36   : > { %253 = vst.msk [vmem:[#allocation3 + $0xd0] sm:$0x3] %vm174_vm1, %v11586_v0  ;;  %256 = vst.msk [vmem:[#allocation3 + $0xe8] sm:$0x3] %vm174_vm1, %v11586_v0 }
  0x37   : > { %254 = vst.msk [vmem:[#allocation3 + $0xd8] sm:$0xff] %vm171_vm0, %v11586_v0  ;;  %255 = vst.msk [vmem:[#allocation3 + $0xe0] sm:$0xff] %vm171_vm0, %v11586_v0 }
  0x38   : > { %257 = vst.msk [vmem:[#allocation3 + $0xf0] sm:$0xff] %vm171_vm0, %v11586_v0  ;;  %258 = vst.msk [vmem:[#allocation3 + $0xf8] sm:$0xff] %vm171_vm0, %v11586_v0 }
  0x39   : > { %259 = vst.msk [vmem:[#allocation3 + $0x100] sm:$0x3] %vm174_vm1, %v11586_v0  ;;  %262 = vst.msk [vmem:[#allocation3 + $0x118] sm:$0x3] %vm174_vm1, %v11586_v0 }
  0x3a   : > { %260 = vst.msk [vmem:[#allocation3 + $0x108] sm:$0xff] %vm171_vm0, %v11586_v0  ;;  %261 = vst.msk [vmem:[#allocation3 + $0x110] sm:$0xff] %vm171_vm0, %v11586_v0 }
  0x3b   : > { %263 = vst.msk [vmem:[#allocation3 + $0x120] sm:$0xff] %vm171_vm0, %v11586_v0  ;;  %264 = vst.msk [vmem:[#allocation3 + $0x128] sm:$0xff] %vm171_vm0, %v11586_v0 }
  0x3c   : > { %265 = vst.msk [vmem:[#allocation3 + $0x130] sm:$0x3] %vm174_vm1, %v11586_v0  ;;  %268 = vst.msk [vmem:[#allocation3 + $0x148] sm:$0x3] %vm174_vm1, %v11586_v0 }
  0x3d   : > { %266 = vst.msk [vmem:[#allocation3 + $0x138] sm:$0xff] %vm171_vm0, %v11586_v0  ;;  %267 = vst.msk [vmem:[#allocation3 + $0x140] sm:$0xff] %vm171_vm0, %v11586_v0 }
  0x3e   : > { %269 = vst.msk [vmem:[#allocation3 + $0x150] sm:$0xff] %vm171_vm0, %v11586_v0  ;;  %270 = vst.msk [vmem:[#allocation3 + $0x158] sm:$0xff] %vm171_vm0, %v11586_v0 }
  0x3f   : > { %271 = vst.msk [vmem:[#allocation3 + $0x160] sm:$0x3] %vm174_vm1, %v11586_v0  ;;  %274 = vst.msk [vmem:[#allocation3 + $0x178] sm:$0x3] %vm174_vm1, %v11586_v0 }
  0x40   : > { %272 = vst.msk [vmem:[#allocation3 + $0x168] sm:$0xff] %vm171_vm0, %v11586_v0  ;;  %273 = vst.msk [vmem:[#allocation3 + $0x170] sm:$0xff] %vm171_vm0, %v11586_v0 }
  0x41   : > { %275 = vst.msk [vmem:[#allocation3 + $0x180] sm:$0xff] %vm171_vm0, %v11586_v0  ;;  %276 = vst.msk [vmem:[#allocation3 + $0x188] sm:$0xff] %vm171_vm0, %v11586_v0 }
  0x42   : > { %277 = vst.msk [vmem:[#allocation3 + $0x190] sm:$0x3] %vm174_vm1, %v11586_v0  ;;  %280 = vst.msk [vmem:[#allocation3 + $0x1a8] sm:$0x3] %vm174_vm1, %v11586_v0 }
  0x43   : > { %278 = vst.msk [vmem:[#allocation3 + $0x198] sm:$0xff] %vm171_vm0, %v11586_v0  ;;  %279 = vst.msk [vmem:[#allocation3 + $0x1a0] sm:$0xff] %vm171_vm0, %v11586_v0 }
  0x44   : > { %315 = vst.msk [vmem:[#allocation2 + $0x19] sm:$0xff] %vm314_vm2, %v281_v10  ;;  %316 = vst.msk [vmem:[#allocation2 + $0x21] sm:$0xff] %vm314_vm2, %v282_v11 }
  0x45   : > { %317 = vst.msk [vmem:[#allocation2 + $0x31] sm:$0xff] %vm314_vm2, %v283_v12  ;;  %318 = vst.msk [vmem:[#allocation2 + $0x39] sm:$0xff] %vm314_vm2, %v284_v13 }
  0x46   : > { %319 = vst.msk [vmem:[#allocation2 + $0x49] sm:$0xff] %vm314_vm2, %v285_v14  ;;  %320 = vst.msk [vmem:[#allocation2 + $0x51] sm:$0xff] %vm314_vm2, %v286_v15 }
  0x47   : > { %321 = vst.msk [vmem:[#allocation2 + $0x61] sm:$0xff] %vm314_vm2, %v287_v24  ;;  %322 = vst.msk [vmem:[#allocation2 + $0x69] sm:$0xff] %vm314_vm2, %v288_v25  ;;  %v1114_v24 = vld [vmem:[%s18563_s1 + $0x68] sm:$0xff] }
  0x48   : > { %323 = vst.msk [vmem:[#allocation2 + $0x79] sm:$0xff] %vm314_vm2, %v289_v26  ;;  %324 = vst.msk [vmem:[#allocation2 + $0x81] sm:$0xff] %vm314_vm2, %v290_v28  ;;  %v9560_v35 = vpack.c.bf16 %v1114_v24, %v1113_v23 }
  0x49   : > { %325 = vst.msk [vmem:[#allocation2 + $0x91] sm:$0xff] %vm314_vm2, %v291_v29  ;;  %326 = vst.msk [vmem:[#allocation2 + $0x99] sm:$0xff] %vm314_vm2, %v292_v30  ;;  %v302_v30 = vld [vmem:[%s11864_s26 + $0xa8] sm:$0xff] }
  0x4a   : > { %327 = vst.msk [vmem:[#allocation2 + $0xa9] sm:$0xff] %vm314_vm2, %v293_v31  ;;  %328 = vst.msk [vmem:[#allocation2 + $0xb1] sm:$0xff] %vm314_vm2, %v294_v32  ;;  %9561 = vmatpush1.bf16.msra.mxu0 %v9560_v35 }
  0x4b   : > { %329 = vst.msk [vmem:[#allocation2 + $0xc1] sm:$0xff] %vm314_vm2, %v295_v33  ;;  %330 = vst.msk [vmem:[#allocation2 + $0xc9] sm:$0xff] %vm314_vm2, %v296_v37  ;;  %v11942_v44 = vld [vmem:[#allocation2 + $0x18] sm:$0xff]  ;;  %v11944_v45 = vld [vmem:[#allocation2 + $0x20] sm:$0xff]  ;;  %9562 = vmatprep.subr.bf16.mxu0 %v18566_v4 }
  0x4c   : > { %331 = vst.msk [vmem:[#allocation2 + $0xd9] sm:$0xff] %vm314_vm2, %v297_v38  ;;  %332 = vst.msk [vmem:[#allocation2 + $0xe1] sm:$0xff] %vm314_vm2, %v298_v40  ;;  %v11947_v47 = vld [vmem:[#allocation2 + $0x30] sm:$0xff]  ;;  %v10606_v48 = vpack.i.bf16 %v452_v36, %v11942_v44  ;;  %v455_v49 = vrot.slane %v11942_v44, 1  ;;  %v456_v50 = vrot.slane %v11944_v45, 1  ;;  %v11957_v52 = vld [vmem:[#allocation2 + $0x38] sm:$0xff]  ;;  %v10611_v60 = vpack.i.bf16 %v454_v46, %v11944_v45 }
  0x4d   : > { %333 = vst.msk [vmem:[#allocation2 + $0xf1] sm:$0xff] %vm314_vm2, %v299_v41  ;;  %334 = vst.msk [vmem:[#allocation2 + $0xf9] sm:$0xff] %vm314_vm2, %v300_v42  ;;  %v11955_v51 = vld [vmem:[#allocation2 + $0x28] sm:$0x3]  ;;  %v460_v55 = vrot.slane %v11947_v47, 1  ;;  %v461_v56 = vrot.slane %v11957_v52, 1 }
  0x4e   : > { %335 = vst.msk [vmem:[#allocation2 + $0x109] sm:$0xff] %vm314_vm2, %v301_v43  ;;  %v11959_v53 = vld [vmem:[#allocation2 + $0x48] sm:$0xff]  ;;  %v458_v54 = vrot.slane %v11955_v51, 1  ;;  %v11964_v57 = vld [vmem:[#allocation2 + $0x40] sm:$0x3]  ;;  %v11966_v58 = vld [vmem:[#allocation2 + $0x50] sm:$0xff]  ;;  %10607 = vrot.lane.b32.xlu0 %v10606_v48, %s11588_s14  ;;  %v11971_v61 = vsel %vm449_vm3, %v455_v49, %v456_v50 }
  0x4f   : > { %18840 = vst [vmem:[#allocation4_spill] sm:$0xff] %v11971_v61  ;;  %v463_v62 = vrot.slane %v11964_v57, 1  ;;  %v465_v63 = vrot.slane %v11959_v53, 1  ;;  %v10616_v0 = vpack.i.bf16 %v11971_v61, %v11947_v47  ;;  %v11982_v2 = vsel %vm449_vm3, %v460_v55, %v461_v56  ;;  %v11985_v5 = vld [vmem:[#allocation2 + $0x58] sm:$0x3]  ;;  %v11987_v6 = vld [vmem:[#allocation2 + $0x68] sm:$0xff] }
  0x50   : > { %v11979_v1 = vsel %vm449_vm3, %v456_v50, %v458_v54  ;;  %18842 = vst [vmem:[#allocation6_spill] sm:$0xff] %v11982_v2  ;;  %v466_v3 = vrot.slane %v11966_v58, 1  ;;  %v10626_v10 = vpack.i.bf16 %v11982_v2, %v11959_v53  ;;  %v12004_v12 = vld [vmem:[#allocation2 + $0x60] sm:$0xff]  ;;  %v468_v13 = vrot.slane %v11985_v5, 1  ;;  %v12013_v17 = vld [vmem:[#allocation2 + $0x70] sm:$0x3] }
  0x51   : > { %18841 = vst [vmem:[#allocation5_spill] sm:$0xff] %v11979_v1  ;;  %10617 = vrot.lane.b32.xlu1 %v10616_v0, %s11588_s14  ;;  %v10621_v9 = vpack.i.bf16 %v11979_v1, %v11957_v52  ;;  %v12002_v11 = vsel %vm449_vm3, %v461_v56, %v463_v62  ;;  %v470_v15 = vrot.slane %v12004_v12, 1  ;;  %v471_v16 = vrot.slane %v11987_v6, 1  ;;  %v12015_v22 = vld [vmem:[#allocation2 + $0x80] sm:$0xff]  ;;  %v12032_v28 = vld [vmem:[#allocation2 + $0x78] sm:$0xff]  ;;  %336 = vst.msk [vmem:[#allocation2 + $0x111] sm:$0xff] %vm314_vm2, %v302_v30 }
  0x52   : > { %10612 = vrot.lane.b32.xlu0 %v10611_v60, %s11588_s14  ;;  %18843 = vst [vmem:[#allocation7_spill] sm:$0xff] %v12002_v11  ;;  %v12009_v14 = vsel %vm449_vm3, %v465_v63, %v466_v3  ;;  %v10631_v25 = vpack.i.bf16 %v12002_v11, %v11966_v58  ;;  %v12030_v27 = vsel %vm449_vm3, %v466_v3, %v468_v13  ;;  %v473_v29 = vrot.slane %v12013_v17, 1  ;;  %v12041_v34 = vld [vmem:[#allocation2 + $0x88] sm:$0x3]  ;;  %v12044_v36 = vld [vmem:[#allocation2 + $0x98] sm:$0xff]  ;;  %v303_v37 = vld [vmem:[%s11864_s26 + $0xb0] sm:$0xff] }
  0x53   : > { %18844 = vst [vmem:[#allocation8_spill] sm:$0xff] %v12009_v14  ;;  %v10636_v26 = vpack.i.bf16 %v12009_v14, %v12004_v12  ;;  %18845 = vst [vmem:[#allocation9_spill] sm:$0xff] %v12030_v27  ;;  %v12037_v31 = vsel %vm449_vm3, %v470_v15, %v471_v16  ;;  %v475_v32 = vrot.slane %v12032_v28, 1  ;;  %v476_v33 = vrot.slane %v12015_v22, 1  ;;  %v304_v40 = vld [vmem:[%s11864_s26 + $0xb8] sm:$0xff]  ;;  %v12062_v43 = vld [vmem:[#allocation2 + $0x90] sm:$0xff] }
  0x54   : > { %18846 = vst [vmem:[#allocation10_spill] sm:$0xff] %v12037_v31  ;;  %v10641_v38 = vpack.i.bf16 %v12030_v27, %v11987_v6  ;;  %337 = vst.msk [vmem:[#allocation2 + $0x121] sm:$0xff] %vm314_vm2, %v303_v37  ;;  %v10646_v41 = vpack.i.bf16 %v12037_v31, %v12032_v28  ;;  %v12060_v42 = vsel %vm449_vm3, %v471_v16, %v473_v29  ;;  %v478_v46 = vrot.slane %v12041_v34, 1  ;;  %v1116_v48 = vld [vmem:[%s18563_s1 + $0x78] sm:$0xff]  ;;  %v305_v49 = vld [vmem:[%s11864_s26 + $0xc0] sm:$0xff] }
  0x55   : > { %10622 = vrot.lane.b32.xlu1 %v10621_v9, %s11588_s14  ;;  %18847 = vst [vmem:[#allocation11_spill] sm:$0xff] %v12060_v42  ;;  %338 = vst.msk [vmem:[#allocation2 + $0x129] sm:$0xff] %vm314_vm2, %v304_v40  ;;  %v12071_v50 = vsel %vm449_vm3, %v475_v32, %v476_v33  ;;  %v480_v54 = vrot.slane %v12062_v43, 1  ;;  %v481_v55 = vrot.slane %v12044_v36, 1  ;;  %v12075_v56 = vld [vmem:[#allocation2 + $0xa0] sm:$0x3]  ;;  %v10651_v3 = vpack.i.bf16 %v12060_v42, %v12015_v22 }
  0x56   : > { %10627 = vrot.lane.b32.xlu0 %v10626_v10, %s11588_s14  ;;  %18848 = vst [vmem:[#allocation12_spill] sm:$0xff] %v12071_v50  ;;  %v12077_v59 = vld [vmem:[#allocation2 + $0xb0] sm:$0xff]  ;;  %339 = vst.msk [vmem:[#allocation2 + $0x139] sm:$0xff] %vm314_vm2, %v305_v49  ;;  %v306_v60 = vld [vmem:[%s11864_s26 + $0xc8] sm:$0xff]  ;;  %v9563_v7 = vpack.c.bf16 %v1116_v48, %v1115_v39  ;;  %v10656_v9 = vpack.i.bf16 %v12071_v50, %v12062_v43  ;;  %v12099_v10 = vsel %vm449_vm3, %v476_v33, %v478_v46 }
  0x57   : > { %v1117_v62 = vld [vmem:[%s18563_s1 + $0x80] sm:$0xff]  ;;  %v1118_v63 = vld [vmem:[%s18563_s1 + $0x88] sm:$0xff]  ;;  %340 = vst.msk [vmem:[#allocation2 + $0x141] sm:$0xff] %vm314_vm2, %v306_v60  ;;  %v307_v0 = vld [vmem:[%s11864_s26 + $0xd0] sm:$0xff]  ;;  %v483_v15 = vrot.slane %v12075_v56, 1  ;;  %v12106_v16 = vsel %vm449_vm3, %v480_v54, %v481_v55  ;;  %v486_v23 = vrot.slane %v12077_v59, 1  ;;  %v10661_v35 = vpack.i.bf16 %v12099_v10, %v12044_v36 }
  0x58   : > { %341 = vst.msk [vmem:[#allocation2 + $0x151] sm:$0xff] %vm314_vm2, %v307_v0  ;;  %18849 = vst [vmem:[#allocation13_spill] sm:$0xff] %v12099_v10  ;;  %v12101_v13 = vld [vmem:[#allocation2 + $0xa8] sm:$0xff]  ;;  %v12110_v24 = vld [vmem:[#allocation2 + $0xb8] sm:$0x3]  ;;  %9564 = vmatpush1.bf16.msra.mxu0 %v9563_v7 }
  0x59   : > { %10632 = vrot.lane.b32.xlu1 %v10631_v25, %s11588_s14  ;;  %342 = vst.msk [vmem:[#allocation2 + $0x159] sm:$0xff] %vm314_vm2, %v308_v8  ;;  %18850 = vst [vmem:[#allocation14_spill] sm:$0xff] %v12106_v16  ;;  %v485_v21 = vrot.slane %v12101_v13, 1  ;;  %v12112_v25 = vld [vmem:[#allocation2 + $0xc8] sm:$0xff]  ;;  %v309_v29 = vld [vmem:[%s11864_s26 + $0xe0] sm:$0xff]  ;;  %9565 = vmatprep.subr.bf16.mxu0 %v18566_v4  ;;  %v10666_v37 = vpack.i.bf16 %v12106_v16, %v12101_v13  ;;  %v488_v40 = vrot.slane %v12110_v24, 1 }
  0x5a   : > { %10637 = vrot.lane.b32.xlu0 %v10636_v26, %s11588_s14  ;;  %v9566_v26 = vpack.c.bf16 %v1118_v63, %v1117_v62  ;;  %v1119_v30 = vld [vmem:[%s18563_s1 + $0x90] sm:$0xff]  ;;  %v1120_v32 = vld [vmem:[%s18563_s1 + $0x98] sm:$0xff]  ;;  %343 = vst.msk [vmem:[#allocation2 + $0x169] sm:$0xff] %vm314_vm2, %v309_v29  ;;  %v310_v33 = vld [vmem:[%s11864_s26 + $0xe8] sm:$0xff]  ;;  %v491_v54 = vrot.slane %v12112_v25, 1 }
  0x5b   : > { %344 = vst.msk [vmem:[#allocation2 + $0x171] sm:$0xff] %vm314_vm2, %v310_v33  ;;  %v12134_v39 = vld [vmem:[#allocation2 + $0xc0] sm:$0xff]  ;;  %v312_v46 = vld [vmem:[%s11864_s26 + $0xf8] sm:$0xff]  ;;  %v12140_v48 = vsel %vm449_vm3, %v485_v21, %v486_v23  ;;  %v12144_v60 = vld [vmem:[#allocation2 + $0xd0] sm:$0x3]  ;;  %v9569_v62 = vpack.c.bf16 %v1120_v32, %v1119_v30  ;;  %v12164_v8 = vsel %vm449_vm3, %v486_v23, %v488_v40 }
  0x5c   : > { %18852 = vst [vmem:[#allocation16_spill] sm:$0xff] %v12140_v48  ;;  %v490_v49 = vrot.slane %v12134_v39, 1  ;;  %9567 = vmatpush1.bf16.msra.mxu0 %v9566_v26  ;;  %346 = vst.msk [vmem:[#allocation2 + $0x189] sm:$0xff] %vm314_vm2, %v312_v46  ;;  %v1121_v63 = vld [vmem:[%s18563_s1 + $0xa0] sm:$0xff]  ;;  %v1122_v0 = vld [vmem:[%s18563_s1 + $0xa8] sm:$0xff]  ;;  %v10676_v7 = vpack.i.bf16 %v12140_v48, %v12134_v39  ;;  %v10681_v40 = vpack.i.bf16 %v12164_v8, %v12112_v25 }
  0x5d   : > { %10642 = vrot.lane.b32.xlu1 %v10641_v38, %s11588_s14  ;;  %v12132_v38 = vsel %vm449_vm3, %v481_v55, %v483_v15  ;;  %v12148_v55 = vld [vmem:[#allocation2 + $0xe0] sm:$0xff]  ;;  %9568 = vmatprep.subr.bf16.mxu0 %v18566_v4  ;;  %18853 = vst [vmem:[#allocation17_spill] sm:$0xff] %v12164_v8  ;;  %v493_v15 = vrot.slane %v12144_v60, 1  ;;  %v12174_v30 = vld [vmem:[#allocation2 + $0xe8] sm:$0x3]  ;;  %v9572_v32 = vpack.c.bf16 %v1122_v0, %v1121_v63  ;;  %v12176_v33 = vld [vmem:[#allocation2 + $0xf8] sm:$0xff] }
  0x5e   : > { %10647 = vrot.lane.b32.xlu0 %v10646_v41, %s11588_s14  ;;  %18851 = vst [vmem:[#allocation15_spill] sm:$0xff] %v12132_v38  ;;  %v311_v41 = vld [vmem:[%s11864_s26 + $0xf0] sm:$0xff]  ;;  %v12170_v21 = vsel %vm449_vm3, %v490_v49, %v491_v54  ;;  %v496_v29 = vrot.slane %v12148_v55, 1  ;;  %v18572_v63 = vrot.slane %v11957_v52, 2  ;;  %v12239_v16 = vld [vmem:[#allocation2 + $0x118] sm:$0x3] }
  0x5f   : > { %345 = vst.msk [vmem:[#allocation2 + $0x181] sm:$0xff] %vm314_vm2, %v311_v41  ;;  %18854 = vst [vmem:[#allocation18_spill] sm:$0xff] %v12170_v21  ;;  %v1123_v23 = vld [vmem:[%s18563_s1 + $0xb0] sm:$0xff]  ;;  %v12193_v46 = vsel %vm449_vm3, %v491_v54, %v493_v15  ;;  %v18857_v54 = vmov 0.0|0.0   ;;  %v1125_v15 = vld [vmem:[%s18563_s1 + $0xc0] sm:$0xff] }
  0x60   : > { %9570 = vmatpush1.bf16.msra.mxu0 %v9569_v62  ;;  %18855 = vst [vmem:[#allocation19_spill] sm:$0xff] %v12193_v46  ;;  %v12195_v49 = vld [vmem:[#allocation2 + $0xf0] sm:$0xff]  ;;  %v498_v62 = vrot.slane %v12174_v30, 1  ;;  %v12241_v10 = vld [vmem:[#allocation2 + $0x128] sm:$0xff]  ;;  %v12269_v31 = vld [vmem:[#allocation2 + $0x140] sm:$0xff] }
  0x61   : > { %10652 = vrot.lane.b32.xlu1 %v10651_v3, %s11588_s14  ;;  %v10671_v3 = vpack.i.bf16 %v12132_v38, %v12077_v59  ;;  %9571 = vmatprep.subr.bf16.mxu0 %v18566_v4  ;;  %v501_v4 = vrot.slane %v12176_v33, 1  ;;  %v12206_v8 = vld [vmem:[#allocation2 + $0x110] sm:$0xff]  ;;  %v12231_v38 = vld [vmem:[#allocation2 + $0x108] sm:$0xff]  ;;  %v511_v42 = vrot.slane %v12241_v10, 1  ;;  %v516_v14 = vrot.slane %v12269_v31, 1  ;;  %v12297_v11 = vld [vmem:[#allocation2 + $0x158] sm:$0xff] }
  0x62   : > { %10657 = vrot.lane.b32.xlu0 %v10656_v9, %s11588_s14  ;;  %v12166_v9 = vld [vmem:[#allocation2 + $0xd8] sm:$0xff] }
  0x63   : > { %v495_v26 = vrot.slane %v12166_v9, 1  ;;  %v10686_v41 = vpack.i.bf16 %v12170_v21, %v12166_v9  ;;  %v12345_v61 = vld [vmem:[#allocation2 + $0x178] sm:$0x3] }
  0x64   : > { %9573 = vmatpush1.bf16.msra.mxu0 %v9572_v32  ;;  %v10691_v32 = vpack.i.bf16 %v12193_v46, %v12148_v55  ;;  %v506_v46 = vrot.slane %v12206_v8, 1 }
  0x65   : > { %10662 = vrot.lane.b32.xlu1 %v10661_v35, %s11588_s14  ;;  %v1124_v35 = vld [vmem:[%s18563_s1 + $0xb8] sm:$0xff]  ;;  %v12200_v0 = vsel %vm449_vm3, %v495_v26, %v496_v29  ;;  %9574 = vmatprep.subr.bf16.mxu0 %v18857_v54  ;;  %v1126_v26 = vld [vmem:[%s18563_s1 + $0xc8] sm:$0xff] }
  0x66   : > { %10667 = vrot.lane.b32.xlu0 %v10666_v37, %s11588_s14  ;;  %v637_v37 = vrot.slane %v11947_v47, 2  ;;  %18856 = vst [vmem:[#allocation20_spill] sm:$0xff] %v12200_v0  ;;  %v9575_v21 = vpack.c.bf16 %v1124_v35, %v1123_v23  ;;  %v10696_v23 = vpack.i.bf16 %v12200_v0, %v12195_v49  ;;  %v12229_v35 = vsel %vm449_vm3, %v496_v29, %v498_v62  ;;  %v1127_v29 = vld [vmem:[%s18563_s1 + $0xd0] sm:$0xff]  ;;  %v1128_v62 = vld [vmem:[%s18563_s1 + $0xd8] sm:$0xff] }
  0x67   : > { %18858 = vst [vmem:[#allocation21_spill] sm:$0xff] %v12229_v35  ;;  %v508_v0 = vrot.slane %v12239_v16, 1 }
  0x68   : > { %v12218_v48 = vsel %vm626_vm4, %v637_v37, %v18572_v63  ;;  %v505_v63 = vrot.slane %v12231_v38, 1  ;;  %9576 = vmatpush1.bf16.msra.mxu0 %v9575_v21 }
  0x69   : > { %10672 = vrot.lane.b32.xlu1 %v10671_v3, %s11588_s14  ;;  %v500_v3 = vrot.slane %v12195_v49, 1  ;;  %9237 = vmatprep.mubr.msk.f32.mxu1 %vm171_vm0, %v12218_v48 }
  0x6a   : > { %10677 = vrot.lane.b32.xlu0 %v10676_v7, %s11588_s14  ;;  %v12204_v7 = vld [vmem:[#allocation2 + $0x100] sm:$0x3]  ;;  %9577 = vmatprep.subr.bf16.mxu0 %v18857_v54  ;;  %v12263_v50 = vsel %vm449_vm3, %v505_v63, %v506_v46  ;;  %v1130_v63 = vld [vmem:[%s18563_s1 + $0xe8] sm:$0xff] }
  0x6b   : > { %v503_v37 = vrot.slane %v12204_v7, 1  ;;  %18861 = vst [vmem:[#allocation24_spill] sm:$0xff] %v12263_v50 }
  0x6d   : > { %10682 = vrot.lane.b32.xlu1 %v10681_v40, %s11588_s14  ;;  %v12235_v40 = vsel %vm449_vm3, %v500_v3, %v501_v4  ;;  %v10701_v3 = vpack.i.bf16 %v12229_v35, %v12176_v33  ;;  %v12267_v35 = vld [vmem:[#allocation2 + $0x130] sm:$0x3] }
  0x6e   : > { %10687 = vrot.lane.b32.xlu0 %v10686_v41, %s11588_s14  ;;  %18859 = vst [vmem:[#allocation22_spill] sm:$0xff] %v12235_v40  ;;  %v9578_v41 = vpack.c.bf16 %v1126_v26, %v1125_v15  ;;  %v10706_v21 = vpack.i.bf16 %v12235_v40, %v12231_v38  ;;  %v12257_v15 = vsel %vm449_vm3, %v501_v4, %v503_v37  ;;  %v12259_v26 = vld [vmem:[#allocation2 + $0x120] sm:$0xff]  ;;  %v513_v40 = vrot.slane %v12267_v35, 1 }
  0x6f   : > { %18860 = vst [vmem:[#allocation23_spill] sm:$0xff] %v12257_v15  ;;  %v1129_v4 = vld [vmem:[%s18563_s1 + $0xe0] sm:$0xff]  ;;  %v10711_v37 = vpack.i.bf16 %v12257_v15, %v12206_v8  ;;  %v12295_v15 = vld [vmem:[#allocation2 + $0x148] sm:$0x3] }
  0x70   : > { %9579 = vmatpush1.bf16.msra.mxu0 %v9578_v41  ;;  %v10716_v41 = vpack.i.bf16 %v12263_v50, %v12259_v26  ;;  %v518_v50 = vrot.slane %v12295_v15, 1 }
  0x71   : > { %10692 = vrot.lane.b32.xlu1 %v10691_v32, %s11588_s14  ;;  %v510_v32 = vrot.slane %v12259_v26, 1  ;;  %9580 = vmatprep.subr.bf16.mxu0 %v18857_v54 }
  0x72   : > { %10697 = vrot.lane.b32.xlu0 %v10696_v23, %s11588_s14  ;;  %v9581_v23 = vpack.c.bf16 %v1128_v62, %v1127_v29  ;;  %v12285_v29 = vsel %vm449_vm3, %v506_v46, %v508_v0  ;;  %v12287_v62 = vld [vmem:[#allocation2 + $0x138] sm:$0xff]  ;;  %v1131_v46 = vld [vmem:[%s18563_s1 + $0xf0] sm:$0xff] }
  0x73   : > { %18862 = vst [vmem:[#allocation25_spill] sm:$0xff] %v12285_v29  ;;  %18863 = vst [vmem:[#allocation26_spill] sm:$0xff] %v12287_v62  ;;  %v12291_v27 = vsel %vm449_vm3, %v510_v32, %v511_v42  ;;  %v1132_v0 = vld [vmem:[%s18563_s1 + $0xf8] sm:$0xff]  ;;  %v10721_v32 = vpack.i.bf16 %v12285_v29, %v12241_v10  ;;  %v521_v29 = vrot.slane %v12297_v11, 1 }
  0x74   : > { %18864 = vst [vmem:[#allocation27_spill] sm:$0xff] %v12291_v27  ;;  %9582 = vmatpush1.bf16.msra.mxu0 %v9581_v23  ;;  %v10726_v23 = vpack.i.bf16 %v12291_v27, %v12287_v62  ;;  %v9587_v1 = vpack.c.bf16 %v1132_v0, %v1131_v46  ;;  %v12326_v27 = vld [vmem:[#allocation2 + $0x170] sm:$0xff] }
  0x75   : > { %10702 = vrot.lane.b32.xlu1 %v10701_v3, %s11588_s14  ;;  %v515_v3 = vrot.slane %v12287_v62, 1  ;;  %9583 = vmatprep.subr.bf16.mxu0 %v18857_v54 }
  0x76   : > { %10707 = vrot.lane.b32.xlu0 %v10706_v21, %s11588_s14  ;;  %v9584_v21 = vpack.c.bf16 %v1130_v63, %v1129_v4  ;;  %v12313_v4 = vsel %vm449_vm3, %v511_v42, %v513_v40  ;;  %v12315_v63 = vld [vmem:[#allocation2 + $0x150] sm:$0xff] }
  0x77   : > { %18865 = vst [vmem:[#allocation28_spill] sm:$0xff] %v12313_v4  ;;  %18866 = vst [vmem:[#allocation29_spill] sm:$0xff] %v12315_v63  ;;  %v12319_v2 = vsel %vm449_vm3, %v515_v3, %v516_v14  ;;  %v10731_v42 = vpack.i.bf16 %v12313_v4, %v12269_v31  ;;  %v12335_v3 = vsel %vm449_vm3, %v516_v14, %v518_v50  ;;  %v526_v4 = vrot.slane %v12326_v27, 1 }
  0x78   : > { %18867 = vst [vmem:[#allocation30_spill] sm:$0xff] %v12319_v2  ;;  %9585 = vmatpush1.bf16.msra.mxu0 %v9584_v21  ;;  %v10736_v40 = vpack.i.bf16 %v12319_v2, %v12315_v63  ;;  %18868 = vst [vmem:[#allocation31_spill] sm:$0xff] %v12335_v3  ;;  %v12337_v21 = vld [vmem:[#allocation2 + $0x168] sm:$0xff]  ;;  %v10741_v14 = vpack.i.bf16 %v12335_v3, %v12297_v11 }
  0x79   : > { %10712 = vrot.lane.b32.xlu1 %v10711_v37, %s11588_s14  ;;  %v520_v37 = vrot.slane %v12315_v63, 1  ;;  %9586 = vmatprep.subr.bf16.mxu0 %v18857_v54  ;;  %18869 = vst [vmem:[#allocation32_spill] sm:$0xff] %v12337_v21 }
  0x7a   : > { %10717 = vrot.lane.b32.xlu0 %v10716_v41, %s11588_s14  ;;  %v12323_v41 = vld [vmem:[#allocation2 + $0x160] sm:$0x3] }
  0x7b   : > { %v523_v46 = vrot.slane %v12323_v41, 1  ;;  %v12341_v0 = vsel %vm449_vm3, %v520_v37, %v521_v29  ;;  %v12358_v37 = vld [vmem:[#allocation2 + $0x180] sm:$0xff] }
  0x7c   : > { %18870 = vst [vmem:[#allocation33_spill] sm:$0xff] %v12341_v0  ;;  %9588 = vmatpush1.bf16.msra.mxu0 %v9587_v1  ;;  %v10746_v50 = vpack.i.bf16 %v12341_v0, %v12337_v21  ;;  %v12369_v0 = vld [vmem:[#allocation2 + $0x188] sm:$0xff] }
  0x7d   : > { %10722 = vrot.lane.b32.xlu1 %v10721_v32, %s11588_s14  ;;  %v525_v32 = vrot.slane %v12337_v21, 1  ;;  %9589 = vmatprep.subr.bf16.mxu0 %v18857_v54  ;;  %v12355_v1 = vsel %vm449_vm3, %v521_v29, %v523_v46 }
  0x7e   : > { %10727 = vrot.lane.b32.xlu0 %v10726_v23, %s11588_s14  ;;  %18871 = vst [vmem:[#allocation34_spill] sm:$0xff] %v12355_v1  ;;  %v528_v23 = vrot.slane %v12345_v61, 1 }
  0x7f   : > { %v12361_v2 = vsel %vm449_vm3, %v525_v32, %v526_v4  ;;  %v632_v32 = vrot.slane %v11942_v44, 2 }
  0x80   : > { %18872 = vst [vmem:[#allocation35_spill] sm:$0xff] %v12361_v2  ;;  %v12372_v29 = vsel %vm449_vm3, %v526_v4, %v528_v23  ;;  %v640_v23 = vrot.slane %v11964_v57, 2  ;;  %v647_v57 = vrot.slane %v12004_v12, 2 }
  0x81   : > { %10732 = vrot.lane.b32.xlu1 %v10731_v42, %s11588_s14  ;;  %v10751_v42 = vpack.i.bf16 %v12355_v1, %v12326_v27  ;;  %18873 = vst [vmem:[#allocation36_spill] sm:$0xff] %v12372_v29  ;;  %v10761_v46 = vpack.i.bf16 %v12372_v29, %v12369_v0  ;;  %v12567_v1 = vld [vmem:[#allocation2 + $0x190] sm:$0x3] }
  0x82   : > { %10737 = vrot.lane.b32.xlu0 %v10736_v40, %s11588_s14  ;;  %v10756_v40 = vpack.i.bf16 %v12361_v2, %v12358_v37 }
  0x85   : > { %10742 = vrot.lane.b32.xlu1 %v10741_v14, %s11588_s14  ;;  %v633_v14 = vrot.slane %v11944_v45, 2 }
  0x86   : > { %10747 = vrot.lane.b32.xlu0 %v10746_v50, %s11588_s14  ;;  %v635_v50 = vrot.slane %v11955_v51, 2  ;;  %v643_v51 = vrot.slane %v11966_v58, 2  ;;  %v648_v58 = vrot.slane %v11987_v6, 2 }
  0x87   : > { %v12383_v2 = vsel %vm626_vm4, %v632_v32, %v633_v14  ;;  %v645_v32 = vrot.slane %v11985_v5, 2 }
  0x88   : > { %v12388_v4 = vsel %vm626_vm4, %v633_v14, %v635_v50  ;;  %v12417_v5 = vsel %vm626_vm4, %v647_v57, %v648_v58  ;;  %v660_v57 = vrot.slane %v12075_v56, 2 }
  0x89   : > { %10752 = vrot.lane.b32.xlu1 %v10751_v42, %s11588_s14  ;;  %v642_v42 = vrot.slane %v11959_v53, 2  ;;  %v12413_v50 = vsel %vm626_vm4, %v643_v51, %v645_v32  ;;  %v657_v32 = vrot.slane %v12062_v43, 2  ;;  %v663_v43 = vrot.slane %v12077_v59, 2 }
  0x8a   : > { %10757 = vrot.lane.b32.xlu0 %v10756_v40, %s11588_s14  ;;  %v18874_v40 = vrot.slane %v11957_v52, 2 }
  0x8b   : > { %v12404_v14 = vsel %vm626_vm4, %v642_v42, %v643_v51  ;;  %v652_v42 = vrot.slane %v12032_v28, 2  ;;  %v655_v51 = vrot.slane %v12041_v34, 2  ;;  %v658_v28 = vrot.slane %v12044_v36, 2 }
  0x8d   : > { %10762 = vrot.lane.b32.xlu1 %v10761_v46, %s11588_s14  ;;  %v12400_v46 = vsel %vm626_vm4, %v18874_v40, %v640_v23  ;;  %v650_v23 = vrot.slane %v12013_v17, 2  ;;  %v653_v40 = vrot.slane %v12015_v22, 2  ;;  %v12443_v34 = vsel %vm626_vm4, %v657_v32, %v658_v28 }
  0x8e   : > { %880 = vrot.lane.b32.xlu0 %v12383_v2, %s11588_s14  ;;  %v12452_v36 = vsel %vm626_vm4, %v658_v28, %v660_v57  ;;  %v675_v32 = vrot.slane %v12174_v30, 2  ;;  %v677_v28 = vrot.slane %v12195_v49, 2  ;;  %v683_v49 = vrot.slane %v12206_v8, 2 }
  0x8f   : > { %v12426_v6 = vsel %vm626_vm4, %v648_v58, %v650_v23  ;;  %v12430_v17 = vsel %vm626_vm4, %v652_v42, %v653_v40  ;;  %v12439_v22 = vsel %vm626_vm4, %v653_v40, %v655_v51  ;;  %v662_v58 = vrot.slane %v12101_v13, 2 }
  0x90   : > { %v665_v23 = vrot.slane %v12110_v24, 2  ;;  %v667_v42 = vrot.slane %v12134_v39, 2  ;;  %v668_v13 = vrot.slane %v12112_v25, 2  ;;  %v670_v40 = vrot.slane %v12144_v60, 2 }
  0x91   : > { %882 = vrot.lane.b32.xlu1 %v12388_v4, %s11588_s14  ;;  %v12456_v56 = vsel %vm626_vm4, %v662_v58, %v663_v43  ;;  %v672_v51 = vrot.slane %v12166_v9, 2  ;;  %v673_v39 = vrot.slane %v12148_v55, 2  ;;  %v678_v9 = vrot.slane %v12176_v33, 2  ;;  %v1165_v33 = vld [vmem:[%s18563_s1 + $0x200] sm:$0xff] }
  0x92   : > { %884 = vrot.lane.b32.xlu0 %v12218_v48, %s11588_s14  ;;  %v12465_v59 = vsel %vm626_vm4, %v663_v43, %v665_v23  ;;  %v12469_v24 = vsel %vm626_vm4, %v667_v42, %v668_v13  ;;  %v12478_v25 = vsel %vm626_vm4, %v668_v13, %v670_v40  ;;  %v680_v55 = vrot.slane %v12204_v7, 2  ;;  %v1166_v43 = vld [vmem:[%s18563_s1 + $0x208] sm:$0xff]  ;;  %v1167_v40 = vld [vmem:[%s18563_s1 + $0x210] sm:$0xff] }
  0x93   : > { %v12482_v60 = vsel %vm626_vm4, %v672_v51, %v673_v39  ;;  %v12492_v57 = vsel %vm626_vm4, %v673_v39, %v675_v32  ;;  %v12495_v30 = vsel %vm626_vm4, %v677_v28, %v678_v9  ;;  %v682_v58 = vrot.slane %v12231_v38, 2 }
  0x94   : > { %v12507_v7 = vsel %vm626_vm4, %v678_v9, %v680_v55  ;;  %v685_v23 = vrot.slane %v12239_v16, 2  ;;  %v687_v38 = vrot.slane %v12259_v26, 2  ;;  %v688_v8 = vrot.slane %v12241_v10, 2  ;;  %v1168_v16 = vld [vmem:[%s18563_s1 + $0x218] sm:$0xff] }
  0x95   : > { %886 = vrot.lane.b32.xlu1 %v12400_v46, %s11588_s14  ;;  %v9637_v42 = vpack.c.bf16 %v1166_v43, %v1165_v33  ;;  %v12516_v13 = vsel %vm626_vm4, %v682_v58, %v683_v49  ;;  %v690_v10 = vrot.slane %v12267_v35, 2  ;;  %v9641_v26 = vpack.c.bf16 %v1168_v16, %v1167_v40  ;;  %v12553_v43 = vld [vmem:[%s18563_s1 + $0x100] sm:$0xff] }
  0x96   : > { %888 = vrot.lane.b32.xlu0 %v12404_v14, %s11588_s14  ;;  %v12530_v51 = vsel %vm626_vm4, %v683_v49, %v685_v23  ;;  %v12533_v39 = vsel %vm626_vm4, %v687_v38, %v688_v8  ;;  %v692_v32 = vrot.slane %v12287_v62, 2  ;;  %v693_v28 = vrot.slane %v12269_v31, 2  ;;  %v1169_v49 = vld [vmem:[%s18563_s1 + $0x220] sm:$0xff]  ;;  %v1170_v23 = vld [vmem:[%s18563_s1 + $0x228] sm:$0xff] }
  0x97   : > { %9638 = vmatprep.subr.bf16.mxu1 %v9637_v42  ;;  %v702_v9 = vrot.slane %v12337_v21, 2  ;;  %v703_v35 = vrot.slane %v12326_v27, 2  ;;  %v838_v55 = vrot.slane %v12358_v37, 1  ;;  %v839_v58 = vrot.slane %v12369_v0, 1  ;;  %v1134_v38 = vld [vmem:[%s18563_s1 + $0x108] sm:$0xff] }
  0x98   : > { %9640 = vmatpush3.bf16.msra.mxu1 %v9637_v42  ;;  %v627_v31 = vrot.slane %v11892_v18, 2  ;;  %v628_v33 = vrot.slane %v11894_v19, 2  ;;  %v12556_v27 = vsel %vm626_vm4, %v688_v8, %v690_v10  ;;  %v695_v42 = vrot.slane %v12295_v15, 2  ;;  %v1171_v15 = vld [vmem:[%s18563_s1 + $0x230] sm:$0xff] }
  0x99   : > { %890 = vrot.lane.b32.xlu1 %v12413_v50, %s11588_s14  ;;  %9642 = vmatprep.subr.bf16.mxu1 %v9641_v26  ;;  %18875 = vst [vmem:[#allocation37_spill] sm:$0xff] %v12556_v27  ;;  %v697_v40 = vrot.slane %v12315_v63, 2  ;;  %v698_v16 = vrot.slane %v12297_v11, 2  ;;  %v9645_v29 = vpack.c.bf16 %v1170_v23, %v1169_v49  ;;  %v12570_v8 = vsel %vm626_vm4, %v692_v32, %v693_v28  ;;  %v1172_v32 = vld [vmem:[%s18563_s1 + $0x238] sm:$0xff] }
  0x9a   : > { %892 = vrot.lane.b32.xlu0 %v12417_v5, %s11588_s14  ;;  %18876 = vst [vmem:[#allocation38_spill] sm:$0xff] %v12570_v8  ;;  %v12575_v10 = vsel %vm626_vm4, %v702_v9, %v703_v35  ;;  %v705_v11 = vrot.slane %v12345_v61, 2  ;;  %v841_v9 = vrot.slane %v12567_v1, 1  ;;  %v629_v49 = vsel %vm626_vm4, %v627_v31, %v628_v33  ;;  %v12604_v31 = vld [vmem:[#allocation2 + $0x1a0] sm:$0xff] }
  0x9b   : > { %18877 = vst [vmem:[#allocation39_spill] sm:$0xff] %v12575_v10  ;;  %v630_v23 = vrot.slane %v11896_v20, 2  ;;  %v9649_v3 = vpack.c.bf16 %v1172_v32, %v1171_v15  ;;  %v12594_v61 = vsel %vm626_vm4, %v693_v28, %v695_v42  ;;  %v12597_v63 = vsel %vm626_vm4, %v697_v40, %v698_v16  ;;  %18879 = vst [vmem:[#allocation41_spill] sm:$0xff] %v12604_v31  ;;  %v1136_v28 = vld [vmem:[%s18563_s1 + $0x118] sm:$0xff] }
  0x9c   : > { %9644 = vmatpush3.bf16.msra.mxu1 %v9641_v26  ;;  %v12578_v26 = vsel %vm449_vm3, %v838_v55, %v839_v58  ;;  %v9590_v55 = vpack.c.bf16 %v1134_v38, %v12553_v43  ;;  %v700_v62 = vrot.slane %v12323_v41, 2  ;;  %v875_v41 = vrot.slane %v12358_v37, 2 }
  0x9d   : > { %894 = vrot.lane.b32.xlu1 %v12426_v6, %s11588_s14  ;;  %18878 = vst [vmem:[#allocation40_spill] sm:$0xff] %v12578_v26  ;;  %9646 = vmatprep.subr.bf16.mxu1 %v9645_v29  ;;  %v876_v38 = vrot.slane %v12369_v0, 2  ;;  %v12622_v42 = vsel %vm449_vm3, %v839_v58, %v841_v9  ;;  %v980_v15 = vrot.slane %v12604_v31, 1  ;;  %v631_v0 = vsel %vm626_vm4, %v628_v33, %v630_v23 }
  0x9e   : > { %896 = vrot.lane.b32.xlu0 %v12430_v17, %s11588_s14  ;;  %v12634_v9 = vsel %vm626_vm4, %v698_v16, %v700_v62  ;;  %v878_v23 = vrot.slane %v12567_v1, 2  ;;  %v1137_v1 = vld [vmem:[%s18563_s1 + $0x120] sm:$0xff] }
  0xa0   : > { %9648 = vmatpush3.bf16.msra.mxu1 %v9645_v29  ;;  %v1135_v29 = vld [vmem:[%s18563_s1 + $0x110] sm:$0xff] }
  0xa1   : > { %898 = vrot.lane.b32.xlu1 %v12439_v22, %s11588_s14  ;;  %9650 = vmatprep.subr.bf16.mxu1 %v9649_v3 }
  0xa2   : > { %900 = vrot.lane.b32.xlu0 %v12443_v34, %s11588_s14 }
  0xa4   : > { %9652 = vmatpush3.bf16.msra.mxu1 %v9649_v3 }
  0xa5   : > { %902 = vrot.lane.b32.xlu1 %v12452_v36, %s11588_s14  ;;  %9653 = vmatprep.subr.bf16.mxu1 %v18857_v54 }
  0xa6   : > { %904 = vrot.lane.b32.xlu0 %v12456_v56, %s11588_s14 }
  0xa7   : > { %9238 = vmatmul.mubr.msk.f32.vlgmr.msra.gmra.mrb[0].mxu1 %vm171_vm0, %v12400_v46 }
  0xa8   : > { %9240 = vmatprep.mubr.msk.f32.mxu1 %vm171_vm0, %v12404_v14 }
  0xa9   : > { %906 = vrot.lane.b32.xlu1 %v12465_v59, %s11588_s14 }
  0xaa   : > { %908 = vrot.lane.b32.xlu0 %v12469_v24, %s11588_s14 }
  0xab   : > { %9241 = vmatmul.mubr.msk.f32.gmra.mrb[2].mxu1 %vm171_vm0, %v12413_v50 }
  0xac   : > { %9243 = vmatprep.mubr.msk.f32.mxu1 %vm171_vm0, %v12417_v5 }
  0xad   : > { %910 = vrot.lane.b32.xlu1 %v12478_v25, %s11588_s14 }
  0xae   : > { %912 = vrot.lane.b32.xlu0 %v12482_v60, %s11588_s14 }
  0xaf   : > { %9244 = vmatmul.mubr.msk.f32.gmra.mrb[4].mxu1 %vm171_vm0, %v12426_v6 }
  0xb0   : > { %9246 = vmatprep.mubr.msk.f32.mxu1 %vm171_vm0, %v12430_v17 }
  0xb1   : > { %914 = vrot.lane.b32.xlu1 %v12492_v57, %s11588_s14 }
  0xb2   : > { %916 = vrot.lane.b32.xlu0 %v12495_v30, %s11588_s14 }
  0xb3   : > { %9247 = vmatmul.mubr.msk.f32.gmra.mrb[6].mxu1 %vm171_vm0, %v12439_v22 }
  0xb4   : > { %9249 = vmatprep.mubr.msk.f32.mxu1 %vm171_vm0, %v12443_v34 }
  0xb5   : > { %918 = vrot.lane.b32.xlu1 %v12507_v7, %s11588_s14 }
  0xb6   : > { %920 = vrot.lane.b32.xlu0 %v12516_v13, %s11588_s14 }
  0xb7   : > { %9250 = vmatmul.mubr.msk.f32.gmra.mrb[8].mxu1 %vm171_vm0, %v12452_v36 }
  0xb8   : > { %9252 = vmatprep.mubr.msk.f32.mxu1 %vm171_vm0, %v12456_v56 }
  0xb9   : > { %922 = vrot.lane.b32.xlu1 %v12530_v51, %s11588_s14 }
  0xba   : > { %924 = vrot.lane.b32.xlu0 %v12533_v39, %s11588_s14 }
  0xbb   : > { %9253 = vmatmul.mubr.msk.f32.gmra.mrb[10].mxu1 %vm171_vm0, %v12465_v59 }
  0xbc   : > { %9255 = vmatprep.mubr.msk.f32.mxu1 %vm171_vm0, %v12469_v24 }
  0xbd   : > { %926 = vrot.lane.b32.xlu1 %v12556_v27, %s11588_s14  ;;  %v12602_v27 = vld [vmem:[#allocation2 + $0x198] sm:$0xff] }
  0xbe   : > { %928 = vrot.lane.b32.xlu0 %v12570_v8, %s11588_s14  ;;  %v10766_v8 = vpack.i.bf16 %v12575_v10, %v12578_v26  ;;  %v979_v40 = vrot.slane %v12602_v27, 1  ;;  %v12631_v10 = vsel %vm626_vm4, %v875_v41, %v876_v38 }
  0xbf   : > { %9256 = vmatmul.mubr.msk.f32.gmra.mrb[12].mxu1 %vm171_vm0, %v12478_v25 }
  0xc0   : > { %v10608_v21 = vpop.permute.xlu0 %10607  ;;  %v981_v31 = vsel %vm449_vm3, %v979_v40, %v980_v15  ;;  %9258 = vmatprep.mubr.msk.f32.mxu1 %vm171_vm0, %v12482_v60 }
  0xc1   : > { %v10610_v43 = vunpack.i.h.bf16 %v10608_v21  ;;  %v10609_v20 = vunpack.i.l.bf16 %v10608_v21  ;;  %930 = vrot.lane.b32.xlu1 %v12594_v61, %s11588_s14  ;;  %v12619_v21 = vsel %vm626_vm4, %v703_v35, %v705_v11  ;;  %v9593_v11 = vpack.c.bf16 %v1136_v28, %v1135_v29 }
  0xc2   : > { %932 = vrot.lane.b32.xlu0 %v12597_v63, %s11588_s14  ;;  %v10771_v3 = vpack.i.bf16 %v12619_v21, %v12622_v42 }
  0xc3   : > { %v1033_v32 = vsel %vm171_vm0, %v629_v49, %v10609_v20  ;;  %v1001_v37 = vsel %vm171_vm0, %v11892_v18, %v10610_v43  ;;  %v10618_v26 = vpop.permute.xlu1 %10617  ;;  %v12637_v49 = vld [vmem:[#allocation2 + $0x1a8] sm:$0x3]  ;;  %v10776_v43 = vpack.i.bf16 %v12631_v10, %v981_v31  ;;  %9259 = vmatmul.mubr.msk.f32.gmra.mrb[14].mxu1 %vm171_vm0, %v12492_v57 }
  0xc4   : > { %v10613_v35 = vpop.permute.xlu0 %10612  ;;  %1308 = vmatprep.mubr.f32.mxu0 %v1033_v32  ;;  %v10619_v58 = vunpack.i.l.bf16 %v10618_v26  ;;  %v10620_v62 = vunpack.i.h.bf16 %v10618_v26  ;;  %v982_v20 = vrot.slane %v12637_v49, 1  ;;  %9261 = vmatprep.mubr.msk.f32.mxu1 %vm171_vm0, %v12495_v30 }
  0xc5   : > { %v10615_v18 = vunpack.i.h.bf16 %v10613_v35  ;;  %v10614_v33 = vunpack.i.l.bf16 %v10613_v35  ;;  %1309 = vmatmul.mubr.f32.vlgmr.msra.gmra.mrb[0].mxu0 %v1001_v37  ;;  %934 = vrot.lane.b32.xlu1 %v12634_v9, %s11588_s14  ;;  %v1140_v35 = vld [vmem:[%s18563_s1 + $0x138] sm:$0xff] }
  0xc6   : > { %9591 = vmatpush1.bf16.msra.mxu0 %v9590_v55  ;;  %v1035_v16 = vsel %vm171_vm0, %v12383_v2, %v10619_v58  ;;  %10767 = vrot.lane.b32.xlu0 %v10766_v8, %s11588_s14  ;;  %v1138_v2 = vld [vmem:[%s18563_s1 + $0x128] sm:$0xff]  ;;  %v12663_v8 = vsel %vm626_vm4, %v876_v38, %v878_v23  ;;  %v983_v55 = vsel %vm449_vm3, %v980_v15, %v982_v20  ;;  %v1139_v15 = vld [vmem:[%s18563_s1 + $0x130] sm:$0xff] }
  0xc7   : > { %v1034_v29 = vsel %vm171_vm0, %v631_v0, %v10614_v33  ;;  %v1002_v28 = vsel %vm171_vm0, %v11894_v19, %v10615_v18  ;;  %9592 = vmatprep.subr.bf16.mxu0 %v18857_v54  ;;  %v10623_v41 = vpop.permute.xlu1 %10622  ;;  %v10781_v31 = vpack.i.bf16 %v12663_v8, %v983_v55  ;;  %v1003_v32 = vsel %vm171_vm0, %v11942_v44, %v10620_v62  ;;  %v1142_v23 = vld [vmem:[%s18563_s1 + $0x148] sm:$0xff] }
  0xc8   : > { %1313 = vmatprep.mubr.f32.mxu0 %v1034_v29  ;;  %v10624_v26 = vunpack.i.l.bf16 %v10623_v41  ;;  %v10628_v19 = vpop.permute.xlu0 %10627  ;;  %v10625_v40 = vunpack.i.h.bf16 %v10623_v41  ;;  %v9596_v38 = vpack.c.bf16 %v1138_v2, %v1137_v1  ;;  %v1143_v29 = vld [vmem:[%s18563_s1 + $0x150] sm:$0xff]  ;;  %v1146_v55 = vld [vmem:[%s18563_s1 + $0x168] sm:$0xff]  ;;  %9262 = vmatmul.mubr.msk.f32.gmra.mrb[16].mxu1 %vm171_vm0, %v12507_v7 }
  0xc9   : > { %1314 = vmatmul.mubr.f32.gmra.mrb[2].mxu0 %v1002_v28  ;;  %10772 = vrot.lane.b32.xlu1 %v10771_v3, %s11588_s14  ;;  %v10629_v37 = vunpack.i.l.bf16 %v10628_v19  ;;  %v10630_v44 = vunpack.i.h.bf16 %v10628_v19  ;;  %v1141_v3 = vld [vmem:[%s18563_s1 + $0x140] sm:$0xff]  ;;  %v1144_v28 = vld [vmem:[%s18563_s1 + $0x158] sm:$0xff] }
  0xca   : > { %1318 = vmatprep.mubr.f32.mxu0 %v1035_v16  ;;  %9594 = vmatpush1.bf16.msra.mxu0 %v9593_v11  ;;  %v1036_v0 = vsel %vm171_vm0, %v12388_v4, %v10624_v26  ;;  %v1004_v4 = vsel %vm171_vm0, %v11944_v45, %v10625_v40  ;;  %v9599_v11 = vpack.c.bf16 %v1140_v35, %v1139_v15  ;;  %v1145_v19 = vld [vmem:[%s18563_s1 + $0x160] sm:$0xff] }
  0xcb   : > { %9595 = vmatprep.subr.bf16.mxu0 %v18857_v54  ;;  %10777 = vrot.lane.b32.xlu0 %v10776_v43, %s11588_s14  ;;  %v10633_v58 = vpop.permute.xlu1 %10632  ;;  %v1037_v33 = vsel %vm171_vm0, %v12218_v48, %v10629_v37  ;;  %v12704_v62 = vsel %vm171_vm0, %v11947_v47, %v10630_v44  ;;  %v9602_v16 = vpack.c.bf16 %v1142_v23, %v1141_v3  ;;  %v1147_v37 = vld [vmem:[%s18563_s1 + $0x170] sm:$0xff] }
  0xcc   : > { %v10634_v18 = vunpack.i.l.bf16 %v10633_v58  ;;  %v10638_v45 = vpop.permute.xlu0 %10637  ;;  %v10635_v48 = vunpack.i.h.bf16 %v10633_v58  ;;  %v9605_v1 = vpack.c.bf16 %v1144_v28, %v1143_v29  ;;  %v9608_v40 = vpack.c.bf16 %v1146_v55, %v1145_v19  ;;  %9264 = vmatprep.mubr.msk.f32.mxu1 %vm171_vm0, %v12516_v13  ;;  %v11533_v19 = vld [vmem:[#allocation2 + $0x78] sm:$0xff] }
  0xcd   : > { %1319 = vmatmul.mubr.f32.gmra.mrb[4].mxu0 %v1003_v32  ;;  %10782 = vrot.lane.b32.xlu1 %v10781_v31, %s11588_s14  ;;  %v10639_v43 = vunpack.i.l.bf16 %v10638_v45  ;;  %v10640_v47 = vunpack.i.h.bf16 %v10638_v45 }
  0xce   : > { %1323 = vmatprep.mubr.f32.mxu0 %v1036_v0  ;;  %9597 = vmatpush1.bf16.msra.mxu0 %v9596_v38  ;;  %v1038_v20 = vsel %vm171_vm0, %v12400_v46, %v10634_v18  ;;  %v12722_v46 = vsel %vm171_vm0, %v11957_v52, %v10635_v48  ;;  %v1148_v0 = vld [vmem:[%s18563_s1 + $0x178] sm:$0xff]  ;;  %v1150_v18 = vld [vmem:[%s18563_s1 + $0x188] sm:$0xff] }
  0xcf   : > { %9598 = vmatprep.subr.bf16.mxu0 %v18857_v54  ;;  %v10643_v41 = vpop.permute.xlu1 %10642  ;;  %v1039_v26 = vsel %vm171_vm0, %v12404_v14, %v10639_v43  ;;  %v12740_v14 = vsel %vm171_vm0, %v11959_v53, %v10640_v47  ;;  %v9611_v58 = vpack.c.bf16 %v1148_v0, %v1147_v37  ;;  %v1152_v43 = vld [vmem:[%s18563_s1 + $0x198] sm:$0xff]  ;;  %9265 = vmatmul.mubr.msk.f32.gmra.mrb[18].mxu1 %vm171_vm0, %v12530_v51  ;;  %v11534_v0 = vld [vmem:[#allocation2 + $0x80] sm:$0xff] }
  0xd0   : > { %v10644_v2 = vunpack.i.l.bf16 %v10643_v41  ;;  %v10648_v31 = vpop.permute.xlu0 %10647  ;;  %v10645_v52 = vunpack.i.h.bf16 %v10643_v41  ;;  %9267 = vmatprep.mubr.msk.f32.mxu1 %vm171_vm0, %v12533_v39 }
  0xd1   : > { %1324 = vmatmul.mubr.f32.gmra.mrb[6].mxu0 %v1004_v4  ;;  %v10649_v32 = vunpack.i.l.bf16 %v10648_v31  ;;  %v10650_v53 = vunpack.i.h.bf16 %v10648_v31 }
  0xd2   : > { %1328 = vmatprep.mubr.f32.mxu0 %v1037_v33  ;;  %9600 = vmatpush1.bf16.msra.mxu0 %v9599_v11  ;;  %v1040_v38 = vsel %vm171_vm0, %v12413_v50, %v10644_v2  ;;  %v11531_v50 = vld [vmem:[#allocation2 + $0x50] sm:$0xff]  ;;  %v1149_v11 = vld [vmem:[%s18563_s1 + $0x180] sm:$0xff]  ;;  %v1154_v2 = vld [vmem:[%s18563_s1 + $0x1a8] sm:$0xff] }
  0xd3   : > { %9601 = vmatprep.subr.bf16.mxu0 %v18857_v54  ;;  %v10653_v15 = vpop.permute.xlu1 %10652  ;;  %v12757_v35 = vsel %vm171_vm0, %v11531_v50, %v10645_v52  ;;  %v1041_v4 = vsel %vm171_vm0, %v12417_v5, %v10649_v32  ;;  %v12775_v3 = vsel %vm171_vm0, %v12004_v12, %v10650_v53  ;;  %v9614_v23 = vpack.c.bf16 %v1150_v18, %v1149_v11  ;;  %v1155_v32 = vld [vmem:[%s18563_s1 + $0x1b0] sm:$0xff]  ;;  %v18880_v18 = vld [vmem:[#allocation37_spill] sm:$0xff] }
  0xd4   : > { %v10654_v44 = vunpack.i.l.bf16 %v10653_v15  ;;  %v10658_v33 = vpop.permute.xlu0 %10657  ;;  %v10655_v5 = vunpack.i.h.bf16 %v10653_v15  ;;  %9268 = vmatmul.mubr.msk.f32.gmra.mrb[20].mxu1 %vm171_vm0, %v18880_v18 }
  0xd5   : > { %1329 = vmatmul.mubr.f32.gmra.mrb[8].mxu0 %v12704_v62  ;;  %v10659_v45 = vunpack.i.l.bf16 %v10658_v33  ;;  %v10660_v12 = vunpack.i.h.bf16 %v10658_v33  ;;  %v18881_v33 = vld [vmem:[#allocation38_spill] sm:$0xff] }
  0xd6   : > { %1333 = vmatprep.mubr.f32.mxu0 %v1038_v20  ;;  %9603 = vmatpush1.bf16.msra.mxu0 %v9602_v16  ;;  %v1042_v48 = vsel %vm171_vm0, %v12426_v6, %v10654_v44  ;;  %v1151_v16 = vld [vmem:[%s18563_s1 + $0x190] sm:$0xff]  ;;  %v11532_v6 = vld [vmem:[#allocation2 + $0x68] sm:$0xff]  ;;  %v1157_v44 = vld [vmem:[%s18563_s1 + $0x1c0] sm:$0xff] }
  0xd7   : > { %9604 = vmatprep.subr.bf16.mxu0 %v18857_v54  ;;  %v10663_v20 = vpop.permute.xlu1 %10662  ;;  %v12792_v29 = vsel %vm171_vm0, %v11532_v6, %v10655_v5  ;;  %v9617_v28 = vpack.c.bf16 %v1152_v43, %v1151_v16  ;;  %v1043_v47 = vsel %vm171_vm0, %v12430_v17, %v10659_v45  ;;  %v12809_v55 = vsel %vm171_vm0, %v11533_v19, %v10660_v12  ;;  %v11535_v5 = vld [vmem:[#allocation2 + $0x90] sm:$0xff]  ;;  %v11536_v6 = vld [vmem:[#allocation2 + $0x98] sm:$0xff] }
  0xd8   : > { %v10664_v41 = vunpack.i.l.bf16 %v10663_v20  ;;  %v10665_v17 = vunpack.i.h.bf16 %v10663_v20  ;;  %9270 = vmatprep.mubr.msk.f32.mxu1 %vm171_vm0, %v18881_v33  ;;  %v1159_v43 = vld [vmem:[%s18563_s1 + $0x1d0] sm:$0xff]  ;;  %v1160_v20 = vld [vmem:[%s18563_s1 + $0x1d8] sm:$0xff] }
  0xd9   : > { %1334 = vmatmul.mubr.f32.gmra.mrb[10].mxu0 %v12722_v46  ;;  %9271 = vmatmul.mubr.msk.f32.gmra.mrb[22].mxu1 %vm171_vm0, %v12594_v61  ;;  %v18882_v19 = vld [vmem:[#allocation39_spill] sm:$0xff] }
  0xda   : > { %1338 = vmatprep.mubr.f32.mxu0 %v1039_v26  ;;  %9606 = vmatpush1.bf16.msra.mxu0 %v9605_v1  ;;  %v1153_v1 = vld [vmem:[%s18563_s1 + $0x1a0] sm:$0xff]  ;;  %v10668_v26 = vpop.permute.xlu0 %10667  ;;  %v12826_v15 = vsel %vm171_vm0, %v11534_v0, %v10665_v17 }
  0xdb   : > { %9607 = vmatprep.subr.bf16.mxu0 %v18857_v54  ;;  %v9620_v31 = vpack.c.bf16 %v1154_v2, %v1153_v1  ;;  %v10669_v52 = vunpack.i.l.bf16 %v10668_v26  ;;  %v10673_v37 = vpop.permute.xlu1 %10672  ;;  %9273 = vmatprep.mubr.msk.f32.mxu1 %vm171_vm0, %v12597_v63  ;;  %v1161_v2 = vld [vmem:[%s18563_s1 + $0x1e0] sm:$0xff] }
  0xdc   : > { %v10674_v50 = vunpack.i.l.bf16 %v10673_v37 }
  0xdd   : > { %1339 = vmatmul.mubr.f32.gmra.mrb[12].mxu0 %v12740_v14  ;;  %9274 = vmatmul.mubr.msk.f32.gmra.mrb[24].mxu1 %vm171_vm0, %v12634_v9 }
  0xde   : > { %1343 = vmatprep.mubr.f32.mxu0 %v1040_v38  ;;  %9609 = vmatpush1.bf16.msra.mxu0 %v9608_v40  ;;  %v1044_v40 = vsel %vm171_vm0, %v12439_v22, %v10664_v41  ;;  %v1156_v38 = vld [vmem:[%s18563_s1 + $0x1b8] sm:$0xff]  ;;  %v10670_v22 = vunpack.i.h.bf16 %v10668_v26  ;;  %v10678_v11 = vpop.permute.xlu0 %10677  ;;  %v1046_v16 = vsel %vm171_vm0, %v12452_v36, %v10674_v50  ;;  %v9629_v41 = vpack.c.bf16 %v1160_v20, %v1159_v43  ;;  %v1162_v26 = vld [vmem:[%s18563_s1 + $0x1e8] sm:$0xff] }
  0xdf   : > { %9610 = vmatprep.subr.bf16.mxu0 %v18857_v54  ;;  %v9623_v53 = vpack.c.bf16 %v1156_v38, %v1155_v32  ;;  %v10683_v12 = vpop.permute.xlu1 %10682  ;;  %v10680_v36 = vunpack.i.h.bf16 %v10678_v11  ;;  %9276 = vmatprep.mubr.msk.f32.mxu1 %vm171_vm0, %v18882_v19  ;;  %v11540_v43 = vld [vmem:[#allocation2 + $0xc8] sm:$0xff] }
  0xe1   : > { %1344 = vmatmul.mubr.f32.gmra.mrb[14].mxu0 %v12757_v35  ;;  %9277 = vmatmul.mubr.msk.f32.gmra.mrb[26].mxu1 %vm171_vm0, %v12619_v21 }
  0xe2   : > { %1348 = vmatprep.mubr.f32.mxu0 %v1041_v4  ;;  %9612 = vmatpush1.bf16.msra.mxu0 %v9611_v58  ;;  %v1045_v58 = vsel %vm171_vm0, %v12443_v34, %v10669_v52  ;;  %v1158_v4 = vld [vmem:[%s18563_s1 + $0x1c8] sm:$0xff]  ;;  %v10675_v34 = vunpack.i.h.bf16 %v10673_v37  ;;  %v10688_v17 = vpop.permute.xlu0 %10687  ;;  %v1163_v37 = vld [vmem:[%s18563_s1 + $0x1f0] sm:$0xff] }
  0xe3   : > { %9613 = vmatprep.subr.bf16.mxu0 %v18857_v54  ;;  %v9626_v45 = vpack.c.bf16 %v1158_v4, %v1157_v44  ;;  %v10689_v32 = vunpack.i.l.bf16 %v10688_v17  ;;  %v10693_v0 = vpop.permute.xlu1 %10692  ;;  %9279 = vmatprep.mubr.msk.f32.mxu1 %vm171_vm0, %v12631_v10 }
  0xe4   : > { %v10694_v44 = vunpack.i.l.bf16 %v10693_v0  ;;  %v10695_v10 = vunpack.i.h.bf16 %v10693_v0 }
  0xe5   : > { %1349 = vmatmul.mubr.f32.gmra.mrb[16].mxu0 %v12775_v3  ;;  %v1049_v4 = vsel %vm171_vm0, %v12469_v24, %v10689_v32  ;;  %9280 = vmatmul.mubr.msk.f32.gmra.mrb[28].mxu1 %vm171_vm0, %v12663_v8 }
  0xe6   : > { %1353 = vmatprep.mubr.f32.mxu0 %v1042_v48  ;;  %9615 = vmatpush1.bf16.msra.mxu0 %v9614_v23  ;;  %v12843_v23 = vsel %vm171_vm0, %v11535_v5, %v10670_v22  ;;  %v10679_v48 = vunpack.i.l.bf16 %v10678_v11  ;;  %v1164_v22 = vld [vmem:[%s18563_s1 + $0x1f8] sm:$0xff]  ;;  %v10698_v11 = vpop.permute.xlu0 %10697  ;;  %v12909_v8 = vsel %vm171_vm0, %v11540_v43, %v10695_v10  ;;  %v11545_v10 = vld [vmem:[#allocation2 + $0x108] sm:$0xff] }
  0xe7   : > { %9616 = vmatprep.subr.bf16.mxu0 %v18857_v54  ;;  %v10703_v24 = vpop.permute.xlu1 %10702 }
  0xe8   : > { %v1047_v1 = vsel %vm171_vm0, %v12456_v56, %v10679_v48  ;;  %v10685_v56 = vunpack.i.h.bf16 %v10683_v12  ;;  %v1050_v48 = vsel %vm171_vm0, %v12478_v25, %v10694_v44  ;;  %v10704_v20 = vunpack.i.l.bf16 %v10703_v24 }
  0xe9   : > { %1354 = vmatmul.mubr.f32.gmra.mrb[18].mxu0 %v12792_v29 }
  0xea   : > { %1358 = vmatprep.mubr.f32.mxu0 %v1043_v47  ;;  %9618 = vmatpush1.bf16.msra.mxu0 %v9617_v28  ;;  %v12860_v28 = vsel %vm171_vm0, %v11536_v6, %v10675_v34  ;;  %v10684_v47 = vunpack.i.l.bf16 %v10683_v12  ;;  %v11539_v34 = vld [vmem:[#allocation2 + $0xc0] sm:$0xff]  ;;  %v10705_v6 = vunpack.i.h.bf16 %v10703_v24 }
  0xeb   : > { %9619 = vmatprep.subr.bf16.mxu0 %v18857_v54 }
  0xec   : > { %v1048_v38 = vsel %vm171_vm0, %v12465_v59, %v10684_v47  ;;  %v10690_v59 = vunpack.i.h.bf16 %v10688_v17  ;;  %v11542_v17 = vld [vmem:[#allocation2 + $0xe0] sm:$0xff] }
  0xed   : > { %1359 = vmatmul.mubr.f32.gmra.mrb[20].mxu0 %v12809_v55 }
  0xee   : > { %1363 = vmatprep.mubr.f32.mxu0 %v1044_v40  ;;  %9621 = vmatpush1.bf16.msra.mxu0 %v9620_v31  ;;  %v11537_v31 = vld [vmem:[#allocation2 + $0xa8] sm:$0xff]  ;;  %v9632_v40 = vpack.c.bf16 %v1162_v26, %v1161_v2  ;;  %v12903_v5 = vsel %vm171_vm0, %v11539_v34, %v10690_v59  ;;  %v10713_v2 = vpop.permute.xlu1 %10712 }
  0xef   : > { %9622 = vmatprep.subr.bf16.mxu0 %v18857_v54  ;;  %v12877_v52 = vsel %vm171_vm0, %v11537_v31, %v10680_v36  ;;  %v10708_v36 = vpop.permute.xlu0 %10707  ;;  %v10715_v32 = vunpack.i.h.bf16 %v10713_v2 }
  0xf0   : > { %v10709_v47 = vunpack.i.l.bf16 %v10708_v36  ;;  %v10710_v26 = vunpack.i.h.bf16 %v10708_v36 }
  0xf1   : > { %1364 = vmatmul.mubr.f32.gmra.mrb[22].mxu0 %v12826_v15 }
  0xf2   : > { %1368 = vmatprep.mubr.f32.mxu0 %v1045_v58  ;;  %9624 = vmatpush1.bf16.msra.mxu0 %v9623_v53  ;;  %v11538_v53 = vld [vmem:[#allocation2 + $0xb0] sm:$0xff]  ;;  %v9635_v58 = vpack.c.bf16 %v1164_v22, %v1163_v37  ;;  %v1053_v31 = vsel %vm171_vm0, %v12495_v30, %v10709_v47  ;;  %v10723_v0 = vpop.permute.xlu1 %10722 }
  0xf3   : > { %9625 = vmatprep.subr.bf16.mxu0 %v18857_v54  ;;  %v12894_v50 = vsel %vm171_vm0, %v11538_v53, %v10685_v56  ;;  %v10714_v56 = vunpack.i.l.bf16 %v10713_v2  ;;  %v11544_v53 = vld [vmem:[#allocation2 + $0xf8] sm:$0xff] }
  0xf4   : > { %v12933_v30 = vsel %vm171_vm0, %v11544_v53, %v10715_v32  ;;  %v18883_v32 = vld [vmem:[#allocation26_spill] sm:$0xff] }
  0xf5   : > { %1369 = vmatmul.mubr.f32.gmra.mrb[24].mxu0 %v12843_v23  ;;  %v1054_v22 = vsel %vm171_vm0, %v12507_v7, %v10714_v56 }
  0xf6   : > { %1373 = vmatprep.mubr.f32.mxu0 %v1046_v16  ;;  %9627 = vmatpush1.bf16.msra.mxu0 %v9626_v45  ;;  %v10699_v45 = vunpack.i.l.bf16 %v10698_v11  ;;  %v10700_v16 = vunpack.i.h.bf16 %v10698_v11  ;;  %v10725_v11 = vunpack.i.h.bf16 %v10723_v0 }
  0xf7   : > { %9628 = vmatprep.subr.bf16.mxu0 %v18857_v54 }
  0xf8   : > { %v1051_v12 = vsel %vm171_vm0, %v12482_v60, %v10699_v45  ;;  %v12921_v60 = vsel %vm171_vm0, %v11542_v17, %v10705_v6  ;;  %v11547_v6 = vld [vmem:[#allocation2 + $0x120] sm:$0xff] }
  0xf9   : > { %1374 = vmatmul.mubr.f32.gmra.mrb[26].mxu0 %v12860_v28 }
  0xfa   : > { %1378 = vmatprep.mubr.f32.mxu0 %v1047_v1  ;;  %9630 = vmatpush1.bf16.msra.mxu0 %v9629_v41  ;;  %v11541_v41 = vld [vmem:[#allocation2 + $0xd8] sm:$0xff]  ;;  %v1052_v1 = vsel %vm171_vm0, %v12492_v57, %v10704_v20 }
  0xfb   : > { %9631 = vmatprep.subr.bf16.mxu0 %v18857_v54  ;;  %v12915_v25 = vsel %vm171_vm0, %v11541_v41, %v10700_v16  ;;  %v11546_v16 = vld [vmem:[#allocation2 + $0x110] sm:$0xff] }
  0xfd   : > { %1379 = vmatmul.mubr.f32.gmra.mrb[28].mxu0 %v12877_v52 }
  0xfe   : > { %1383 = vmatprep.mubr.f32.mxu0 %v1048_v38  ;;  %9633 = vmatpush1.bf16.msra.mxu0 %v9632_v40  ;;  %v10718_v40 = vpop.permute.xlu0 %10717  ;;  %v11543_v38 = vld [vmem:[#allocation2 + $0xf0] sm:$0xff] }
  0xff   : > { %9634 = vmatprep.subr.bf16.mxu0 %v18857_v54  ;;  %v12927_v57 = vsel %vm171_vm0, %v11543_v38, %v10710_v26  ;;  %v10719_v37 = vunpack.i.l.bf16 %v10718_v40  ;;  %v10720_v59 = vunpack.i.h.bf16 %v10718_v40  ;;  %v11548_v26 = vld [vmem:[#allocation2 + $0x128] sm:$0xff] }
 0x101   : > { %1384 = vmatmul.mubr.f32.gmra.mrb[30].mxu0 %v12894_v50  ;;  %v1055_v44 = vsel %vm171_vm0, %v12516_v13, %v10719_v37  ;;  %v12939_v7 = vsel %vm171_vm0, %v11545_v10, %v10720_v59  ;;  %v12945_v13 = vsel %vm171_vm0, %v11546_v16, %v10725_v11  ;;  %v11549_v59 = vld [vmem:[#allocation2 + $0x140] sm:$0xff]  ;;  %v18884_v11 = vld [vmem:[#allocation29_spill] sm:$0xff] }
 0x102   : > { %1388 = vmatprep.mubr.f32.mxu0 %v1049_v4  ;;  %9636 = vmatpush1.bf16.msra.mxu0 %v9635_v58  ;;  %v10724_v58 = vunpack.i.l.bf16 %v10723_v0  ;;  %v10728_v4 = vpop.permute.xlu0 %10727 }
 0x103   : > { %v10729_v34 = vunpack.i.l.bf16 %v10728_v4  ;;  %v10730_v24 = vunpack.i.h.bf16 %v10728_v4 }
 0x104   : > { %v1056_v45 = vsel %vm171_vm0, %v12530_v51, %v10724_v58 }
 0x105   : > { %1389 = vmatmul.mubr.f32.gmra.mrb[32].mxu0 %v12903_v5  ;;  %v1057_v20 = vsel %vm171_vm0, %v12533_v39, %v10729_v34  ;;  %v12951_v51 = vsel %vm171_vm0, %v11547_v6, %v10730_v24  ;;  %v11550_v24 = vld [vmem:[#allocation2 + $0x158] sm:$0xff]  ;;  %v18886_v6 = vld [vmem:[#allocation32_spill] sm:$0xff] }
 0x106   : > { %1393 = vmatprep.mubr.f32.mxu0 %v1050_v48  ;;  %v10733_v48 = vpop.permute.xlu1 %10732 }
 0x107   : > { %v10734_v43 = vunpack.i.l.bf16 %v10733_v48  ;;  %v10735_v36 = vunpack.i.h.bf16 %v10733_v48 }
 0x109   : > { %1394 = vmatmul.mubr.f32.gmra.mrb[34].mxu0 %v12909_v8  ;;  %v1058_v47 = vsel %vm171_vm0, %v18880_v18, %v10734_v43  ;;  %v12957_v39 = vsel %vm171_vm0, %v11548_v26, %v10735_v36 }
 0x10a   : > { %1398 = vmatprep.mubr.f32.mxu0 %v1051_v12  ;;  %v10738_v12 = vpop.permute.xlu0 %10737 }
 0x10b   : > { %v10739_v41 = vunpack.i.l.bf16 %v10738_v12  ;;  %v10740_v2 = vunpack.i.h.bf16 %v10738_v12  ;;  %v18885_v12 = vld [vmem:[#allocation41_spill] sm:$0xff] }
 0x10c   : > { %v997_v36 = vrot.slane %v18885_v12, 2 }
 0x10d   : > { %1399 = vmatmul.mubr.f32.gmra.mrb[36].mxu0 %v12915_v25  ;;  %v1059_v56 = vsel %vm171_vm0, %v18881_v33, %v10739_v41  ;;  %v12964_v18 = vsel %vm171_vm0, %v18883_v32, %v10740_v2 }
 0x10e   : > { %1403 = vmatprep.mubr.f32.mxu0 %v1052_v1  ;;  %v10743_v1 = vpop.permute.xlu1 %10742 }
 0x10f   : > { %v10744_v17 = vunpack.i.l.bf16 %v10743_v1  ;;  %v10745_v40 = vunpack.i.h.bf16 %v10743_v1 }
 0x111   : > { %1404 = vmatmul.mubr.f32.gmra.mrb[38].mxu0 %v12921_v60  ;;  %v1060_v37 = vsel %vm171_vm0, %v12594_v61, %v10744_v17  ;;  %v12970_v33 = vsel %vm171_vm0, %v11549_v59, %v10745_v40 }
 0x112   : > { %1408 = vmatprep.mubr.f32.mxu0 %v1053_v31  ;;  %v10748_v31 = vpop.permute.xlu0 %10747 }
 0x113   : > { %v10749_v38 = vunpack.i.l.bf16 %v10748_v31  ;;  %v10750_v0 = vunpack.i.h.bf16 %v10748_v31  ;;  %v18888_v31 = vld [vmem:[#allocation5_spill] sm:$0xff] }
 0x115   : > { %1409 = vmatmul.mubr.f32.gmra.mrb[40].mxu0 %v12927_v57  ;;  %v1061_v58 = vsel %vm171_vm0, %v12597_v63, %v10749_v38  ;;  %v12977_v61 = vsel %vm171_vm0, %v18884_v11, %v10750_v0  ;;  %v18889_v38 = vld [vmem:[#allocation6_spill] sm:$0xff] }
 0x116   : > { %1413 = vmatprep.mubr.f32.mxu0 %v1054_v22  ;;  %v10753_v22 = vpop.permute.xlu1 %10752 }
 0x117   : > { %v10754_v53 = vunpack.i.l.bf16 %v10753_v22  ;;  %v10755_v4 = vunpack.i.h.bf16 %v10753_v22 }
 0x119   : > { %1414 = vmatmul.mubr.f32.gmra.mrb[42].mxu0 %v12933_v30  ;;  %v1062_v34 = vsel %vm171_vm0, %v12634_v9, %v10754_v53  ;;  %v12983_v63 = vsel %vm171_vm0, %v11550_v24, %v10755_v4 }
 0x11a   : > { %1418 = vmatprep.mubr.f32.mxu0 %v1055_v44  ;;  %v10758_v44 = vpop.permute.xlu0 %10757 }
 0x11b   : > { %v10759_v10 = vunpack.i.l.bf16 %v10758_v44  ;;  %v10760_v48 = vunpack.i.h.bf16 %v10758_v44 }
 0x11d   : > { %1419 = vmatmul.mubr.f32.gmra.mrb[44].mxu0 %v12939_v7  ;;  %v1063_v43 = vsel %vm171_vm0, %v18882_v19, %v10759_v10  ;;  %v12992_v41 = vsel %vm171_vm0, %v18886_v6, %v10760_v48 }
 0x11e   : > { %1423 = vmatprep.mubr.f32.mxu0 %v1056_v45  ;;  %v10763_v45 = vpop.permute.xlu1 %10762  ;;  %v881_v17 = vpop.permute.xlu0 %880 }
 0x11f   : > { %v10764_v16 = vunpack.i.l.bf16 %v10763_v45  ;;  %v10765_v9 = vunpack.i.h.bf16 %v10763_v45 }
 0x121   : > { %1424 = vmatmul.mubr.f32.gmra.mrb[46].mxu0 %v12945_v13  ;;  %v1064_v1 = vsel %vm171_vm0, %v12619_v21, %v10764_v16  ;;  %v18887_v21 = vld [vmem:[#allocation4_spill] sm:$0xff] }
 0x122   : > { %1428 = vmatprep.mubr.f32.mxu0 %v1057_v20  ;;  %v996_v20 = vrot.slane %v12602_v27, 2  ;;  %v11551_v27 = vld [vmem:[#allocation2 + $0x170] sm:$0xff]  ;;  %v885_v32 = vpop.permute.xlu0 %884 }
 0x123   : > { %v13003_v26 = vsel %vm171_vm0, %v11551_v27, %v10765_v9 }
 0x124   : > { %v998_v2 = vsel %vm626_vm4, %v996_v20, %v997_v36 }
 0x125   : > { %1429 = vmatmul.mubr.f32.gmra.mrb[48].mxu0 %v12951_v51  ;;  %9282 = vmatprep.mubr.msk.f32.mxu1 %vm171_vm0, %v998_v2 }
 0x126   : > { %1433 = vmatprep.mubr.f32.mxu0 %v1058_v47  ;;  %v999_v47 = vrot.slane %v12637_v49, 2  ;;  %v1065_v49 = vsel %vm171_vm0, %v18887_v21, %v881_v17  ;;  %v889_v59 = vpop.permute.xlu0 %888 }
 0x128   : > { %v1000_v19 = vsel %vm626_vm4, %v997_v36, %v999_v47 }
 0x129   : > { %1434 = vmatmul.mubr.f32.gmra.mrb[50].mxu0 %v12957_v39  ;;  %9283 = vmatmul.mubr.msk.f32.gmra.mrb[30].mxu1 %vm171_vm0, %v1000_v19 }
 0x12a   : > { %1438 = vmatprep.mubr.f32.mxu0 %v1059_v56  ;;  %v883_v56 = vpop.permute.xlu1 %882  ;;  %v893_v4 = vpop.permute.xlu0 %892 }
 0x12b   : > { %v1066_v40 = vsel %vm171_vm0, %v18888_v31, %v883_v56 }
 0x12d   : > { %1439 = vmatmul.mubr.f32.gmra.mrb[52].mxu0 %v12964_v18 }
 0x12e   : > { %1443 = vmatprep.mubr.f32.mxu0 %v1060_v37  ;;  %v1067_v37 = vsel %vm171_vm0, %v18889_v38, %v885_v32  ;;  %v887_v22 = vpop.permute.xlu1 %886  ;;  %v897_v45 = vpop.permute.xlu0 %896 }
 0x131   : > { %1444 = vmatmul.mubr.f32.gmra.mrb[54].mxu0 %v12970_v33 }
 0x132   : > { %1448 = vmatprep.mubr.f32.mxu0 %v1061_v58  ;;  %v891_v58 = vpop.permute.xlu1 %890 }
 0x135   : > { %1449 = vmatmul.mubr.f32.gmra.mrb[56].mxu0 %v12977_v61 }
 0x136   : > { %1453 = vmatprep.mubr.f32.mxu0 %v1062_v34  ;;  %v895_v10 = vpop.permute.xlu1 %894 }
 0x139   : > { %1454 = vmatmul.mubr.f32.gmra.mrb[58].mxu0 %v12983_v63 }
 0x13a   : > { %1458 = vmatprep.mubr.f32.mxu0 %v1063_v43  ;;  %v899_v24 = vpop.permute.xlu1 %898  ;;  %v901_v43 = vpop.permute.xlu0 %900 }
 0x13d   : > { %1459 = vmatmul.mubr.f32.gmra.mrb[60].mxu0 %v12992_v41 }
 0x13e   : > { %1463 = vmatprep.mubr.f32.mxu0 %v1064_v1  ;;  %v903_v12 = vpop.permute.xlu1 %902  ;;  %v905_v9 = vpop.permute.xlu0 %904 }
 0x141   : > { %1464 = vmatmul.mubr.f32.gmra.mrb[62].mxu0 %v13003_v26 }
 0x142   : > { %1533 = vmatprep.mubr.f32.mxu0 %v12704_v62  ;;  %v18890_v62 = vld [vmem:[#allocation7_spill] sm:$0xff]  ;;  %v907_v47 = vpop.permute.xlu1 %906  ;;  %v909_v2 = vpop.permute.xlu0 %908 }
 0x143   : > { %v1068_v0 = vsel %vm171_vm0, %v18890_v62, %v887_v22 }
 0x145   : > { %1534 = vmatmul.mubr.f32.vlgmr.msra.gmra.mrb[0].mxu0 %v1065_v49 }
 0x146   : > { %1538 = vmatprep.mubr.f32.mxu0 %v12722_v46  ;;  %v18891_v46 = vld [vmem:[#allocation8_spill] sm:$0xff]  ;;  %v911_v27 = vpop.permute.xlu1 %910  ;;  %v913_v21 = vpop.permute.xlu0 %912 }
 0x147   : > { %v1069_v53 = vsel %vm171_vm0, %v18891_v46, %v889_v59 }
 0x149   : > { %1539 = vmatmul.mubr.f32.gmra.mrb[2].mxu0 %v1066_v40 }
 0x14a   : > { %1543 = vmatprep.mubr.f32.mxu0 %v12740_v14  ;;  %v18892_v14 = vld [vmem:[#allocation9_spill] sm:$0xff]  ;;  %v915_v56 = vpop.permute.xlu1 %914  ;;  %v917_v40 = vpop.permute.xlu0 %916 }
 0x14b   : > { %v1070_v44 = vsel %vm171_vm0, %v18892_v14, %v891_v58 }
 0x14d   : > { %1544 = vmatmul.mubr.f32.gmra.mrb[4].mxu0 %v1067_v37 }
 0x14e   : > { %1548 = vmatprep.mubr.f32.mxu0 %v12757_v35  ;;  %v18893_v35 = vld [vmem:[#allocation10_spill] sm:$0xff]  ;;  %v919_v38 = vpop.permute.xlu1 %918  ;;  %v921_v22 = vpop.permute.xlu0 %920 }
 0x14f   : > { %v1071_v11 = vsel %vm171_vm0, %v18893_v35, %v893_v4 }
 0x151   : > { %1549 = vmatmul.mubr.f32.gmra.mrb[6].mxu0 %v1068_v0 }
 0x152   : > { %1553 = vmatprep.mubr.f32.mxu0 %v12775_v3  ;;  %v18894_v3 = vld [vmem:[#allocation11_spill] sm:$0xff]  ;;  %v923_v0 = vpop.permute.xlu1 %922  ;;  %v925_v46 = vpop.permute.xlu0 %924 }
 0x153   : > { %v1072_v34 = vsel %vm171_vm0, %v18894_v3, %v895_v10 }
 0x155   : > { %1554 = vmatmul.mubr.f32.gmra.mrb[8].mxu0 %v1069_v53 }
 0x156   : > { %1558 = vmatprep.mubr.f32.mxu0 %v12792_v29  ;;  %v18895_v29 = vld [vmem:[#allocation12_spill] sm:$0xff]  ;;  %v929_v4 = vpop.permute.xlu0 %928 }
 0x157   : > { %v1073_v48 = vsel %vm171_vm0, %v18895_v29, %v897_v45  ;;  %v8658_v45 = vld [vmem:[%s18563_s1 + $0x448] sm:$0xff] }
 0x159   : > { %1559 = vmatmul.mubr.f32.gmra.mrb[10].mxu0 %v1070_v44  ;;  %v18910_v44 = vld [vmem:[#allocation28_spill] sm:$0xff] }
 0x15a   : > { %1563 = vmatprep.mubr.f32.mxu0 %v12809_v55  ;;  %v18896_v55 = vld [vmem:[#allocation13_spill] sm:$0xff] }
 0x15b   : > { %v1074_v16 = vsel %vm171_vm0, %v18896_v55, %v899_v24 }
 0x15d   : > { %1564 = vmatmul.mubr.f32.gmra.mrb[12].mxu0 %v1071_v11 }
 0x15e   : > { %1568 = vmatprep.mubr.f32.mxu0 %v12826_v15  ;;  %v18897_v15 = vld [vmem:[#allocation14_spill] sm:$0xff] }
 0x15f   : > { %v1075_v20 = vsel %vm171_vm0, %v18897_v15, %v901_v43  ;;  %v8659_v43 = vld [vmem:[%s18563_s1 + $0x450] sm:$0xff]  ;;  %v8660_v15 = vld [vmem:[%s18563_s1 + $0x458] sm:$0xff] }
 0x161   : > { %1569 = vmatmul.mubr.f32.gmra.mrb[14].mxu0 %v1072_v34  ;;  %v933_v34 = vpop.permute.xlu0 %932 }
 0x162   : > { %1573 = vmatprep.mubr.f32.mxu0 %v12843_v23  ;;  %v18898_v23 = vld [vmem:[#allocation15_spill] sm:$0xff] }
 0x163   : > { %v1076_v36 = vsel %vm171_vm0, %v18898_v23, %v903_v12  ;;  %v18913_v12 = vld [vmem:[#allocation33_spill] sm:$0xff] }
 0x164   : > { %v1091_v23 = vsel %vm171_vm0, %v18913_v12, %v933_v34  ;;  %v8598_v12 = vld [vmem:[%s18563_s1 + $0x268] sm:$0xff] }
 0x165   : > { %1574 = vmatmul.mubr.f32.gmra.mrb[16].mxu0 %v1073_v48  ;;  %v18912_v48 = vld [vmem:[#allocation31_spill] sm:$0xff]  ;;  %v10768_v55 = vpop.permute.xlu0 %10767 }
 0x166   : > { %1578 = vmatprep.mubr.f32.mxu0 %v12860_v28  ;;  %v18899_v28 = vld [vmem:[#allocation16_spill] sm:$0xff] }
 0x167   : > { %v1077_v6 = vsel %vm171_vm0, %v18899_v28, %v905_v9  ;;  %v8661_v28 = vld [vmem:[%s18563_s1 + $0x460] sm:$0xff] }
 0x169   : > { %1579 = vmatmul.mubr.f32.gmra.mrb[18].mxu0 %v1074_v16 }
 0x16a   : > { %1583 = vmatprep.mubr.f32.mxu0 %v12877_v52  ;;  %v18900_v52 = vld [vmem:[#allocation17_spill] sm:$0xff] }
 0x16b   : > { %v1078_v1 = vsel %vm171_vm0, %v18900_v52, %v907_v47  ;;  %v18914_v52 = vld [vmem:[#allocation34_spill] sm:$0xff] }
 0x16d   : > { %1584 = vmatmul.mubr.f32.gmra.mrb[20].mxu0 %v1075_v20 }
 0x16e   : > { %1588 = vmatprep.mubr.f32.mxu0 %v12894_v50  ;;  %v18901_v50 = vld [vmem:[#allocation18_spill] sm:$0xff] }
 0x16f   : > { %v1079_v19 = vsel %vm171_vm0, %v18901_v50, %v909_v2  ;;  %v11552_v50 = vld [vmem:[#allocation2 + $0x180] sm:$0xff] }
 0x171   : > { %1589 = vmatmul.mubr.f32.gmra.mrb[22].mxu0 %v1076_v36  ;;  %v10769_v36 = vunpack.i.l.bf16 %v10768_v55 }
 0x172   : > { %1593 = vmatprep.mubr.f32.mxu0 %v12903_v5  ;;  %v18902_v5 = vld [vmem:[#allocation19_spill] sm:$0xff] }
 0x173   : > { %v1080_v17 = vsel %vm171_vm0, %v18902_v5, %v911_v27  ;;  %v10778_v27 = vpop.permute.xlu0 %10777 }
 0x175   : > { %1594 = vmatmul.mubr.f32.gmra.mrb[24].mxu0 %v1077_v6  ;;  %v8662_v6 = vld [vmem:[%s18563_s1 + $0x468] sm:$0xff] }
 0x176   : > { %1598 = vmatprep.mubr.f32.mxu0 %v12909_v8  ;;  %v18903_v8 = vld [vmem:[#allocation20_spill] sm:$0xff]  ;;  %v9757_v47 = vpack.c.bf16 %v8662_v6, %v8661_v28  ;;  %v8599_v28 = vld [vmem:[%s18563_s1 + $0x270] sm:$0xff]  ;;  %v8600_v6 = vld [vmem:[%s18563_s1 + $0x278] sm:$0xff] }
 0x177   : > { %v1081_v49 = vsel %vm171_vm0, %v18903_v8, %v913_v21 }
 0x179   : > { %1599 = vmatmul.mubr.f32.gmra.mrb[26].mxu0 %v1078_v1 }
 0x17a   : > { %1603 = vmatprep.mubr.f32.mxu0 %v12915_v25  ;;  %v18904_v25 = vld [vmem:[#allocation21_spill] sm:$0xff]  ;;  %v13075_v58 = vpop.f32.mrb[0].mxu1 }
 0x17b   : > { %v1082_v31 = vsel %vm171_vm0, %v18904_v25, %v915_v56  ;;  %v13077_v14 = vpop.f32.mrb[1].mxu1  ;;  %v18915_v56 = vld [vmem:[#allocation35_spill] sm:$0xff] }
 0x17d   : > { %1604 = vmatmul.mubr.f32.gmra.mrb[28].mxu0 %v1079_v19  ;;  %v1097_v19 = vsel %vm171_vm0, %v11552_v50, %v10769_v36 }
 0x17e   : > { %1608 = vmatprep.mubr.f32.mxu0 %v12921_v60  ;;  %v18905_v60 = vld [vmem:[#allocation22_spill] sm:$0xff]  ;;  %v13082_v35 = vpop.f32.mrb[2].mxu1 }
 0x17f   : > { %v1083_v32 = vsel %vm171_vm0, %v18905_v60, %v917_v40  ;;  %v13084_v11 = vpop.f32.mrb[3].mxu1  ;;  %v11553_v40 = vld [vmem:[#allocation2 + $0x188] sm:$0xff] }
 0x181   : > { %1609 = vmatmul.mubr.f32.gmra.mrb[30].mxu0 %v1080_v17  ;;  %v8663_v17 = vld [vmem:[%s18563_s1 + $0x470] sm:$0xff] }
 0x182   : > { %1613 = vmatprep.mubr.f32.mxu0 %v12927_v57  ;;  %v18906_v57 = vld [vmem:[#allocation23_spill] sm:$0xff]  ;;  %v13098_v16 = vpop.f32.mrb[4].mxu1 }
 0x183   : > { %v1084_v37 = vsel %vm171_vm0, %v18906_v57, %v919_v38  ;;  %v13106_v20 = vpop.f32.mrb[5].mxu1  ;;  %v10780_v38 = vunpack.i.h.bf16 %v10778_v27  ;;  %v18916_v57 = vld [vmem:[#allocation36_spill] sm:$0xff] }
 0x185   : > { %1614 = vmatmul.mubr.f32.gmra.mrb[32].mxu0 %v1081_v49 }
 0x186   : > { %1618 = vmatprep.mubr.f32.mxu0 %v12933_v30  ;;  %v18907_v30 = vld [vmem:[#allocation24_spill] sm:$0xff]  ;;  %v13121_v5 = vpop.f32.mrb[6].mxu1 }
 0x187   : > { %v1085_v62 = vsel %vm171_vm0, %v18907_v30, %v921_v22  ;;  %v13129_v21 = vpop.f32.mrb[7].mxu1  ;;  %v11554_v30 = vld [vmem:[#allocation2 + $0x198] sm:$0xff] }
 0x189   : > { %1619 = vmatmul.mubr.f32.gmra.mrb[34].mxu0 %v1082_v31  ;;  %v10779_v31 = vunpack.i.l.bf16 %v10778_v27  ;;  %v8604_v27 = vld [vmem:[%s18563_s1 + $0x298] sm:$0xff] }
 0x18a   : > { %1623 = vmatprep.mubr.f32.mxu0 %v12939_v7  ;;  %v18908_v7 = vld [vmem:[#allocation25_spill] sm:$0xff] }
 0x18b   : > { %v1086_v59 = vsel %vm171_vm0, %v18908_v7, %v923_v0  ;;  %v13138_v0 = vpop.f32.mrb[8].mxu1 }
 0x18c   : > { %v13140_v7 = vpop.f32.mrb[9].mxu1 }
 0x18d   : > { %1624 = vmatmul.mubr.f32.gmra.mrb[36].mxu0 %v1083_v32 }
 0x18e   : > { %1628 = vmatprep.mubr.f32.mxu0 %v12945_v13  ;;  %v18909_v13 = vld [vmem:[#allocation27_spill] sm:$0xff] }
 0x18f   : > { %v1087_v53 = vsel %vm171_vm0, %v18909_v13, %v925_v46  ;;  %v18917_v46 = vld [vmem:[#allocation40_spill] sm:$0xff] }
 0x190   : > { %v1095_v13 = vsel %vm171_vm0, %v18917_v46, %v10780_v38  ;;  %v8610_v38 = vld [vmem:[%s18563_s1 + $0x2c8] sm:$0xff]  ;;  %v8613_v46 = vld [vmem:[%s18563_s1 + $0x2e0] sm:$0xff] }
 0x191   : > { %1629 = vmatmul.mubr.f32.gmra.mrb[38].mxu0 %v1084_v37 }
 0x192   : > { %1633 = vmatprep.mubr.f32.mxu0 %v12951_v51  ;;  %v927_v51 = vpop.permute.xlu1 %926 }
 0x195   : > { %1634 = vmatmul.mubr.f32.gmra.mrb[40].mxu0 %v1085_v62  ;;  %v1099_v62 = vsel %vm171_vm0, %v11554_v30, %v10779_v31  ;;  %v8607_v31 = vld [vmem:[%s18563_s1 + $0x2b0] sm:$0xff] }
 0x196   : > { %1638 = vmatprep.mubr.f32.mxu0 %v12957_v39  ;;  %v1088_v39 = vsel %vm171_vm0, %v18910_v44, %v927_v51  ;;  %v931_v3 = vpop.permute.xlu1 %930  ;;  %v8611_v30 = vld [vmem:[%s18563_s1 + $0x2d0] sm:$0xff] }
 0x199   : > { %1639 = vmatmul.mubr.f32.gmra.mrb[42].mxu0 %v1086_v59 }
 0x19a   : > { %1643 = vmatprep.mubr.f32.mxu0 %v12964_v18  ;;  %v18911_v18 = vld [vmem:[#allocation30_spill] sm:$0xff]  ;;  %v935_v24 = vpop.permute.xlu1 %934 }
 0x19b   : > { %v1089_v10 = vsel %vm171_vm0, %v18911_v18, %v929_v4  ;;  %v1092_v1 = vsel %vm171_vm0, %v18914_v52, %v935_v24  ;;  %v8602_v52 = vld [vmem:[%s18563_s1 + $0x288] sm:$0xff] }
 0x19d   : > { %1644 = vmatmul.mubr.f32.gmra.mrb[44].mxu0 %v1087_v53  ;;  %v11555_v53 = vld [vmem:[#allocation2 + $0x1a0] sm:$0xff] }
 0x19e   : > { %1648 = vmatprep.mubr.f32.mxu0 %v12970_v33  ;;  %v8657_v33 = vld [vmem:[%s18563_s1 + $0x440] sm:$0xff]  ;;  %v10773_v9 = vpop.permute.xlu1 %10772 }
 0x19f   : > { %v9749_v29 = vpack.c.bf16 %v8658_v45, %v8657_v33  ;;  %v10774_v2 = vunpack.i.l.bf16 %v10773_v9  ;;  %v10775_v49 = vunpack.i.h.bf16 %v10773_v9 }
 0x1a1   : > { %1649 = vmatmul.mubr.f32.gmra.mrb[46].mxu0 %v1088_v39  ;;  %9750 = vmatprep.subr.bf16.mxu0 %v9749_v29  ;;  %v1098_v60 = vsel %vm171_vm0, %v11553_v40, %v10774_v2  ;;  %v1094_v37 = vsel %vm171_vm0, %v18916_v57, %v10775_v49  ;;  %v13147_v39 = vpop.f32.mrb[10].mxu1  ;;  %v8608_v40 = vld [vmem:[%s18563_s1 + $0x2b8] sm:$0xff] }
 0x1a2   : > { %1653 = vmatprep.mubr.f32.mxu0 %v12977_v61  ;;  %v1090_v61 = vsel %vm171_vm0, %v18912_v48, %v931_v3  ;;  %9752 = vmatpush3.bf16.msra.mxu0 %v9749_v29  ;;  %v10783_v32 = vpop.permute.xlu1 %10782  ;;  %v13149_v4 = vpop.f32.mrb[11].mxu1  ;;  %v8594_v29 = vld [vmem:[%s18563_s1 + $0x248] sm:$0xff] }
 0x1a3   : > { %v10784_v22 = vunpack.i.l.bf16 %v10783_v32  ;;  %v10785_v59 = vunpack.i.h.bf16 %v10783_v32  ;;  %v13151_v18 = vpop.f32.mrb[12].mxu1  ;;  %v8609_v32 = vld [vmem:[%s18563_s1 + $0x2c0] sm:$0xff] }
 0x1a4   : > { %v9678_v57 = vpack.c.bf16 %v8610_v38, %v8609_v32 }
 0x1a5   : > { %1654 = vmatmul.mubr.f32.gmra.mrb[48].mxu0 %v1089_v10  ;;  %v1100_v51 = vsel %vm171_vm0, %v11555_v53, %v10784_v22  ;;  %v1096_v44 = vsel %vm171_vm0, %v12622_v42, %v10785_v59  ;;  %v13153_v10 = vpop.f32.mrb[13].mxu1  ;;  %v8593_v42 = vld [vmem:[%s18563_s1 + $0x240] sm:$0xff] }
 0x1a6   : > { %1658 = vmatprep.mubr.f32.mxu0 %v12983_v63  ;;  %v9753_v63 = vpack.c.bf16 %v8660_v15, %v8659_v43  ;;  %v13155_v3 = vpop.f32.mrb[14].mxu1  ;;  %v9654_v48 = vpack.c.bf16 %v8594_v29, %v8593_v42  ;;  %v8596_v43 = vld [vmem:[%s18563_s1 + $0x258] sm:$0xff]  ;;  %v8615_v42 = vld [vmem:[%s18563_s1 + $0x2f0] sm:$0xff] }
 0x1a7   : > { %v13157_v34 = vpop.f32.mrb[15].mxu1  ;;  %v8616_v29 = vld [vmem:[%s18563_s1 + $0x2f8] sm:$0xff] }
 0x1a8   : > { %9754 = vmatprep.subr.bf16.mxu0 %v9753_v63  ;;  %v13159_v33 = vpop.f32.mrb[16].mxu1  ;;  %9655 = vmatpush1.bf16.msra.mxu1 %v9654_v48  ;;  %v9687_v48 = vpack.c.bf16 %v8616_v29, %v8615_v42  ;;  %v13320_v29 = vld [vmem:[#allocation3 + $0x10] sm:$0x3] }
 0x1a9   : > { %1659 = vmatmul.mubr.f32.gmra.mrb[50].mxu0 %v1090_v61  ;;  %v13161_v45 = vpop.f32.mrb[17].mxu1  ;;  %9656 = vmatprep.subr.bf16.mxu1 %v18857_v54 }
 0x1aa   : > { %1663 = vmatprep.mubr.f32.mxu0 %v12992_v41  ;;  %9756 = vmatpush3.bf16.msra.mxu0 %v9753_v63  ;;  %v10770_v41 = vunpack.i.h.bf16 %v10768_v55  ;;  %v13169_v61 = vpop.f32.mrb[18].mxu1  ;;  %v8595_v55 = vld [vmem:[%s18563_s1 + $0x250] sm:$0xff]  ;;  %v8597_v63 = vld [vmem:[%s18563_s1 + $0x260] sm:$0xff] }
 0x1ab   : > { %9758 = vmatprep.subr.bf16.mxu0 %v9757_v47  ;;  %v13171_v24 = vpop.f32.mrb[19].mxu1  ;;  %v9657_v15 = vpack.c.bf16 %v8596_v43, %v8595_v55  ;;  %v8617_v55 = vld [vmem:[%s18563_s1 + $0x300] sm:$0xff]  ;;  %v8618_v43 = vld [vmem:[%s18563_s1 + $0x308] sm:$0xff] }
 0x1ac   : > { %v1093_v25 = vsel %vm171_vm0, %v18915_v56, %v10770_v41  ;;  %v13187_v36 = vpop.f32.mrb[20].mxu1  ;;  %v8601_v41 = vld [vmem:[%s18563_s1 + $0x280] sm:$0xff] }
 0x1ad   : > { %1664 = vmatmul.mubr.f32.gmra.mrb[52].mxu0 %v1091_v23  ;;  %9658 = vmatpush1.bf16.msra.mxu1 %v9657_v15  ;;  %v9660_v23 = vpack.c.bf16 %v8598_v12, %v8597_v63  ;;  %v13189_v9 = vpop.f32.mrb[21].mxu1  ;;  %v9690_v15 = vpack.c.bf16 %v8618_v43, %v8617_v55  ;;  %v2089_v43 = vrot.slane %v13320_v29, 1 }
 0x1ae   : > { %1668 = vmatprep.mubr.f32.mxu0 %v13003_v26  ;;  %9760 = vmatpush3.bf16.msra.mxu0 %v9757_v47  ;;  %v8664_v26 = vld [vmem:[%s18563_s1 + $0x478] sm:$0xff]  ;;  %v9663_v47 = vpack.c.bf16 %v8600_v6, %v8599_v28  ;;  %v13205_v2 = vpop.f32.mrb[22].mxu1 }
 0x1af   : > { %v9761_v8 = vpack.c.bf16 %v8664_v26, %v8663_v17  ;;  %9659 = vmatprep.subr.bf16.mxu1 %v18857_v54  ;;  %v13207_v50 = vpop.f32.mrb[23].mxu1  ;;  %v8605_v26 = vld [vmem:[%s18563_s1 + $0x2a0] sm:$0xff]  ;;  %v8620_v28 = vld [vmem:[%s18563_s1 + $0x318] sm:$0xff] }
 0x1b0   : > { %v13223_v56 = vpop.f32.mrb[24].mxu1 }
 0x1b1   : > { %1669 = vmatmul.mubr.f32.gmra.mrb[54].mxu0 %v1092_v1  ;;  %9762 = vmatprep.subr.bf16.mxu0 %v9761_v8  ;;  %v9666_v1 = vpack.c.bf16 %v8602_v52, %v8601_v41  ;;  %v8621_v41 = vld [vmem:[%s18563_s1 + $0x320] sm:$0xff]  ;;  %v8622_v52 = vld [vmem:[%s18563_s1 + $0x328] sm:$0xff] }
 0x1b2   : > { %1673 = vmatprep.mubr.f32.mxu0 %v1097_v19  ;;  %9764 = vmatpush3.bf16.msra.mxu0 %v9761_v8  ;;  %v8603_v19 = vld [vmem:[%s18563_s1 + $0x290] sm:$0xff]  ;;  %v8606_v8 = vld [vmem:[%s18563_s1 + $0x2a8] sm:$0xff] }
 0x1b3   : > { %9813 = vmatprep.subr.bf16.mxu0 %v18857_v54  ;;  %9661 = vmatpush1.bf16.msra.mxu1 %v9660_v23  ;;  %v9669_v17 = vpack.c.bf16 %v8604_v27, %v8603_v19  ;;  %v9672_v49 = vpack.c.bf16 %v8606_v8, %v8605_v26  ;;  %v8619_v23 = vld [vmem:[%s18563_s1 + $0x310] sm:$0xff]  ;;  %v9696_v19 = vpack.c.bf16 %v8622_v52, %v8621_v41 }
 0x1b4   : > { %9662 = vmatprep.subr.bf16.mxu1 %v18857_v54  ;;  %v9693_v6 = vpack.c.bf16 %v8620_v28, %v8619_v23  ;;  %v8623_v8 = vld [vmem:[%s18563_s1 + $0x330] sm:$0xff] }
 0x1b5   : > { %1674 = vmatmul.mubr.f32.gmra.mrb[56].mxu0 %v1093_v25  ;;  %v13225_v25 = vpop.f32.mrb[25].mxu1 }
 0x1b6   : > { %1678 = vmatprep.mubr.f32.mxu0 %v1098_v60  ;;  %v9675_v60 = vpack.c.bf16 %v8608_v40, %v8607_v31 }
 0x1b7   : > { %9664 = vmatpush1.bf16.msra.mxu1 %v9663_v47  ;;  %v13291_v47 = vld [vmem:[%s18564_s2] ss:$0 sm:$0xff] }
 0x1b8   : > { %9665 = vmatprep.subr.bf16.mxu1 %v18857_v54 }
 0x1b9   : > { %1679 = vmatmul.mubr.f32.gmra.mrb[58].mxu0 %v1094_v37  ;;  %v13241_v37 = vpop.f32.mrb[26].mxu1 }
 0x1ba   : > { %1683 = vmatprep.mubr.f32.mxu0 %v1099_v62  ;;  %v13243_v22 = vpop.f32.mrb[27].mxu1  ;;  %v8612_v62 = vld [vmem:[%s18563_s1 + $0x2d8] sm:$0xff] }
 0x1bb   : > { %9667 = vmatpush1.bf16.msra.mxu1 %v9666_v1  ;;  %v9681_v59 = vpack.c.bf16 %v8612_v62, %v8611_v30  ;;  %v13312_v30 = vld [vmem:[#allocation3 + $0x8] sm:$0xff] }
 0x1bc   : > { %9668 = vmatprep.subr.bf16.mxu1 %v18857_v54 }
 0x1bd   : > { %1684 = vmatmul.mubr.f32.gmra.mrb[60].mxu0 %v1095_v13  ;;  %v8614_v13 = vld [vmem:[%s18563_s1 + $0x2e8] sm:$0xff] }
 0x1be   : > { %1688 = vmatprep.mubr.f32.mxu0 %v1100_v51  ;;  %v9684_v53 = vpack.c.bf16 %v8614_v13, %v8613_v46  ;;  %v13259_v51 = vpop.f32.mrb[28].mxu1  ;;  %v2087_v46 = vrot.slane %v13312_v30, 1 }
 0x1bf   : > { %9670 = vmatpush1.bf16.msra.mxu1 %v9669_v17 }
 0x1c0   : > { %9671 = vmatprep.subr.bf16.mxu1 %v18857_v54 }
 0x1c1   : > { %1689 = vmatmul.mubr.f32.gmra.mrb[62].mxu0 %v1096_v44  ;;  %v13261_v44 = vpop.f32.mrb[29].mxu1 }
 0x1c3   : > { %9673 = vmatpush1.bf16.msra.mxu1 %v9672_v49  ;;  %v8624_v49 = vld [vmem:[%s18563_s1 + $0x338] sm:$0xff] }
 0x1c4   : > { %9674 = vmatprep.subr.bf16.mxu1 %v18857_v54  ;;  %v9699_v40 = vpack.c.bf16 %v8624_v49, %v8623_v8 }
 0x1c7   : > { %9676 = vmatpush1.bf16.msra.mxu1 %v9675_v60 }
 0x1c8   : > { %9677 = vmatprep.subr.bf16.mxu1 %v18857_v54 }
 0x1cb   : > { %9679 = vmatpush1.bf16.msra.mxu1 %v9678_v57  ;;  %v13310_v57 = vld [vmem:[#allocation3] sm:$0xff] }
 0x1cc   : > { %9680 = vmatprep.subr.bf16.mxu1 %v18857_v54 }
 0x1cf   : > { %9682 = vmatpush1.bf16.msra.mxu1 %v9681_v59  ;;  %v2086_v59 = vrot.slane %v13310_v57, 1 }
 0x1d0   : > { %9683 = vmatprep.subr.bf16.mxu1 %v18857_v54 }
 0x1d3   : > { %9685 = vmatpush1.bf16.msra.mxu1 %v9684_v53 }
 0x1d4   : > { %9686 = vmatprep.subr.bf16.mxu1 %v18857_v54 }
 0x1d7   : > { %9688 = vmatpush1.bf16.msra.mxu1 %v9687_v48 }
 0x1d8   : > { %9689 = vmatprep.subr.bf16.mxu1 %v18857_v54 }
 0x1db   : > { %9691 = vmatpush1.bf16.msra.mxu1 %v9690_v15 }
 0x1dc   : > { %9692 = vmatprep.subr.bf16.mxu1 %v18857_v54 }
 0x1df   : > { %9694 = vmatpush1.bf16.msra.mxu1 %v9693_v6 }
 0x1e0   : > { %9695 = vmatprep.subr.bf16.mxu1 %v18857_v54 }
 0x1e3   : > { %9697 = vmatpush1.bf16.msra.mxu1 %v9696_v19 }
 0x1e4   : > { %9698 = vmatprep.subr.bf16.mxu1 %v18857_v54 }
 0x1e7   : > { %9700 = vmatpush1.bf16.msra.mxu1 %v9699_v40 }
 0x1e8   : > { %9701 = vmatprep.subr.bf16.mxu1 %v18857_v54 }
 0x1fc   : > { %v13277_v63 = vpop.f32.mrb[30].mxu1 }
 0x1fd   : > { %v13279_v12 = vpop.f32.mrb[31].mxu1 }
 0x218   : > { %v1535_v1 = vpop.f32.mrb[0].mxu0 }
 0x219   : > { %v1537_v27 = vpop.f32.mrb[1].mxu0  ;;  %v10133_v17 = vadd.f32 %v13291_v47, %v1535_v1 }
 0x21b   : > { %v1761_v26 = vadd.f32 %v10133_v17, %v13077_v14 }
 0x21c   : > { %v1540_v31 = vpop.f32.mrb[2].mxu0 }
 0x21d   : > { %v1919_v60 = vmax.f32 %v1761_v26, 0.0  ;;  %v10134_v32 = vadd.f32 %v13291_v47, %v1540_v31  ;;  %v1542_v38 = vpop.f32.mrb[3].mxu0 }
 0x21f   : > { %1952 = vst.msk [vmem:[#allocation3 + $0x19] sm:$0xff] %vm171_vm0, %v1919_v60  ;;  %v1766_v14 = vadd.f32 %v10134_v32, %v13075_v58  ;;  %v2088_v58 = vsel %vm449_vm3, %v2086_v59, %v2087_v46 }
 0x220   : > { %v1545_v62 = vpop.f32.mrb[4].mxu0 }
 0x221   : > { %v1920_v13 = vmax.f32 %v1766_v14, 0.0  ;;  %v10135_v53 = vadd.f32 %v13291_v47, %v1545_v62  ;;  %v1547_v42 = vpop.f32.mrb[5].mxu0 }
 0x223   : > { %1953 = vst.msk [vmem:[#allocation3 + $0x21] sm:$0xff] %vm171_vm0, %v1920_v13  ;;  %v1771_v48 = vadd.f32 %v10135_v53, %v13084_v11  ;;  %v2090_v11 = vsel %vm449_vm3, %v2087_v46, %v2089_v43 }
 0x224   : > { %v1550_v55 = vpop.f32.mrb[6].mxu0 }
 0x225   : > { %v1921_v15 = vmax.f32 %v1771_v48, 0.0  ;;  %v10136_v23 = vadd.f32 %v13291_v47, %v1550_v55  ;;  %v1552_v28 = vpop.f32.mrb[7].mxu0 }
 0x226   : > { %v13327_v6 = vld [vmem:[#allocation3 + $0x18] sm:$0xff] }
 0x227   : > { %1954 = vst.msk [vmem:[#allocation3 + $0x31] sm:$0xff] %vm171_vm0, %v1921_v15  ;;  %v1776_v41 = vadd.f32 %v10136_v23, %v13082_v35  ;;  %v10786_v52 = vpack.i.bf16 %v2088_v58, %v13327_v6  ;;  %v2091_v35 = vrot.slane %v13327_v6, 1 }
 0x228   : > { %v1555_v1 = vpop.f32.mrb[8].mxu0 }
 0x229   : > { %v1922_v19 = vmax.f32 %v1776_v41, 0.0  ;;  %v10137_v27 = vadd.f32 %v13291_v47, %v1555_v1  ;;  %v1557_v17 = vpop.f32.mrb[9].mxu0  ;;  %10787 = vrot.lane.b32.xlu0 %v10786_v52, %s11588_s14 }
 0x22a   : > { %v13335_v26 = vld [vmem:[#allocation3 + $0x20] sm:$0xff]  ;;  %v13342_v40 = vld [vmem:[#allocation3 + $0x28] sm:$0x3] }
 0x22b   : > { %1955 = vst.msk [vmem:[#allocation3 + $0x39] sm:$0xff] %vm171_vm0, %v1922_v19  ;;  %v1781_v8 = vadd.f32 %v10137_v27, %v13106_v20  ;;  %v10791_v49 = vpack.i.bf16 %v2090_v11, %v13335_v26  ;;  %v2092_v31 = vrot.slane %v13335_v26, 1  ;;  %v2094_v20 = vrot.slane %v13342_v40, 1 }
 0x22c   : > { %v1560_v60 = vpop.f32.mrb[10].mxu0 }
 0x22d   : > { %v1923_v32 = vmax.f32 %v1781_v8, 0.0  ;;  %v10138_v38 = vadd.f32 %v13291_v47, %v1560_v60  ;;  %v1562_v14 = vpop.f32.mrb[11].mxu0  ;;  %10792 = vrot.lane.b32.xlu1 %v10791_v49, %s11588_s14  ;;  %v13347_v62 = vsel %vm449_vm3, %v2091_v35, %v2092_v31  ;;  %v13359_v43 = vsel %vm449_vm3, %v2092_v31, %v2094_v20 }
 0x22e   : > { %18918 = vst [vmem:[#allocation37_spill] sm:$0xff] %v13347_v62  ;;  %v13349_v59 = vld [vmem:[#allocation3 + $0x30] sm:$0xff]  ;;  %18919 = vst [vmem:[#allocation38_spill] sm:$0xff] %v13359_v43 }
 0x22f   : > { %1956 = vst.msk [vmem:[#allocation3 + $0x49] sm:$0xff] %vm171_vm0, %v1923_v32  ;;  %v1786_v46 = vadd.f32 %v10138_v38, %v13098_v16  ;;  %v10796_v13 = vpack.i.bf16 %v13347_v62, %v13349_v59  ;;  %v2272_v15 = vrot.slane %v13349_v59, 2  ;;  %v2096_v11 = vrot.slane %v13349_v59, 1 }
 0x230   : > { %v1565_v53 = vpop.f32.mrb[12].mxu0 }
 0x231   : > { %v1924_v42 = vmax.f32 %v1786_v46, 0.0  ;;  %v10139_v48 = vadd.f32 %v13291_v47, %v1565_v53  ;;  %v1567_v55 = vpop.f32.mrb[13].mxu0  ;;  %10797 = vrot.lane.b32.xlu0 %v10796_v13, %s11588_s14 }
 0x232   : > { %v1991_v58 = vld [vmem:[#allocation3 + $0x38] sm:$0xff]  ;;  %v1992_v23 = vld [vmem:[#allocation3 + $0x40] sm:$0x3] }
 0x233   : > { %1957 = vst.msk [vmem:[#allocation3 + $0x51] sm:$0xff] %vm171_vm0, %v1924_v42  ;;  %v1791_v16 = vadd.f32 %v10139_v48, %v13129_v21  ;;  %v10801_v28 = vpack.i.bf16 %v13359_v43, %v1991_v58  ;;  %v2273_v41 = vrot.slane %v1991_v58, 2  ;;  %v2275_v52 = vrot.slane %v1992_v23, 2 }
 0x234   : > { %v1570_v1 = vpop.f32.mrb[14].mxu0  ;;  %v2097_v19 = vrot.slane %v1991_v58, 1  ;;  %v2099_v60 = vrot.slane %v1992_v23, 1 }
 0x235   : > { %v1925_v27 = vmax.f32 %v1791_v16, 0.0  ;;  %v10140_v17 = vadd.f32 %v13291_v47, %v1570_v1  ;;  %v1572_v8 = vpop.f32.mrb[15].mxu0  ;;  %10802 = vrot.lane.b32.xlu1 %v10801_v28, %s11588_s14  ;;  %v13369_v49 = vsel %vm626_vm4, %v2272_v15, %v2273_v41  ;;  %v13372_v35 = vsel %vm626_vm4, %v2273_v41, %v2275_v52 }
 0x236   : > { %9301 = vmatprep.mubr.msk.f32.mxu0 %vm171_vm0, %v13369_v49  ;;  %v13376_v21 = vld [vmem:[#allocation3 + $0x48] sm:$0xff]  ;;  %v13379_v31 = vsel %vm449_vm3, %v2096_v11, %v2097_v19  ;;  %v13392_v42 = vsel %vm449_vm3, %v2097_v19, %v2099_v60 }
 0x237   : > { %18920 = vst [vmem:[#allocation39_spill] sm:$0xff] %v13379_v31  ;;  %1958 = vst.msk [vmem:[#allocation3 + $0x61] sm:$0xff] %vm171_vm0, %v1925_v27  ;;  %v1796_v32 = vadd.f32 %v10140_v17, %v13121_v5  ;;  %9302 = vmatmul.mubr.msk.f32.vlgmr.msra.gmra.mrb[64].mxu0 %vm171_vm0, %v13372_v35  ;;  %v10806_v38 = vpack.i.bf16 %v13379_v31, %v13376_v21  ;;  %v2277_v5 = vrot.slane %v13376_v21, 2  ;;  %v2101_v28 = vrot.slane %v13376_v21, 1 }
 0x238   : > { %v1575_v14 = vpop.f32.mrb[16].mxu0  ;;  %18921 = vst [vmem:[#allocation26_spill] sm:$0xff] %v13392_v42 }
 0x239   : > { %v1926_v20 = vmax.f32 %v1796_v32, 0.0  ;;  %v10141_v46 = vadd.f32 %v13291_v47, %v1575_v14  ;;  %v1577_v13 = vpop.f32.mrb[17].mxu0  ;;  %10807 = vrot.lane.b32.xlu0 %v10806_v38, %s11588_s14 }
 0x23a   : > { %v13389_v53 = vld [vmem:[#allocation3 + $0x50] sm:$0xff]  ;;  %v1995_v48 = vld [vmem:[#allocation3 + $0x58] sm:$0x3] }
 0x23b   : > { %1959 = vst.msk [vmem:[#allocation3 + $0x69] sm:$0xff] %vm171_vm0, %v1926_v20  ;;  %v1801_v55 = vadd.f32 %v10141_v46, %v13140_v7  ;;  %v10811_v58 = vpack.i.bf16 %v13392_v42, %v13389_v53  ;;  %v2278_v15 = vrot.slane %v13389_v53, 2  ;;  %v2280_v23 = vrot.slane %v1995_v48, 2 }
 0x23c   : > { %v1580_v16 = vpop.f32.mrb[18].mxu0  ;;  %v2102_v41 = vrot.slane %v13389_v53, 1  ;;  %v2104_v8 = vrot.slane %v1995_v48, 1 }
 0x23d   : > { %v1927_v52 = vmax.f32 %v1801_v55, 0.0  ;;  %v10142_v1 = vadd.f32 %v13291_v47, %v1580_v16  ;;  %v1582_v11 = vpop.f32.mrb[19].mxu0  ;;  %10812 = vrot.lane.b32.xlu1 %v10811_v58, %s11588_s14  ;;  %v13405_v19 = vsel %vm626_vm4, %v2277_v5, %v2278_v15  ;;  %v13408_v7 = vsel %vm626_vm4, %v2278_v15, %v2280_v23 }
 0x23e   : > { %9304 = vmatprep.mubr.msk.f32.mxu0 %vm171_vm0, %v13405_v19  ;;  %v13412_v27 = vld [vmem:[#allocation3 + $0x60] sm:$0xff]  ;;  %v13415_v17 = vsel %vm449_vm3, %v2101_v28, %v2102_v41  ;;  %v13428_v5 = vsel %vm449_vm3, %v2102_v41, %v2104_v8 }
 0x23f   : > { %18922 = vst [vmem:[#allocation29_spill] sm:$0xff] %v13415_v17  ;;  %1960 = vst.msk [vmem:[#allocation3 + $0x79] sm:$0xff] %vm171_vm0, %v1927_v52  ;;  %v1806_v60 = vadd.f32 %v10142_v1, %v13138_v0  ;;  %9305 = vmatmul.mubr.msk.f32.gmra.mrb[66].mxu0 %vm171_vm0, %v13408_v7  ;;  %v10816_v32 = vpack.i.bf16 %v13415_v17, %v13412_v27  ;;  %v2282_v0 = vrot.slane %v13412_v27, 2  ;;  %v2106_v28 = vrot.slane %v13412_v27, 1 }
 0x240   : > { %v1585_v38 = vpop.f32.mrb[20].mxu0  ;;  %18923 = vst [vmem:[#allocation41_spill] sm:$0xff] %v13428_v5 }
 0x241   : > { %v1928_v14 = vmax.f32 %v1806_v60, 0.0  ;;  %v10143_v20 = vadd.f32 %v13291_v47, %v1585_v38  ;;  %v1587_v46 = vpop.f32.mrb[21].mxu0  ;;  %10817 = vrot.lane.b32.xlu0 %v10816_v32, %s11588_s14 }
 0x242   : > { %v13425_v13 = vld [vmem:[#allocation3 + $0x68] sm:$0xff]  ;;  %v1998_v48 = vld [vmem:[#allocation3 + $0x70] sm:$0x3] }
 0x243   : > { %1961 = vst.msk [vmem:[#allocation3 + $0x81] sm:$0xff] %vm171_vm0, %v1928_v14  ;;  %v1811_v55 = vadd.f32 %v10143_v20, %v13149_v4  ;;  %v10821_v58 = vpack.i.bf16 %v13428_v5, %v13425_v13  ;;  %v2283_v15 = vrot.slane %v13425_v13, 2  ;;  %v2285_v23 = vrot.slane %v1998_v48, 2 }
 0x244   : > { %v1590_v16 = vpop.f32.mrb[22].mxu0  ;;  %v2107_v52 = vrot.slane %v13425_v13, 1  ;;  %v2109_v38 = vrot.slane %v1998_v48, 1 }
 0x245   : > { %v1929_v41 = vmax.f32 %v1811_v55, 0.0  ;;  %v10144_v1 = vadd.f32 %v13291_v47, %v1590_v16  ;;  %v1592_v11 = vpop.f32.mrb[23].mxu0  ;;  %10822 = vrot.lane.b32.xlu1 %v10821_v58, %s11588_s14  ;;  %v13441_v8 = vsel %vm626_vm4, %v2282_v0, %v2283_v15  ;;  %v13444_v4 = vsel %vm626_vm4, %v2283_v15, %v2285_v23 }
 0x246   : > { %9307 = vmatprep.mubr.msk.f32.mxu0 %vm171_vm0, %v13441_v8  ;;  %v13448_v60 = vld [vmem:[#allocation3 + $0x78] sm:$0xff]  ;;  %v13451_v32 = vsel %vm449_vm3, %v2106_v28, %v2107_v52  ;;  %v13464_v48 = vsel %vm449_vm3, %v2107_v52, %v2109_v38 }
 0x247   : > { %18924 = vst [vmem:[#allocation32_spill] sm:$0xff] %v13451_v32  ;;  %1962 = vst.msk [vmem:[#allocation3 + $0x91] sm:$0xff] %vm171_vm0, %v1929_v41  ;;  %v1816_v14 = vadd.f32 %v10144_v1, %v13147_v39  ;;  %9308 = vmatmul.mubr.msk.f32.gmra.mrb[68].mxu0 %vm171_vm0, %v13444_v4  ;;  %v10826_v20 = vpack.i.bf16 %v13451_v32, %v13448_v60  ;;  %v2287_v39 = vrot.slane %v13448_v60, 2 }
 0x248   : > { %v1595_v46 = vpop.f32.mrb[24].mxu0  ;;  %18925 = vst [vmem:[#allocation4_spill] sm:$0xff] %v13464_v48 }
 0x249   : > { %v1930_v0 = vmax.f32 %v1816_v14, 0.0  ;;  %v10145_v55 = vadd.f32 %v13291_v47, %v1595_v46  ;;  %v1597_v58 = vpop.f32.mrb[25].mxu0  ;;  %10827 = vrot.lane.b32.xlu0 %v10826_v20, %s11588_s14  ;;  %v2111_v14 = vrot.slane %v13448_v60, 1 }
 0x24a   : > { %v13461_v15 = vld [vmem:[#allocation3 + $0x80] sm:$0xff]  ;;  %v2001_v23 = vld [vmem:[#allocation3 + $0x88] sm:$0x3] }
 0x24b   : > { %1963 = vst.msk [vmem:[#allocation3 + $0x99] sm:$0xff] %vm171_vm0, %v1930_v0  ;;  %v1821_v16 = vadd.f32 %v10145_v55, %v13153_v10  ;;  %v10831_v28 = vpack.i.bf16 %v13464_v48, %v13461_v15  ;;  %v2288_v41 = vrot.slane %v13461_v15, 2  ;;  %v2290_v1 = vrot.slane %v2001_v23, 2 }
 0x24c   : > { %v1600_v11 = vpop.f32.mrb[26].mxu0  ;;  %v2112_v20 = vrot.slane %v13461_v15, 1 }
 0x24d   : > { %v1931_v52 = vmax.f32 %v1821_v16, 0.0  ;;  %v10146_v38 = vadd.f32 %v13291_v47, %v1600_v11  ;;  %v1602_v46 = vpop.f32.mrb[27].mxu0  ;;  %10832 = vrot.lane.b32.xlu1 %v10831_v28, %s11588_s14  ;;  %v13477_v0 = vsel %vm626_vm4, %v2287_v39, %v2288_v41  ;;  %v13480_v10 = vsel %vm626_vm4, %v2288_v41, %v2290_v1 }
 0x24e   : > { %9310 = vmatprep.mubr.msk.f32.mxu0 %vm171_vm0, %v13477_v0  ;;  %v13484_v55 = vld [vmem:[#allocation3 + $0x90] sm:$0xff]  ;;  %v13487_v58 = vsel %vm449_vm3, %v2111_v14, %v2112_v20  ;;  %v2114_v16 = vrot.slane %v2001_v23, 1 }
 0x24f   : > { %18926 = vst [vmem:[#allocation5_spill] sm:$0xff] %v13487_v58  ;;  %1964 = vst.msk [vmem:[#allocation3 + $0xa9] sm:$0xff] %vm171_vm0, %v1931_v52  ;;  %v1826_v11 = vadd.f32 %v10146_v38, %v13151_v18  ;;  %9311 = vmatmul.mubr.msk.f32.gmra.mrb[70].mxu0 %vm171_vm0, %v13480_v10  ;;  %v10836_v39 = vpack.i.bf16 %v13487_v58, %v13484_v55  ;;  %v2292_v18 = vrot.slane %v13484_v55, 2 }
 0x250   : > { %v1605_v28 = vpop.f32.mrb[28].mxu0  ;;  %v13500_v23 = vsel %vm449_vm3, %v2112_v20, %v2114_v16 }
 0x251   : > { %v1932_v41 = vmax.f32 %v1826_v11, 0.0  ;;  %v10147_v1 = vadd.f32 %v13291_v47, %v1605_v28  ;;  %v1607_v46 = vpop.f32.mrb[29].mxu0  ;;  %10837 = vrot.lane.b32.xlu0 %v10836_v39, %s11588_s14  ;;  %18927 = vst [vmem:[#allocation6_spill] sm:$0xff] %v13500_v23  ;;  %v2116_v39 = vrot.slane %v13484_v55, 1 }
 0x252   : > { %v13497_v14 = vld [vmem:[#allocation3 + $0x98] sm:$0xff]  ;;  %v2004_v52 = vld [vmem:[#allocation3 + $0xa0] sm:$0x3] }
 0x253   : > { %1965 = vst.msk [vmem:[#allocation3 + $0xb1] sm:$0xff] %vm171_vm0, %v1932_v41  ;;  %v1831_v38 = vadd.f32 %v10147_v1, %v13157_v34  ;;  %v10841_v11 = vpack.i.bf16 %v13500_v23, %v13497_v14  ;;  %v2293_v28 = vrot.slane %v13497_v14, 2  ;;  %v2295_v46 = vrot.slane %v2004_v52, 2 }
 0x254   : > { %v1610_v58 = vpop.f32.mrb[30].mxu0  ;;  %v2117_v48 = vrot.slane %v13497_v14, 1 }
 0x255   : > { %v1933_v20 = vmax.f32 %v1831_v38, 0.0  ;;  %v10148_v16 = vadd.f32 %v13291_v47, %v1610_v58  ;;  %v1612_v32 = vpop.f32.mrb[31].mxu0  ;;  %10842 = vrot.lane.b32.xlu1 %v10841_v11, %s11588_s14  ;;  %v13513_v41 = vsel %vm626_vm4, %v2292_v18, %v2293_v28  ;;  %v13516_v34 = vsel %vm626_vm4, %v2293_v28, %v2295_v46 }
 0x256   : > { %9313 = vmatprep.mubr.msk.f32.mxu0 %vm171_vm0, %v13513_v41  ;;  %v13520_v1 = vld [vmem:[#allocation3 + $0xa8] sm:$0xff]  ;;  %v13523_v23 = vsel %vm449_vm3, %v2116_v39, %v2117_v48  ;;  %v2119_v38 = vrot.slane %v2004_v52, 1 }
 0x257   : > { %18928 = vst [vmem:[#allocation7_spill] sm:$0xff] %v13523_v23  ;;  %1966 = vst.msk [vmem:[#allocation3 + $0xc1] sm:$0xff] %vm171_vm0, %v1933_v20  ;;  %v1836_v32 = vadd.f32 %v10148_v16, %v13155_v3  ;;  %9314 = vmatmul.mubr.msk.f32.gmra.mrb[72].mxu0 %vm171_vm0, %v13516_v34  ;;  %v10846_v58 = vpack.i.bf16 %v13523_v23, %v13520_v1  ;;  %v2297_v3 = vrot.slane %v13520_v1, 2 }
 0x258   : > { %v1615_v18 = vpop.f32.mrb[32].mxu0  ;;  %v13536_v52 = vsel %vm449_vm3, %v2117_v48, %v2119_v38 }
 0x259   : > { %v1934_v11 = vmax.f32 %v1836_v32, 0.0  ;;  %v10149_v28 = vadd.f32 %v13291_v47, %v1615_v18  ;;  %v1617_v46 = vpop.f32.mrb[33].mxu0  ;;  %10847 = vrot.lane.b32.xlu0 %v10846_v58, %s11588_s14  ;;  %18929 = vst [vmem:[#allocation8_spill] sm:$0xff] %v13536_v52  ;;  %v2121_v58 = vrot.slane %v13520_v1, 1 }
 0x25a   : > { %v13533_v39 = vld [vmem:[#allocation3 + $0xb0] sm:$0xff]  ;;  %v2007_v20 = vld [vmem:[#allocation3 + $0xb8] sm:$0x3] }
 0x25b   : > { %1967 = vst.msk [vmem:[#allocation3 + $0xc9] sm:$0xff] %vm171_vm0, %v1934_v11  ;;  %v1841_v16 = vadd.f32 %v10149_v28, %v13161_v45  ;;  %v10851_v32 = vpack.i.bf16 %v13536_v52, %v13533_v39  ;;  %v2298_v18 = vrot.slane %v13533_v39, 2  ;;  %v2300_v46 = vrot.slane %v2007_v20, 2 }
 0x25c   : > { %v1620_v23 = vpop.f32.mrb[34].mxu0  ;;  %v2122_v5 = vrot.slane %v13533_v39, 1 }
 0x25d   : > { %v1935_v48 = vmax.f32 %v1841_v16, 0.0  ;;  %v10150_v38 = vadd.f32 %v13291_v47, %v1620_v23  ;;  %v1622_v17 = vpop.f32.mrb[35].mxu0  ;;  %10852 = vrot.lane.b32.xlu1 %v10851_v32, %s11588_s14  ;;  %v13549_v11 = vsel %vm626_vm4, %v2297_v3, %v2298_v18  ;;  %v13552_v45 = vsel %vm626_vm4, %v2298_v18, %v2300_v46 }
 0x25e   : > { %9316 = vmatprep.mubr.msk.f32.mxu0 %vm171_vm0, %v13549_v11  ;;  %v13556_v28 = vld [vmem:[#allocation3 + $0xc0] sm:$0xff]  ;;  %v13559_v52 = vsel %vm449_vm3, %v2121_v58, %v2122_v5  ;;  %v2124_v16 = vrot.slane %v2007_v20, 1 }
 0x25f   : > { %18930 = vst [vmem:[#allocation9_spill] sm:$0xff] %v13556_v28  ;;  %18931 = vst [vmem:[#allocation10_spill] sm:$0xff] %v13559_v52  ;;  %v1846_v17 = vadd.f32 %v10150_v38, %v13159_v33  ;;  %9317 = vmatmul.mubr.msk.f32.gmra.mrb[74].mxu0 %vm171_vm0, %v13552_v45  ;;  %v10856_v23 = vpack.i.bf16 %v13559_v52, %v13556_v28  ;;  %v2302_v33 = vrot.slane %v13556_v28, 2 }
 0x260   : > { %1968 = vst.msk [vmem:[#allocation3 + $0xd9] sm:$0xff] %vm171_vm0, %v1935_v48  ;;  %v1625_v3 = vpop.f32.mrb[36].mxu0  ;;  %v13572_v20 = vsel %vm449_vm3, %v2122_v5, %v2124_v16 }
 0x261   : > { %v1936_v32 = vmax.f32 %v1846_v17, 0.0  ;;  %v10151_v18 = vadd.f32 %v13291_v47, %v1625_v3  ;;  %v1627_v46 = vpop.f32.mrb[37].mxu0  ;;  %10857 = vrot.lane.b32.xlu0 %v10856_v23, %s11588_s14  ;;  %18933 = vst [vmem:[#allocation12_spill] sm:$0xff] %v13572_v20  ;;  %v2126_v23 = vrot.slane %v13556_v28, 1 }
 0x262   : > { %v13569_v58 = vld [vmem:[#allocation3 + $0xc8] sm:$0xff]  ;;  %v2010_v48 = vld [vmem:[#allocation3 + $0xd0] sm:$0x3] }
 0x263   : > { %18932 = vst [vmem:[#allocation11_spill] sm:$0xff] %v13569_v58  ;;  %1969 = vst.msk [vmem:[#allocation3 + $0xe1] sm:$0xff] %vm171_vm0, %v1936_v32  ;;  %v1851_v38 = vadd.f32 %v10151_v18, %v13171_v24  ;;  %v10861_v17 = vpack.i.bf16 %v13572_v20, %v13569_v58  ;;  %v2303_v3 = vrot.slane %v13569_v58, 2  ;;  %v2305_v46 = vrot.slane %v2010_v48, 2 }
 0x264   : > { %v1630_v52 = vpop.f32.mrb[38].mxu0  ;;  %v2127_v42 = vrot.slane %v13569_v58, 1 }
 0x265   : > { %v1937_v5 = vmax.f32 %v1851_v38, 0.0  ;;  %v10152_v16 = vadd.f32 %v13291_v47, %v1630_v52  ;;  %v1632_v31 = vpop.f32.mrb[39].mxu0  ;;  %10862 = vrot.lane.b32.xlu1 %v10861_v17, %s11588_s14  ;;  %v13585_v32 = vsel %vm626_vm4, %v2302_v33, %v2303_v3  ;;  %v13588_v24 = vsel %vm626_vm4, %v2303_v3, %v2305_v46 }
 0x266   : > { %9319 = vmatprep.mubr.msk.f32.mxu0 %vm171_vm0, %v13585_v32  ;;  %v13595_v20 = vsel %vm449_vm3, %v2126_v23, %v2127_v42  ;;  %v2129_v38 = vrot.slane %v2010_v48, 1 }
 0x267   : > { %v13592_v18 = vld [vmem:[#allocation3 + $0xd8] sm:$0xff]  ;;  %18935 = vst [vmem:[#allocation14_spill] sm:$0xff] %v13595_v20  ;;  %1970 = vst.msk [vmem:[#allocation3 + $0xf1] sm:$0xff] %vm171_vm0, %v1937_v5  ;;  %v1856_v31 = vadd.f32 %v10152_v16, %v13169_v61  ;;  %9320 = vmatmul.mubr.msk.f32.gmra.mrb[76].mxu0 %vm171_vm0, %v13588_v24 }
 0x268   : > { %18934 = vst [vmem:[#allocation13_spill] sm:$0xff] %v13592_v18  ;;  %v10866_v52 = vpack.i.bf16 %v13595_v20, %v13592_v18  ;;  %v1635_v33 = vpop.f32.mrb[40].mxu0  ;;  %v13608_v48 = vsel %vm449_vm3, %v2127_v42, %v2129_v38  ;;  %v2307_v61 = vrot.slane %v13592_v18, 2 }
 0x269   : > { %v1938_v17 = vmax.f32 %v1856_v31, 0.0  ;;  %v10153_v3 = vadd.f32 %v13291_v47, %v1635_v33  ;;  %v1637_v46 = vpop.f32.mrb[41].mxu0  ;;  %18937 = vst [vmem:[#allocation16_spill] sm:$0xff] %v13608_v48 }
 0x26a   : > { %10867 = vrot.lane.b32.xlu0 %v10866_v52, %s11588_s14  ;;  %v13605_v23 = vld [vmem:[#allocation3 + $0xe0] sm:$0xff]  ;;  %v2013_v5 = vld [vmem:[#allocation3 + $0xe8] sm:$0x3]  ;;  %v2131_v52 = vrot.slane %v13592_v18, 1 }
 0x26b   : > { %18936 = vst [vmem:[#allocation15_spill] sm:$0xff] %v13605_v23  ;;  %1971 = vst.msk [vmem:[#allocation3 + $0xf9] sm:$0xff] %vm171_vm0, %v1938_v17  ;;  %v1861_v16 = vadd.f32 %v10153_v3, %v13189_v9  ;;  %v10871_v31 = vpack.i.bf16 %v13608_v48, %v13605_v23  ;;  %v2308_v33 = vrot.slane %v13605_v23, 2  ;;  %v2310_v46 = vrot.slane %v2013_v5, 2 }
 0x26c   : > { %v1640_v20 = vpop.f32.mrb[42].mxu0  ;;  %v2132_v43 = vrot.slane %v13605_v23, 1 }
 0x26d   : > { %v1939_v42 = vmax.f32 %v1861_v16, 0.0  ;;  %v10154_v38 = vadd.f32 %v13291_v47, %v1640_v20  ;;  %v1642_v62 = vpop.f32.mrb[43].mxu0  ;;  %10872 = vrot.lane.b32.xlu1 %v10871_v31, %s11588_s14  ;;  %v13621_v17 = vsel %vm626_vm4, %v2307_v61, %v2308_v33  ;;  %v13624_v9 = vsel %vm626_vm4, %v2308_v33, %v2310_v46 }
 0x26e   : > { %9322 = vmatprep.mubr.msk.f32.mxu0 %vm171_vm0, %v13621_v17  ;;  %v13628_v3 = vld [vmem:[#allocation3 + $0xf0] sm:$0xff]  ;;  %v13631_v48 = vsel %vm449_vm3, %v2131_v52, %v2132_v43  ;;  %v2134_v16 = vrot.slane %v2013_v5, 1 }
 0x26f   : > { %18938 = vst [vmem:[#allocation17_spill] sm:$0xff] %v13628_v3  ;;  %18939 = vst [vmem:[#allocation18_spill] sm:$0xff] %v13631_v48  ;;  %v1866_v62 = vadd.f32 %v10154_v38, %v13187_v36  ;;  %9323 = vmatmul.mubr.msk.f32.gmra.mrb[78].mxu0 %vm171_vm0, %v13624_v9  ;;  %v10876_v20 = vpack.i.bf16 %v13631_v48, %v13628_v3  ;;  %v2312_v36 = vrot.slane %v13628_v3, 2 }
 0x270   : > { %1972 = vst.msk [vmem:[#allocation3 + $0x109] sm:$0xff] %vm171_vm0, %v1939_v42  ;;  %v1645_v61 = vpop.f32.mrb[44].mxu0  ;;  %v13644_v5 = vsel %vm449_vm3, %v2132_v43, %v2134_v16 }
 0x271   : > { %v1940_v31 = vmax.f32 %v1866_v62, 0.0  ;;  %v10155_v33 = vadd.f32 %v13291_v47, %v1645_v61  ;;  %v1647_v46 = vpop.f32.mrb[45].mxu0  ;;  %10877 = vrot.lane.b32.xlu0 %v10876_v20, %s11588_s14  ;;  %18941 = vst [vmem:[#allocation20_spill] sm:$0xff] %v13644_v5  ;;  %v2136_v20 = vrot.slane %v13628_v3, 1 }
 0x272   : > { %v13641_v52 = vld [vmem:[#allocation3 + $0xf8] sm:$0xff]  ;;  %v2016_v42 = vld [vmem:[#allocation3 + $0x100] sm:$0x3] }
 0x273   : > { %18940 = vst [vmem:[#allocation19_spill] sm:$0xff] %v13641_v52  ;;  %1973 = vst.msk [vmem:[#allocation3 + $0x111] sm:$0xff] %vm171_vm0, %v1940_v31  ;;  %v1871_v38 = vadd.f32 %v10155_v33, %v13207_v50  ;;  %v10881_v62 = vpack.i.bf16 %v13644_v5, %v13641_v52  ;;  %v2313_v61 = vrot.slane %v13641_v52, 2  ;;  %v2315_v46 = vrot.slane %v2016_v42, 2 }
 0x274   : > { %v1650_v48 = vpop.f32.mrb[46].mxu0  ;;  %v2137_v23 = vrot.slane %v13641_v52, 1 }
 0x275   : > { %v1941_v43 = vmax.f32 %v1871_v38, 0.0  ;;  %v10156_v16 = vadd.f32 %v13291_v47, %v1650_v48  ;;  %v1652_v18 = vpop.f32.mrb[47].mxu0  ;;  %10882 = vrot.lane.b32.xlu1 %v10881_v62, %s11588_s14  ;;  %v13657_v31 = vsel %vm626_vm4, %v2312_v36, %v2313_v61  ;;  %v13660_v50 = vsel %vm626_vm4, %v2313_v61, %v2315_v46 }
 0x276   : > { %9325 = vmatprep.mubr.msk.f32.mxu0 %vm171_vm0, %v13657_v31  ;;  %v13667_v5 = vsel %vm449_vm3, %v2136_v20, %v2137_v23  ;;  %v2139_v38 = vrot.slane %v2016_v42, 1 }
 0x277   : > { %v13664_v33 = vld [vmem:[#allocation3 + $0x108] sm:$0xff]  ;;  %18943 = vst [vmem:[#allocation22_spill] sm:$0xff] %v13667_v5  ;;  %1974 = vst.msk [vmem:[#allocation3 + $0x121] sm:$0xff] %vm171_vm0, %v1941_v43  ;;  %v1876_v18 = vadd.f32 %v10156_v16, %v13205_v2  ;;  %9326 = vmatmul.mubr.msk.f32.gmra.mrb[80].mxu0 %vm171_vm0, %v13660_v50 }
 0x278   : > { %18942 = vst [vmem:[#allocation21_spill] sm:$0xff] %v13664_v33  ;;  %v10886_v48 = vpack.i.bf16 %v13667_v5, %v13664_v33  ;;  %v1655_v36 = vpop.f32.mrb[48].mxu0  ;;  %v13680_v42 = vsel %vm449_vm3, %v2137_v23, %v2139_v38  ;;  %v2317_v2 = vrot.slane %v13664_v33, 2 }
 0x279   : > { %v1942_v62 = vmax.f32 %v1876_v18, 0.0  ;;  %v10157_v61 = vadd.f32 %v13291_v47, %v1655_v36  ;;  %v1657_v46 = vpop.f32.mrb[49].mxu0  ;;  %18945 = vst [vmem:[#allocation24_spill] sm:$0xff] %v13680_v42 }
 0x27a   : > { %10887 = vrot.lane.b32.xlu0 %v10886_v48, %s11588_s14  ;;  %v13677_v20 = vld [vmem:[#allocation3 + $0x110] sm:$0xff]  ;;  %v2019_v43 = vld [vmem:[#allocation3 + $0x118] sm:$0x3]  ;;  %v2141_v48 = vrot.slane %v13664_v33, 1 }
 0x27b   : > { %18944 = vst [vmem:[#allocation23_spill] sm:$0xff] %v13677_v20  ;;  %1975 = vst.msk [vmem:[#allocation3 + $0x129] sm:$0xff] %vm171_vm0, %v1942_v62  ;;  %v1881_v16 = vadd.f32 %v10157_v61, %v13225_v25  ;;  %v10891_v18 = vpack.i.bf16 %v13680_v42, %v13677_v20  ;;  %v2318_v36 = vrot.slane %v13677_v20, 2  ;;  %v2320_v46 = vrot.slane %v2019_v43, 2 }
 0x27c   : > { %v1660_v5 = vpop.f32.mrb[50].mxu0  ;;  %v2142_v52 = vrot.slane %v13677_v20, 1 }
 0x27d   : > { %v1943_v23 = vmax.f32 %v1881_v16, 0.0  ;;  %v10158_v38 = vadd.f32 %v13291_v47, %v1660_v5  ;;  %v1662_v3 = vpop.f32.mrb[51].mxu0  ;;  %10892 = vrot.lane.b32.xlu1 %v10891_v18, %s11588_s14  ;;  %v13693_v62 = vsel %vm626_vm4, %v2317_v2, %v2318_v36  ;;  %v13696_v25 = vsel %vm626_vm4, %v2318_v36, %v2320_v46 }
 0x27e   : > { %9328 = vmatprep.mubr.msk.f32.mxu0 %vm171_vm0, %v13693_v62  ;;  %v13700_v61 = vld [vmem:[#allocation3 + $0x120] sm:$0xff]  ;;  %v13703_v42 = vsel %vm449_vm3, %v2141_v48, %v2142_v52  ;;  %v2144_v16 = vrot.slane %v2019_v43, 1 }
 0x27f   : > { %18946 = vst [vmem:[#allocation25_spill] sm:$0xff] %v13700_v61  ;;  %18947 = vst [vmem:[#allocation27_spill] sm:$0xff] %v13703_v42  ;;  %v1886_v3 = vadd.f32 %v10158_v38, %v13223_v56  ;;  %9329 = vmatmul.mubr.msk.f32.gmra.mrb[82].mxu0 %vm171_vm0, %v13696_v25  ;;  %v10896_v5 = vpack.i.bf16 %v13703_v42, %v13700_v61  ;;  %v2322_v56 = vrot.slane %v13700_v61, 2 }
 0x280   : > { %1976 = vst.msk [vmem:[#allocation3 + $0x139] sm:$0xff] %vm171_vm0, %v1943_v23  ;;  %v1665_v2 = vpop.f32.mrb[52].mxu0  ;;  %v13716_v43 = vsel %vm449_vm3, %v2142_v52, %v2144_v16 }
 0x281   : > { %v1944_v18 = vmax.f32 %v1886_v3, 0.0  ;;  %v10159_v36 = vadd.f32 %v13291_v47, %v1665_v2  ;;  %v1667_v46 = vpop.f32.mrb[53].mxu0  ;;  %10897 = vrot.lane.b32.xlu0 %v10896_v5, %s11588_s14  ;;  %18949 = vst [vmem:[#allocation30_spill] sm:$0xff] %v13716_v43  ;;  %v2146_v5 = vrot.slane %v13700_v61, 1 }
 0x282   : > { %v13713_v48 = vld [vmem:[#allocation3 + $0x128] sm:$0xff]  ;;  %v2022_v23 = vld [vmem:[#allocation3 + $0x130] sm:$0x3] }
 0x283   : > { %18948 = vst [vmem:[#allocation28_spill] sm:$0xff] %v13713_v48  ;;  %1977 = vst.msk [vmem:[#allocation3 + $0x141] sm:$0xff] %vm171_vm0, %v1944_v18  ;;  %v1891_v38 = vadd.f32 %v10159_v36, %v13243_v22  ;;  %v10901_v3 = vpack.i.bf16 %v13716_v43, %v13713_v48  ;;  %v2323_v2 = vrot.slane %v13713_v48, 2  ;;  %v2325_v46 = vrot.slane %v2022_v23, 2 }
 0x284   : > { %v1670_v42 = vpop.f32.mrb[54].mxu0  ;;  %v2147_v20 = vrot.slane %v13713_v48, 1 }
 0x285   : > { %v1945_v52 = vmax.f32 %v1891_v38, 0.0  ;;  %v10160_v16 = vadd.f32 %v13291_v47, %v1670_v42  ;;  %v1672_v33 = vpop.f32.mrb[55].mxu0  ;;  %10902 = vrot.lane.b32.xlu1 %v10901_v3, %s11588_s14  ;;  %v13729_v18 = vsel %vm626_vm4, %v2322_v56, %v2323_v2  ;;  %v13732_v22 = vsel %vm626_vm4, %v2323_v2, %v2325_v46 }
 0x286   : > { %9331 = vmatprep.mubr.msk.f32.mxu0 %vm171_vm0, %v13729_v18  ;;  %v13739_v43 = vsel %vm449_vm3, %v2146_v5, %v2147_v20  ;;  %v2149_v38 = vrot.slane %v2022_v23, 1 }
 0x287   : > { %v13736_v36 = vld [vmem:[#allocation3 + $0x138] sm:$0xff]  ;;  %18951 = vst [vmem:[#allocation33_spill] sm:$0xff] %v13739_v43  ;;  %1978 = vst.msk [vmem:[#allocation3 + $0x151] sm:$0xff] %vm171_vm0, %v1945_v52  ;;  %v1896_v33 = vadd.f32 %v10160_v16, %v13241_v37  ;;  %9332 = vmatmul.mubr.msk.f32.gmra.mrb[84].mxu0 %vm171_vm0, %v13732_v22 }
 0x288   : > { %18950 = vst [vmem:[#allocation31_spill] sm:$0xff] %v13736_v36  ;;  %v10906_v42 = vpack.i.bf16 %v13739_v43, %v13736_v36  ;;  %v1675_v56 = vpop.f32.mrb[56].mxu0  ;;  %v13752_v23 = vsel %vm449_vm3, %v2147_v20, %v2149_v38  ;;  %v2327_v37 = vrot.slane %v13736_v36, 2 }
 0x289   : > { %v1946_v3 = vmax.f32 %v1896_v33, 0.0  ;;  %v10161_v2 = vadd.f32 %v13291_v47, %v1675_v56  ;;  %v1677_v46 = vpop.f32.mrb[57].mxu0  ;;  %18953 = vst [vmem:[#allocation35_spill] sm:$0xff] %v13752_v23 }
 0x28a   : > { %10907 = vrot.lane.b32.xlu0 %v10906_v42, %s11588_s14  ;;  %v13749_v5 = vld [vmem:[#allocation3 + $0x140] sm:$0xff]  ;;  %v2025_v52 = vld [vmem:[#allocation3 + $0x148] sm:$0x3]  ;;  %v2151_v42 = vrot.slane %v13736_v36, 1 }
 0x28b   : > { %18952 = vst [vmem:[#allocation34_spill] sm:$0xff] %v13749_v5  ;;  %1979 = vst.msk [vmem:[#allocation3 + $0x159] sm:$0xff] %vm171_vm0, %v1946_v3  ;;  %v1901_v16 = vadd.f32 %v10161_v2, %v13261_v44  ;;  %v10911_v33 = vpack.i.bf16 %v13752_v23, %v13749_v5  ;;  %v2328_v56 = vrot.slane %v13749_v5, 2  ;;  %v2330_v46 = vrot.slane %v2025_v52, 2 }
 0x28c   : > { %v1680_v43 = vpop.f32.mrb[58].mxu0  ;;  %v2152_v48 = vrot.slane %v13749_v5, 1 }
 0x28d   : > { %v1947_v20 = vmax.f32 %v1901_v16, 0.0  ;;  %v10162_v38 = vadd.f32 %v13291_v47, %v1680_v43  ;;  %v1682_v61 = vpop.f32.mrb[59].mxu0  ;;  %10912 = vrot.lane.b32.xlu1 %v10911_v33, %s11588_s14  ;;  %v13765_v3 = vsel %vm626_vm4, %v2327_v37, %v2328_v56  ;;  %v13768_v44 = vsel %vm626_vm4, %v2328_v56, %v2330_v46 }
 0x28e   : > { %9334 = vmatprep.mubr.msk.f32.mxu0 %vm171_vm0, %v13765_v3  ;;  %v13772_v2 = vld [vmem:[#allocation3 + $0x150] sm:$0xff]  ;;  %v13775_v23 = vsel %vm449_vm3, %v2151_v42, %v2152_v48  ;;  %v2154_v16 = vrot.slane %v2025_v52, 1 }
 0x28f   : > { %18954 = vst [vmem:[#allocation36_spill] sm:$0xff] %v13772_v2  ;;  %18955 = vst [vmem:[#allocation40_spill] sm:$0xff] %v13775_v23  ;;  %v1906_v61 = vadd.f32 %v10162_v38, %v13259_v51  ;;  %9335 = vmatmul.mubr.msk.f32.gmra.mrb[86].mxu0 %vm171_vm0, %v13768_v44  ;;  %v10916_v43 = vpack.i.bf16 %v13775_v23, %v13772_v2  ;;  %v2332_v51 = vrot.slane %v13772_v2, 2 }
 0x290   : > { %1980 = vst.msk [vmem:[#allocation3 + $0x169] sm:$0xff] %vm171_vm0, %v1947_v20  ;;  %v1685_v37 = vpop.f32.mrb[60].mxu0  ;;  %v13788_v52 = vsel %vm449_vm3, %v2152_v48, %v2154_v16 }
 0x291   : > { %v1948_v33 = vmax.f32 %v1906_v61, 0.0  ;;  %v10163_v56 = vadd.f32 %v13291_v47, %v1685_v37  ;;  %v1687_v46 = vpop.f32.mrb[61].mxu0  ;;  %10917 = vrot.lane.b32.xlu0 %v10916_v43, %s11588_s14  ;;  %18957 = vst [vmem:[#allocation43_spill] sm:$0xff] %v13788_v52  ;;  %v2156_v43 = vrot.slane %v13772_v2, 1 }
 0x292   : > { %v13785_v42 = vld [vmem:[#allocation3 + $0x158] sm:$0xff]  ;;  %v2028_v20 = vld [vmem:[#allocation3 + $0x160] sm:$0x3] }
 0x293   : > { %18956 = vst [vmem:[#allocation42_spill] sm:$0xff] %v13785_v42  ;;  %1981 = vst.msk [vmem:[#allocation3 + $0x171] sm:$0xff] %vm171_vm0, %v1948_v33  ;;  %v1911_v38 = vadd.f32 %v10163_v56, %v13279_v12  ;;  %v10921_v61 = vpack.i.bf16 %v13788_v52, %v13785_v42  ;;  %v2333_v37 = vrot.slane %v13785_v42, 2  ;;  %v2335_v46 = vrot.slane %v2028_v20, 2 }
 0x294   : > { %v1690_v23 = vpop.f32.mrb[62].mxu0  ;;  %v2157_v5 = vrot.slane %v13785_v42, 1 }
 0x295   : > { %v1949_v48 = vmax.f32 %v1911_v38, 0.0  ;;  %v10164_v16 = vadd.f32 %v13291_v47, %v1690_v23  ;;  %v1692_v36 = vpop.f32.mrb[63].mxu0  ;;  %10922 = vrot.lane.b32.xlu1 %v10921_v61, %s11588_s14  ;;  %v13801_v33 = vsel %vm626_vm4, %v2332_v51, %v2333_v37  ;;  %v13804_v12 = vsel %vm626_vm4, %v2333_v37, %v2335_v46 }
 0x296   : > { %9337 = vmatprep.mubr.msk.f32.mxu0 %vm171_vm0, %v13801_v33  ;;  %v13811_v52 = vsel %vm449_vm3, %v2156_v43, %v2157_v5  ;;  %v2159_v38 = vrot.slane %v2028_v20, 1  ;;  %v2262_v47 = vrot.slane %v13310_v57, 2  ;;  %v2263_v36 = vrot.slane %v13312_v30, 2  ;;  %v8625_v20 = vld [vmem:[%s18563_s1 + $0x340] sm:$0xff] }
 0x297   : > { %v13808_v56 = vld [vmem:[#allocation3 + $0x168] sm:$0xff]  ;;  %18959 = vst [vmem:[#allocation45_spill] sm:$0xff] %v13811_v52  ;;  %1982 = vst.msk [vmem:[#allocation3 + $0x181] sm:$0xff] %vm171_vm0, %v1949_v48  ;;  %v1916_v23 = vadd.f32 %v10164_v16, %v13277_v63  ;;  %9338 = vmatmul.mubr.msk.f32.gmra.mrb[88].mxu0 %vm171_vm0, %v13804_v12  ;;  %v2265_v37 = vrot.slane %v13320_v29, 2 }
 0x298   : > { %18958 = vst [vmem:[#allocation44_spill] sm:$0xff] %v13808_v56  ;;  %v10926_v51 = vpack.i.bf16 %v13811_v52, %v13808_v56  ;;  %v13829_v43 = vsel %vm449_vm3, %v2157_v5, %v2159_v38  ;;  %v2337_v63 = vrot.slane %v13808_v56, 2  ;;  %v2264_v16 = vsel %vm626_vm4, %v2262_v47, %v2263_v36 }
 0x299   : > { %v1950_v61 = vmax.f32 %v1916_v23, 0.0  ;;  %18961 = vst [vmem:[#allocation47_spill] sm:$0xff] %v13829_v43  ;;  %v8626_v23 = vld [vmem:[%s18563_s1 + $0x348] sm:$0xff] }
 0x29a   : > { %10927 = vrot.lane.b32.xlu0 %v10926_v51, %s11588_s14  ;;  %v13826_v46 = vld [vmem:[#allocation3 + $0x170] sm:$0xff]  ;;  %v2031_v48 = vld [vmem:[#allocation3 + $0x178] sm:$0x3]  ;;  %v2161_v51 = vrot.slane %v13808_v56, 1 }
 0x29b   : > { %18960 = vst [vmem:[#allocation46_spill] sm:$0xff] %v13826_v46  ;;  %1983 = vst.msk [vmem:[#allocation3 + $0x189] sm:$0xff] %vm171_vm0, %v1950_v61  ;;  %v10788_v52 = vpop.permute.xlu0 %10787  ;;  %v10931_v29 = vpack.i.bf16 %v13829_v43, %v13826_v46  ;;  %v2338_v5 = vrot.slane %v13826_v46, 2  ;;  %v2340_v38 = vrot.slane %v2031_v48, 2  ;;  %v2162_v42 = vrot.slane %v13826_v46, 1 }
 0x29c   : > { %v10790_v2 = vunpack.i.h.bf16 %v10788_v52  ;;  %v10789_v58 = vunpack.i.l.bf16 %v10788_v52  ;;  %v9702_v61 = vpack.c.bf16 %v8626_v23, %v8625_v20  ;;  %v2266_v23 = vsel %vm626_vm4, %v2263_v36, %v2265_v37 }
 0x29d   : > { %10932 = vrot.lane.b32.xlu1 %v10931_v29, %s11588_s14  ;;  %v13844_v47 = vsel %vm626_vm4, %v2337_v63, %v2338_v5  ;;  %v13847_v56 = vsel %vm626_vm4, %v2338_v5, %v2340_v38  ;;  %v13850_v28 = vsel %vm449_vm3, %v2161_v51, %v2162_v42  ;;  %v2164_v29 = vrot.slane %v2031_v48, 1  ;;  %v8627_v51 = vld [vmem:[%s18563_s1 + $0x350] sm:$0xff] }
 0x29e   : > { %18962 = vst [vmem:[#allocation48_spill] sm:$0xff] %v13847_v56  ;;  %18963 = vst [vmem:[#allocation49_spill] sm:$0xff] %v13850_v28  ;;  %v13852_v43 = vld [vmem:[#allocation3 + $0x180] sm:$0xff]  ;;  %9340 = vmatprep.mubr.msk.f32.mxu0 %vm171_vm0, %v13844_v47  ;;  %v2668_v46 = vsel %vm171_vm0, %v2264_v16, %v10789_v58  ;;  %v2636_v52 = vsel %vm171_vm0, %v13310_v57, %v10790_v2  ;;  %v8628_v58 = vld [vmem:[%s18563_s1 + $0x358] sm:$0xff]  ;;  %v2268_v48 = vrot.slane %v13335_v26, 2 }
 0x29f   : > { %9341 = vmatmul.mubr.msk.f32.gmra.mrb[90].mxu0 %vm171_vm0, %v13847_v56  ;;  %v10793_v63 = vpop.permute.xlu1 %10792  ;;  %2945 = vmatprep.mubr.f32.mxu1 %v2668_v46  ;;  %v10936_v20 = vpack.i.bf16 %v13850_v28, %v13852_v43  ;;  %v2267_v46 = vrot.slane %v13327_v6, 2  ;;  %v13881_v38 = vsel %vm449_vm3, %v2162_v42, %v2164_v29  ;;  %v8629_v29 = vld [vmem:[%s18563_s1 + $0x360] sm:$0xff] }
 0x2a0   : > { %v10795_v57 = vunpack.i.h.bf16 %v10793_v63  ;;  %v10794_v2 = vunpack.i.l.bf16 %v10793_v63  ;;  %2946 = vmatmul.mubr.f32.vlgmr.msra.gmra.mrb[32].mxu1 %v2636_v52  ;;  %v9705_v52 = vpack.c.bf16 %v8628_v58, %v8627_v51  ;;  %v8630_v51 = vld [vmem:[%s18563_s1 + $0x368] sm:$0xff] }
 0x2a1   : > { %9703 = vmatpush1.bf16.msra.mxu1 %v9702_v61  ;;  %10937 = vrot.lane.b32.xlu0 %v10936_v20, %s11588_s14  ;;  %v2510_v20 = vrot.slane %v13852_v43, 2 }
 0x2a2   : > { %v13873_v16 = vld [vmem:[#allocation3 + $0x188] sm:$0xff]  ;;  %v13875_v36 = vld [vmem:[#allocation3 + $0x190] sm:$0x3]  ;;  %v2669_v37 = vsel %vm171_vm0, %v2266_v23, %v10794_v2  ;;  %v2637_v5 = vsel %vm171_vm0, %v13312_v30, %v10795_v57  ;;  %9704 = vmatprep.subr.bf16.mxu1 %v18857_v54  ;;  %v2270_v23 = vrot.slane %v13342_v40, 2  ;;  %v2269_v30 = vsel %vm626_vm4, %v2267_v46, %v2268_v48 }
 0x2a3   : > { %2950 = vmatprep.mubr.f32.mxu1 %v2669_v37  ;;  %v10798_v61 = vpop.permute.xlu0 %10797  ;;  %v10941_v63 = vpack.i.bf16 %v13881_v38, %v13873_v16  ;;  %v2511_v28 = vrot.slane %v13873_v16, 2  ;;  %v2513_v42 = vrot.slane %v13875_v36, 2 }
 0x2a4   : > { %v10800_v2 = vunpack.i.h.bf16 %v10798_v61  ;;  %v10799_v56 = vunpack.i.l.bf16 %v10798_v61  ;;  %2951 = vmatmul.mubr.f32.gmra.mrb[34].mxu1 %v2637_v5  ;;  %v9708_v5 = vpack.c.bf16 %v8630_v51, %v8629_v29  ;;  %v8634_v29 = vld [vmem:[%s18563_s1 + $0x388] sm:$0xff] }
 0x2a5   : > { %10942 = vrot.lane.b32.xlu1 %v10941_v63, %s11588_s14  ;;  %2515 = vrot.lane.b32.xlu0 %v2269_v30, %s11588_s14  ;;  %v13900_v40 = vsel %vm626_vm4, %v2510_v20, %v2511_v28  ;;  %v13905_v58 = vsel %vm626_vm4, %v2511_v28, %v2513_v42  ;;  %v2271_v20 = vsel %vm626_vm4, %v2268_v48, %v2270_v23  ;;  %v8631_v28 = vld [vmem:[%s18563_s1 + $0x370] sm:$0xff]  ;;  %v8633_v42 = vld [vmem:[%s18563_s1 + $0x380] sm:$0xff] }
 0x2a6   : > { %9343 = vmatprep.mubr.msk.f32.mxu0 %vm171_vm0, %v13900_v40  ;;  %v2670_v46 = vsel %vm171_vm0, %v2269_v30, %v10799_v56  ;;  %v2638_v37 = vsel %vm171_vm0, %v13327_v6, %v10800_v2  ;;  %9706 = vmatpush1.bf16.msra.mxu1 %v9705_v52  ;;  %v8632_v56 = vld [vmem:[%s18563_s1 + $0x378] sm:$0xff] }
 0x2a7   : > { %9344 = vmatmul.mubr.msk.f32.gmra.mrb[92].mxu0 %vm171_vm0, %v13905_v58  ;;  %v10803_v57 = vpop.permute.xlu1 %10802  ;;  %2955 = vmatprep.mubr.f32.mxu1 %v2670_v46  ;;  %v9711_v23 = vpack.c.bf16 %v8632_v56, %v8631_v28  ;;  %v9714_v46 = vpack.c.bf16 %v8634_v29, %v8633_v42 }
 0x2a8   : > { %v10805_v61 = vunpack.i.h.bf16 %v10803_v57  ;;  %v10804_v63 = vunpack.i.l.bf16 %v10803_v57  ;;  %9707 = vmatprep.subr.bf16.mxu1 %v18857_v54  ;;  %2956 = vmatmul.mubr.f32.gmra.mrb[36].mxu1 %v2638_v37 }
 0x2a9   : > { %2517 = vrot.lane.b32.xlu1 %v2271_v20, %s11588_s14  ;;  %2519 = vrot.lane.b32.xlu0 %v13369_v49, %s11588_s14 }
 0x2aa   : > { %v2671_v6 = vsel %vm171_vm0, %v2271_v20, %v10804_v63  ;;  %v2639_v48 = vsel %vm171_vm0, %v13335_v26, %v10805_v61  ;;  %9709 = vmatpush1.bf16.msra.mxu1 %v9708_v5  ;;  %v8635_v61 = vld [vmem:[%s18563_s1 + $0x390] sm:$0xff]  ;;  %v11556_v63 = vld [vmem:[#allocation3 + $0x38] sm:$0xff] }
 0x2ab   : > { %v10808_v52 = vpop.permute.xlu0 %10807  ;;  %2960 = vmatprep.mubr.f32.mxu1 %v2671_v6  ;;  %9710 = vmatprep.subr.bf16.mxu1 %v18857_v54 }
 0x2ac   : > { %v10810_v2 = vunpack.i.h.bf16 %v10808_v52  ;;  %v10809_v30 = vunpack.i.l.bf16 %v10808_v52  ;;  %2961 = vmatmul.mubr.f32.gmra.mrb[38].mxu1 %v2639_v48  ;;  %v8637_v52 = vld [vmem:[%s18563_s1 + $0x3a0] sm:$0xff] }
 0x2ad   : > { %2521 = vrot.lane.b32.xlu1 %v13372_v35, %s11588_s14  ;;  %2523 = vrot.lane.b32.xlu0 %v13405_v19, %s11588_s14 }
 0x2ae   : > { %v2672_v26 = vsel %vm171_vm0, %v13369_v49, %v10809_v30  ;;  %v13941_v51 = vsel %vm171_vm0, %v13349_v59, %v10810_v2  ;;  %9712 = vmatpush1.bf16.msra.mxu1 %v9711_v23  ;;  %v8636_v49 = vld [vmem:[%s18563_s1 + $0x398] sm:$0xff] }
 0x2af   : > { %v10813_v57 = vpop.permute.xlu1 %10812  ;;  %2965 = vmatprep.mubr.f32.mxu1 %v2672_v26  ;;  %9713 = vmatprep.subr.bf16.mxu1 %v18857_v54  ;;  %v9717_v56 = vpack.c.bf16 %v8636_v49, %v8635_v61 }
 0x2b0   : > { %v10815_v37 = vunpack.i.h.bf16 %v10813_v57  ;;  %v10814_v5 = vunpack.i.l.bf16 %v10813_v57  ;;  %2966 = vmatmul.mubr.f32.gmra.mrb[40].mxu1 %v13941_v51  ;;  %v8639_v57 = vld [vmem:[%s18563_s1 + $0x3b0] sm:$0xff] }
 0x2b1   : > { %2525 = vrot.lane.b32.xlu1 %v13408_v7, %s11588_s14  ;;  %2527 = vrot.lane.b32.xlu0 %v13441_v8, %s11588_s14 }
 0x2b2   : > { %v2673_v59 = vsel %vm171_vm0, %v13372_v35, %v10814_v5  ;;  %v13958_v20 = vsel %vm171_vm0, %v11556_v63, %v10815_v37  ;;  %9715 = vmatpush1.bf16.msra.mxu1 %v9714_v46  ;;  %v8638_v35 = vld [vmem:[%s18563_s1 + $0x3a8] sm:$0xff] }
 0x2b3   : > { %v10818_v28 = vpop.permute.xlu0 %10817  ;;  %2970 = vmatprep.mubr.f32.mxu1 %v2673_v59  ;;  %9716 = vmatprep.subr.bf16.mxu1 %v18857_v54  ;;  %v9720_v42 = vpack.c.bf16 %v8638_v35, %v8637_v52  ;;  %v8641_v59 = vld [vmem:[%s18563_s1 + $0x3c0] sm:$0xff]  ;;  %v8643_v52 = vld [vmem:[%s18563_s1 + $0x3d0] sm:$0xff] }
 0x2b4   : > { %v10820_v6 = vunpack.i.h.bf16 %v10818_v28  ;;  %v10819_v48 = vunpack.i.l.bf16 %v10818_v28  ;;  %2971 = vmatmul.mubr.f32.gmra.mrb[42].mxu1 %v13958_v20 }
 0x2b5   : > { %2529 = vrot.lane.b32.xlu1 %v13444_v4, %s11588_s14  ;;  %2531 = vrot.lane.b32.xlu0 %v13477_v0, %s11588_s14 }
 0x2b6   : > { %v2674_v23 = vsel %vm171_vm0, %v13405_v19, %v10819_v48  ;;  %v13976_v2 = vsel %vm171_vm0, %v13376_v21, %v10820_v6  ;;  %9718 = vmatpush1.bf16.msra.mxu1 %v9717_v56  ;;  %v8640_v19 = vld [vmem:[%s18563_s1 + $0x3b8] sm:$0xff] }
 0x2b7   : > { %v10823_v30 = vpop.permute.xlu1 %10822  ;;  %2975 = vmatprep.mubr.f32.mxu1 %v2674_v23  ;;  %9719 = vmatprep.subr.bf16.mxu1 %v18857_v54  ;;  %v9723_v5 = vpack.c.bf16 %v8640_v19, %v8639_v57 }
 0x2b8   : > { %v10825_v29 = vunpack.i.h.bf16 %v10823_v30  ;;  %v10824_v26 = vunpack.i.l.bf16 %v10823_v30  ;;  %2976 = vmatmul.mubr.f32.gmra.mrb[44].mxu1 %v13976_v2 }
 0x2b9   : > { %2533 = vrot.lane.b32.xlu1 %v13480_v10, %s11588_s14  ;;  %2535 = vrot.lane.b32.xlu0 %v13513_v41, %s11588_s14 }
 0x2ba   : > { %v2675_v21 = vsel %vm171_vm0, %v13408_v7, %v10824_v26  ;;  %v13994_v46 = vsel %vm171_vm0, %v13389_v53, %v10825_v29  ;;  %9721 = vmatpush1.bf16.msra.mxu1 %v9720_v42  ;;  %v8642_v7 = vld [vmem:[%s18563_s1 + $0x3c8] sm:$0xff]  ;;  %v8645_v26 = vld [vmem:[%s18563_s1 + $0x3e0] sm:$0xff] }
 0x2bb   : > { %v10828_v37 = vpop.permute.xlu0 %10827  ;;  %2980 = vmatprep.mubr.f32.mxu1 %v2675_v21  ;;  %9722 = vmatprep.subr.bf16.mxu1 %v18857_v54  ;;  %v9726_v56 = vpack.c.bf16 %v8642_v7, %v8641_v59 }
 0x2bc   : > { %v10830_v61 = vunpack.i.h.bf16 %v10828_v37  ;;  %v10829_v49 = vunpack.i.l.bf16 %v10828_v37  ;;  %2981 = vmatmul.mubr.f32.gmra.mrb[46].mxu1 %v13994_v46 }
 0x2bd   : > { %2537 = vrot.lane.b32.xlu1 %v13516_v34, %s11588_s14  ;;  %2539 = vrot.lane.b32.xlu0 %v13549_v11, %s11588_s14 }
 0x2be   : > { %v2676_v53 = vsel %vm171_vm0, %v13441_v8, %v10829_v49  ;;  %v14012_v63 = vsel %vm171_vm0, %v13412_v27, %v10830_v61  ;;  %9724 = vmatpush1.bf16.msra.mxu1 %v9723_v5  ;;  %v8644_v8 = vld [vmem:[%s18563_s1 + $0x3d8] sm:$0xff]  ;;  %v8647_v61 = vld [vmem:[%s18563_s1 + $0x3f0] sm:$0xff] }
 0x2bf   : > { %v10833_v28 = vpop.permute.xlu1 %10832  ;;  %2985 = vmatprep.mubr.f32.mxu1 %v2676_v53  ;;  %9725 = vmatprep.subr.bf16.mxu1 %v18857_v54  ;;  %v9729_v30 = vpack.c.bf16 %v8644_v8, %v8643_v52 }
 0x2c0   : > { %v10835_v6 = vunpack.i.h.bf16 %v10833_v28  ;;  %v10834_v48 = vunpack.i.l.bf16 %v10833_v28  ;;  %2986 = vmatmul.mubr.f32.gmra.mrb[48].mxu1 %v14012_v63 }
 0x2c1   : > { %2541 = vrot.lane.b32.xlu1 %v13552_v45, %s11588_s14  ;;  %2543 = vrot.lane.b32.xlu0 %v13585_v32, %s11588_s14 }
 0x2c2   : > { %v2677_v27 = vsel %vm171_vm0, %v13444_v4, %v10834_v48  ;;  %v14030_v35 = vsel %vm171_vm0, %v13425_v13, %v10835_v6  ;;  %9727 = vmatpush1.bf16.msra.mxu1 %v9726_v56  ;;  %v8646_v4 = vld [vmem:[%s18563_s1 + $0x3e8] sm:$0xff]  ;;  %v8649_v56 = vld [vmem:[%s18563_s1 + $0x400] sm:$0xff] }
 0x2c3   : > { %v10838_v23 = vpop.permute.xlu0 %10837  ;;  %2990 = vmatprep.mubr.f32.mxu1 %v2677_v27  ;;  %9728 = vmatprep.subr.bf16.mxu1 %v18857_v54  ;;  %v9732_v21 = vpack.c.bf16 %v8646_v4, %v8645_v26 }
 0x2c4   : > { %v10840_v42 = vunpack.i.h.bf16 %v10838_v23  ;;  %v10839_v29 = vunpack.i.l.bf16 %v10838_v23  ;;  %2991 = vmatmul.mubr.f32.gmra.mrb[50].mxu1 %v14030_v35  ;;  %v8651_v23 = vld [vmem:[%s18563_s1 + $0x410] sm:$0xff] }
 0x2c5   : > { %2545 = vrot.lane.b32.xlu1 %v13588_v24, %s11588_s14  ;;  %2547 = vrot.lane.b32.xlu0 %v13621_v17, %s11588_s14 }
 0x2c6   : > { %v2678_v13 = vsel %vm171_vm0, %v13477_v0, %v10839_v29  ;;  %v14048_v57 = vsel %vm171_vm0, %v13448_v60, %v10840_v42  ;;  %9730 = vmatpush1.bf16.msra.mxu1 %v9729_v30  ;;  %v8648_v0 = vld [vmem:[%s18563_s1 + $0x3f8] sm:$0xff] }
 0x2c7   : > { %v10843_v19 = vpop.permute.xlu1 %10842  ;;  %2995 = vmatprep.mubr.f32.mxu1 %v2678_v13  ;;  %9731 = vmatprep.subr.bf16.mxu1 %v18857_v54  ;;  %v9735_v7 = vpack.c.bf16 %v8648_v0, %v8647_v61  ;;  %v8653_v13 = vld [vmem:[%s18563_s1 + $0x420] sm:$0xff] }
 0x2c8   : > { %v10845_v37 = vunpack.i.h.bf16 %v10843_v19  ;;  %v10844_v5 = vunpack.i.l.bf16 %v10843_v19  ;;  %2996 = vmatmul.mubr.f32.gmra.mrb[52].mxu1 %v14048_v57  ;;  %v2474_v19 = vrot.slane %v13873_v16, 1  ;;  %v2473_v16 = vrot.slane %v13852_v43, 1 }
 0x2c9   : > { %2549 = vrot.lane.b32.xlu1 %v13624_v9, %s11588_s14  ;;  %2551 = vrot.lane.b32.xlu0 %v13657_v31, %s11588_s14 }
 0x2ca   : > { %v2679_v60 = vsel %vm171_vm0, %v13480_v10, %v10844_v5  ;;  %v14066_v49 = vsel %vm171_vm0, %v13461_v15, %v10845_v37  ;;  %9733 = vmatpush1.bf16.msra.mxu1 %v9732_v21  ;;  %v8650_v10 = vld [vmem:[%s18563_s1 + $0x408] sm:$0xff]  ;;  %v14117_v21 = vld [vmem:[#allocation3 + $0x1a0] sm:$0xff]  ;;  %v14139_v43 = vsel %vm449_vm3, %v2473_v16, %v2474_v19  ;;  %v18966_v16 = vld [vmem:[#allocation11_spill] sm:$0xff] }
 0x2cb   : > { %v10848_v59 = vpop.permute.xlu0 %10847  ;;  %3000 = vmatprep.mubr.f32.mxu1 %v2679_v60  ;;  %9734 = vmatprep.subr.bf16.mxu1 %v18857_v54  ;;  %v9738_v52 = vpack.c.bf16 %v8650_v10, %v8649_v56  ;;  %v2476_v60 = vrot.slane %v13875_v36, 1  ;;  %v2615_v36 = vrot.slane %v14117_v21, 1 }
 0x2cc   : > { %v10850_v53 = vunpack.i.h.bf16 %v10848_v59  ;;  %v10849_v28 = vunpack.i.l.bf16 %v10848_v59  ;;  %3001 = vmatmul.mubr.f32.gmra.mrb[54].mxu1 %v14066_v49  ;;  %v14129_v59 = vld [vmem:[#allocation3 + $0x1a8] sm:$0x3] }
 0x2cd   : > { %2553 = vrot.lane.b32.xlu1 %v13660_v50, %s11588_s14  ;;  %2555 = vrot.lane.b32.xlu0 %v13693_v62, %s11588_s14 }
 0x2ce   : > { %v2680_v15 = vsel %vm171_vm0, %v13513_v41, %v10849_v28  ;;  %v14084_v6 = vsel %vm171_vm0, %v13484_v55, %v10850_v53  ;;  %9736 = vmatpush1.bf16.msra.mxu1 %v9735_v7  ;;  %v8652_v41 = vld [vmem:[%s18563_s1 + $0x418] sm:$0xff] }
 0x2cf   : > { %v10853_v48 = vpop.permute.xlu1 %10852  ;;  %3005 = vmatprep.mubr.f32.mxu1 %v2680_v15  ;;  %9737 = vmatprep.subr.bf16.mxu1 %v18857_v54  ;;  %v9741_v29 = vpack.c.bf16 %v8652_v41, %v8651_v23  ;;  %v2617_v15 = vrot.slane %v14129_v59, 1 }
 0x2d0   : > { %v10855_v8 = vunpack.i.h.bf16 %v10853_v48  ;;  %v10854_v27 = vunpack.i.l.bf16 %v10853_v48  ;;  %3006 = vmatmul.mubr.f32.gmra.mrb[56].mxu1 %v14084_v6 }
 0x2d1   : > { %2557 = vrot.lane.b32.xlu1 %v13696_v25, %s11588_s14  ;;  %2559 = vrot.lane.b32.xlu0 %v13729_v18, %s11588_s14 }
 0x2d2   : > { %v2681_v55 = vsel %vm171_vm0, %v13516_v34, %v10854_v27  ;;  %v14102_v30 = vsel %vm171_vm0, %v13497_v14, %v10855_v8  ;;  %9739 = vmatpush1.bf16.msra.mxu1 %v9738_v52  ;;  %v8654_v34 = vld [vmem:[%s18563_s1 + $0x428] sm:$0xff]  ;;  %v10946_v8 = vpack.i.bf16 %v13844_v47, %v14139_v43  ;;  %v14158_v27 = vsel %vm449_vm3, %v2474_v19, %v2476_v60 }
 0x2d3   : > { %v10858_v42 = vpop.permute.xlu0 %10857  ;;  %3010 = vmatprep.mubr.f32.mxu1 %v2681_v55  ;;  %9740 = vmatprep.subr.bf16.mxu1 %v18857_v54  ;;  %v14115_v14 = vld [vmem:[#allocation3 + $0x198] sm:$0xff]  ;;  %v9744_v0 = vpack.c.bf16 %v8654_v34, %v8653_v13  ;;  %v2618_v34 = vsel %vm449_vm3, %v2615_v36, %v2617_v15 }
 0x2d4   : > { %v10860_v26 = vunpack.i.h.bf16 %v10858_v42  ;;  %v10859_v4 = vunpack.i.l.bf16 %v10858_v42  ;;  %3011 = vmatmul.mubr.f32.gmra.mrb[58].mxu1 %v14102_v30  ;;  %v2614_v28 = vrot.slane %v14115_v14, 1  ;;  %v18964_v55 = vld [vmem:[#allocation9_spill] sm:$0xff] }
 0x2d5   : > { %2561 = vrot.lane.b32.xlu1 %v13732_v22, %s11588_s14  ;;  %2563 = vrot.lane.b32.xlu0 %v13765_v3, %s11588_s14 }
 0x2d6   : > { %v2682_v37 = vsel %vm171_vm0, %v13549_v11, %v10859_v4  ;;  %v14125_v5 = vsel %vm171_vm0, %v13520_v1, %v10860_v26  ;;  %9742 = vmatpush1.bf16.msra.mxu1 %v9741_v29  ;;  %v8655_v11 = vld [vmem:[%s18563_s1 + $0x430] sm:$0xff]  ;;  %v8656_v1 = vld [vmem:[%s18563_s1 + $0x438] sm:$0xff]  ;;  %v18965_v29 = vld [vmem:[#allocation48_spill] sm:$0xff] }
 0x2d7   : > { %v10863_v61 = vpop.permute.xlu1 %10862  ;;  %3015 = vmatprep.mubr.f32.mxu1 %v2682_v37  ;;  %9743 = vmatprep.subr.bf16.mxu1 %v18857_v54  ;;  %v9747_v52 = vpack.c.bf16 %v8656_v1, %v8655_v11  ;;  %v10951_v26 = vpack.i.bf16 %v18965_v29, %v14158_v27  ;;  %v18967_v11 = vld [vmem:[#allocation13_spill] sm:$0xff] }
 0x2d8   : > { %v10865_v7 = vunpack.i.h.bf16 %v10863_v61  ;;  %v10864_v53 = vunpack.i.l.bf16 %v10863_v61  ;;  %3016 = vmatmul.mubr.f32.gmra.mrb[60].mxu1 %v14125_v5 }
 0x2d9   : > { %2565 = vrot.lane.b32.xlu1 %v13768_v44, %s11588_s14  ;;  %2567 = vrot.lane.b32.xlu0 %v13801_v33, %s11588_s14 }
 0x2da   : > { %v2683_v56 = vsel %vm171_vm0, %v13552_v45, %v10864_v53  ;;  %v14152_v10 = vsel %vm171_vm0, %v13533_v39, %v10865_v7  ;;  %9745 = vmatpush1.bf16.msra.mxu1 %v9744_v0  ;;  %v2616_v45 = vsel %vm449_vm3, %v2614_v28, %v2615_v36 }
 0x2db   : > { %3020 = vmatprep.mubr.f32.mxu1 %v2683_v56  ;;  %9746 = vmatprep.subr.bf16.mxu1 %v18857_v54  ;;  %v10956_v13 = vpack.i.bf16 %v13900_v40, %v2616_v45  ;;  %v10961_v40 = vpack.i.bf16 %v13905_v58, %v2618_v34  ;;  %v18968_v56 = vld [vmem:[#allocation15_spill] sm:$0xff] }
 0x2dc   : > { %v10868_v48 = vpop.permute.xlu0 %10867  ;;  %3021 = vmatmul.mubr.f32.gmra.mrb[62].mxu1 %v14152_v10 }
 0x2dd   : > { %v10870_v23 = vunpack.i.h.bf16 %v10868_v48  ;;  %v10869_v41 = vunpack.i.l.bf16 %v10868_v48  ;;  %2569 = vrot.lane.b32.xlu1 %v13804_v12, %s11588_s14  ;;  %10947 = vrot.lane.b32.xlu0 %v10946_v8, %s11588_s14 }
 0x2de   : > { %9748 = vmatpush1.bf16.msra.mxu1 %v9747_v52 }
 0x2df   : > { %v2684_v39 = vsel %vm171_vm0, %v13585_v32, %v10869_v41  ;;  %v14170_v42 = vsel %vm171_vm0, %v18964_v55, %v10870_v23  ;;  %v10873_v4 = vpop.permute.xlu1 %10872  ;;  %9765 = vmatprep.subr.bf16.mxu1 %v18857_v54  ;;  %v18969_v23 = vld [vmem:[#allocation17_spill] sm:$0xff] }
 0x2e0   : > { %3025 = vmatprep.mubr.f32.mxu1 %v2684_v39  ;;  %v10875_v19 = vunpack.i.h.bf16 %v10873_v4  ;;  %v10874_v37 = vunpack.i.l.bf16 %v10873_v4 }
 0x2e1   : > { %3026 = vmatmul.mubr.f32.gmra.mrb[64].mxu1 %v14170_v42  ;;  %10952 = vrot.lane.b32.xlu1 %v10951_v26, %s11588_s14  ;;  %v18970_v26 = vld [vmem:[#allocation19_spill] sm:$0xff] }
 0x2e2   : > { %10957 = vrot.lane.b32.xlu0 %v10956_v13, %s11588_s14  ;;  %v2685_v32 = vsel %vm171_vm0, %v13588_v24, %v10874_v37  ;;  %v14184_v61 = vsel %vm171_vm0, %v18966_v16, %v10875_v19  ;;  %v18971_v37 = vld [vmem:[#allocation21_spill] sm:$0xff] }
 0x2e3   : > { %v10878_v0 = vpop.permute.xlu0 %10877  ;;  %3030 = vmatprep.mubr.f32.mxu1 %v2685_v32 }
 0x2e4   : > { %v10880_v60 = vunpack.i.h.bf16 %v10878_v0  ;;  %v10879_v7 = vunpack.i.l.bf16 %v10878_v0 }
 0x2e5   : > { %3031 = vmatmul.mubr.f32.gmra.mrb[66].mxu1 %v14184_v61  ;;  %10962 = vrot.lane.b32.xlu1 %v10961_v40, %s11588_s14 }
 0x2e6   : > { %v2686_v53 = vsel %vm171_vm0, %v13621_v17, %v10879_v7  ;;  %v14193_v24 = vsel %vm171_vm0, %v18967_v11, %v10880_v60  ;;  %v18972_v60 = vld [vmem:[#allocation23_spill] sm:$0xff] }
 0x2e7   : > { %v10883_v1 = vpop.permute.xlu1 %10882  ;;  %3035 = vmatprep.mubr.f32.mxu1 %v2686_v53 }
 0x2e8   : > { %v10885_v28 = vunpack.i.h.bf16 %v10883_v1  ;;  %v10884_v36 = vunpack.i.l.bf16 %v10883_v1 }
 0x2e9   : > { %3036 = vmatmul.mubr.f32.gmra.mrb[68].mxu1 %v14193_v24 }
 0x2ea   : > { %v2687_v58 = vsel %vm171_vm0, %v13624_v9, %v10884_v36  ;;  %v14200_v15 = vsel %vm171_vm0, %v18968_v56, %v10885_v28  ;;  %v18973_v28 = vld [vmem:[#allocation25_spill] sm:$0xff] }
 0x2eb   : > { %3040 = vmatprep.mubr.f32.mxu1 %v2687_v58 }
 0x2ec   : > { %v10888_v48 = vpop.permute.xlu0 %10887 }
 0x2ed   : > { %v10890_v17 = vunpack.i.h.bf16 %v10888_v48  ;;  %v10889_v52 = vunpack.i.l.bf16 %v10888_v48  ;;  %3041 = vmatmul.mubr.f32.gmra.mrb[70].mxu1 %v14200_v15 }
 0x2ef   : > { %v2688_v8 = vsel %vm171_vm0, %v13657_v31, %v10889_v52  ;;  %v14207_v41 = vsel %vm171_vm0, %v18969_v23, %v10890_v17  ;;  %v10893_v45 = vpop.permute.xlu1 %10892  ;;  %v18974_v17 = vld [vmem:[#allocation28_spill] sm:$0xff] }
 0x2f0   : > { %3045 = vmatprep.mubr.f32.mxu1 %v2688_v8  ;;  %v10895_v9 = vunpack.i.h.bf16 %v10893_v45  ;;  %v10894_v39 = vunpack.i.l.bf16 %v10893_v45 }
 0x2f1   : > { %3046 = vmatmul.mubr.f32.gmra.mrb[72].mxu1 %v14207_v41 }
 0x2f2   : > { %v2689_v55 = vsel %vm171_vm0, %v13660_v50, %v10894_v39  ;;  %v14214_v4 = vsel %vm171_vm0, %v18970_v26, %v10895_v9  ;;  %v18975_v9 = vld [vmem:[#allocation31_spill] sm:$0xff] }
 0x2f3   : > { %v10898_v13 = vpop.permute.xlu0 %10897  ;;  %3050 = vmatprep.mubr.f32.mxu1 %v2689_v55 }
 0x2f4   : > { %v10900_v31 = vunpack.i.h.bf16 %v10898_v13  ;;  %v10899_v34 = vunpack.i.l.bf16 %v10898_v13 }
 0x2f5   : > { %3051 = vmatmul.mubr.f32.gmra.mrb[74].mxu1 %v14214_v4 }
 0x2f6   : > { %v2690_v19 = vsel %vm171_vm0, %v13693_v62, %v10899_v34  ;;  %v14221_v32 = vsel %vm171_vm0, %v18971_v37, %v10900_v31  ;;  %v18976_v34 = vld [vmem:[#allocation34_spill] sm:$0xff] }
 0x2f7   : > { %v10903_v16 = vpop.permute.xlu1 %10902  ;;  %3055 = vmatprep.mubr.f32.mxu1 %v2690_v19 }
 0x2f8   : > { %v10905_v50 = vunpack.i.h.bf16 %v10903_v16  ;;  %v10904_v40 = vunpack.i.l.bf16 %v10903_v16 }
 0x2f9   : > { %3056 = vmatmul.mubr.f32.gmra.mrb[76].mxu1 %v14221_v32 }
 0x2fa   : > { %v2691_v0 = vsel %vm171_vm0, %v13696_v25, %v10904_v40  ;;  %v14228_v7 = vsel %vm171_vm0, %v18972_v60, %v10905_v50 }
 0x2fb   : > { %3060 = vmatprep.mubr.f32.mxu1 %v2691_v0  ;;  %v18977_v0 = vld [vmem:[#allocation36_spill] sm:$0xff] }
 0x2fc   : > { %v10908_v53 = vpop.permute.xlu0 %10907 }
 0x2fd   : > { %v10910_v62 = vunpack.i.h.bf16 %v10908_v53  ;;  %v10909_v11 = vunpack.i.l.bf16 %v10908_v53  ;;  %3061 = vmatmul.mubr.f32.gmra.mrb[78].mxu1 %v14228_v7 }
 0x2ff   : > { %v2692_v1 = vsel %vm171_vm0, %v13729_v18, %v10909_v11  ;;  %v14235_v36 = vsel %vm171_vm0, %v18973_v28, %v10910_v62  ;;  %v10913_v58 = vpop.permute.xlu1 %10912  ;;  %v18978_v28 = vld [vmem:[#allocation42_spill] sm:$0xff] }
 0x300   : > { %3065 = vmatprep.mubr.f32.mxu1 %v2692_v1  ;;  %v10915_v25 = vunpack.i.h.bf16 %v10913_v58  ;;  %v10914_v56 = vunpack.i.l.bf16 %v10913_v58 }
 0x301   : > { %3066 = vmatmul.mubr.f32.gmra.mrb[80].mxu1 %v14235_v36 }
 0x302   : > { %v2693_v48 = vsel %vm171_vm0, %v13732_v22, %v10914_v56  ;;  %v14242_v52 = vsel %vm171_vm0, %v18974_v17, %v10915_v25 }
 0x303   : > { %v10918_v8 = vpop.permute.xlu0 %10917  ;;  %3070 = vmatprep.mubr.f32.mxu1 %v2693_v48 }
 0x304   : > { %v10920_v18 = vunpack.i.h.bf16 %v10918_v8  ;;  %v10919_v23 = vunpack.i.l.bf16 %v10918_v8  ;;  %v18979_v8 = vld [vmem:[#allocation44_spill] sm:$0xff] }
 0x305   : > { %3071 = vmatmul.mubr.f32.gmra.mrb[82].mxu1 %v14242_v52 }
 0x306   : > { %v2694_v45 = vsel %vm171_vm0, %v13765_v3, %v10919_v23  ;;  %v14249_v39 = vsel %vm171_vm0, %v18975_v9, %v10920_v18  ;;  %v2632_v23 = vrot.slane %v14117_v21, 2  ;;  %v2634_v9 = vrot.slane %v14129_v59, 2 }
 0x307   : > { %v10923_v55 = vpop.permute.xlu1 %10922  ;;  %3075 = vmatprep.mubr.f32.mxu1 %v2694_v45 }
 0x308   : > { %v10925_v22 = vunpack.i.h.bf16 %v10923_v55  ;;  %v10924_v26 = vunpack.i.l.bf16 %v10923_v55 }
 0x309   : > { %3076 = vmatmul.mubr.f32.gmra.mrb[84].mxu1 %v14249_v39 }
 0x30a   : > { %v14252_v13 = vpop.f32.mrb[64].mxu0  ;;  %v2695_v31 = vsel %vm171_vm0, %v13768_v44, %v10924_v26  ;;  %v14258_v19 = vsel %vm171_vm0, %v18976_v34, %v10925_v22 }
 0x30b   : > { %v14260_v3 = vpop.f32.mrb[65].mxu0  ;;  %3080 = vmatprep.mubr.f32.mxu1 %v2695_v31 }
 0x30c   : > { %v10928_v37 = vpop.permute.xlu0 %10927 }
 0x30d   : > { %v10930_v16 = vunpack.i.h.bf16 %v10928_v37  ;;  %v10929_v50 = vunpack.i.l.bf16 %v10928_v37  ;;  %3081 = vmatmul.mubr.f32.gmra.mrb[86].mxu1 %v14258_v19  ;;  %v18980_v37 = vld [vmem:[#allocation46_spill] sm:$0xff] }
 0x30f   : > { %v2696_v40 = vsel %vm171_vm0, %v13801_v33, %v10929_v50  ;;  %v14267_v60 = vsel %vm171_vm0, %v18977_v0, %v10930_v16  ;;  %v10933_v44 = vpop.permute.xlu1 %10932 }
 0x310   : > { %3085 = vmatprep.mubr.f32.mxu1 %v2696_v40  ;;  %v10935_v53 = vunpack.i.h.bf16 %v10933_v44  ;;  %v10934_v62 = vunpack.i.l.bf16 %v10933_v44  ;;  %v18981_v40 = vld [vmem:[#allocation37_spill] sm:$0xff] }
 0x311   : > { %3086 = vmatmul.mubr.f32.gmra.mrb[88].mxu1 %v14267_v60 }
 0x312   : > { %v14270_v11 = vpop.f32.mrb[66].mxu0  ;;  %v2697_v1 = vsel %vm171_vm0, %v13804_v12, %v10934_v62  ;;  %v14276_v58 = vsel %vm171_vm0, %v18978_v28, %v10935_v53  ;;  %v2631_v12 = vrot.slane %v14115_v14, 2  ;;  %v18982_v62 = vld [vmem:[#allocation38_spill] sm:$0xff] }
 0x313   : > { %v14278_v33 = vpop.f32.mrb[67].mxu0  ;;  %v10938_v25 = vpop.permute.xlu0 %10937  ;;  %3090 = vmatprep.mubr.f32.mxu1 %v2697_v1 }
 0x314   : > { %v10940_v56 = vunpack.i.h.bf16 %v10938_v25  ;;  %v10939_v48 = vunpack.i.l.bf16 %v10938_v25  ;;  %v2633_v26 = vsel %vm626_vm4, %v2631_v12, %v2632_v23  ;;  %v18983_v25 = vld [vmem:[#allocation39_spill] sm:$0xff] }
 0x315   : > { %3091 = vmatmul.mubr.f32.gmra.mrb[90].mxu1 %v14276_v58  ;;  %9346 = vmatprep.mubr.msk.f32.mxu0 %vm171_vm0, %v2633_v26 }
 0x316   : > { %v2698_v17 = vsel %vm171_vm0, %v13844_v47, %v10939_v48  ;;  %v14285_v18 = vsel %vm171_vm0, %v18979_v8, %v10940_v56  ;;  %v2635_v47 = vsel %vm626_vm4, %v2632_v23, %v2634_v9  ;;  %v18985_v23 = vld [vmem:[#allocation29_spill] sm:$0xff] }
 0x317   : > { %v10943_v45 = vpop.permute.xlu1 %10942  ;;  %3095 = vmatprep.mubr.f32.mxu1 %v2698_v17  ;;  %9347 = vmatmul.mubr.msk.f32.gmra.mrb[94].mxu0 %vm171_vm0, %v2635_v47  ;;  %v2516_v50 = vpop.permute.xlu0 %2515  ;;  %v18984_v17 = vld [vmem:[#allocation26_spill] sm:$0xff]  ;;  %v18987_v47 = vld [vmem:[#allocation32_spill] sm:$0xff] }
 0x318   : > { %v10945_v55 = vunpack.i.h.bf16 %v10943_v45  ;;  %v10944_v22 = vunpack.i.l.bf16 %v10943_v45  ;;  %v2700_v0 = vsel %vm171_vm0, %v18981_v40, %v2516_v50  ;;  %v18988_v50 = vld [vmem:[#allocation4_spill] sm:$0xff] }
 0x319   : > { %3096 = vmatmul.mubr.f32.gmra.mrb[92].mxu1 %v14285_v18 }
 0x31a   : > { %v14294_v31 = vpop.f32.mrb[68].mxu0  ;;  %v2699_v34 = vsel %vm171_vm0, %v18965_v29, %v10944_v22  ;;  %v14300_v16 = vsel %vm171_vm0, %v18980_v37, %v10945_v55  ;;  %v18986_v55 = vld [vmem:[#allocation41_spill] sm:$0xff] }
 0x31b   : > { %v14303_v59 = vpop.f32.mrb[69].mxu0  ;;  %3100 = vmatprep.mubr.f32.mxu1 %v2699_v34  ;;  %v2518_v44 = vpop.permute.xlu1 %2517 }
 0x31c   : > { %v2701_v1 = vsel %vm171_vm0, %v18982_v62, %v2518_v44  ;;  %v2520_v28 = vpop.permute.xlu0 %2519  ;;  %v18989_v44 = vld [vmem:[#allocation5_spill] sm:$0xff] }
 0x31d   : > { %3101 = vmatmul.mubr.f32.gmra.mrb[94].mxu1 %v14300_v16 }
 0x31e   : > { %3170 = vmatprep.mubr.f32.mxu1 %v13941_v51  ;;  %v2702_v51 = vsel %vm171_vm0, %v18983_v25, %v2520_v28  ;;  %v18990_v28 = vld [vmem:[#allocation6_spill] sm:$0xff] }
 0x31f   : > { %v2522_v56 = vpop.permute.xlu1 %2521 }
 0x320   : > { %v2703_v8 = vsel %vm171_vm0, %v18984_v17, %v2522_v56  ;;  %v2524_v12 = vpop.permute.xlu0 %2523  ;;  %v18991_v56 = vld [vmem:[#allocation7_spill] sm:$0xff] }
 0x321   : > { %3171 = vmatmul.mubr.f32.vlgmr.msra.gmra.mrb[32].mxu1 %v2700_v0 }
 0x322   : > { %3175 = vmatprep.mubr.f32.mxu1 %v13958_v20  ;;  %v14310_v29 = vpop.f32.mrb[70].mxu0 }
 0x323   : > { %v14312_v53 = vpop.f32.mrb[71].mxu0  ;;  %v2526_v45 = vpop.permute.xlu1 %2525 }
 0x324   : > { %v2705_v22 = vsel %vm171_vm0, %v18986_v55, %v2526_v45  ;;  %v2528_v26 = vpop.permute.xlu0 %2527  ;;  %v18993_v45 = vld [vmem:[#allocation10_spill] sm:$0xff] }
 0x325   : > { %3176 = vmatmul.mubr.f32.gmra.mrb[34].mxu1 %v2701_v1 }
 0x326   : > { %3180 = vmatprep.mubr.f32.mxu1 %v13976_v2  ;;  %v2704_v2 = vsel %vm171_vm0, %v18985_v23, %v2524_v12  ;;  %v18992_v12 = vld [vmem:[#allocation8_spill] sm:$0xff] }
 0x327   : > { %v2530_v34 = vpop.permute.xlu1 %2529 }
 0x328   : > { %v2707_v40 = vsel %vm171_vm0, %v18988_v50, %v2530_v34  ;;  %v2532_v0 = vpop.permute.xlu0 %2531  ;;  %v18995_v34 = vld [vmem:[#allocation14_spill] sm:$0xff] }
 0x329   : > { %3181 = vmatmul.mubr.f32.gmra.mrb[36].mxu1 %v2702_v51 }
 0x32a   : > { %3185 = vmatprep.mubr.f32.mxu1 %v13994_v46  ;;  %v14320_v48 = vpop.f32.mrb[72].mxu0 }
 0x32b   : > { %v14322_v20 = vpop.f32.mrb[73].mxu0  ;;  %v2534_v62 = vpop.permute.xlu1 %2533 }
 0x32c   : > { %v2709_v25 = vsel %vm171_vm0, %v18990_v28, %v2534_v62  ;;  %v2536_v51 = vpop.permute.xlu0 %2535  ;;  %v18997_v62 = vld [vmem:[#allocation18_spill] sm:$0xff] }
 0x32d   : > { %3186 = vmatmul.mubr.f32.gmra.mrb[38].mxu1 %v2703_v8 }
 0x32e   : > { %3190 = vmatprep.mubr.f32.mxu1 %v14012_v63  ;;  %v2706_v63 = vsel %vm171_vm0, %v18987_v47, %v2528_v26  ;;  %v18994_v26 = vld [vmem:[#allocation12_spill] sm:$0xff] }
 0x32f   : > { %v2538_v17 = vpop.permute.xlu1 %2537 }
 0x330   : > { %v2711_v23 = vsel %vm171_vm0, %v18992_v12, %v2538_v17  ;;  %v18999_v17 = vld [vmem:[#allocation22_spill] sm:$0xff] }
 0x331   : > { %3191 = vmatmul.mubr.f32.gmra.mrb[40].mxu1 %v2704_v2  ;;  %v2540_v2 = vpop.permute.xlu0 %2539 }
 0x332   : > { %3195 = vmatprep.mubr.f32.mxu1 %v14030_v35  ;;  %v14330_v9 = vpop.f32.mrb[74].mxu0 }
 0x333   : > { %v14332_v46 = vpop.f32.mrb[75].mxu0  ;;  %v2542_v55 = vpop.permute.xlu1 %2541 }
 0x334   : > { %v2713_v47 = vsel %vm171_vm0, %v18994_v26, %v2542_v55  ;;  %v19001_v55 = vld [vmem:[#allocation27_spill] sm:$0xff] }
 0x335   : > { %3196 = vmatmul.mubr.f32.gmra.mrb[42].mxu1 %v2705_v22 }
 0x336   : > { %3200 = vmatprep.mubr.f32.mxu1 %v14048_v57  ;;  %v2708_v57 = vsel %vm171_vm0, %v18989_v44, %v2532_v0  ;;  %v18996_v0 = vld [vmem:[#allocation16_spill] sm:$0xff] }
 0x337   : > { %v2546_v50 = vpop.permute.xlu1 %2545 }
 0x338   : > { %v2715_v44 = vsel %vm171_vm0, %v18996_v0, %v2546_v50 }
 0x339   : > { %3201 = vmatmul.mubr.f32.gmra.mrb[44].mxu1 %v2706_v63  ;;  %v2544_v63 = vpop.permute.xlu0 %2543 }
 0x33a   : > { %3205 = vmatprep.mubr.f32.mxu1 %v14066_v49  ;;  %v14340_v37 = vpop.f32.mrb[76].mxu0 }
 0x33b   : > { %v14342_v35 = vpop.f32.mrb[77].mxu0  ;;  %v2550_v28 = vpop.permute.xlu1 %2549 }
 0x33d   : > { %3206 = vmatmul.mubr.f32.gmra.mrb[46].mxu1 %v2707_v40 }
 0x33e   : > { %3210 = vmatprep.mubr.f32.mxu1 %v14084_v6  ;;  %v2710_v6 = vsel %vm171_vm0, %v18991_v56, %v2536_v51  ;;  %v18998_v51 = vld [vmem:[#allocation20_spill] sm:$0xff] }
 0x33f   : > { %v2717_v56 = vsel %vm171_vm0, %v18998_v51, %v2550_v28  ;;  %v2554_v12 = vpop.permute.xlu1 %2553  ;;  %v19005_v51 = vld [vmem:[#allocation40_spill] sm:$0xff] }
 0x341   : > { %3211 = vmatmul.mubr.f32.gmra.mrb[48].mxu1 %v2708_v57  ;;  %v2548_v57 = vpop.permute.xlu0 %2547 }
 0x342   : > { %3215 = vmatprep.mubr.f32.mxu1 %v14102_v30  ;;  %v14350_v1 = vpop.f32.mrb[78].mxu0 }
 0x343   : > { %v14352_v49 = vpop.f32.mrb[79].mxu0  ;;  %v2558_v26 = vpop.permute.xlu1 %2557 }
 0x345   : > { %3216 = vmatmul.mubr.f32.gmra.mrb[50].mxu1 %v2709_v25 }
 0x346   : > { %3220 = vmatprep.mubr.f32.mxu1 %v14125_v5  ;;  %v2712_v5 = vsel %vm171_vm0, %v18993_v45, %v2540_v2  ;;  %v19000_v2 = vld [vmem:[#allocation24_spill] sm:$0xff] }
 0x347   : > { %v2719_v45 = vsel %vm171_vm0, %v19000_v2, %v2554_v12  ;;  %v2562_v50 = vpop.permute.xlu1 %2561  ;;  %v19007_v12 = vld [vmem:[#allocation45_spill] sm:$0xff] }
 0x349   : > { %3221 = vmatmul.mubr.f32.gmra.mrb[52].mxu1 %v2710_v6  ;;  %v2552_v6 = vpop.permute.xlu0 %2551 }
 0x34a   : > { %3225 = vmatprep.mubr.f32.mxu1 %v14152_v10  ;;  %v14360_v8 = vpop.f32.mrb[80].mxu0 }
 0x34b   : > { %v14362_v30 = vpop.f32.mrb[81].mxu0  ;;  %v2566_v28 = vpop.permute.xlu1 %2565 }
 0x34d   : > { %3226 = vmatmul.mubr.f32.gmra.mrb[54].mxu1 %v2711_v23 }
 0x34e   : > { %3230 = vmatprep.mubr.f32.mxu1 %v14170_v42  ;;  %v2714_v42 = vsel %vm171_vm0, %v18995_v34, %v2544_v63  ;;  %v19002_v34 = vld [vmem:[#allocation30_spill] sm:$0xff] }
 0x351   : > { %3231 = vmatmul.mubr.f32.gmra.mrb[56].mxu1 %v2712_v5  ;;  %v2556_v5 = vpop.permute.xlu0 %2555 }
 0x352   : > { %3235 = vmatprep.mubr.f32.mxu1 %v14184_v61  ;;  %v14370_v22 = vpop.f32.mrb[82].mxu0 }
 0x353   : > { %v14372_v10 = vpop.f32.mrb[83].mxu0 }
 0x355   : > { %3236 = vmatmul.mubr.f32.gmra.mrb[58].mxu1 %v2713_v47  ;;  %v2560_v63 = vpop.permute.xlu0 %2559 }
 0x356   : > { %3240 = vmatprep.mubr.f32.mxu1 %v14193_v24  ;;  %v2716_v24 = vsel %vm171_vm0, %v18997_v62, %v2548_v57  ;;  %v19004_v62 = vld [vmem:[#allocation35_spill] sm:$0xff] }
 0x359   : > { %3241 = vmatmul.mubr.f32.gmra.mrb[60].mxu1 %v2714_v42  ;;  %v2721_v42 = vsel %vm171_vm0, %v19002_v34, %v2558_v26  ;;  %v11557_v26 = vld [vmem:[#allocation3 + $0x180] sm:$0xff] }
 0x35a   : > { %3245 = vmatprep.mubr.f32.mxu1 %v14200_v15  ;;  %v14380_v40 = vpop.f32.mrb[84].mxu0 }
 0x35b   : > { %v14382_v61 = vpop.f32.mrb[85].mxu0 }
 0x35d   : > { %3246 = vmatmul.mubr.f32.gmra.mrb[62].mxu1 %v2715_v44  ;;  %v2564_v44 = vpop.permute.xlu0 %2563 }
 0x35e   : > { %3250 = vmatprep.mubr.f32.mxu1 %v14207_v41  ;;  %v2718_v41 = vsel %vm171_vm0, %v18999_v17, %v2552_v6  ;;  %v2570_v6 = vpop.permute.xlu1 %2569 }
 0x361   : > { %3251 = vmatmul.mubr.f32.gmra.mrb[64].mxu1 %v2716_v24  ;;  %v2723_v24 = vsel %vm171_vm0, %v19004_v62, %v2562_v50 }
 0x362   : > { %3255 = vmatprep.mubr.f32.mxu1 %v14214_v4  ;;  %v14390_v25 = vpop.f32.mrb[86].mxu0 }
 0x363   : > { %v14392_v15 = vpop.f32.mrb[87].mxu0 }
 0x365   : > { %3256 = vmatmul.mubr.f32.gmra.mrb[66].mxu1 %v2717_v56  ;;  %v2724_v56 = vsel %vm171_vm0, %v19005_v51, %v2564_v44 }
 0x366   : > { %3260 = vmatprep.mubr.f32.mxu1 %v14221_v32  ;;  %v2720_v32 = vsel %vm171_vm0, %v19001_v55, %v2556_v5  ;;  %v19008_v55 = vld [vmem:[#allocation47_spill] sm:$0xff] }
 0x369   : > { %3261 = vmatmul.mubr.f32.gmra.mrb[68].mxu1 %v2718_v41 }
 0x36a   : > { %3265 = vmatprep.mubr.f32.mxu1 %v14228_v7  ;;  %v14400_v23 = vpop.f32.mrb[88].mxu0 }
 0x36b   : > { %v14402_v4 = vpop.f32.mrb[89].mxu0 }
 0x36d   : > { %3266 = vmatmul.mubr.f32.gmra.mrb[70].mxu1 %v2719_v45 }
 0x36e   : > { %3270 = vmatprep.mubr.f32.mxu1 %v14235_v36  ;;  %v19003_v36 = vld [vmem:[#allocation33_spill] sm:$0xff] }
 0x36f   : > { %v2722_v0 = vsel %vm171_vm0, %v19003_v36, %v2560_v63 }
 0x371   : > { %3271 = vmatmul.mubr.f32.gmra.mrb[72].mxu1 %v2720_v32 }
 0x372   : > { %3275 = vmatprep.mubr.f32.mxu1 %v14242_v52  ;;  %v14410_v47 = vpop.f32.mrb[90].mxu0 }
 0x373   : > { %v14412_v7 = vpop.f32.mrb[91].mxu0 }
 0x375   : > { %3276 = vmatmul.mubr.f32.gmra.mrb[74].mxu1 %v2721_v42  ;;  %v19009_v42 = vld [vmem:[#allocation49_spill] sm:$0xff] }
 0x376   : > { %3280 = vmatprep.mubr.f32.mxu1 %v14249_v39  ;;  %v2568_v39 = vpop.permute.xlu0 %2567 }
 0x377   : > { %v2726_v2 = vsel %vm171_vm0, %v19007_v12, %v2568_v39  ;;  %v8704_v12 = vld [vmem:[%s18563_s1 + $0x4a8] sm:$0xff] }
 0x379   : > { %3281 = vmatmul.mubr.f32.gmra.mrb[76].mxu1 %v2722_v0  ;;  %v11558_v0 = vld [vmem:[#allocation3 + $0x188] sm:$0xff] }
 0x37a   : > { %3285 = vmatprep.mubr.f32.mxu1 %v14258_v19  ;;  %v14420_v52 = vpop.f32.mrb[92].mxu0  ;;  %v19006_v19 = vld [vmem:[#allocation43_spill] sm:$0xff]  ;;  %v10948_v41 = vpop.permute.xlu0 %10947 }
 0x37b   : > { %v14422_v57 = vpop.f32.mrb[93].mxu0  ;;  %v2725_v17 = vsel %vm171_vm0, %v19006_v19, %v2566_v28  ;;  %v10949_v45 = vunpack.i.l.bf16 %v10948_v41  ;;  %v10950_v5 = vunpack.i.h.bf16 %v10948_v41  ;;  %v8703_v41 = vld [vmem:[%s18563_s1 + $0x4a0] sm:$0xff] }
 0x37d   : > { %3286 = vmatmul.mubr.f32.gmra.mrb[78].mxu1 %v2723_v24  ;;  %v2732_v63 = vsel %vm171_vm0, %v11557_v26, %v10949_v45  ;;  %v2728_v50 = vsel %vm171_vm0, %v19009_v42, %v10950_v5  ;;  %v8705_v45 = vld [vmem:[%s18563_s1 + $0x4b0] sm:$0xff]  ;;  %v8732_v42 = vld [vmem:[%s18563_s1 + $0x588] sm:$0xff] }
 0x37e   : > { %3290 = vmatprep.mubr.f32.mxu1 %v14267_v60  ;;  %v10953_v60 = vpop.permute.xlu1 %10952  ;;  %v10958_v34 = vpop.permute.xlu0 %10957  ;;  %v8709_v26 = vld [vmem:[%s18563_s1 + $0x4d0] sm:$0xff] }
 0x37f   : > { %v10954_v32 = vunpack.i.l.bf16 %v10953_v60  ;;  %v10959_v36 = vunpack.i.l.bf16 %v10958_v34  ;;  %v10960_v62 = vunpack.i.h.bf16 %v10958_v34 }
 0x381   : > { %3291 = vmatmul.mubr.f32.gmra.mrb[80].mxu1 %v2724_v56  ;;  %v2734_v39 = vsel %vm171_vm0, %v14115_v14, %v10959_v36  ;;  %v2730_v56 = vsel %vm171_vm0, %v14139_v43, %v10960_v62  ;;  %v8700_v14 = vld [vmem:[%s18563_s1 + $0x488] sm:$0xff]  ;;  %v8702_v43 = vld [vmem:[%s18563_s1 + $0x498] sm:$0xff]  ;;  %v8733_v36 = vld [vmem:[%s18563_s1 + $0x590] sm:$0xff] }
 0x382   : > { %3295 = vmatprep.mubr.f32.mxu1 %v14276_v58  ;;  %v2727_v58 = vsel %vm171_vm0, %v19008_v55, %v2570_v6  ;;  %v10963_v44 = vpop.permute.xlu1 %10962  ;;  %v8707_v55 = vld [vmem:[%s18563_s1 + $0x4c0] sm:$0xff] }
 0x383   : > { %v10964_v28 = vunpack.i.l.bf16 %v10963_v44  ;;  %v10965_v51 = vunpack.i.h.bf16 %v10963_v44  ;;  %v8712_v44 = vld [vmem:[%s18563_s1 + $0x4e8] sm:$0xff] }
 0x385   : > { %3296 = vmatmul.mubr.f32.gmra.mrb[82].mxu1 %v2725_v17  ;;  %v2735_v6 = vsel %vm171_vm0, %v14117_v21, %v10964_v28  ;;  %v2731_v19 = vsel %vm171_vm0, %v14158_v27, %v10965_v51  ;;  %v8701_v21 = vld [vmem:[%s18563_s1 + $0x490] sm:$0xff]  ;;  %v8735_v28 = vld [vmem:[%s18563_s1 + $0x5a0] sm:$0xff] }
 0x386   : > { %3300 = vmatprep.mubr.f32.mxu1 %v14285_v18  ;;  %v10955_v18 = vunpack.i.h.bf16 %v10953_v60  ;;  %v9769_v27 = vpack.c.bf16 %v8702_v43, %v8701_v21  ;;  %v8706_v60 = vld [vmem:[%s18563_s1 + $0x4b8] sm:$0xff]  ;;  %v8739_v21 = vld [vmem:[%s18563_s1 + $0x5c0] sm:$0xff]  ;;  %v8740_v43 = vld [vmem:[%s18563_s1 + $0x5c8] sm:$0xff] }
 0x387   : > { %v9775_v5 = vpack.c.bf16 %v8706_v60, %v8705_v45  ;;  %v8716_v45 = vld [vmem:[%s18563_s1 + $0x508] sm:$0xff] }
 0x388   : > { %v2729_v24 = vsel %vm171_vm0, %v13881_v38, %v10955_v18  ;;  %v8699_v38 = vld [vmem:[%s18563_s1 + $0x480] sm:$0xff] }
 0x389   : > { %3301 = vmatmul.mubr.f32.gmra.mrb[84].mxu1 %v2726_v2  ;;  %v9766_v17 = vpack.c.bf16 %v8700_v14, %v8699_v38  ;;  %v9772_v2 = vpack.c.bf16 %v8704_v12, %v8703_v41  ;;  %v8731_v18 = vld [vmem:[%s18563_s1 + $0x580] sm:$0xff]  ;;  %v8714_v38 = vld [vmem:[%s18563_s1 + $0x4f8] sm:$0xff]  ;;  %v8741_v41 = vld [vmem:[%s18563_s1 + $0x5d0] sm:$0xff] }
 0x38a   : > { %3305 = vmatprep.mubr.f32.mxu1 %v14300_v16  ;;  %v2733_v16 = vsel %vm171_vm0, %v11558_v0, %v10954_v32  ;;  %v8734_v0 = vld [vmem:[%s18563_s1 + $0x598] sm:$0xff] }
 0x38b   : > { %9767 = vmatpush1.bf16.msra.mxu1 %v9766_v17  ;;  %v14516_v62 = vpack.c.bf16 %v8734_v0, %v8733_v36  ;;  %v8742_v12 = vld [vmem:[%s18563_s1 + $0x5d8] sm:$0xff]  ;;  %v8747_v0 = vld [vmem:[%s18563_s1 + $0x600] sm:$0xff] }
 0x38c   : > { %9768 = vmatprep.subr.bf16.mxu1 %v18857_v54  ;;  %v14570_v60 = vpack.c.bf16 %v8742_v12, %v8741_v41  ;;  %v8752_v41 = vld [vmem:[%s18563_s1 + $0x628] sm:$0xff] }
 0x38d   : > { %3306 = vmatmul.mubr.f32.gmra.mrb[86].mxu1 %v2727_v58  ;;  %v8708_v58 = vld [vmem:[%s18563_s1 + $0x4c8] sm:$0xff] }
 0x38e   : > { %3310 = vmatprep.mubr.f32.mxu1 %v2732_v63  ;;  %v9778_v32 = vpack.c.bf16 %v8708_v58, %v8707_v55  ;;  %v8710_v63 = vld [vmem:[%s18563_s1 + $0x4d8] sm:$0xff]  ;;  %19013 = vst [vmem:[#allocation13_spill] sm:$0xff] %v14570_v60  ;;  %v8743_v55 = vld [vmem:[%s18563_s1 + $0x5e0] sm:$0xff]  ;;  %v8744_v58 = vld [vmem:[%s18563_s1 + $0x5e8] sm:$0xff] }
 0x38f   : > { %9770 = vmatpush1.bf16.msra.mxu1 %v9769_v27  ;;  %v9781_v34 = vpack.c.bf16 %v8710_v63, %v8709_v26  ;;  %v14554_v27 = vpack.c.bf16 %v8740_v43, %v8739_v21  ;;  %v8745_v26 = vld [vmem:[%s18563_s1 + $0x5f0] sm:$0xff]  ;;  %v8746_v63 = vld [vmem:[%s18563_s1 + $0x5f8] sm:$0xff]  ;;  %v14634_v21 = vld [vmem:[%s18564_s2 + $0x1] ss:$0 sm:$0xff] }
 0x390   : > { %9771 = vmatprep.subr.bf16.mxu1 %v18857_v54  ;;  %v8751_v43 = vld [vmem:[%s18563_s1 + $0x620] sm:$0xff] }
 0x391   : > { %3311 = vmatmul.mubr.f32.gmra.mrb[88].mxu1 %v2728_v50  ;;  %v14500_v50 = vpack.c.bf16 %v8732_v42, %v8731_v18  ;;  %19012 = vst [vmem:[#allocation11_spill] sm:$0xff] %v14554_v27  ;;  %v8718_v18 = vld [vmem:[%s18563_s1 + $0x518] sm:$0xff]  ;;  %v14597_v42 = vpack.c.bf16 %v8746_v63, %v8745_v26  ;;  %v14644_v12 = vpack.c.bf16 %v8752_v41, %v8751_v43  ;;  %v8721_v63 = vld [vmem:[%s18563_s1 + $0x530] sm:$0xff]  ;;  %v8756_v43 = vld [vmem:[%s18563_s1 + $0x648] sm:$0xff] }
 0x392   : > { %3315 = vmatprep.mubr.f32.mxu1 %v2733_v16  ;;  %v8711_v16 = vld [vmem:[%s18563_s1 + $0x4e0] sm:$0xff] }
 0x393   : > { %9773 = vmatpush1.bf16.msra.mxu1 %v9772_v2  ;;  %9815 = vmatpush1.bf16.msra.mxu0 %v14500_v50  ;;  %v8715_v2 = vld [vmem:[%s18563_s1 + $0x500] sm:$0xff]  ;;  %19015 = vst [vmem:[#allocation17_spill] sm:$0xff] %v14597_v42  ;;  %19018 = vst [vmem:[#allocation23_spill] sm:$0xff] %v14644_v12 }
 0x394   : > { %9774 = vmatprep.subr.bf16.mxu1 %v18857_v54  ;;  %9816 = vmatprep.subr.bf16.mxu0 %v18857_v54 }
 0x395   : > { %3316 = vmatmul.mubr.f32.gmra.mrb[90].mxu1 %v2729_v24  ;;  %v9784_v24 = vpack.c.bf16 %v8712_v44, %v8711_v16  ;;  %v8748_v16 = vld [vmem:[%s18563_s1 + $0x608] sm:$0xff] }
 0x396   : > { %3320 = vmatprep.mubr.f32.mxu1 %v2734_v39  ;;  %v8736_v39 = vld [vmem:[%s18563_s1 + $0x5a8] sm:$0xff]  ;;  %v14608_v44 = vpack.c.bf16 %v8748_v16, %v8747_v0 }
 0x397   : > { %9776 = vmatpush1.bf16.msra.mxu1 %v9775_v5  ;;  %9818 = vmatpush1.bf16.msra.mxu0 %v14516_v62  ;;  %v14527_v51 = vpack.c.bf16 %v8736_v39, %v8735_v28  ;;  %v9790_v5 = vpack.c.bf16 %v8716_v45, %v8715_v2  ;;  %v8749_v28 = vld [vmem:[%s18563_s1 + $0x610] sm:$0xff]  ;;  %v8750_v39 = vld [vmem:[%s18563_s1 + $0x618] sm:$0xff] }
 0x398   : > { %9777 = vmatprep.subr.bf16.mxu1 %v18857_v54  ;;  %9819 = vmatprep.subr.bf16.mxu0 %v18857_v54  ;;  %19016 = vst [vmem:[#allocation19_spill] sm:$0xff] %v14608_v44 }
 0x399   : > { %3321 = vmatmul.mubr.f32.gmra.mrb[92].mxu1 %v2730_v56  ;;  %19010 = vst [vmem:[#allocation9_spill] sm:$0xff] %v14527_v51  ;;  %v8737_v56 = vld [vmem:[%s18563_s1 + $0x5b0] sm:$0xff] }
 0x39a   : > { %3325 = vmatprep.mubr.f32.mxu1 %v2735_v6  ;;  %v8738_v6 = vld [vmem:[%s18563_s1 + $0x5b8] sm:$0xff] }
 0x39b   : > { %9779 = vmatpush1.bf16.msra.mxu1 %v9778_v32  ;;  %9821 = vmatpush1.bf16.msra.mxu0 %v14527_v51  ;;  %v14543_v14 = vpack.c.bf16 %v8738_v6, %v8737_v56  ;;  %v14581_v32 = vpack.c.bf16 %v8744_v58, %v8743_v55  ;;  %v8719_v56 = vld [vmem:[%s18563_s1 + $0x520] sm:$0xff]  ;;  %v8720_v6 = vld [vmem:[%s18563_s1 + $0x528] sm:$0xff]  ;;  %v8753_v55 = vld [vmem:[%s18563_s1 + $0x630] sm:$0xff] }
 0x39c   : > { %9780 = vmatprep.subr.bf16.mxu1 %v18857_v54  ;;  %9822 = vmatprep.subr.bf16.mxu0 %v18857_v54  ;;  %v8754_v58 = vld [vmem:[%s18563_s1 + $0x638] sm:$0xff] }
 0x39d   : > { %3326 = vmatmul.mubr.f32.gmra.mrb[94].mxu1 %v2731_v19  ;;  %v8713_v19 = vld [vmem:[%s18563_s1 + $0x4f0] sm:$0xff]  ;;  %19011 = vst [vmem:[#allocation48_spill] sm:$0xff] %v14543_v14  ;;  %19014 = vst [vmem:[#allocation15_spill] sm:$0xff] %v14581_v32 }
 0x39e   : > { %v9787_v17 = vpack.c.bf16 %v8714_v38, %v8713_v19  ;;  %v14628_v38 = vpack.c.bf16 %v8750_v39, %v8749_v28 }
 0x39f   : > { %9782 = vmatpush1.bf16.msra.mxu1 %v9781_v34  ;;  %9824 = vmatpush1.bf16.msra.mxu0 %v14543_v14  ;;  %v8717_v34 = vld [vmem:[%s18563_s1 + $0x510] sm:$0xff] }
 0x3a0   : > { %9783 = vmatprep.subr.bf16.mxu1 %v18857_v54  ;;  %9825 = vmatprep.subr.bf16.mxu0 %v18857_v54  ;;  %v9793_v36 = vpack.c.bf16 %v8718_v18, %v8717_v34  ;;  %19017 = vst [vmem:[#allocation21_spill] sm:$0xff] %v14628_v38  ;;  %v8722_v34 = vld [vmem:[%s18563_s1 + $0x538] sm:$0xff]  ;;  %v14662_v18 = vpack.c.bf16 %v8754_v58, %v8753_v55 }
 0x3a1   : > { %v9799_v0 = vpack.c.bf16 %v8722_v34, %v8721_v63  ;;  %v8758_v63 = vld [vmem:[%s18563_s1 + $0x658] sm:$0xff] }
 0x3a2   : > { %19019 = vst [vmem:[#allocation25_spill] sm:$0xff] %v14662_v18 }
 0x3a3   : > { %9785 = vmatpush1.bf16.msra.mxu1 %v9784_v24  ;;  %9827 = vmatpush1.bf16.msra.mxu0 %v14554_v27 }
 0x3a4   : > { %9786 = vmatprep.subr.bf16.mxu1 %v18857_v54  ;;  %9828 = vmatprep.subr.bf16.mxu0 %v18857_v54 }
 0x3a7   : > { %9788 = vmatpush1.bf16.msra.mxu1 %v9787_v17  ;;  %9830 = vmatpush1.bf16.msra.mxu0 %v14570_v60  ;;  %v9796_v17 = vpack.c.bf16 %v8720_v6, %v8719_v56  ;;  %v8724_v56 = vld [vmem:[%s18563_s1 + $0x548] sm:$0xff]  ;;  %v8755_v6 = vld [vmem:[%s18563_s1 + $0x640] sm:$0xff] }
 0x3a8   : > { %9789 = vmatprep.subr.bf16.mxu1 %v18857_v54  ;;  %9831 = vmatprep.subr.bf16.mxu0 %v18857_v54 }
 0x3ab   : > { %9791 = vmatpush1.bf16.msra.mxu1 %v9790_v5  ;;  %9833 = vmatpush1.bf16.msra.mxu0 %v14581_v32 }
 0x3ac   : > { %9792 = vmatprep.subr.bf16.mxu1 %v18857_v54  ;;  %9834 = vmatprep.subr.bf16.mxu0 %v18857_v54 }
 0x3af   : > { %9836 = vmatpush1.bf16.msra.mxu0 %v14597_v42  ;;  %9794 = vmatpush1.bf16.msra.mxu1 %v9793_v36 }
 0x3b0   : > { %9837 = vmatprep.subr.bf16.mxu0 %v18857_v54  ;;  %9795 = vmatprep.subr.bf16.mxu1 %v18857_v54 }
 0x3b3   : > { %9839 = vmatpush1.bf16.msra.mxu0 %v14608_v44  ;;  %9797 = vmatpush1.bf16.msra.mxu1 %v9796_v17 }
 0x3b4   : > { %9840 = vmatprep.subr.bf16.mxu0 %v18857_v54  ;;  %9798 = vmatprep.subr.bf16.mxu1 %v18857_v54 }
 0x3b7   : > { %9842 = vmatpush1.bf16.msra.mxu0 %v14628_v38  ;;  %9800 = vmatpush1.bf16.msra.mxu1 %v9799_v0 }
 0x3b8   : > { %9843 = vmatprep.subr.bf16.mxu0 %v18857_v54  ;;  %9801 = vmatprep.subr.bf16.mxu1 %v18857_v54 }
 0x3bb   : > { %9845 = vmatpush1.bf16.msra.mxu0 %v14644_v12 }
 0x3bc   : > { %9846 = vmatprep.subr.bf16.mxu0 %v18857_v54 }
 0x3bf   : > { %9848 = vmatpush1.bf16.msra.mxu0 %v14662_v18 }
 0x3c0   : > { %9849 = vmatprep.subr.bf16.mxu0 %v18857_v54 }
 0x3ea   : > { %v14611_v24 = vpop.f32.mrb[94].mxu0 }
 0x3eb   : > { %v14626_v19 = vpop.f32.mrb[95].mxu0 }
 0x3f4   : > { %v3172_v2 = vpop.f32.mrb[32].mxu1 }
 0x3f5   : > { %v10165_v45 = vadd.f32 %v14634_v21, %v3172_v2  ;;  %v3174_v5 = vpop.f32.mrb[33].mxu1  ;;  %v14682_v2 = vpack.c.bf16 %v8756_v43, %v8755_v6  ;;  %v8760_v6 = vld [vmem:[%s18563_s1 + $0x668] sm:$0xff] }
 0x3f7   : > { %v3398_v26 = vadd.f32 %v10165_v45, %v14260_v3  ;;  %v8723_v3 = vld [vmem:[%s18563_s1 + $0x540] sm:$0xff]  ;;  %19020 = vst [vmem:[#allocation28_spill] sm:$0xff] %v14682_v2  ;;  %9851 = vmatpush1.bf16.msra.mxu0 %v14682_v2 }
 0x3f8   : > { %v3177_v36 = vpop.f32.mrb[34].mxu1  ;;  %v9802_v17 = vpack.c.bf16 %v8724_v56, %v8723_v3  ;;  %9852 = vmatprep.subr.bf16.mxu0 %v18857_v54  ;;  %v8726_v3 = vld [vmem:[%s18563_s1 + $0x558] sm:$0xff] }
 0x3f9   : > { %v3556_v16 = vmax.f32 %v3398_v26, 0.0  ;;  %v10166_v28 = vadd.f32 %v14634_v21, %v3177_v36  ;;  %v3179_v39 = vpop.f32.mrb[35].mxu1  ;;  %v8757_v26 = vld [vmem:[%s18563_s1 + $0x650] sm:$0xff] }
 0x3fa   : > { %9803 = vmatpush1.bf16.msra.mxu1 %v9802_v17  ;;  %v8725_v39 = vld [vmem:[%s18563_s1 + $0x550] sm:$0xff] }
 0x3fb   : > { %3588 = vst.msk [vmem:[#allocation2 + $0x19] sm:$0xff] %vm171_vm0, %v3556_v16  ;;  %v3403_v41 = vadd.f32 %v10166_v28, %v14252_v13  ;;  %v14693_v13 = vpack.c.bf16 %v8758_v63, %v8757_v26  ;;  %9804 = vmatprep.subr.bf16.mxu1 %v18857_v54  ;;  %v9805_v56 = vpack.c.bf16 %v8726_v3, %v8725_v39  ;;  %v8762_v26 = vld [vmem:[%s18563_s1 + $0x678] sm:$0xff]  ;;  %v8728_v3 = vld [vmem:[%s18563_s1 + $0x568] sm:$0xff] }
 0x3fc   : > { %v3182_v45 = vpop.f32.mrb[36].mxu1 }
 0x3fd   : > { %v3557_v5 = vmax.f32 %v3403_v41, 0.0  ;;  %v10167_v55 = vadd.f32 %v14634_v21, %v3182_v45  ;;  %v3184_v58 = vpop.f32.mrb[37].mxu1  ;;  %19021 = vst [vmem:[#allocation31_spill] sm:$0xff] %v14693_v13  ;;  %9854 = vmatpush1.bf16.msra.mxu0 %v14693_v13 }
 0x3fe   : > { %9855 = vmatprep.subr.bf16.mxu0 %v18857_v54  ;;  %9806 = vmatpush1.bf16.msra.mxu1 %v9805_v56  ;;  %v8761_v58 = vld [vmem:[%s18563_s1 + $0x670] sm:$0xff] }
 0x3ff   : > { %3589 = vst.msk [vmem:[#allocation2 + $0x21] sm:$0xff] %vm171_vm0, %v3557_v5  ;;  %v3408_v34 = vadd.f32 %v10167_v55, %v14278_v33  ;;  %v8759_v33 = vld [vmem:[%s18563_s1 + $0x660] sm:$0xff]  ;;  %9807 = vmatprep.subr.bf16.mxu1 %v18857_v54 }
 0x400   : > { %v3187_v36 = vpop.f32.mrb[38].mxu1  ;;  %v14715_v41 = vpack.c.bf16 %v8760_v6, %v8759_v33  ;;  %v8763_v6 = vld [vmem:[%s18563_s1 + $0x680] sm:$0xff] }
 0x401   : > { %v3558_v0 = vmax.f32 %v3408_v34, 0.0  ;;  %v10168_v16 = vadd.f32 %v14634_v21, %v3187_v36  ;;  %v3189_v28 = vpop.f32.mrb[39].mxu1  ;;  %v14729_v34 = vpack.c.bf16 %v8762_v26, %v8761_v58 }
 0x402   : > { %19022 = vst [vmem:[#allocation34_spill] sm:$0xff] %v14715_v41  ;;  %9857 = vmatpush1.bf16.msra.mxu0 %v14715_v41  ;;  %v14745_v56 = vld [vmem:[#allocation2 + $0x18] sm:$0xff] }
 0x403   : > { %3590 = vst.msk [vmem:[#allocation2 + $0x31] sm:$0xff] %vm171_vm0, %v3558_v0  ;;  %v3413_v17 = vadd.f32 %v10168_v16, %v14270_v11  ;;  %9858 = vmatprep.subr.bf16.mxu0 %v18857_v54  ;;  %19023 = vst [vmem:[#allocation36_spill] sm:$0xff] %v14729_v34 }
 0x404   : > { %v3192_v43 = vpop.f32.mrb[40].mxu1 }
 0x405   : > { %v3559_v45 = vmax.f32 %v3413_v17, 0.0  ;;  %v10169_v5 = vadd.f32 %v14634_v21, %v3192_v43  ;;  %v3194_v55 = vpop.f32.mrb[41].mxu1  ;;  %v8764_v17 = vld [vmem:[%s18563_s1 + $0x688] sm:$0xff] }
 0x406   : > { %v14732_v28 = vld [vmem:[#allocation2 + $0x20] sm:$0xff]  ;;  %v14734_v39 = vld [vmem:[#allocation2 + $0x28] sm:$0x3]  ;;  %9860 = vmatpush1.bf16.msra.mxu0 %v14729_v34 }
 0x407   : > { %3591 = vst.msk [vmem:[#allocation2 + $0x39] sm:$0xff] %vm171_vm0, %v3559_v45  ;;  %v3418_v11 = vadd.f32 %v10169_v5, %v14303_v59  ;;  %v8727_v59 = vld [vmem:[%s18563_s1 + $0x560] sm:$0xff]  ;;  %v3904_v45 = vrot.slane %v14732_v28, 2  ;;  %v3906_v5 = vrot.slane %v14734_v39, 2 }
 0x408   : > { %v3197_v63 = vpop.f32.mrb[42].mxu1  ;;  %v9808_v58 = vpack.c.bf16 %v8728_v3, %v8727_v59 }
 0x409   : > { %v3560_v36 = vmax.f32 %v3418_v11, 0.0  ;;  %v10170_v0 = vadd.f32 %v14634_v21, %v3197_v63  ;;  %v3199_v16 = vpop.f32.mrb[43].mxu1  ;;  %v14757_v11 = vpack.c.bf16 %v8764_v17, %v8763_v6  ;;  %v14770_v17 = vsel %vm626_vm4, %v3904_v45, %v3906_v5 }
 0x40a   : > { %v14755_v55 = vld [vmem:[#allocation2 + $0x30] sm:$0xff]  ;;  %v3903_v16 = vrot.slane %v14745_v56, 2  ;;  %9809 = vmatpush1.bf16.msra.mxu1 %v9808_v58  ;;  %19024 = vst [vmem:[#allocation42_spill] sm:$0xff] %v14770_v17 }
 0x40b   : > { %3592 = vst.msk [vmem:[#allocation2 + $0x49] sm:$0xff] %vm171_vm0, %v3560_v36  ;;  %v3423_v33 = vadd.f32 %v10170_v0, %v14294_v31  ;;  %9862 = vmatprep.subr.bf16.mxu0 %v14757_v11  ;;  %9810 = vmatprep.subr.bf16.mxu1 %v18857_v54 }
 0x40c   : > { %v3202_v43 = vpop.f32.mrb[44].mxu1 }
 0x40d   : > { %v3561_v31 = vmax.f32 %v3423_v33, 0.0  ;;  %v10171_v26 = vadd.f32 %v14634_v21, %v3202_v43  ;;  %v3204_v63 = vpop.f32.mrb[45].mxu1  ;;  %v3732_v33 = vrot.slane %v14755_v55, 1  ;;  %v14773_v43 = vsel %vm626_vm4, %v3903_v16, %v3904_v45  ;;  %v8729_v45 = vld [vmem:[%s18563_s1 + $0x570] sm:$0xff] }
 0x40e   : > { %v14760_v36 = vld [vmem:[#allocation2 + $0x38] sm:$0xff]  ;;  %v3628_v0 = vld [vmem:[#allocation2 + $0x40] sm:$0x3] }
 0x40f   : > { %3593 = vst.msk [vmem:[#allocation2 + $0x51] sm:$0xff] %vm171_vm0, %v3561_v31  ;;  %v3428_v34 = vadd.f32 %v10171_v26, %v14312_v53  ;;  %v3733_v59 = vrot.slane %v14760_v36, 1  ;;  %v3735_v3 = vrot.slane %v3628_v0, 1  ;;  %v3911_v13 = vrot.slane %v3628_v0, 2 }
 0x410   : > { %v3207_v6 = vpop.f32.mrb[46].mxu1 }
 0x411   : > { %v3562_v58 = vmax.f32 %v3428_v34, 0.0  ;;  %v10172_v63 = vadd.f32 %v14634_v21, %v3207_v6  ;;  %v3209_v31 = vpop.f32.mrb[47].mxu1  ;;  %v14777_v53 = vsel %vm449_vm3, %v3733_v59, %v3735_v3  ;;  %v14780_v26 = vsel %vm449_vm3, %v3732_v33, %v3733_v59  ;;  %v8730_v34 = vld [vmem:[%s18563_s1 + $0x578] sm:$0xff]  ;;  %v14794_v59 = vld [vmem:[#allocation2] sm:$0xff]  ;;  %v14796_v3 = vld [vmem:[#allocation2 + $0x8] sm:$0xff] }
 0x412   : > { %v10971_v41 = vpack.i.bf16 %v14770_v17, %v14777_v53  ;;  %v10966_v5 = vpack.i.bf16 %v14773_v43, %v14780_v26  ;;  %v9811_v33 = vpack.c.bf16 %v8730_v34, %v8729_v45  ;;  %v3909_v31 = vrot.slane %v14760_v36, 2  ;;  %v14801_v2 = vld [vmem:[#allocation2 + $0x48] sm:$0xff] }
 0x413   : > { %3594 = vst.msk [vmem:[#allocation2 + $0x61] sm:$0xff] %vm171_vm0, %v3562_v58  ;;  %v3433_v16 = vadd.f32 %v10172_v63, %v14310_v29  ;;  %v3908_v45 = vrot.slane %v14755_v55, 2 }
 0x414   : > { %v3212_v6 = vpop.f32.mrb[48].mxu1  ;;  %10972 = vrot.lane.b32.xlu1 %v10971_v41, %s11588_s14  ;;  %10967 = vrot.lane.b32.xlu0 %v10966_v5, %s11588_s14  ;;  %v3722_v41 = vrot.slane %v14794_v59, 1  ;;  %v3723_v5 = vrot.slane %v14796_v3, 1  ;;  %v14820_v38 = vsel %vm626_vm4, %v3909_v31, %v3911_v13 }
 0x415   : > { %v3563_v18 = vmax.f32 %v3433_v16, 0.0  ;;  %v10173_v58 = vadd.f32 %v14634_v21, %v3212_v6  ;;  %v3214_v12 = vpop.f32.mrb[49].mxu1  ;;  %9812 = vmatpush1.bf16.msra.mxu1 %v9811_v33  ;;  %v3737_v16 = vrot.slane %v14801_v2, 1  ;;  %v14817_v33 = vld [vmem:[#allocation2 + $0x10] sm:$0x3]  ;;  %19025 = vst [vmem:[#allocation44_spill] sm:$0xff] %v14820_v38  ;;  %v14823_v44 = vsel %vm626_vm4, %v3908_v45, %v3909_v31 }
 0x416   : > { %v14804_v29 = vld [vmem:[#allocation2 + $0x50] sm:$0xff]  ;;  %v14806_v63 = vld [vmem:[#allocation2 + $0x58] sm:$0x3]  ;;  %10101 = vmatprep.subr.bf16.mxu1 %v18857_v54  ;;  %19026 = vst [vmem:[#allocation46_spill] sm:$0xff] %v14823_v44  ;;  %v3725_v27 = vrot.slane %v14817_v33, 1 }
 0x417   : > { %3595 = vst.msk [vmem:[#allocation2 + $0x69] sm:$0xff] %vm171_vm0, %v3563_v18  ;;  %v3438_v0 = vadd.f32 %v10173_v58, %v14322_v20  ;;  %v3738_v34 = vrot.slane %v14804_v29, 1  ;;  %v3740_v12 = vrot.slane %v14806_v63, 1 }
 0x418   : > { %v3217_v6 = vpop.f32.mrb[50].mxu1 }
 0x419   : > { %v3564_v42 = vmax.f32 %v3438_v0, 0.0  ;;  %v10174_v18 = vadd.f32 %v14634_v21, %v3217_v6  ;;  %v3219_v32 = vpop.f32.mrb[51].mxu1  ;;  %v14827_v20 = vsel %vm449_vm3, %v3738_v34, %v3740_v12  ;;  %v14830_v58 = vsel %vm449_vm3, %v3737_v16, %v3738_v34 }
 0x41a   : > { %v11001_v60 = vpack.i.bf16 %v14820_v38, %v14827_v20  ;;  %v10976_v13 = vpack.i.bf16 %v14823_v44, %v14830_v58  ;;  %v3724_v32 = vsel %vm449_vm3, %v3722_v41, %v3723_v5  ;;  %v14842_v0 = vld [vmem:[#allocation2 + $0x60] sm:$0xff]  ;;  %v3914_v6 = vrot.slane %v14804_v29, 2 }
 0x41b   : > { %3596 = vst.msk [vmem:[#allocation2 + $0x79] sm:$0xff] %vm171_vm0, %v3564_v42  ;;  %v3443_v31 = vadd.f32 %v10174_v18, %v14320_v48  ;;  %v10981_v38 = vpack.i.bf16 %v3724_v32, %v14745_v56  ;;  %v3913_v48 = vrot.slane %v14801_v2, 2  ;;  %v3726_v41 = vsel %vm449_vm3, %v3723_v5, %v3725_v27 }
 0x41c   : > { %v3222_v45 = vpop.f32.mrb[52].mxu1  ;;  %11002 = vrot.lane.b32.xlu1 %v11001_v60, %s11588_s14  ;;  %10977 = vrot.lane.b32.xlu0 %v10976_v13, %s11588_s14  ;;  %v3728_v60 = vrot.slane %v14732_v28, 1  ;;  %v3916_v44 = vrot.slane %v14806_v63, 2  ;;  %v3727_v27 = vrot.slane %v14745_v56, 1  ;;  %v10986_v17 = vpack.i.bf16 %v3726_v41, %v14732_v28 }
 0x41d   : > { %v3565_v34 = vmax.f32 %v3443_v31, 0.0  ;;  %v10175_v12 = vadd.f32 %v14634_v21, %v3222_v45  ;;  %v3224_v16 = vpop.f32.mrb[53].mxu1  ;;  %v3742_v31 = vrot.slane %v14842_v0, 1 }
 0x41e   : > { %v14847_v42 = vld [vmem:[#allocation2 + $0x68] sm:$0xff]  ;;  %v14851_v18 = vld [vmem:[#allocation2 + $0x70] sm:$0x3] }
 0x41f   : > { %3597 = vst.msk [vmem:[#allocation2 + $0x81] sm:$0xff] %vm171_vm0, %v3565_v34  ;;  %v3448_v13 = vadd.f32 %v10175_v12, %v14332_v46  ;;  %v3743_v45 = vrot.slane %v14847_v42, 1  ;;  %v3745_v32 = vrot.slane %v14851_v18, 1  ;;  %v14867_v46 = vsel %vm626_vm4, %v3913_v48, %v3914_v6 }
 0x420   : > { %v3227_v16 = vpop.f32.mrb[54].mxu1  ;;  %10982 = vrot.lane.b32.xlu0 %v10981_v38, %s11588_s14  ;;  %19027 = vst [vmem:[#allocation37_spill] sm:$0xff] %v14867_v46 }
 0x421   : > { %v3566_v5 = vmax.f32 %v3448_v13, 0.0  ;;  %v10176_v14 = vadd.f32 %v14634_v21, %v3227_v16  ;;  %v3229_v51 = vpop.f32.mrb[55].mxu1  ;;  %v14864_v34 = vsel %vm449_vm3, %v3742_v31, %v3743_v45  ;;  %v14875_v56 = vsel %vm449_vm3, %v3743_v45, %v3745_v32 }
 0x422   : > { %v11006_v12 = vpack.i.bf16 %v14867_v46, %v14864_v34  ;;  %v14878_v51 = vsel %vm449_vm3, %v3727_v27, %v3728_v60  ;;  %v14882_v48 = vld [vmem:[#allocation2 + $0x78] sm:$0xff]  ;;  %v3730_v13 = vrot.slane %v14734_v39, 1  ;;  %v3918_v16 = vrot.slane %v14842_v0, 2 }
 0x423   : > { %3598 = vst.msk [vmem:[#allocation2 + $0x91] sm:$0xff] %vm171_vm0, %v3566_v5  ;;  %v3453_v38 = vadd.f32 %v10176_v14, %v14330_v9  ;;  %v14887_v9 = vsel %vm626_vm4, %v3914_v6, %v3916_v44  ;;  %v3919_v14 = vrot.slane %v14847_v42, 2  ;;  %v10991_v32 = vpack.i.bf16 %v14878_v51, %v14755_v55 }
 0x424   : > { %v3232_v63 = vpop.f32.mrb[56].mxu1  ;;  %11007 = vrot.lane.b32.xlu1 %v11006_v12, %s11588_s14  ;;  %10987 = vrot.lane.b32.xlu0 %v10986_v17, %s11588_s14  ;;  %19028 = vst [vmem:[#allocation38_spill] sm:$0xff] %v14887_v9  ;;  %v11011_v45 = vpack.i.bf16 %v14887_v9, %v14875_v56  ;;  %v3747_v44 = vrot.slane %v14882_v48, 1 }
 0x425   : > { %v3567_v28 = vmax.f32 %v3453_v38, 0.0  ;;  %v10177_v41 = vadd.f32 %v14634_v21, %v3232_v63  ;;  %v3234_v31 = vpop.f32.mrb[57].mxu1  ;;  %v14907_v38 = vsel %vm449_vm3, %v3728_v60, %v3730_v13  ;;  %v3921_v63 = vrot.slane %v14851_v18, 2 }
 0x426   : > { %v14894_v17 = vld [vmem:[#allocation2 + $0x80] sm:$0xff]  ;;  %v14897_v39 = vld [vmem:[#allocation2 + $0x88] sm:$0x3]  ;;  %v14915_v9 = vsel %vm626_vm4, %v3918_v16, %v3919_v14  ;;  %v3923_v16 = vrot.slane %v14882_v48, 2 }
 0x427   : > { %3599 = vst.msk [vmem:[#allocation2 + $0x99] sm:$0xff] %vm171_vm0, %v3567_v28  ;;  %v3458_v27 = vadd.f32 %v10177_v41, %v14342_v35  ;;  %v3748_v6 = vrot.slane %v14894_v17, 1  ;;  %v3750_v5 = vrot.slane %v14897_v39, 1  ;;  %19029 = vst [vmem:[#allocation39_spill] sm:$0xff] %v14915_v9  ;;  %v3924_v60 = vrot.slane %v14894_v17, 2 }
 0x428   : > { %v3237_v12 = vpop.f32.mrb[58].mxu1  ;;  %11012 = vrot.lane.b32.xlu1 %v11011_v45, %s11588_s14  ;;  %10992 = vrot.lane.b32.xlu0 %v10991_v32, %s11588_s14  ;;  %v10996_v32 = vpack.i.bf16 %v14907_v38, %v14760_v36  ;;  %v3926_v46 = vrot.slane %v14897_v39, 2 }
 0x429   : > { %v3568_v31 = vmax.f32 %v3458_v27, 0.0  ;;  %v10178_v28 = vadd.f32 %v14634_v21, %v3237_v12  ;;  %v3239_v35 = vpop.f32.mrb[59].mxu1  ;;  %v14912_v41 = vsel %vm449_vm3, %v3747_v44, %v3748_v6  ;;  %v14925_v13 = vsel %vm449_vm3, %v3748_v6, %v3750_v5 }
 0x42a   : > { %v11016_v45 = vpack.i.bf16 %v14915_v9, %v14912_v41  ;;  %v14930_v44 = vld [vmem:[#allocation2 + $0x90] sm:$0xff]  ;;  %v14939_v6 = vsel %vm626_vm4, %v3923_v16, %v3924_v60 }
 0x42b   : > { %3600 = vst.msk [vmem:[#allocation2 + $0xa9] sm:$0xff] %vm171_vm0, %v3568_v31  ;;  %v3463_v18 = vadd.f32 %v10178_v28, %v14340_v37  ;;  %v14934_v31 = vsel %vm626_vm4, %v3919_v14, %v3921_v63  ;;  %19031 = vst [vmem:[#allocation29_spill] sm:$0xff] %v14939_v6 }
 0x42c   : > { %v3242_v27 = vpop.f32.mrb[60].mxu1  ;;  %11017 = vrot.lane.b32.xlu1 %v11016_v45, %s11588_s14  ;;  %10997 = vrot.lane.b32.xlu0 %v10996_v32, %s11588_s14  ;;  %19030 = vst [vmem:[#allocation26_spill] sm:$0xff] %v14934_v31  ;;  %v11021_v37 = vpack.i.bf16 %v14934_v31, %v14925_v13  ;;  %v3752_v32 = vrot.slane %v14930_v44, 1 }
 0x42d   : > { %v3569_v12 = vmax.f32 %v3463_v18, 0.0  ;;  %v10179_v35 = vadd.f32 %v14634_v21, %v3242_v27  ;;  %v3244_v9 = vpop.f32.mrb[61].mxu1 }
 0x42e   : > { %v14941_v5 = vld [vmem:[#allocation2 + $0x98] sm:$0xff]  ;;  %v3640_v28 = vld [vmem:[#allocation2 + $0xa0] sm:$0x3] }
 0x42f   : > { %3601 = vst.msk [vmem:[#allocation2 + $0xb1] sm:$0xff] %vm171_vm0, %v3569_v12  ;;  %v3468_v45 = vadd.f32 %v10179_v35, %v14352_v49  ;;  %v3753_v9 = vrot.slane %v14941_v5, 1  ;;  %v3755_v18 = vrot.slane %v3640_v28, 1  ;;  %v11031_v49 = vpack.i.bf16 %v14804_v29, %v14939_v6 }
 0x430   : > { %v3247_v14 = vpop.f32.mrb[62].mxu1  ;;  %11022 = vrot.lane.b32.xlu1 %v11021_v37, %s11588_s14  ;;  %v3929_v35 = vrot.slane %v14941_v5, 2 }
 0x431   : > { %v3570_v63 = vmax.f32 %v3468_v45, 0.0  ;;  %v10180_v27 = vadd.f32 %v14634_v21, %v3247_v14  ;;  %v3249_v16 = vpop.f32.mrb[63].mxu1  ;;  %v14950_v31 = vsel %vm449_vm3, %v3752_v32, %v3753_v9  ;;  %v14961_v45 = vsel %vm449_vm3, %v3753_v9, %v3755_v18 }
 0x432   : > { %19032 = vst [vmem:[#allocation41_spill] sm:$0xff] %v14950_v31  ;;  %v11026_v12 = vpack.i.bf16 %v14950_v31, %v14801_v2  ;;  %19033 = vst [vmem:[#allocation32_spill] sm:$0xff] %v14961_v45  ;;  %v14965_v39 = vld [vmem:[#allocation2 + $0xa8] sm:$0xff]  ;;  %v3928_v32 = vrot.slane %v14930_v44, 2 }
 0x433   : > { %3602 = vst.msk [vmem:[#allocation2 + $0xc1] sm:$0xff] %vm171_vm0, %v3570_v63  ;;  %v3473_v37 = vadd.f32 %v10180_v27, %v14350_v1  ;;  %19034 = vst [vmem:[#allocation4_spill] sm:$0xff] %v14965_v39  ;;  %v14970_v63 = vsel %vm626_vm4, %v3924_v60, %v3926_v46 }
 0x434   : > { %v3252_v14 = vpop.f32.mrb[64].mxu1  ;;  %11032 = vrot.lane.b32.xlu1 %v11031_v49, %s11588_s14  ;;  %11027 = vrot.lane.b32.xlu0 %v11026_v12, %s11588_s14  ;;  %19035 = vst [vmem:[#allocation5_spill] sm:$0xff] %v14970_v63  ;;  %v11036_v1 = vpack.i.bf16 %v14970_v63, %v14961_v45  ;;  %v14977_v18 = vsel %vm626_vm4, %v3928_v32, %v3929_v35  ;;  %v3757_v12 = vrot.slane %v14965_v39, 1  ;;  %v3931_v45 = vrot.slane %v3640_v28, 2 }
 0x435   : > { %v3571_v16 = vmax.f32 %v3473_v37, 0.0  ;;  %v10181_v6 = vadd.f32 %v14634_v21, %v3252_v14  ;;  %v3254_v31 = vpop.f32.mrb[65].mxu1  ;;  %19037 = vst [vmem:[#allocation7_spill] sm:$0xff] %v14977_v18  ;;  %v3933_v28 = vrot.slane %v14965_v39, 2 }
 0x436   : > { %v14974_v9 = vld [vmem:[#allocation2 + $0xb0] sm:$0xff]  ;;  %v3643_v27 = vld [vmem:[#allocation2 + $0xb8] sm:$0x3] }
 0x437   : > { %19036 = vst [vmem:[#allocation6_spill] sm:$0xff] %v14974_v9  ;;  %3603 = vst.msk [vmem:[#allocation2 + $0xc9] sm:$0xff] %vm171_vm0, %v3571_v16  ;;  %v3478_v49 = vadd.f32 %v10181_v6, %v14362_v30  ;;  %v3758_v31 = vrot.slane %v14974_v9, 1  ;;  %v3760_v37 = vrot.slane %v3643_v27, 1  ;;  %v11046_v30 = vpack.i.bf16 %v14847_v42, %v14977_v18 }
 0x438   : > { %v3257_v46 = vpop.f32.mrb[66].mxu1  ;;  %11037 = vrot.lane.b32.xlu0 %v11036_v1, %s11588_s14  ;;  %v3934_v6 = vrot.slane %v14974_v9, 2 }
 0x439   : > { %v3572_v60 = vmax.f32 %v3478_v49, 0.0  ;;  %v10182_v14 = vadd.f32 %v14634_v21, %v3257_v46  ;;  %v3259_v63 = vpop.f32.mrb[67].mxu1  ;;  %v14986_v32 = vsel %vm449_vm3, %v3757_v12, %v3758_v31  ;;  %v14996_v49 = vsel %vm449_vm3, %v3758_v31, %v3760_v37 }
 0x43a   : > { %19038 = vst [vmem:[#allocation8_spill] sm:$0xff] %v14986_v32  ;;  %v11041_v16 = vpack.i.bf16 %v14986_v32, %v14842_v0  ;;  %19039 = vst [vmem:[#allocation10_spill] sm:$0xff] %v14996_v49  ;;  %v15001_v12 = vld [vmem:[#allocation2 + $0xc0] sm:$0xff]  ;;  %v15010_v31 = vsel %vm626_vm4, %v3933_v28, %v3934_v6 }
 0x43b   : > { %3604 = vst.msk [vmem:[#allocation2 + $0xd9] sm:$0xff] %vm171_vm0, %v3572_v60  ;;  %v3483_v1 = vadd.f32 %v10182_v14, %v14360_v8  ;;  %19040 = vst [vmem:[#allocation12_spill] sm:$0xff] %v15001_v12  ;;  %v15005_v60 = vsel %vm626_vm4, %v3929_v35, %v3931_v45 }
 0x43c   : > { %v3262_v63 = vpop.f32.mrb[68].mxu1  ;;  %11042 = vrot.lane.b32.xlu1 %v11041_v16, %s11588_s14  ;;  %11047 = vrot.lane.b32.xlu0 %v11046_v30, %s11588_s14  ;;  %19041 = vst [vmem:[#allocation14_spill] sm:$0xff] %v15005_v60  ;;  %v11051_v8 = vpack.i.bf16 %v15005_v60, %v14996_v49  ;;  %19042 = vst [vmem:[#allocation16_spill] sm:$0xff] %v15010_v31  ;;  %v3762_v30 = vrot.slane %v15001_v12, 1  ;;  %v3936_v49 = vrot.slane %v3643_v27, 2 }
 0x43d   : > { %v3573_v46 = vmax.f32 %v3483_v1, 0.0  ;;  %v10183_v18 = vadd.f32 %v14634_v21, %v3262_v63  ;;  %v3264_v32 = vpop.f32.mrb[69].mxu1 }
 0x43e   : > { %v15012_v37 = vld [vmem:[#allocation2 + $0xc8] sm:$0xff]  ;;  %v3646_v14 = vld [vmem:[#allocation2 + $0xd0] sm:$0x3] }
 0x43f   : > { %19043 = vst [vmem:[#allocation18_spill] sm:$0xff] %v15012_v37  ;;  %3605 = vst.msk [vmem:[#allocation2 + $0xe1] sm:$0xff] %vm171_vm0, %v3573_v46  ;;  %v3488_v16 = vadd.f32 %v10183_v18, %v14372_v10  ;;  %v3763_v32 = vrot.slane %v15012_v37, 1  ;;  %v3765_v1 = vrot.slane %v3646_v14, 1  ;;  %v11061_v46 = vpack.i.bf16 %v14894_v17, %v15010_v31 }
 0x440   : > { %v3267_v35 = vpop.f32.mrb[70].mxu1  ;;  %11052 = vrot.lane.b32.xlu1 %v11051_v8, %s11588_s14  ;;  %v3939_v18 = vrot.slane %v15012_v37, 2 }
 0x441   : > { %v3574_v45 = vmax.f32 %v3488_v16, 0.0  ;;  %v10184_v63 = vadd.f32 %v14634_v21, %v3267_v35  ;;  %v3269_v28 = vpop.f32.mrb[71].mxu1  ;;  %v15021_v60 = vsel %vm449_vm3, %v3762_v30, %v3763_v32  ;;  %v15031_v16 = vsel %vm449_vm3, %v3763_v32, %v3765_v1 }
 0x442   : > { %19044 = vst [vmem:[#allocation20_spill] sm:$0xff] %v15021_v60  ;;  %v11056_v10 = vpack.i.bf16 %v15021_v60, %v14882_v48  ;;  %19045 = vst [vmem:[#allocation22_spill] sm:$0xff] %v15031_v16  ;;  %v15035_v27 = vld [vmem:[#allocation2 + $0xd8] sm:$0xff]  ;;  %v3938_v30 = vrot.slane %v15001_v12, 2 }
 0x443   : > { %3606 = vst.msk [vmem:[#allocation2 + $0xf1] sm:$0xff] %vm171_vm0, %v3574_v45  ;;  %v3493_v8 = vadd.f32 %v10184_v63, %v14370_v22  ;;  %19046 = vst [vmem:[#allocation24_spill] sm:$0xff] %v15035_v27  ;;  %v15040_v45 = vsel %vm626_vm4, %v3934_v6, %v3936_v49 }
 0x444   : > { %v3272_v35 = vpop.f32.mrb[72].mxu1  ;;  %11062 = vrot.lane.b32.xlu1 %v11061_v46, %s11588_s14  ;;  %11057 = vrot.lane.b32.xlu0 %v11056_v10, %s11588_s14  ;;  %19047 = vst [vmem:[#allocation27_spill] sm:$0xff] %v15040_v45  ;;  %v11066_v22 = vpack.i.bf16 %v15040_v45, %v15031_v16  ;;  %v15047_v1 = vsel %vm626_vm4, %v3938_v30, %v3939_v18  ;;  %v3767_v10 = vrot.slane %v15035_v27, 1  ;;  %v3941_v16 = vrot.slane %v3646_v14, 2 }
 0x445   : > { %v3575_v28 = vmax.f32 %v3493_v8, 0.0  ;;  %v10185_v31 = vadd.f32 %v14634_v21, %v3272_v35  ;;  %v3274_v60 = vpop.f32.mrb[73].mxu1  ;;  %19049 = vst [vmem:[#allocation33_spill] sm:$0xff] %v15047_v1  ;;  %v3943_v14 = vrot.slane %v15035_v27, 2 }
 0x446   : > { %v15044_v32 = vld [vmem:[#allocation2 + $0xe0] sm:$0xff]  ;;  %v3649_v63 = vld [vmem:[#allocation2 + $0xe8] sm:$0x3] }
 0x447   : > { %19048 = vst [vmem:[#allocation30_spill] sm:$0xff] %v15044_v32  ;;  %3607 = vst.msk [vmem:[#allocation2 + $0xf9] sm:$0xff] %vm171_vm0, %v3575_v28  ;;  %v3498_v46 = vadd.f32 %v10185_v31, %v14382_v61  ;;  %v3768_v60 = vrot.slane %v15044_v32, 1  ;;  %v3770_v8 = vrot.slane %v3649_v63, 1  ;;  %v11076_v61 = vpack.i.bf16 %v14941_v5, %v15047_v1 }
 0x448   : > { %v3277_v6 = vpop.f32.mrb[74].mxu1  ;;  %11067 = vrot.lane.b32.xlu0 %v11066_v22, %s11588_s14  ;;  %v3944_v31 = vrot.slane %v15044_v32, 2 }
 0x449   : > { %v3576_v49 = vmax.f32 %v3498_v46, 0.0  ;;  %v10186_v35 = vadd.f32 %v14634_v21, %v3277_v6  ;;  %v3279_v45 = vpop.f32.mrb[75].mxu1  ;;  %v15056_v30 = vsel %vm449_vm3, %v3767_v10, %v3768_v60  ;;  %v15066_v46 = vsel %vm449_vm3, %v3768_v60, %v3770_v8 }
 0x44a   : > { %19050 = vst [vmem:[#allocation35_spill] sm:$0xff] %v15056_v30  ;;  %v11071_v28 = vpack.i.bf16 %v15056_v30, %v14930_v44  ;;  %19051 = vst [vmem:[#allocation40_spill] sm:$0xff] %v15066_v46  ;;  %v15071_v10 = vld [vmem:[#allocation2 + $0xf0] sm:$0xff]  ;;  %v15080_v60 = vsel %vm626_vm4, %v3943_v14, %v3944_v31 }
 0x44b   : > { %3608 = vst.msk [vmem:[#allocation2 + $0x109] sm:$0xff] %vm171_vm0, %v3576_v49  ;;  %v3503_v22 = vadd.f32 %v10186_v35, %v14380_v40  ;;  %19052 = vst [vmem:[#allocation43_spill] sm:$0xff] %v15071_v10  ;;  %v15075_v49 = vsel %vm626_vm4, %v3939_v18, %v3941_v16 }
 0x44c   : > { %v3282_v45 = vpop.f32.mrb[76].mxu1  ;;  %11072 = vrot.lane.b32.xlu1 %v11071_v28, %s11588_s14  ;;  %11077 = vrot.lane.b32.xlu0 %v11076_v61, %s11588_s14  ;;  %19053 = vst [vmem:[#allocation45_spill] sm:$0xff] %v15075_v49  ;;  %v11081_v40 = vpack.i.bf16 %v15075_v49, %v15066_v46  ;;  %19054 = vst [vmem:[#allocation47_spill] sm:$0xff] %v15080_v60  ;;  %v3772_v61 = vrot.slane %v15071_v10, 1  ;;  %v3946_v46 = vrot.slane %v3649_v63, 2 }
 0x44d   : > { %v3577_v6 = vmax.f32 %v3503_v22, 0.0  ;;  %v10187_v1 = vadd.f32 %v14634_v21, %v3282_v45  ;;  %v3284_v30 = vpop.f32.mrb[77].mxu1 }
 0x44e   : > { %v15082_v8 = vld [vmem:[#allocation2 + $0xf8] sm:$0xff]  ;;  %v15084_v35 = vld [vmem:[#allocation2 + $0x100] sm:$0x3] }
 0x44f   : > { %19055 = vst [vmem:[#allocation49_spill] sm:$0xff] %v15082_v8  ;;  %3609 = vst.msk [vmem:[#allocation2 + $0x111] sm:$0xff] %vm171_vm0, %v3577_v6  ;;  %v3508_v28 = vadd.f32 %v10187_v1, %v14392_v15  ;;  %v3773_v30 = vrot.slane %v15082_v8, 1  ;;  %v3775_v18 = vrot.slane %v15084_v35, 1  ;;  %v11091_v15 = vpack.i.bf16 %v14974_v9, %v15080_v60 }
 0x450   : > { %v3287_v16 = vpop.f32.mrb[78].mxu1  ;;  %11082 = vrot.lane.b32.xlu1 %v11081_v40, %s11588_s14  ;;  %v19082_v9 = vrot.slane %v14796_v3, 2 }
 0x451   : > { %v3578_v22 = vmax.f32 %v3508_v28, 0.0  ;;  %v10188_v45 = vadd.f32 %v14634_v21, %v3287_v16  ;;  %v3289_v14 = vpop.f32.mrb[79].mxu1  ;;  %v15094_v49 = vsel %vm449_vm3, %v3772_v61, %v3773_v30  ;;  %v15103_v40 = vsel %vm449_vm3, %v3773_v30, %v3775_v18 }
 0x452   : > { %19056 = vst [vmem:[#allocation50_spill] sm:$0xff] %v15094_v49  ;;  %v11086_v1 = vpack.i.bf16 %v15094_v49, %v14965_v39  ;;  %19057 = vst [vmem:[#allocation51_spill] sm:$0xff] %v15103_v40  ;;  %v15109_v14 = vsel %vm626_vm4, %v3944_v31, %v3946_v46 }
 0x453   : > { %3610 = vst.msk [vmem:[#allocation2 + $0x121] sm:$0xff] %vm171_vm0, %v3578_v22  ;;  %v3513_v6 = vadd.f32 %v10188_v45, %v14390_v25  ;;  %19058 = vst [vmem:[#allocation52_spill] sm:$0xff] %v15109_v14  ;;  %v11096_v22 = vpack.i.bf16 %v15109_v14, %v15103_v40 }
 0x454   : > { %v3292_v28 = vpop.f32.mrb[80].mxu1  ;;  %11092 = vrot.lane.b32.xlu1 %v11091_v15, %s11588_s14  ;;  %11087 = vrot.lane.b32.xlu0 %v11086_v1, %s11588_s14 }
 0x455   : > { %v3579_v61 = vmax.f32 %v3513_v6, 0.0  ;;  %v10189_v63 = vadd.f32 %v14634_v21, %v3292_v28  ;;  %v3294_v16 = vpop.f32.mrb[81].mxu1 }
 0x457   : > { %3611 = vst.msk [vmem:[#allocation2 + $0x129] sm:$0xff] %vm171_vm0, %v3579_v61  ;;  %v3518_v25 = vadd.f32 %v10189_v63, %v14402_v4  ;;  %v15125_v4 = vld [vmem:[#allocation2 + $0x110] sm:$0xff]  ;;  %v15128_v61 = vld [vmem:[#allocation2 + $0x108] sm:$0xff] }
 0x458   : > { %v3297_v30 = vpop.f32.mrb[82].mxu1  ;;  %4040 = vrot.lane.b32.xlu1 %v15001_v12, %s11588_s14  ;;  %11097 = vrot.lane.b32.xlu0 %v11096_v22, %s11588_s14  ;;  %19059 = vst [vmem:[#allocation53_spill] sm:$0xff] %v15125_v4  ;;  %19060 = vst [vmem:[#allocation54_spill] sm:$0xff] %v15128_v61 }
 0x459   : > { %v3580_v18 = vmax.f32 %v3518_v25, 0.0  ;;  %v10190_v45 = vadd.f32 %v14634_v21, %v3297_v30  ;;  %v3299_v15 = vpop.f32.mrb[83].mxu1 }
 0x45a   : > { %v15141_v15 = vld [vmem:[#allocation2 + $0x118] sm:$0x3] }
 0x45b   : > { %3612 = vst.msk [vmem:[#allocation2 + $0x139] sm:$0xff] %vm171_vm0, %v3580_v18  ;;  %v3523_v31 = vadd.f32 %v10190_v45, %v14400_v23  ;;  %v3778_v23 = vrot.slane %v15125_v4, 1  ;;  %v3777_v45 = vrot.slane %v15128_v61, 1 }
 0x45c   : > { %v3302_v46 = vpop.f32.mrb[84].mxu1  ;;  %4044 = vrot.lane.b32.xlu1 %v15035_v27, %s11588_s14  ;;  %4042 = vrot.lane.b32.xlu0 %v15012_v37, %s11588_s14 }
 0x45d   : > { %v3581_v1 = vmax.f32 %v3523_v31, 0.0  ;;  %v10191_v6 = vadd.f32 %v14634_v21, %v3302_v46  ;;  %v3304_v28 = vpop.f32.mrb[85].mxu1  ;;  %v15148_v46 = vsel %vm449_vm3, %v3777_v45, %v3778_v23 }
 0x45e   : > { %v15137_v22 = vld [vmem:[#allocation2 + $0x128] sm:$0xff]  ;;  %19063 = vst [vmem:[#allocation57_spill] sm:$0xff] %v15148_v46  ;;  %v3780_v28 = vrot.slane %v15141_v15, 1  ;;  %v15164_v40 = vld [vmem:[#allocation2 + $0x130] sm:$0x3] }
 0x45f   : > { %3613 = vst.msk [vmem:[#allocation2 + $0x141] sm:$0xff] %vm171_vm0, %v3581_v1  ;;  %v3528_v63 = vadd.f32 %v10191_v6, %v14412_v7  ;;  %19061 = vst [vmem:[#allocation55_spill] sm:$0xff] %v15137_v22  ;;  %v15143_v7 = vld [vmem:[#allocation2 + $0x120] sm:$0xff]  ;;  %v3783_v1 = vrot.slane %v15137_v22, 1 }
 0x460   : > { %v3307_v16 = vpop.f32.mrb[86].mxu1  ;;  %4048 = vrot.lane.b32.xlu1 %v15071_v10, %s11588_s14  ;;  %4046 = vrot.lane.b32.xlu0 %v15044_v32, %s11588_s14  ;;  %19062 = vst [vmem:[#allocation56_spill] sm:$0xff] %v15143_v7 }
 0x461   : > { %v3582_v25 = vmax.f32 %v3528_v63, 0.0  ;;  %v10192_v30 = vadd.f32 %v14634_v21, %v3307_v16  ;;  %v3309_v18 = vpop.f32.mrb[87].mxu1 }
 0x462   : > { %v15160_v18 = vld [vmem:[#allocation2 + $0x138] sm:$0xff] }
 0x463   : > { %3614 = vst.msk [vmem:[#allocation2 + $0x151] sm:$0xff] %vm171_vm0, %v3582_v25  ;;  %v3533_v31 = vadd.f32 %v10192_v30, %v14410_v47  ;;  %v3782_v47 = vrot.slane %v15143_v7, 1  ;;  %v11101_v30 = vpack.i.bf16 %v15148_v46, %v15143_v7  ;;  %v15176_v46 = vsel %vm449_vm3, %v3778_v23, %v3780_v28 }
 0x464   : > { %v3312_v6 = vpop.f32.mrb[88].mxu1  ;;  %4052 = vrot.lane.b32.xlu1 %v15128_v61, %s11588_s14  ;;  %4050 = vrot.lane.b32.xlu0 %v15082_v8, %s11588_s14  ;;  %19066 = vst [vmem:[#allocation60_spill] sm:$0xff] %v15176_v46 }
 0x465   : > { %v3583_v63 = vmax.f32 %v3533_v31, 0.0  ;;  %v10193_v16 = vadd.f32 %v14634_v21, %v3312_v6  ;;  %v3314_v25 = vpop.f32.mrb[89].mxu1  ;;  %v15169_v31 = vsel %vm449_vm3, %v3782_v47, %v3783_v1 }
 0x466   : > { %v15162_v45 = vld [vmem:[#allocation2 + $0x140] sm:$0xff]  ;;  %19065 = vst [vmem:[#allocation59_spill] sm:$0xff] %v15169_v31  ;;  %v11111_v47 = vpack.i.bf16 %v15169_v31, %v15160_v18  ;;  %v15185_v32 = vld [vmem:[#allocation2 + $0x148] sm:$0x3] }
 0x467   : > { %19064 = vst [vmem:[#allocation58_spill] sm:$0xff] %v15162_v45  ;;  %3615 = vst.msk [vmem:[#allocation2 + $0x159] sm:$0xff] %vm171_vm0, %v3583_v63  ;;  %v3538_v49 = vadd.f32 %v10193_v16, %v14422_v57  ;;  %v3788_v6 = vrot.slane %v15162_v45, 1  ;;  %v3787_v57 = vrot.slane %v15160_v18, 1  ;;  %v3785_v16 = vrot.slane %v15164_v40, 1 }
 0x468   : > { %v3317_v25 = vpop.f32.mrb[90].mxu1  ;;  %11102 = vrot.lane.b32.xlu1 %v11101_v30, %s11588_s14  ;;  %4054 = vrot.lane.b32.xlu0 %v15125_v4, %s11588_s14  ;;  %v11106_v30 = vpack.i.bf16 %v15176_v46, %v15137_v22 }
 0x469   : > { %v3584_v14 = vmax.f32 %v3538_v49, 0.0  ;;  %v10194_v60 = vadd.f32 %v14634_v21, %v3317_v25  ;;  %v3319_v63 = vpop.f32.mrb[91].mxu1  ;;  %v15192_v28 = vsel %vm449_vm3, %v3787_v57, %v3788_v6  ;;  %v15198_v27 = vsel %vm449_vm3, %v3783_v1, %v3785_v16 }
 0x46a   : > { %v15189_v49 = vld [vmem:[#allocation2 + $0x150] sm:$0xff]  ;;  %19067 = vst [vmem:[#allocation61_spill] sm:$0xff] %v15192_v28  ;;  %19068 = vst [vmem:[#allocation62_spill] sm:$0xff] %v15198_v27 }
 0x46b   : > { %3616 = vst.msk [vmem:[#allocation2 + $0x169] sm:$0xff] %vm171_vm0, %v3584_v14  ;;  %v3543_v23 = vadd.f32 %v10194_v60, %v14420_v52  ;;  %v3790_v14 = vrot.slane %v15185_v32, 1  ;;  %v11121_v52 = vpack.i.bf16 %v15192_v28, %v15189_v49  ;;  %v11116_v60 = vpack.i.bf16 %v15198_v27, %v15162_v45 }
 0x46c   : > { %v3322_v25 = vpop.f32.mrb[92].mxu1  ;;  %11112 = vrot.lane.b32.xlu1 %v11111_v47, %s11588_s14  ;;  %11107 = vrot.lane.b32.xlu0 %v11106_v30, %s11588_s14  ;;  %v3792_v30 = vrot.slane %v15189_v49, 1 }
 0x46d   : > { %v3585_v63 = vmax.f32 %v3543_v23, 0.0  ;;  %v10195_v31 = vadd.f32 %v14634_v21, %v3322_v25  ;;  %v3324_v46 = vpop.f32.mrb[93].mxu1  ;;  %v15217_v27 = vsel %vm449_vm3, %v3788_v6, %v3790_v14 }
 0x46e   : > { %v15205_v57 = vld [vmem:[#allocation2 + $0x158] sm:$0xff]  ;;  %v15211_v1 = vld [vmem:[#allocation2 + $0x160] sm:$0x3]  ;;  %19069 = vst [vmem:[#allocation63_spill] sm:$0xff] %v15217_v27 }
 0x46f   : > { %3617 = vst.msk [vmem:[#allocation2 + $0x171] sm:$0xff] %vm171_vm0, %v3585_v63  ;;  %v3548_v47 = vadd.f32 %v10195_v31, %v14626_v19  ;;  %v3793_v46 = vrot.slane %v15205_v57, 1  ;;  %v11126_v31 = vpack.i.bf16 %v15217_v27, %v15205_v57  ;;  %v3795_v37 = vrot.slane %v15211_v1, 1 }
 0x470   : > { %v3327_v16 = vpop.f32.mrb[94].mxu1  ;;  %11122 = vrot.lane.b32.xlu1 %v11121_v52, %s11588_s14  ;;  %11117 = vrot.lane.b32.xlu0 %v11116_v60, %s11588_s14  ;;  %v3959_v27 = vrot.slane %v15137_v22, 2 }
 0x471   : > { %v3586_v23 = vmax.f32 %v3548_v47, 0.0  ;;  %v10196_v25 = vadd.f32 %v14634_v21, %v3327_v16  ;;  %v3329_v28 = vpop.f32.mrb[95].mxu1  ;;  %v15220_v19 = vsel %vm449_vm3, %v3792_v30, %v3793_v46  ;;  %v15236_v14 = vsel %vm449_vm3, %v3793_v46, %v3795_v37 }
 0x472   : > { %19070 = vst [vmem:[#allocation64_spill] sm:$0xff] %v15220_v19  ;;  %v15224_v63 = vld [vmem:[#allocation2 + $0x168] sm:$0xff]  ;;  %19071 = vst [vmem:[#allocation65_spill] sm:$0xff] %v15236_v14 }
 0x473   : > { %3618 = vst.msk [vmem:[#allocation2 + $0x181] sm:$0xff] %vm171_vm0, %v3586_v23  ;;  %v3553_v52 = vadd.f32 %v10196_v25, %v14611_v24  ;;  %v11131_v21 = vpack.i.bf16 %v15220_v19, %v15224_v63  ;;  %v3797_v24 = vrot.slane %v15224_v63, 1  ;;  %v3949_v25 = vrot.slane %v15082_v8, 2  ;;  %v8768_v8 = vld [vmem:[%s18563_s1 + $0x6a8] sm:$0xff] }
 0x474   : > { %11127 = vrot.lane.b32.xlu0 %v11126_v31, %s11588_s14  ;;  %v3948_v31 = vrot.slane %v15071_v10, 2  ;;  %v8769_v10 = vld [vmem:[%s18563_s1 + $0x6b0] sm:$0xff] }
 0x475   : > { %v3587_v6 = vmax.f32 %v3553_v52, 0.0  ;;  %11132 = vrot.lane.b32.xlu1 %v11131_v21, %s11588_s14 }
 0x476   : > { %v15233_v28 = vld [vmem:[#allocation2 + $0x170] sm:$0xff]  ;;  %v15243_v30 = vld [vmem:[#allocation2 + $0x178] sm:$0x3] }
 0x477   : > { %3619 = vst.msk [vmem:[#allocation2 + $0x189] sm:$0xff] %vm171_vm0, %v3587_v6  ;;  %v11136_v60 = vpack.i.bf16 %v15236_v14, %v15233_v28  ;;  %v3798_v47 = vrot.slane %v15233_v28, 1  ;;  %v3800_v37 = vrot.slane %v15243_v30, 1  ;;  %v15269_v14 = vld [vmem:[#allocation2 + $0x198] sm:$0xff] }
 0x478   : > { %19075 = vst [vmem:[#allocation69_spill] sm:$0xff] %v15269_v14 }
 0x479   : > { %11137 = vrot.lane.b32.xlu0 %v11136_v60, %s11588_s14  ;;  %v15247_v16 = vsel %vm449_vm3, %v3797_v24, %v3798_v47  ;;  %v15260_v21 = vsel %vm449_vm3, %v3798_v47, %v3800_v37  ;;  %v15265_v60 = vsel %vm626_vm4, %v3948_v31, %v3949_v25  ;;  %v3954_v24 = vrot.slane %v15125_v4, 2  ;;  %v15277_v37 = vld [vmem:[#allocation2 + $0x1a8] sm:$0x3] }
 0x47a   : > { %19072 = vst [vmem:[#allocation66_spill] sm:$0xff] %v15247_v16  ;;  %v15249_v23 = vld [vmem:[#allocation2 + $0x180] sm:$0xff]  ;;  %19073 = vst [vmem:[#allocation67_spill] sm:$0xff] %v15260_v21  ;;  %v3953_v47 = vrot.slane %v15128_v61, 2  ;;  %v4250_v31 = vrot.slane %v15269_v14, 1  ;;  %v3956_v4 = vrot.slane %v15141_v15, 2 }
 0x47b   : > { %v11141_v46 = vpack.i.bf16 %v15247_v16, %v15249_v23  ;;  %19074 = vst [vmem:[#allocation68_spill] sm:$0xff] %v15265_v60  ;;  %v3951_v16 = vrot.slane %v15084_v35, 2  ;;  %19077 = vst [vmem:[#allocation71_spill] sm:$0xff] %v15277_v37  ;;  %v3898_v61 = vrot.slane %v14794_v59, 2 }
 0x47c   : > { %v15282_v19 = vsel %vm626_vm4, %v3953_v47, %v3954_v24  ;;  %v3958_v47 = vrot.slane %v15143_v7, 2  ;;  %v8767_v7 = vld [vmem:[%s18563_s1 + $0x6a0] sm:$0xff] }
 0x47d   : > { %11142 = vrot.lane.b32.xlu1 %v11141_v46, %s11588_s14  ;;  %v15271_v46 = vld [vmem:[#allocation2 + $0x1a0] sm:$0xff]  ;;  %19078 = vst [vmem:[#allocation72_spill] sm:$0xff] %v15282_v19  ;;  %v15285_v35 = vsel %vm626_vm4, %v3949_v25, %v3951_v16 }
 0x47e   : > { %v15257_v52 = vld [vmem:[#allocation2 + $0x188] sm:$0xff]  ;;  %19076 = vst [vmem:[#allocation70_spill] sm:$0xff] %v15271_v46  ;;  %19079 = vst [vmem:[#allocation73_spill] sm:$0xff] %v15285_v35  ;;  %v15310_v16 = vsel %vm626_vm4, %v3958_v47, %v3959_v27  ;;  %v8770_v47 = vld [vmem:[%s18563_s1 + $0x6b8] sm:$0xff] }
 0x47f   : > { %v11146_v6 = vpack.i.bf16 %v15260_v21, %v15257_v52  ;;  %v4251_v21 = vrot.slane %v15271_v46, 1  ;;  %19080 = vst [vmem:[#allocation74_spill] sm:$0xff] %v15310_v16 }
 0x481   : > { %4187 = vrot.lane.b32.xlu1 %v15265_v60, %s11588_s14  ;;  %11147 = vrot.lane.b32.xlu0 %v11146_v6, %s11588_s14  ;;  %v4253_v6 = vrot.slane %v15277_v37, 1  ;;  %v15298_v15 = vsel %vm449_vm3, %v4250_v31, %v4251_v21  ;;  %v8766_v37 = vld [vmem:[%s18563_s1 + $0x698] sm:$0xff]  ;;  %v3964_v31 = vrot.slane %v15162_v45, 2 }
 0x483   : > { %v15338_v45 = vsel %vm449_vm3, %v4251_v21, %v4253_v6 }
 0x485   : > { %4191 = vrot.lane.b32.xlu1 %v15282_v19, %s11588_s14  ;;  %4189 = vrot.lane.b32.xlu0 %v15285_v35, %s11588_s14  ;;  %v8765_v19 = vld [vmem:[%s18563_s1 + $0x690] sm:$0xff]  ;;  %v3961_v35 = vrot.slane %v15164_v40, 2 }
 0x486   : > { %v10973_v14 = vpop.permute.xlu1 %10972  ;;  %v10968_v46 = vpop.permute.xlu0 %10967  ;;  %v9865_v39 = vpack.c.bf16 %v8766_v37, %v8765_v19  ;;  %v4147_v37 = vrot.slane %v15257_v52, 2 }
 0x487   : > { %v10974_v25 = vunpack.i.l.bf16 %v10973_v14  ;;  %v10970_v22 = vunpack.i.h.bf16 %v10968_v46  ;;  %v10969_v60 = vunpack.i.l.bf16 %v10968_v46  ;;  %v15313_v46 = vsel %vm626_vm4, %v3954_v24, %v3956_v4 }
 0x488   : > { %19081 = vst [vmem:[#allocation75_spill] sm:$0xff] %v15313_v46  ;;  %v3966_v24 = vrot.slane %v15185_v32, 2  ;;  %v10975_v12 = vunpack.i.h.bf16 %v10973_v14  ;;  %v3901_v32 = vrot.slane %v14817_v33, 2  ;;  %v15352_v14 = vpack.c.bf16 %v8770_v47, %v8769_v10 }
 0x489   : > { %4195 = vrot.lane.b32.xlu1 %v15310_v16, %s11588_s14  ;;  %4193 = vrot.lane.b32.xlu0 %v15313_v46, %s11588_s14  ;;  %v15332_v40 = vsel %vm171_vm0, %v14755_v55, %v10969_v60  ;;  %v4336_v4 = vsel %vm171_vm0, %v14878_v51, %v10970_v22  ;;  %v3963_v16 = vrot.slane %v15160_v18, 2  ;;  %v3900_v46 = vsel %vm626_vm4, %v3898_v61, %v19082_v9  ;;  %v15349_v51 = vld [vmem:[#allocation2 + $0x190] sm:$0x3] }
 0x48a   : > { %4806 = vmatprep.mubr.f32.mxu0 %v15332_v40  ;;  %v15347_v55 = vsel %vm171_vm0, %v14760_v36, %v10974_v25  ;;  %v9869_v22 = vpack.c.bf16 %v8768_v8, %v8767_v7  ;;  %v15360_v9 = vsel %vm626_vm4, %v3959_v27, %v3961_v35  ;;  %v3969_v36 = vrot.slane %v15205_v57, 2 }
 0x48b   : > { %4807 = vmatmul.mubr.f32.vlgmr.msra.gmra.mrb[96].mxu0 %v4336_v4  ;;  %v15357_v21 = vsel %vm626_vm4, %v3963_v16, %v3964_v31  ;;  %v4110_v61 = vrot.slane %v15257_v52, 1  ;;  %v3968_v33 = vrot.slane %v15189_v49, 2  ;;  %v3974_v10 = vrot.slane %v15233_v28, 2 }
 0x48c   : > { %4811 = vmatprep.mubr.f32.mxu0 %v15347_v55  ;;  %9864 = vmatpush3.bf16.msra.mxu0 %v14757_v11  ;;  %v15370_v11 = vsel %vm626_vm4, %v3964_v31, %v3966_v24  ;;  %v3971_v27 = vrot.slane %v15211_v1, 2  ;;  %v4337_v19 = vsel %vm171_vm0, %v14907_v38, %v10975_v12  ;;  %v4109_v60 = vrot.slane %v15249_v23, 1 }
 0x48d   : > { %4199 = vrot.lane.b32.xlu1 %v15357_v21, %s11588_s14  ;;  %4197 = vrot.lane.b32.xlu0 %v15360_v9, %s11588_s14  ;;  %v4112_v35 = vrot.slane %v15349_v51, 1  ;;  %v3973_v31 = vrot.slane %v15224_v63, 2  ;;  %v15381_v1 = vsel %vm626_vm4, %v3968_v33, %v3969_v36  ;;  %v4146_v38 = vrot.slane %v15249_v23, 2 }
 0x48e   : > { %v11003_v8 = vpop.permute.xlu1 %11002  ;;  %v10978_v7 = vpop.permute.xlu0 %10977  ;;  %9866 = vmatprep.subr.bf16.mxu0 %v9865_v39  ;;  %v15384_v47 = vsel %vm449_vm3, %v4109_v60, %v4110_v61  ;;  %v3976_v12 = vrot.slane %v15243_v30, 2  ;;  %v15417_v60 = vsel %vm626_vm4, %v3969_v36, %v3971_v27 }
 0x48f   : > { %v11004_v6 = vunpack.i.l.bf16 %v11003_v8  ;;  %v10980_v16 = vunpack.i.h.bf16 %v10978_v7  ;;  %v10979_v25 = vunpack.i.l.bf16 %v10978_v7  ;;  %4812 = vmatmul.mubr.f32.gmra.mrb[98].mxu0 %v4337_v19  ;;  %v15399_v24 = vsel %vm626_vm4, %v3973_v31, %v3974_v10 }
 0x490   : > { %9868 = vmatpush3.bf16.msra.mxu0 %v9865_v39  ;;  %v11005_v23 = vunpack.i.h.bf16 %v11003_v8  ;;  %v15403_v39 = vsel %vm626_vm4, %v4146_v38, %v4147_v37  ;;  %v15406_v30 = vsel %vm449_vm3, %v4110_v61, %v4112_v35  ;;  %v4149_v7 = vrot.slane %v15349_v51, 2 }
 0x491   : > { %4203 = vrot.lane.b32.xlu1 %v15381_v1, %s11588_s14  ;;  %4201 = vrot.lane.b32.xlu0 %v15370_v11, %s11588_s14  ;;  %v15394_v52 = vsel %vm171_vm0, %v14801_v2, %v10979_v25  ;;  %v4338_v4 = vsel %vm171_vm0, %v14780_v26, %v10980_v16  ;;  %v15411_v26 = vsel %vm171_vm0, %v14804_v29, %v11004_v6  ;;  %v19083_v51 = vrot.slane %v14796_v3, 2 }
 0x492   : > { %v10983_v33 = vpop.permute.xlu0 %10982  ;;  %4816 = vmatprep.mubr.f32.mxu0 %v15394_v52  ;;  %9870 = vmatprep.subr.bf16.mxu0 %v9869_v22  ;;  %v11151_v8 = vpack.i.bf16 %v15399_v24, %v15384_v47  ;;  %v15420_v61 = vsel %vm626_vm4, %v3974_v10, %v3976_v12  ;;  %v11161_v36 = vpack.i.bf16 %v15403_v39, %v15298_v15 }
 0x493   : > { %v10985_v2 = vunpack.i.h.bf16 %v10983_v33  ;;  %v10984_v19 = vunpack.i.l.bf16 %v10983_v33  ;;  %4817 = vmatmul.mubr.f32.gmra.mrb[100].mxu0 %v4338_v4  ;;  %v3902_v35 = vsel %vm626_vm4, %v19083_v51, %v3901_v32  ;;  %v4339_v3 = vsel %vm171_vm0, %v14777_v53, %v11005_v23 }
 0x494   : > { %4821 = vmatprep.mubr.f32.mxu0 %v15411_v26  ;;  %9872 = vmatpush3.bf16.msra.mxu0 %v9869_v22  ;;  %v11156_v32 = vpack.i.bf16 %v15420_v61, %v15406_v30  ;;  %v15438_v22 = vsel %vm626_vm4, %v4147_v37, %v4149_v7  ;;  %v11559_v37 = vld [vmem:[#allocation2 + $0x8] sm:$0xff] }
 0x495   : > { %11152 = vrot.lane.b32.xlu1 %v11151_v8, %s11588_s14  ;;  %4205 = vrot.lane.b32.xlu0 %v15417_v60, %s11588_s14  ;;  %v4304_v29 = vsel %vm171_vm0, %v3900_v46, %v10984_v19  ;;  %v4272_v6 = vsel %vm171_vm0, %v14794_v59, %v10985_v2 }
 0x496   : > { %v11008_v10 = vpop.permute.xlu1 %11007  ;;  %v10988_v27 = vpop.permute.xlu0 %10987  ;;  %4581 = vmatprep.mubr.f32.mxu1 %v4304_v29  ;;  %9874 = vmatprep.subr.bf16.mxu0 %v15352_v14 }
 0x497   : > { %v11010_v46 = vunpack.i.h.bf16 %v11008_v10  ;;  %v11009_v16 = vunpack.i.l.bf16 %v11008_v10  ;;  %v10990_v59 = vunpack.i.h.bf16 %v10988_v27  ;;  %v10989_v25 = vunpack.i.l.bf16 %v10988_v27  ;;  %4582 = vmatmul.mubr.f32.vlgmr.msra.gmra.mrb[96].mxu1 %v4272_v6  ;;  %4822 = vmatmul.mubr.f32.gmra.mrb[102].mxu0 %v4339_v3 }
 0x498   : > { %10117 = vmatpush1.bf16.msra.mxu1 %v14500_v50  ;;  %9876 = vmatpush3.bf16.msra.mxu0 %v15352_v14  ;;  %v11166_v14 = vpack.i.bf16 %v15438_v22, %v15338_v45  ;;  %v11560_v45 = vld [vmem:[#allocation2 + $0x18] sm:$0xff] }
 0x499   : > { %11162 = vrot.lane.b32.xlu1 %v11161_v36, %s11588_s14  ;;  %11157 = vrot.lane.b32.xlu0 %v11156_v32, %s11588_s14  ;;  %v4305_v53 = vsel %vm171_vm0, %v3902_v35, %v10989_v25  ;;  %v15448_v15 = vsel %vm171_vm0, %v14842_v0, %v11009_v16  ;;  %v4273_v31 = vsel %vm171_vm0, %v11559_v37, %v10990_v59  ;;  %v19085_v16 = vld [vmem:[#allocation9_spill] sm:$0xff] }
 0x49a   : > { %v11013_v38 = vpop.permute.xlu1 %11012  ;;  %4586 = vmatprep.mubr.f32.mxu1 %v4305_v53  ;;  %v10993_v12 = vpop.permute.xlu0 %10992  ;;  %4826 = vmatprep.mubr.f32.mxu0 %v15448_v15  ;;  %v4340_v50 = vsel %vm171_vm0, %v14830_v58, %v11010_v46 }
 0x49b   : > { %v11015_v4 = vunpack.i.h.bf16 %v11013_v38  ;;  %v11014_v23 = vunpack.i.l.bf16 %v11013_v38  ;;  %v10995_v33 = vunpack.i.h.bf16 %v10993_v12  ;;  %v10994_v7 = vunpack.i.l.bf16 %v10993_v12  ;;  %4587 = vmatmul.mubr.f32.gmra.mrb[98].mxu1 %v4273_v31  ;;  %4827 = vmatmul.mubr.f32.gmra.mrb[104].mxu0 %v4340_v50  ;;  %v19086_v12 = vld [vmem:[#allocation48_spill] sm:$0xff]  ;;  %v19087_v50 = vld [vmem:[#allocation46_spill] sm:$0xff] }
 0x49c   : > { %10102 = vmatprep.subr.bf16.mxu1 %v18857_v54  ;;  %9877 = vmatprep.subr.bf16.mxu0 %v18857_v54 }
 0x49d   : > { %11167 = vrot.lane.b32.xlu0 %v11166_v14, %s11588_s14  ;;  %v4306_v0 = vsel %vm171_vm0, %v14773_v43, %v10994_v7  ;;  %v15463_v58 = vsel %vm171_vm0, %v14847_v42, %v11014_v23  ;;  %v4274_v2 = vsel %vm171_vm0, %v11560_v45, %v10995_v33  ;;  %v4341_v19 = vsel %vm171_vm0, %v14827_v20, %v11015_v4  ;;  %v19084_v43 = vld [vmem:[#allocation42_spill] sm:$0xff]  ;;  %v11561_v20 = vld [vmem:[#allocation2 + $0x20] sm:$0xff] }
 0x49e   : > { %v11018_v8 = vpop.permute.xlu1 %11017  ;;  %v10998_v51 = vpop.permute.xlu0 %10997  ;;  %4591 = vmatprep.mubr.f32.mxu1 %v4306_v0  ;;  %4831 = vmatprep.mubr.f32.mxu0 %v15463_v58  ;;  %v19088_v7 = vld [vmem:[#allocation44_spill] sm:$0xff] }
 0x49f   : > { %v11020_v35 = vunpack.i.h.bf16 %v11018_v8  ;;  %v11019_v29 = vunpack.i.l.bf16 %v11018_v8  ;;  %v11000_v6 = vunpack.i.h.bf16 %v10998_v51  ;;  %v10999_v36 = vunpack.i.l.bf16 %v10998_v51  ;;  %4592 = vmatmul.mubr.f32.gmra.mrb[100].mxu1 %v4274_v2  ;;  %4832 = vmatmul.mubr.f32.gmra.mrb[106].mxu0 %v4341_v19 }
 0x4a0   : > { %10118 = vmatpush1.bf16.msra.mxu1 %v14516_v62 }
 0x4a1   : > { %v4307_v42 = vsel %vm171_vm0, %v19084_v43, %v10999_v36  ;;  %v15474_v10 = vsel %vm171_vm0, %v14882_v48, %v11019_v29  ;;  %v4275_v27 = vsel %vm171_vm0, %v11561_v20, %v11000_v6  ;;  %v4342_v3 = vsel %vm171_vm0, %v14864_v34, %v11020_v35  ;;  %10103 = vmatprep.subr.bf16.mxu1 %v18857_v54  ;;  %v19090_v29 = vld [vmem:[#allocation13_spill] sm:$0xff]  ;;  %v19092_v36 = vld [vmem:[#allocation4_spill] sm:$0xff] }
 0x4a2   : > { %v11023_v32 = vpop.permute.xlu1 %11022  ;;  %4596 = vmatprep.mubr.f32.mxu1 %v4307_v42  ;;  %4836 = vmatprep.mubr.f32.mxu0 %v15474_v10  ;;  %v19093_v43 = vld [vmem:[#allocation41_spill] sm:$0xff] }
 0x4a3   : > { %v11025_v62 = vunpack.i.h.bf16 %v11023_v32  ;;  %v11024_v46 = vunpack.i.l.bf16 %v11023_v32  ;;  %4597 = vmatmul.mubr.f32.gmra.mrb[102].mxu1 %v4275_v27  ;;  %4837 = vmatmul.mubr.f32.gmra.mrb[108].mxu0 %v4342_v3  ;;  %v19094_v3 = vld [vmem:[#allocation38_spill] sm:$0xff] }
 0x4a4   : > { %10119 = vmatpush1.bf16.msra.mxu1 %v19085_v16 }
 0x4a5   : > { %v15484_v48 = vsel %vm171_vm0, %v14894_v17, %v11024_v46  ;;  %v4343_v59 = vsel %vm171_vm0, %v14875_v56, %v11025_v62  ;;  %10104 = vmatprep.subr.bf16.mxu1 %v18857_v54  ;;  %v19095_v62 = vld [vmem:[#allocation15_spill] sm:$0xff]  ;;  %v19096_v46 = vld [vmem:[#allocation6_spill] sm:$0xff] }
 0x4a6   : > { %v11033_v34 = vpop.permute.xlu1 %11032  ;;  %v11028_v25 = vpop.permute.xlu0 %11027  ;;  %4841 = vmatprep.mubr.f32.mxu0 %v15484_v48 }
 0x4a7   : > { %v11035_v53 = vunpack.i.h.bf16 %v11033_v34  ;;  %v11034_v37 = vunpack.i.l.bf16 %v11033_v34  ;;  %v11030_v31 = vunpack.i.h.bf16 %v11028_v25  ;;  %v11029_v38 = vunpack.i.l.bf16 %v11028_v25  ;;  %4842 = vmatmul.mubr.f32.gmra.mrb[110].mxu0 %v4343_v59  ;;  %v19097_v59 = vld [vmem:[#allocation32_spill] sm:$0xff] }
 0x4a8   : > { %10120 = vmatpush1.bf16.msra.mxu1 %v19086_v12  ;;  %v19098_v12 = vld [vmem:[#allocation17_spill] sm:$0xff] }
 0x4a9   : > { %v4308_v17 = vsel %vm171_vm0, %v19087_v50, %v11029_v38  ;;  %v15495_v14 = vsel %vm171_vm0, %v14930_v44, %v11030_v31  ;;  %v4344_v56 = vsel %vm171_vm0, %v14912_v41, %v11034_v37  ;;  %10105 = vmatprep.subr.bf16.mxu1 %v18857_v54  ;;  %v4309_v0 = vsel %vm171_vm0, %v19088_v7, %v11035_v53  ;;  %v19089_v44 = vld [vmem:[#allocation11_spill] sm:$0xff] }
 0x4aa   : > { %v11038_v4 = vpop.permute.xlu0 %11037  ;;  %4601 = vmatprep.mubr.f32.mxu1 %v4308_v17  ;;  %4846 = vmatprep.mubr.f32.mxu0 %v15495_v14  ;;  %v19099_v17 = vld [vmem:[#allocation39_spill] sm:$0xff] }
 0x4ab   : > { %v11040_v23 = vunpack.i.h.bf16 %v11038_v4  ;;  %v11039_v33 = vunpack.i.l.bf16 %v11038_v4  ;;  %4602 = vmatmul.mubr.f32.gmra.mrb[104].mxu1 %v15332_v40  ;;  %4847 = vmatmul.mubr.f32.gmra.mrb[112].mxu0 %v4344_v56  ;;  %v19100_v4 = vld [vmem:[#allocation12_spill] sm:$0xff] }
 0x4ac   : > { %4606 = vmatprep.mubr.f32.mxu1 %v4309_v0  ;;  %10121 = vmatpush1.bf16.msra.mxu1 %v19089_v44 }
 0x4ad   : > { %v15507_v41 = vsel %vm171_vm0, %v14941_v5, %v11039_v33  ;;  %v4345_v45 = vsel %vm171_vm0, %v14925_v13, %v11040_v23  ;;  %10106 = vmatprep.subr.bf16.mxu1 %v18857_v54  ;;  %v19091_v5 = vld [vmem:[#allocation37_spill] sm:$0xff]  ;;  %v19101_v33 = vld [vmem:[#allocation8_spill] sm:$0xff] }
 0x4ae   : > { %v11043_v2 = vpop.permute.xlu1 %11042  ;;  %v11048_v19 = vpop.permute.xlu0 %11047  ;;  %4851 = vmatprep.mubr.f32.mxu0 %v15507_v41 }
 0x4af   : > { %v11045_v40 = vunpack.i.h.bf16 %v11043_v2  ;;  %v11044_v8 = vunpack.i.l.bf16 %v11043_v2  ;;  %v11050_v51 = vunpack.i.h.bf16 %v11048_v19  ;;  %v11049_v35 = vunpack.i.l.bf16 %v11048_v19  ;;  %4607 = vmatmul.mubr.f32.gmra.mrb[106].mxu1 %v15347_v55  ;;  %4852 = vmatmul.mubr.f32.gmra.mrb[114].mxu0 %v4345_v45  ;;  %v19102_v2 = vld [vmem:[#allocation26_spill] sm:$0xff] }
 0x4b0   : > { %10122 = vmatpush1.bf16.msra.mxu1 %v19090_v29 }
 0x4b1   : > { %v4310_v6 = vsel %vm171_vm0, %v19091_v5, %v11044_v8  ;;  %v15519_v13 = vsel %vm171_vm0, %v19092_v36, %v11045_v40  ;;  %v4346_v42 = vsel %vm171_vm0, %v19093_v43, %v11049_v35  ;;  %10107 = vmatprep.subr.bf16.mxu1 %v18857_v54  ;;  %v4311_v32 = vsel %vm171_vm0, %v19094_v3, %v11050_v51  ;;  %v19103_v40 = vld [vmem:[#allocation19_spill] sm:$0xff]  ;;  %v19104_v8 = vld [vmem:[#allocation18_spill] sm:$0xff] }
 0x4b2   : > { %v11053_v20 = vpop.permute.xlu1 %11052  ;;  %4611 = vmatprep.mubr.f32.mxu1 %v4310_v6  ;;  %4856 = vmatprep.mubr.f32.mxu0 %v15519_v13  ;;  %v19105_v35 = vld [vmem:[#allocation10_spill] sm:$0xff] }
 0x4b3   : > { %v11055_v55 = vunpack.i.h.bf16 %v11053_v20  ;;  %v11054_v27 = vunpack.i.l.bf16 %v11053_v20  ;;  %4612 = vmatmul.mubr.f32.gmra.mrb[108].mxu1 %v15394_v52  ;;  %4857 = vmatmul.mubr.f32.gmra.mrb[116].mxu0 %v4346_v42 }
 0x4b4   : > { %4616 = vmatprep.mubr.f32.mxu1 %v4311_v32  ;;  %10123 = vmatpush1.bf16.msra.mxu1 %v19095_v62  ;;  %v19108_v62 = vld [vmem:[#allocation24_spill] sm:$0xff] }
 0x4b5   : > { %v15531_v16 = vsel %vm171_vm0, %v19096_v46, %v11054_v27  ;;  %v4347_v34 = vsel %vm171_vm0, %v19097_v59, %v11055_v55  ;;  %10108 = vmatprep.subr.bf16.mxu1 %v18857_v54  ;;  %v19106_v55 = vld [vmem:[#allocation21_spill] sm:$0xff]  ;;  %v19109_v59 = vld [vmem:[#allocation20_spill] sm:$0xff] }
 0x4b6   : > { %v11063_v25 = vpop.permute.xlu1 %11062  ;;  %v11058_v53 = vpop.permute.xlu0 %11057  ;;  %4861 = vmatprep.mubr.f32.mxu0 %v15531_v16  ;;  %v19107_v27 = vld [vmem:[#allocation29_spill] sm:$0xff] }
 0x4b7   : > { %v11065_v52 = vunpack.i.h.bf16 %v11063_v25  ;;  %v11064_v37 = vunpack.i.l.bf16 %v11063_v25  ;;  %v11060_v31 = vunpack.i.h.bf16 %v11058_v53  ;;  %v11059_v38 = vunpack.i.l.bf16 %v11058_v53  ;;  %4617 = vmatmul.mubr.f32.gmra.mrb[110].mxu1 %v15411_v26  ;;  %4862 = vmatmul.mubr.f32.gmra.mrb[118].mxu0 %v4347_v34 }
 0x4b8   : > { %10124 = vmatpush1.bf16.msra.mxu1 %v19098_v12 }
 0x4b9   : > { %v4312_v56 = vsel %vm171_vm0, %v19099_v17, %v11059_v38  ;;  %v15543_v23 = vsel %vm171_vm0, %v19100_v4, %v11060_v31  ;;  %v4348_v0 = vsel %vm171_vm0, %v19101_v33, %v11064_v37  ;;  %10109 = vmatprep.subr.bf16.mxu1 %v18857_v54  ;;  %v4313_v19 = vsel %vm171_vm0, %v19102_v2, %v11065_v52  ;;  %v19110_v52 = vld [vmem:[#allocation5_spill] sm:$0xff]  ;;  %v19111_v31 = vld [vmem:[#allocation23_spill] sm:$0xff]  ;;  %v19112_v38 = vld [vmem:[#allocation30_spill] sm:$0xff] }
 0x4ba   : > { %v11068_v44 = vpop.permute.xlu0 %11067  ;;  %4621 = vmatprep.mubr.f32.mxu1 %v4312_v56  ;;  %4866 = vmatprep.mubr.f32.mxu0 %v15543_v23  ;;  %v19113_v56 = vld [vmem:[#allocation22_spill] sm:$0xff] }
 0x4bb   : > { %v11070_v26 = vunpack.i.h.bf16 %v11068_v44  ;;  %v11069_v45 = vunpack.i.l.bf16 %v11068_v44  ;;  %4622 = vmatmul.mubr.f32.gmra.mrb[112].mxu1 %v15448_v15  ;;  %4867 = vmatmul.mubr.f32.gmra.mrb[120].mxu0 %v4348_v0 }
 0x4bc   : > { %4626 = vmatprep.mubr.f32.mxu1 %v4313_v19  ;;  %10125 = vmatpush1.bf16.msra.mxu1 %v19103_v40  ;;  %v19114_v19 = vld [vmem:[#allocation25_spill] sm:$0xff]  ;;  %v19115_v40 = vld [vmem:[#allocation7_spill] sm:$0xff] }
 0x4bd   : > { %v15555_v51 = vsel %vm171_vm0, %v19104_v8, %v11069_v45  ;;  %v4349_v29 = vsel %vm171_vm0, %v19105_v35, %v11070_v26  ;;  %10110 = vmatprep.subr.bf16.mxu1 %v18857_v54  ;;  %v19116_v35 = vld [vmem:[#allocation43_spill] sm:$0xff] }
 0x4be   : > { %v11073_v6 = vpop.permute.xlu1 %11072  ;;  %v11078_v36 = vpop.permute.xlu0 %11077  ;;  %4871 = vmatprep.mubr.f32.mxu0 %v15555_v51 }
 0x4bf   : > { %v11075_v15 = vunpack.i.h.bf16 %v11073_v6  ;;  %v11074_v43 = vunpack.i.l.bf16 %v11073_v6  ;;  %v11080_v42 = vunpack.i.h.bf16 %v11078_v36  ;;  %v11079_v20 = vunpack.i.l.bf16 %v11078_v36  ;;  %4627 = vmatmul.mubr.f32.gmra.mrb[114].mxu1 %v15463_v58  ;;  %4872 = vmatmul.mubr.f32.gmra.mrb[122].mxu0 %v4349_v29  ;;  %v19117_v6 = vld [vmem:[#allocation35_spill] sm:$0xff] }
 0x4c0   : > { %10126 = vmatpush1.bf16.msra.mxu1 %v19106_v55 }
 0x4c1   : > { %v4314_v32 = vsel %vm171_vm0, %v19107_v27, %v11074_v43  ;;  %v15567_v46 = vsel %vm171_vm0, %v19108_v62, %v11075_v15  ;;  %v4350_v34 = vsel %vm171_vm0, %v19109_v59, %v11079_v20  ;;  %10111 = vmatprep.subr.bf16.mxu1 %v18857_v54  ;;  %v4315_v37 = vsel %vm171_vm0, %v19110_v52, %v11080_v42  ;;  %v19118_v42 = vld [vmem:[#allocation14_spill] sm:$0xff]  ;;  %v19120_v62 = vld [vmem:[#allocation49_spill] sm:$0xff] }
 0x4c2   : > { %v11083_v25 = vpop.permute.xlu1 %11082  ;;  %4631 = vmatprep.mubr.f32.mxu1 %v4314_v32  ;;  %4876 = vmatprep.mubr.f32.mxu0 %v15567_v46  ;;  %v19119_v32 = vld [vmem:[#allocation28_spill] sm:$0xff] }
 0x4c3   : > { %v11085_v58 = vunpack.i.h.bf16 %v11083_v25  ;;  %v11084_v53 = vunpack.i.l.bf16 %v11083_v25  ;;  %4632 = vmatmul.mubr.f32.gmra.mrb[116].mxu1 %v15474_v10  ;;  %4877 = vmatmul.mubr.f32.gmra.mrb[124].mxu0 %v4350_v34  ;;  %v19121_v34 = vld [vmem:[#allocation40_spill] sm:$0xff] }
 0x4c4   : > { %4636 = vmatprep.mubr.f32.mxu1 %v4315_v37  ;;  %10127 = vmatpush1.bf16.msra.mxu1 %v19111_v31  ;;  %v19123_v37 = vld [vmem:[#allocation31_spill] sm:$0xff] }
 0x4c5   : > { %v15579_v12 = vsel %vm171_vm0, %v19112_v38, %v11084_v53  ;;  %v4351_v4 = vsel %vm171_vm0, %v19113_v56, %v11085_v58  ;;  %10112 = vmatprep.subr.bf16.mxu1 %v18857_v54  ;;  %v19124_v31 = vld [vmem:[#allocation27_spill] sm:$0xff]  ;;  %v19125_v56 = vld [vmem:[#allocation34_spill] sm:$0xff] }
 0x4c6   : > { %v11093_v33 = vpop.permute.xlu1 %11092  ;;  %v11088_v0 = vpop.permute.xlu0 %11087  ;;  %4881 = vmatprep.mubr.f32.mxu0 %v15579_v12 }
 0x4c7   : > { %v11095_v10 = vunpack.i.h.bf16 %v11093_v33  ;;  %v11094_v44 = vunpack.i.l.bf16 %v11093_v33  ;;  %v11090_v26 = vunpack.i.h.bf16 %v11088_v0  ;;  %v11089_v45 = vunpack.i.l.bf16 %v11088_v0  ;;  %4637 = vmatmul.mubr.f32.gmra.mrb[118].mxu1 %v15484_v48  ;;  %4882 = vmatmul.mubr.f32.gmra.mrb[126].mxu0 %v4351_v4  ;;  %v19127_v4 = vld [vmem:[#allocation36_spill] sm:$0xff] }
 0x4c8   : > { %10128 = vmatpush1.bf16.msra.mxu1 %v19114_v19  ;;  %v19131_v0 = vld [vmem:[#allocation68_spill] sm:$0xff] }
 0x4c9   : > { %v4316_v8 = vsel %vm171_vm0, %v19115_v40, %v11089_v45  ;;  %v15591_v29 = vsel %vm171_vm0, %v19116_v35, %v11090_v26  ;;  %v4352_v36 = vsel %vm171_vm0, %v19117_v6, %v11094_v44  ;;  %10113 = vmatprep.subr.bf16.mxu1 %v18857_v54  ;;  %v4317_v20 = vsel %vm171_vm0, %v19118_v42, %v11095_v10  ;;  %v19132_v26 = vld [vmem:[#allocation73_spill] sm:$0xff] }
 0x4ca   : > { %v11098_v15 = vpop.permute.xlu0 %11097  ;;  %4641 = vmatprep.mubr.f32.mxu1 %v4316_v8  ;;  %4886 = vmatprep.mubr.f32.mxu0 %v15591_v29  ;;  %v4041_v55 = vpop.permute.xlu1 %4040  ;;  %v19133_v8 = vld [vmem:[#allocation72_spill] sm:$0xff] }
 0x4cb   : > { %v11100_v48 = vunpack.i.h.bf16 %v11098_v15  ;;  %v11099_v43 = vunpack.i.l.bf16 %v11098_v15  ;;  %4642 = vmatmul.mubr.f32.gmra.mrb[120].mxu1 %v15495_v14  ;;  %4887 = vmatmul.mubr.f32.gmra.mrb[128].mxu0 %v4352_v36  ;;  %v19122_v14 = vld [vmem:[#allocation16_spill] sm:$0xff]  ;;  %v19134_v36 = vld [vmem:[#allocation54_spill] sm:$0xff] }
 0x4cc   : > { %4646 = vmatprep.mubr.f32.mxu1 %v4317_v20  ;;  %10129 = vmatpush1.bf16.msra.mxu1 %v19119_v32  ;;  %v4318_v58 = vsel %vm171_vm0, %v19122_v14, %v4041_v55  ;;  %v19136_v32 = vld [vmem:[#allocation53_spill] sm:$0xff] }
 0x4cd   : > { %v4293_v59 = vsel %vm171_vm0, %v19120_v62, %v11099_v43  ;;  %v4353_v25 = vsel %vm171_vm0, %v19121_v34, %v11100_v48  ;;  %10114 = vmatprep.subr.bf16.mxu1 %v18857_v54  ;;  %v19135_v43 = vld [vmem:[#allocation75_spill] sm:$0xff]  ;;  %v19137_v34 = vld [vmem:[#allocation74_spill] sm:$0xff] }
 0x4ce   : > { %4891 = vmatprep.mubr.f32.mxu0 %v4293_v59  ;;  %v4043_v53 = vpop.permute.xlu0 %4042  ;;  %v4045_v38 = vpop.permute.xlu1 %4044 }
 0x4cf   : > { %4647 = vmatmul.mubr.f32.gmra.mrb[122].mxu1 %v15507_v41  ;;  %4892 = vmatmul.mubr.f32.gmra.mrb[130].mxu0 %v4353_v25  ;;  %v4319_v41 = vsel %vm171_vm0, %v19124_v31, %v4043_v53  ;;  %v19138_v53 = vld [vmem:[#allocation56_spill] sm:$0xff] }
 0x4d0   : > { %4651 = vmatprep.mubr.f32.mxu1 %v4318_v58  ;;  %9365 = vmatprep.mubr.msk.f32.mxu0 %vm171_vm0, %v19087_v50  ;;  %v19126_v50 = vld [vmem:[#allocation33_spill] sm:$0xff] }
 0x4d1   : > { %10130 = vmatpush1.bf16.msra.mxu1 %v19123_v37 }
 0x4d2   : > { %10115 = vmatprep.subr.bf16.mxu1 %v18857_v54  ;;  %v4049_v33 = vpop.permute.xlu1 %4048 }
 0x4d3   : > { %4652 = vmatmul.mubr.f32.gmra.mrb[124].mxu1 %v15519_v13  ;;  %9366 = vmatmul.mubr.msk.f32.vlgmr.msra.gmra.mrb[132].mxu0 %vm171_vm0, %v19088_v7  ;;  %v4320_v7 = vsel %vm171_vm0, %v19126_v50, %v4045_v38  ;;  %v4047_v13 = vpop.permute.xlu0 %4046 }
 0x4d4   : > { %4656 = vmatprep.mubr.f32.mxu1 %v4319_v41  ;;  %9368 = vmatprep.mubr.msk.f32.mxu0 %vm171_vm0, %v19091_v5  ;;  %v19128_v5 = vld [vmem:[#allocation45_spill] sm:$0xff] }
 0x4d5   : > { %10131 = vmatpush1.bf16.msra.mxu1 %v19125_v56 }
 0x4d6   : > { %10116 = vmatprep.subr.bf16.mxu1 %v18857_v54 }
 0x4d7   : > { %4657 = vmatmul.mubr.f32.gmra.mrb[126].mxu1 %v15531_v16  ;;  %9369 = vmatmul.mubr.msk.f32.gmra.mrb[134].mxu0 %vm171_vm0, %v19094_v3  ;;  %v4321_v16 = vsel %vm171_vm0, %v19128_v5, %v4047_v13  ;;  %v19129_v3 = vld [vmem:[#allocation47_spill] sm:$0xff] }
 0x4d8   : > { %4661 = vmatprep.mubr.f32.mxu1 %v4320_v7  ;;  %9371 = vmatprep.mubr.msk.f32.mxu0 %vm171_vm0, %v19099_v17  ;;  %v4322_v17 = vsel %vm171_vm0, %v19129_v3, %v4049_v33 }
 0x4d9   : > { %10132 = vmatpush1.bf16.msra.mxu1 %v19127_v4 }
 0x4db   : > { %4662 = vmatmul.mubr.f32.gmra.mrb[128].mxu1 %v15543_v23  ;;  %9372 = vmatmul.mubr.msk.f32.gmra.mrb[136].mxu0 %vm171_vm0, %v19102_v2  ;;  %v4051_v23 = vpop.permute.xlu0 %4050  ;;  %v4053_v2 = vpop.permute.xlu1 %4052 }
 0x4dc   : > { %4666 = vmatprep.mubr.f32.mxu1 %v4321_v16  ;;  %9374 = vmatprep.mubr.msk.f32.mxu0 %vm171_vm0, %v19107_v27  ;;  %v19130_v27 = vld [vmem:[#allocation52_spill] sm:$0xff]  ;;  %v4324_v10 = vsel %vm171_vm0, %v19131_v0, %v4053_v2  ;;  %v19141_v2 = vld [vmem:[#allocation70_spill] sm:$0xff] }
 0x4df   : > { %4667 = vmatmul.mubr.f32.gmra.mrb[130].mxu1 %v15555_v51  ;;  %9375 = vmatmul.mubr.msk.f32.gmra.mrb[138].mxu0 %vm171_vm0, %v19110_v52  ;;  %v4323_v51 = vsel %vm171_vm0, %v19130_v27, %v4051_v23  ;;  %v4055_v52 = vpop.permute.xlu0 %4054 }
 0x4e0   : > { %4671 = vmatprep.mubr.f32.mxu1 %v4322_v17  ;;  %9377 = vmatprep.mubr.msk.f32.mxu0 %vm171_vm0, %v19115_v40 }
 0x4e3   : > { %4672 = vmatmul.mubr.f32.gmra.mrb[132].mxu1 %v15567_v46  ;;  %9378 = vmatmul.mubr.msk.f32.gmra.mrb[140].mxu0 %vm171_vm0, %v19118_v42  ;;  %v11103_v46 = vpop.permute.xlu1 %11102  ;;  %v11108_v45 = vpop.permute.xlu0 %11107 }
 0x4e4   : > { %4676 = vmatprep.mubr.f32.mxu1 %v4323_v51  ;;  %9380 = vmatprep.mubr.msk.f32.mxu0 %vm171_vm0, %v19122_v14  ;;  %v11104_v44 = vunpack.i.l.bf16 %v11103_v46  ;;  %v11105_v19 = vunpack.i.h.bf16 %v11103_v46  ;;  %v11109_v40 = vunpack.i.l.bf16 %v11108_v45  ;;  %v11110_v6 = vunpack.i.h.bf16 %v11108_v45  ;;  %v19143_v46 = vld [vmem:[#allocation71_spill] sm:$0xff] }
 0x4e6   : > { %v4326_v35 = vsel %vm171_vm0, %v19133_v8, %v11104_v44  ;;  %v15673_v15 = vsel %vm171_vm0, %v19134_v36, %v11105_v19  ;;  %v4327_v42 = vsel %vm171_vm0, %v19135_v43, %v11109_v40  ;;  %v15684_v62 = vsel %vm171_vm0, %v19136_v32, %v11110_v6  ;;  %v19147_v32 = vld [vmem:[#allocation60_spill] sm:$0xff] }
 0x4e7   : > { %4677 = vmatmul.mubr.f32.gmra.mrb[134].mxu1 %v15579_v12  ;;  %9381 = vmatmul.mubr.msk.f32.gmra.mrb[142].mxu0 %vm171_vm0, %v19124_v31  ;;  %v4325_v12 = vsel %vm171_vm0, %v19132_v26, %v4055_v52  ;;  %v11118_v20 = vpop.permute.xlu0 %11117  ;;  %v19142_v52 = vld [vmem:[#allocation58_spill] sm:$0xff]  ;;  %v4270_v44 = vrot.slane %v19143_v46, 2  ;;  %v19153_v46 = vld [vmem:[#allocation65_spill] sm:$0xff] }
 0x4e8   : > { %4681 = vmatprep.mubr.f32.mxu1 %v4324_v10  ;;  %9383 = vmatprep.mubr.msk.f32.mxu0 %vm171_vm0, %v19126_v50  ;;  %v11120_v58 = vunpack.i.h.bf16 %v11118_v20  ;;  %v19139_v50 = vld [vmem:[#allocation55_spill] sm:$0xff] }
 0x4ea   : > { %v15706_v7 = vsel %vm171_vm0, %v19139_v50, %v11120_v58  ;;  %v8870_v58 = vld [vmem:[%s18563_s1 + $0x8c8] sm:$0xff] }
 0x4eb   : > { %4682 = vmatmul.mubr.f32.gmra.mrb[136].mxu1 %v15591_v29  ;;  %9384 = vmatmul.mubr.msk.f32.gmra.mrb[144].mxu0 %vm171_vm0, %v19128_v5  ;;  %v11113_v29 = vpop.permute.xlu1 %11112  ;;  %v11128_v38 = vpop.permute.xlu0 %11127 }
 0x4ec   : > { %4686 = vmatprep.mubr.f32.mxu1 %v4325_v12  ;;  %9386 = vmatprep.mubr.msk.f32.mxu0 %vm171_vm0, %v19129_v3  ;;  %v11114_v48 = vunpack.i.l.bf16 %v11113_v29  ;;  %v11115_v55 = vunpack.i.h.bf16 %v11113_v29  ;;  %v11129_v13 = vunpack.i.l.bf16 %v11128_v38  ;;  %v11130_v5 = vunpack.i.h.bf16 %v11128_v38  ;;  %v8871_v38 = vld [vmem:[%s18563_s1 + $0x8d0] sm:$0xff] }
 0x4ee   : > { %v4328_v25 = vsel %vm171_vm0, %v19137_v34, %v11114_v48  ;;  %v15695_v37 = vsel %vm171_vm0, %v19138_v53, %v11115_v55  ;;  %v4331_v3 = vsel %vm171_vm0, %v15370_v11, %v11129_v13 }
 0x4ef   : > { %4687 = vmatmul.mubr.f32.gmra.mrb[138].mxu1 %v4293_v59  ;;  %9387 = vmatmul.mubr.msk.f32.gmra.mrb[146].mxu0 %vm171_vm0, %v19130_v27  ;;  %v11119_v59 = vunpack.i.l.bf16 %v11118_v20  ;;  %v11123_v14 = vpop.permute.xlu1 %11122  ;;  %v11138_v17 = vpop.permute.xlu0 %11137  ;;  %v4268_v27 = vrot.slane %v19141_v2, 2  ;;  %v8876_v2 = vld [vmem:[%s18563_s1 + $0x8f8] sm:$0xff] }
 0x4f0   : > { %4691 = vmatprep.mubr.f32.mxu1 %v4326_v35  ;;  %9389 = vmatprep.mubr.msk.f32.mxu0 %vm171_vm0, %v19131_v0  ;;  %v11124_v31 = vunpack.i.l.bf16 %v11123_v14  ;;  %v11125_v56 = vunpack.i.h.bf16 %v11123_v14  ;;  %v11139_v0 = vunpack.i.l.bf16 %v11138_v17  ;;  %v11140_v12 = vunpack.i.h.bf16 %v11138_v17  ;;  %v8869_v14 = vld [vmem:[%s18563_s1 + $0x8c0] sm:$0xff]  ;;  %v19151_v17 = vld [vmem:[#allocation63_spill] sm:$0xff] }
 0x4f1   : > { %v4329_v41 = vsel %vm171_vm0, %v15360_v9, %v11119_v59  ;;  %v9973_v53 = vpack.c.bf16 %v8870_v58, %v8869_v14 }
 0x4f2   : > { %v4330_v4 = vsel %vm171_vm0, %v15357_v21, %v11124_v31  ;;  %v4298_v16 = vsel %vm171_vm0, %v15160_v18, %v11125_v56  ;;  %v4299_v18 = vsel %vm171_vm0, %v19142_v52, %v11130_v5  ;;  %v4301_v35 = vsel %vm171_vm0, %v15205_v57, %v11140_v12  ;;  %v19149_v31 = vld [vmem:[#allocation62_spill] sm:$0xff]  ;;  %v8872_v56 = vld [vmem:[%s18563_s1 + $0x8d8] sm:$0xff]  ;;  %v8873_v5 = vld [vmem:[%s18563_s1 + $0x8e0] sm:$0xff] }
 0x4f3   : > { %4692 = vmatmul.mubr.f32.gmra.mrb[140].mxu1 %v15673_v15  ;;  %9390 = vmatmul.mubr.msk.f32.gmra.mrb[148].mxu0 %vm171_vm0, %v19132_v26  ;;  %v11148_v40 = vpop.permute.xlu0 %11147  ;;  %v9977_v50 = vpack.c.bf16 %v8872_v56, %v8871_v38  ;;  %v19152_v52 = vld [vmem:[#allocation64_spill] sm:$0xff] }
 0x4f4   : > { %4696 = vmatprep.mubr.f32.mxu1 %v4327_v42  ;;  %9392 = vmatprep.mubr.msk.f32.mxu0 %vm171_vm0, %v19133_v8  ;;  %v11149_v29 = vunpack.i.l.bf16 %v11148_v40  ;;  %v11562_v12 = vld [vmem:[#allocation2 + $0x180] sm:$0xff] }
 0x4f5   : > { %9974 = vmatprep.subr.bf16.mxu1 %v9973_v53  ;;  %v8805_v56 = vld [vmem:[%s18563_s1 + $0x6c0] sm:$0xff] }
 0x4f6   : > { %v4335_v6 = vsel %vm171_vm0, %v15420_v61, %v11149_v29 }
 0x4f7   : > { %4697 = vmatmul.mubr.f32.gmra.mrb[142].mxu1 %v15684_v62  ;;  %9393 = vmatmul.mubr.msk.f32.gmra.mrb[150].mxu0 %vm171_vm0, %v19135_v43  ;;  %v4190_v43 = vpop.permute.xlu0 %4189 }
 0x4f8   : > { %4701 = vmatprep.mubr.f32.mxu1 %v4328_v25  ;;  %9395 = vmatprep.mubr.msk.f32.mxu0 %vm171_vm0, %v19137_v34  ;;  %v19148_v34 = vld [vmem:[#allocation59_spill] sm:$0xff] }
 0x4fb   : > { %4702 = vmatmul.mubr.f32.gmra.mrb[144].mxu1 %v15695_v37  ;;  %9396 = vmatmul.mubr.msk.f32.gmra.mrb[152].mxu0 %vm171_vm0, %v15360_v9  ;;  %v11133_v9 = vpop.permute.xlu1 %11132  ;;  %v4194_v55 = vpop.permute.xlu0 %4193 }
 0x4fc   : > { %4706 = vmatprep.mubr.f32.mxu1 %v4329_v41  ;;  %9398 = vmatprep.mubr.msk.f32.mxu0 %vm171_vm0, %v15357_v21  ;;  %v11134_v33 = vunpack.i.l.bf16 %v11133_v9  ;;  %v19140_v21 = vld [vmem:[#allocation69_spill] sm:$0xff]  ;;  %v11135_v51 = vunpack.i.h.bf16 %v11133_v9  ;;  %v4357_v59 = vsel %vm171_vm0, %v19147_v32, %v4194_v55 }
 0x4fd   : > { %v4267_v23 = vrot.slane %v19140_v21, 2 }
 0x4fe   : > { %v4300_v45 = vsel %vm171_vm0, %v15189_v49, %v11135_v51 }
 0x4ff   : > { %4707 = vmatmul.mubr.f32.gmra.mrb[146].mxu1 %v15706_v7  ;;  %9399 = vmatmul.mubr.msk.f32.gmra.mrb[154].mxu0 %vm171_vm0, %v15370_v11  ;;  %v4332_v11 = vsel %vm171_vm0, %v15381_v1, %v11134_v33  ;;  %v11143_v10 = vpop.permute.xlu1 %11142  ;;  %v4269_v26 = vsel %vm626_vm4, %v4267_v23, %v4268_v27  ;;  %v8875_v23 = vld [vmem:[%s18563_s1 + $0x8f0] sm:$0xff] }
 0x500   : > { %4711 = vmatprep.mubr.f32.mxu1 %v4330_v4  ;;  %9401 = vmatprep.mubr.msk.f32.mxu0 %vm171_vm0, %v15381_v1  ;;  %v11144_v19 = vunpack.i.l.bf16 %v11143_v10  ;;  %v4333_v1 = vsel %vm171_vm0, %v15417_v60, %v11139_v0  ;;  %v11145_v8 = vunpack.i.h.bf16 %v11143_v10  ;;  %v19150_v4 = vld [vmem:[#allocation61_spill] sm:$0xff] }
 0x502   : > { %v4334_v49 = vsel %vm171_vm0, %v15399_v24, %v11144_v19 }
 0x503   : > { %4712 = vmatmul.mubr.f32.gmra.mrb[148].mxu1 %v4298_v16  ;;  %9402 = vmatmul.mubr.msk.f32.gmra.mrb[156].mxu0 %vm171_vm0, %v15417_v60  ;;  %v4302_v60 = vsel %vm171_vm0, %v15224_v63, %v11145_v8  ;;  %v4188_v36 = vpop.permute.xlu1 %4187  ;;  %v19145_v63 = vld [vmem:[#allocation51_spill] sm:$0xff] }
 0x504   : > { %4716 = vmatprep.mubr.f32.mxu1 %v4331_v3  ;;  %9404 = vmatprep.mubr.msk.f32.mxu0 %vm171_vm0, %v15399_v24  ;;  %v19144_v24 = vld [vmem:[#allocation50_spill] sm:$0xff]  ;;  %v4355_v42 = vsel %vm171_vm0, %v19145_v63, %v4190_v43  ;;  %v11565_v63 = vld [vmem:[#allocation2 + $0x1a0] sm:$0xff] }
 0x505   : > { %v4354_v48 = vsel %vm171_vm0, %v19144_v24, %v4188_v36  ;;  %v11564_v36 = vld [vmem:[#allocation2 + $0x198] sm:$0xff] }
 0x507   : > { %4717 = vmatmul.mubr.f32.gmra.mrb[150].mxu1 %v4299_v18  ;;  %9405 = vmatmul.mubr.msk.f32.gmra.mrb[158].mxu0 %vm171_vm0, %v15420_v61  ;;  %v4192_v20 = vpop.permute.xlu1 %4191  ;;  %v19146_v61 = vld [vmem:[#allocation57_spill] sm:$0xff] }
 0x508   : > { %4721 = vmatprep.mubr.f32.mxu1 %v4332_v11  ;;  %9407 = vmatprep.mubr.msk.f32.mxu0 %vm171_vm0, %v15403_v39  ;;  %v4271_v39 = vsel %vm626_vm4, %v4268_v27, %v4270_v44  ;;  %v9985_v27 = vpack.c.bf16 %v8876_v2, %v8875_v23 }
 0x50b   : > { %4722 = vmatmul.mubr.f32.gmra.mrb[152].mxu1 %v4300_v45  ;;  %9408 = vmatmul.mubr.msk.f32.gmra.mrb[160].mxu0 %vm171_vm0, %v15438_v22  ;;  %v11150_v22 = vunpack.i.h.bf16 %v11148_v40  ;;  %v19154_v40 = vld [vmem:[#allocation66_spill] sm:$0xff] }
 0x50c   : > { %4726 = vmatprep.mubr.f32.mxu1 %v4333_v1  ;;  %9410 = vmatprep.mubr.msk.f32.mxu0 %vm171_vm0, %v4269_v26 }
 0x50d   : > { %v4303_v57 = vsel %vm171_vm0, %v15233_v28, %v11150_v22  ;;  %v4356_v28 = vsel %vm171_vm0, %v19146_v61, %v4192_v20 }
 0x50f   : > { %4727 = vmatmul.mubr.f32.gmra.mrb[154].mxu1 %v4301_v35  ;;  %9411 = vmatmul.mubr.msk.f32.gmra.mrb[162].mxu0 %vm171_vm0, %v4271_v39 }
 0x510   : > { %4731 = vmatprep.mubr.f32.mxu1 %v4334_v49 }
 0x513   : > { %4732 = vmatmul.mubr.f32.gmra.mrb[156].mxu1 %v4302_v60 }
 0x514   : > { %4736 = vmatprep.mubr.f32.mxu1 %v4335_v6 }
 0x517   : > { %4737 = vmatmul.mubr.f32.gmra.mrb[158].mxu1 %v4303_v57 }
 0x518   : > { %4896 = vmatprep.mubr.f32.mxu1 %v15673_v15  ;;  %v4196_v15 = vpop.permute.xlu1 %4195 }
 0x519   : > { %v4358_v25 = vsel %vm171_vm0, %v19148_v34, %v4196_v15 }
 0x51b   : > { %4897 = vmatmul.mubr.f32.vlgmr.msra.gmra.mrb[132].mxu1 %v4354_v48 }
 0x51c   : > { %4901 = vmatprep.mubr.f32.mxu1 %v15684_v62  ;;  %v4198_v62 = vpop.permute.xlu0 %4197  ;;  %9976 = vmatpush3.bf16.msra.mxu1 %v9973_v53 }
 0x51d   : > { %v4359_v41 = vsel %vm171_vm0, %v19149_v31, %v4198_v62  ;;  %9978 = vmatprep.subr.bf16.mxu1 %v9977_v50  ;;  %v15818_v62 = vld [vmem:[%s18564_s2 + $0x2] ss:$0 sm:$0xff] }
 0x51f   : > { %4902 = vmatmul.mubr.f32.gmra.mrb[134].mxu1 %v4355_v42 }
 0x520   : > { %4906 = vmatprep.mubr.f32.mxu1 %v15695_v37  ;;  %v4200_v37 = vpop.permute.xlu1 %4199  ;;  %9980 = vmatpush3.bf16.msra.mxu1 %v9977_v50  ;;  %v8806_v50 = vld [vmem:[%s18563_s1 + $0x6c8] sm:$0xff] }
 0x521   : > { %v4360_v9 = vsel %vm171_vm0, %v19150_v4, %v4200_v37 }
 0x523   : > { %4907 = vmatmul.mubr.f32.gmra.mrb[136].mxu1 %v4356_v28 }
 0x524   : > { %4911 = vmatprep.mubr.f32.mxu1 %v15706_v7  ;;  %v4202_v7 = vpop.permute.xlu0 %4201  ;;  %v4204_v13 = vpop.permute.xlu1 %4203 }
 0x525   : > { %v4361_v21 = vsel %vm171_vm0, %v19151_v17, %v4202_v7  ;;  %v9878_v7 = vpack.c.bf16 %v8806_v50, %v8805_v56  ;;  %v8808_v17 = vld [vmem:[%s18563_s1 + $0x6d8] sm:$0xff] }
 0x527   : > { %4912 = vmatmul.mubr.f32.gmra.mrb[138].mxu1 %v4357_v59  ;;  %9879 = vmatpush1.bf16.msra.mxu0 %v9878_v7 }
 0x528   : > { %4916 = vmatprep.mubr.f32.mxu1 %v4298_v16  ;;  %v8874_v16 = vld [vmem:[%s18563_s1 + $0x8e8] sm:$0xff]  ;;  %v4206_v3 = vpop.permute.xlu0 %4205  ;;  %v11153_v51 = vpop.permute.xlu1 %11152  ;;  %9880 = vmatprep.subr.bf16.mxu0 %v18857_v54 }
 0x529   : > { %v9981_v33 = vpack.c.bf16 %v8874_v16, %v8873_v5  ;;  %v11154_v0 = vunpack.i.l.bf16 %v11153_v51  ;;  %v11155_v10 = vunpack.i.h.bf16 %v11153_v51  ;;  %v4363_v44 = vsel %vm171_vm0, %v19153_v46, %v4206_v3  ;;  %v8807_v3 = vld [vmem:[%s18563_s1 + $0x6d0] sm:$0xff] }
 0x52b   : > { %4917 = vmatmul.mubr.f32.gmra.mrb[140].mxu1 %v4358_v25  ;;  %9982 = vmatprep.subr.bf16.mxu1 %v9981_v33  ;;  %v4364_v39 = vsel %vm171_vm0, %v19154_v40, %v11155_v10 }
 0x52c   : > { %4921 = vmatprep.mubr.f32.mxu1 %v4299_v18  ;;  %9984 = vmatpush3.bf16.msra.mxu1 %v9981_v33  ;;  %v4362_v18 = vsel %vm171_vm0, %v19152_v52, %v4204_v13  ;;  %v11158_v11 = vpop.permute.xlu0 %11157  ;;  %v11163_v19 = vpop.permute.xlu1 %11162 }
 0x52d   : > { %9986 = vmatprep.subr.bf16.mxu1 %v9985_v27  ;;  %v11159_v26 = vunpack.i.l.bf16 %v11158_v11  ;;  %v11160_v1 = vunpack.i.h.bf16 %v11158_v11  ;;  %v11164_v8 = vunpack.i.l.bf16 %v11163_v19  ;;  %v11165_v22 = vunpack.i.h.bf16 %v11163_v19  ;;  %v8810_v11 = vld [vmem:[%s18563_s1 + $0x6e8] sm:$0xff] }
 0x52f   : > { %4922 = vmatmul.mubr.f32.gmra.mrb[142].mxu1 %v4359_v41  ;;  %v4370_v24 = vsel %vm171_vm0, %v11564_v36, %v11164_v8  ;;  %v4366_v43 = vsel %vm171_vm0, %v15384_v47, %v11165_v22 }
 0x530   : > { %4926 = vmatprep.mubr.f32.mxu1 %v4300_v45  ;;  %9988 = vmatpush3.bf16.msra.mxu1 %v9985_v27  ;;  %v4368_v45 = vsel %vm171_vm0, %v11562_v12, %v11154_v0  ;;  %v11168_v49 = vpop.permute.xlu0 %11167  ;;  %v8809_v0 = vld [vmem:[%s18563_s1 + $0x6e0] sm:$0xff]  ;;  %v8811_v12 = vld [vmem:[%s18563_s1 + $0x6f0] sm:$0xff] }
 0x531   : > { %9989 = vmatprep.subr.bf16.mxu1 %v18857_v54  ;;  %v11170_v48 = vunpack.i.h.bf16 %v11168_v49  ;;  %v9884_v10 = vpack.c.bf16 %v8810_v11, %v8809_v0  ;;  %v8823_v0 = vld [vmem:[%s18563_s1 + $0x750] sm:$0xff]  ;;  %v8824_v11 = vld [vmem:[%s18563_s1 + $0x758] sm:$0xff] }
 0x533   : > { %4927 = vmatmul.mubr.f32.gmra.mrb[144].mxu1 %v4360_v9  ;;  %v4367_v20 = vsel %vm171_vm0, %v15406_v30, %v11170_v48 }
 0x534   : > { %4931 = vmatprep.mubr.f32.mxu1 %v4301_v35  ;;  %v11563_v35 = vld [vmem:[#allocation2 + $0x188] sm:$0xff] }
 0x535   : > { %v4369_v29 = vsel %vm171_vm0, %v11563_v35, %v11159_v26 }
 0x537   : > { %4932 = vmatmul.mubr.f32.gmra.mrb[146].mxu1 %v4361_v21  ;;  %v9881_v21 = vpack.c.bf16 %v8808_v17, %v8807_v3  ;;  %v8822_v3 = vld [vmem:[%s18563_s1 + $0x748] sm:$0xff] }
 0x538   : > { %4936 = vmatprep.mubr.f32.mxu1 %v4302_v60  ;;  %v19155_v60 = vld [vmem:[#allocation67_spill] sm:$0xff] }
 0x539   : > { %v4365_v6 = vsel %vm171_vm0, %v19155_v60, %v11160_v1  ;;  %9882 = vmatpush1.bf16.msra.mxu0 %v9881_v21 }
 0x53a   : > { %9883 = vmatprep.subr.bf16.mxu0 %v18857_v54 }
 0x53b   : > { %4937 = vmatmul.mubr.f32.gmra.mrb[148].mxu1 %v4362_v18 }
 0x53c   : > { %4941 = vmatprep.mubr.f32.mxu1 %v4303_v57  ;;  %v11169_v57 = vunpack.i.l.bf16 %v11168_v49  ;;  %v8814_v49 = vld [vmem:[%s18563_s1 + $0x708] sm:$0xff] }
 0x53d   : > { %9885 = vmatpush1.bf16.msra.mxu0 %v9884_v10  ;;  %v9905_v10 = vpack.c.bf16 %v8824_v11, %v8823_v0  ;;  %v8836_v0 = vld [vmem:[%s18563_s1 + $0x7b8] sm:$0xff] }
 0x53e   : > { %v4371_v42 = vsel %vm171_vm0, %v11565_v63, %v11169_v57  ;;  %9886 = vmatprep.subr.bf16.mxu0 %v18857_v54  ;;  %v8816_v63 = vld [vmem:[%s18563_s1 + $0x718] sm:$0xff] }
 0x53f   : > { %4942 = vmatmul.mubr.f32.gmra.mrb[150].mxu1 %v4363_v44 }
 0x540   : > { %4946 = vmatprep.mubr.f32.mxu1 %v4368_v45  ;;  %v8812_v45 = vld [vmem:[%s18563_s1 + $0x6f8] sm:$0xff] }
 0x541   : > { %v9887_v19 = vpack.c.bf16 %v8812_v45, %v8811_v12 }
 0x543   : > { %4947 = vmatmul.mubr.f32.gmra.mrb[152].mxu1 %v4364_v39  ;;  %9888 = vmatpush1.bf16.msra.mxu0 %v9887_v19 }
 0x544   : > { %4951 = vmatprep.mubr.f32.mxu1 %v4369_v29  ;;  %9889 = vmatprep.subr.bf16.mxu0 %v18857_v54  ;;  %v8813_v29 = vld [vmem:[%s18563_s1 + $0x700] sm:$0xff] }
 0x545   : > { %v9890_v22 = vpack.c.bf16 %v8814_v49, %v8813_v29 }
 0x547   : > { %4952 = vmatmul.mubr.f32.gmra.mrb[154].mxu1 %v4365_v6  ;;  %9891 = vmatpush1.bf16.msra.mxu0 %v9890_v22 }
 0x548   : > { %4956 = vmatprep.mubr.f32.mxu1 %v4370_v24  ;;  %9892 = vmatprep.subr.bf16.mxu0 %v18857_v54 }
 0x54b   : > { %4957 = vmatmul.mubr.f32.gmra.mrb[156].mxu1 %v4366_v43  ;;  %v8815_v43 = vld [vmem:[%s18563_s1 + $0x710] sm:$0xff] }
 0x54c   : > { %4961 = vmatprep.mubr.f32.mxu1 %v4371_v42  ;;  %v9893_v42 = vpack.c.bf16 %v8816_v63, %v8815_v43 }
 0x54e   : > { %9894 = vmatpush1.bf16.msra.mxu0 %v9893_v42 }
 0x54f   : > { %4962 = vmatmul.mubr.f32.gmra.mrb[158].mxu1 %v4367_v20  ;;  %9895 = vmatprep.subr.bf16.mxu0 %v18857_v54 }
 0x55e   : > { %v4808_v61 = vpop.f32.mrb[96].mxu0 }
 0x55f   : > { %v4810_v28 = vpop.f32.mrb[97].mxu0 }
 0x562   : > { %v4813_v55 = vpop.f32.mrb[98].mxu0 }
 0x563   : > { %v4815_v15 = vpop.f32.mrb[99].mxu0 }
 0x566   : > { %v4818_v32 = vpop.f32.mrb[100].mxu0 }
 0x567   : > { %v4820_v59 = vpop.f32.mrb[101].mxu0 }
 0x568   : > { %v8817_v59 = vld [vmem:[%s18563_s1 + $0x720] sm:$0xff] }
 0x56a   : > { %v4583_v47 = vpop.f32.mrb[96].mxu1  ;;  %v4823_v34 = vpop.f32.mrb[102].mxu0 }
 0x56b   : > { %v4584_v25 = vadd.f32 %v15818_v62, %v4583_v47  ;;  %v4585_v14 = vpop.f32.mrb[97].mxu1  ;;  %v4825_v58 = vpop.f32.mrb[103].mxu0  ;;  %v8818_v47 = vld [vmem:[%s18563_s1 + $0x728] sm:$0xff] }
 0x56d   : > { %v15821_v53 = vadd.f32 %v4808_v61, %v4584_v25 }
 0x56e   : > { %v4588_v30 = vpop.f32.mrb[98].mxu1  ;;  %v4828_v37 = vpop.f32.mrb[104].mxu0 }
 0x56f   : > { %v4589_v31 = vadd.f32 %v15818_v62, %v4588_v30  ;;  %v4590_v41 = vpop.f32.mrb[99].mxu1  ;;  %v4830_v38 = vpop.f32.mrb[105].mxu0 }
 0x570   : > { %v8819_v41 = vld [vmem:[%s18563_s1 + $0x730] sm:$0xff]  ;;  %v8820_v38 = vld [vmem:[%s18563_s1 + $0x738] sm:$0xff] }
 0x571   : > { %v15830_v13 = vadd.f32 %v4813_v55, %v4589_v31  ;;  %v9899_v56 = vpack.c.bf16 %v8820_v38, %v8819_v41  ;;  %v8832_v41 = vld [vmem:[%s18563_s1 + $0x798] sm:$0xff] }
 0x572   : > { %v4593_v4 = vpop.f32.mrb[100].mxu1  ;;  %v4833_v9 = vpop.f32.mrb[106].mxu0 }
 0x573   : > { %v4594_v5 = vadd.f32 %v15818_v62, %v4593_v4  ;;  %v4595_v16 = vpop.f32.mrb[101].mxu1  ;;  %v4835_v33 = vpop.f32.mrb[107].mxu0 }
 0x574   : > { %v8821_v33 = vld [vmem:[%s18563_s1 + $0x740] sm:$0xff] }
 0x575   : > { %v15840_v23 = vadd.f32 %v4818_v32, %v4594_v5  ;;  %v9902_v17 = vpack.c.bf16 %v8822_v3, %v8821_v33  ;;  %v8833_v3 = vld [vmem:[%s18563_s1 + $0x7a0] sm:$0xff] }
 0x576   : > { %v4598_v2 = vpop.f32.mrb[102].mxu1  ;;  %v4838_v27 = vpop.f32.mrb[108].mxu0 }
 0x577   : > { %v4599_v51 = vadd.f32 %v15818_v62, %v4598_v2  ;;  %v4600_v52 = vpop.f32.mrb[103].mxu1  ;;  %v4840_v18 = vpop.f32.mrb[109].mxu0 }
 0x579   : > { %v15850_v46 = vadd.f32 %v4823_v34, %v4599_v51  ;;  %v9896_v34 = vpack.c.bf16 %v8818_v47, %v8817_v59 }
 0x57a   : > { %v4843_v44 = vpop.f32.mrb[110].mxu0 }
 0x57b   : > { %v4845_v26 = vpop.f32.mrb[111].mxu0  ;;  %9897 = vmatpush1.bf16.msra.mxu0 %v9896_v34 }
 0x57c   : > { %9898 = vmatprep.subr.bf16.mxu0 %v18857_v54 }
 0x57e   : > { %v4603_v1 = vpop.f32.mrb[104].mxu1  ;;  %v4848_v40 = vpop.f32.mrb[112].mxu0 }
 0x57f   : > { %v4604_v39 = vadd.f32 %v15818_v62, %v4603_v1  ;;  %v4605_v8 = vpop.f32.mrb[105].mxu1  ;;  %v4850_v35 = vpop.f32.mrb[113].mxu0  ;;  %9900 = vmatpush1.bf16.msra.mxu0 %v9899_v56 }
 0x580   : > { %9901 = vmatprep.subr.bf16.mxu0 %v18857_v54 }
 0x581   : > { %v15867_v60 = vadd.f32 %v4828_v37, %v4604_v39  ;;  %v8826_v39 = vld [vmem:[%s18563_s1 + $0x768] sm:$0xff] }
 0x582   : > { %v4608_v6 = vpop.f32.mrb[106].mxu1  ;;  %v4853_v57 = vpop.f32.mrb[114].mxu0 }
 0x583   : > { %v4609_v36 = vadd.f32 %v15818_v62, %v4608_v6  ;;  %v4610_v24 = vpop.f32.mrb[107].mxu1  ;;  %v4855_v48 = vpop.f32.mrb[115].mxu0  ;;  %9903 = vmatpush1.bf16.msra.mxu0 %v9902_v17  ;;  %v8834_v17 = vld [vmem:[%s18563_s1 + $0x7a8] sm:$0xff] }
 0x584   : > { %9904 = vmatprep.subr.bf16.mxu0 %v18857_v54  ;;  %v8828_v24 = vld [vmem:[%s18563_s1 + $0x778] sm:$0xff] }
 0x585   : > { %v15877_v20 = vadd.f32 %v4833_v9, %v4609_v36  ;;  %v8827_v36 = vld [vmem:[%s18563_s1 + $0x770] sm:$0xff] }
 0x586   : > { %v4613_v61 = vpop.f32.mrb[108].mxu1  ;;  %v4858_v28 = vpop.f32.mrb[116].mxu0  ;;  %v9911_v48 = vpack.c.bf16 %v8828_v24, %v8827_v36 }
 0x587   : > { %v4614_v55 = vadd.f32 %v15818_v62, %v4613_v61  ;;  %v4615_v15 = vpop.f32.mrb[109].mxu1  ;;  %v4860_v32 = vpop.f32.mrb[117].mxu0  ;;  %9906 = vmatpush1.bf16.msra.mxu0 %v9905_v10 }
 0x588   : > { %9907 = vmatprep.subr.bf16.mxu0 %v18857_v54  ;;  %v8829_v15 = vld [vmem:[%s18563_s1 + $0x780] sm:$0xff]  ;;  %v8830_v32 = vld [vmem:[%s18563_s1 + $0x788] sm:$0xff] }
 0x589   : > { %v15887_v25 = vadd.f32 %v4838_v27, %v4614_v55  ;;  %v9914_v59 = vpack.c.bf16 %v8830_v32, %v8829_v15 }
 0x58a   : > { %v4618_v14 = vpop.f32.mrb[110].mxu1  ;;  %v4863_v58 = vpop.f32.mrb[118].mxu0 }
 0x58b   : > { %v4619_v30 = vadd.f32 %v15818_v62, %v4618_v14  ;;  %v4620_v37 = vpop.f32.mrb[111].mxu1  ;;  %v4865_v31 = vpop.f32.mrb[119].mxu0 }
 0x58c   : > { %v8831_v31 = vld [vmem:[%s18563_s1 + $0x790] sm:$0xff] }
 0x58d   : > { %v15897_v50 = vadd.f32 %v4843_v44, %v4619_v30  ;;  %v9917_v38 = vpack.c.bf16 %v8832_v41, %v8831_v31 }
 0x58e   : > { %v4623_v7 = vpop.f32.mrb[112].mxu1  ;;  %v4868_v4 = vpop.f32.mrb[120].mxu0 }
 0x58f   : > { %v4624_v9 = vadd.f32 %v15818_v62, %v4623_v7  ;;  %v4625_v5 = vpop.f32.mrb[113].mxu1  ;;  %v4870_v16 = vpop.f32.mrb[121].mxu0 }
 0x591   : > { %v15907_v21 = vadd.f32 %v4848_v40, %v4624_v9  ;;  %v8825_v40 = vld [vmem:[%s18563_s1 + $0x760] sm:$0xff] }
 0x592   : > { %v4628_v2 = vpop.f32.mrb[114].mxu1  ;;  %v4873_v27 = vpop.f32.mrb[122].mxu0  ;;  %v9908_v8 = vpack.c.bf16 %v8826_v39, %v8825_v40 }
 0x593   : > { %v4629_v51 = vadd.f32 %v15818_v62, %v4628_v2  ;;  %v4630_v52 = vpop.f32.mrb[115].mxu1  ;;  %v4875_v18 = vpop.f32.mrb[123].mxu0 }
 0x594   : > { %9909 = vmatpush1.bf16.msra.mxu0 %v9908_v8  ;;  %v15975_v52 = vld [vmem:[#allocation3 + $0x8] sm:$0xff] }
 0x595   : > { %v15917_v44 = vadd.f32 %v4853_v57, %v4629_v51  ;;  %9910 = vmatprep.subr.bf16.mxu0 %v18857_v54 }
 0x596   : > { %v4633_v26 = vpop.f32.mrb[116].mxu1  ;;  %v4878_v12 = vpop.f32.mrb[124].mxu0 }
 0x597   : > { %v4634_v45 = vadd.f32 %v15818_v62, %v4633_v26  ;;  %v4635_v19 = vpop.f32.mrb[117].mxu1  ;;  %v4880_v1 = vpop.f32.mrb[125].mxu0 }
 0x598   : > { %9912 = vmatpush1.bf16.msra.mxu0 %v9911_v48 }
 0x599   : > { %v15927_v35 = vadd.f32 %v4858_v28, %v4634_v45  ;;  %9913 = vmatprep.subr.bf16.mxu0 %v18857_v54  ;;  %v15985_v45 = vld [vmem:[#allocation3 + $0x10] sm:$0x3] }
 0x59a   : > { %v4638_v29 = vpop.f32.mrb[118].mxu1  ;;  %v15929_v49 = vpop.f32.mrb[126].mxu0 }
 0x59b   : > { %v4639_v22 = vadd.f32 %v15818_v62, %v4638_v29  ;;  %v4640_v6 = vpop.f32.mrb[119].mxu1  ;;  %v4885_v57 = vpop.f32.mrb[127].mxu0  ;;  %v5359_v29 = vrot.slane %v15975_v52, 1 }
 0x59c   : > { %9915 = vmatpush1.bf16.msra.mxu0 %v9914_v59  ;;  %v5361_v6 = vrot.slane %v15985_v45, 1 }
 0x59d   : > { %v15939_v43 = vadd.f32 %v4863_v58, %v4639_v22  ;;  %9916 = vmatprep.subr.bf16.mxu0 %v18857_v54 }
 0x59e   : > { %v4643_v63 = vpop.f32.mrb[120].mxu1  ;;  %v15941_v42 = vpop.f32.mrb[128].mxu0  ;;  %v5362_v15 = vsel %vm449_vm3, %v5359_v29, %v5361_v6 }
 0x59f   : > { %v4644_v61 = vadd.f32 %v15818_v62, %v4643_v63  ;;  %v4645_v28 = vpop.f32.mrb[121].mxu1  ;;  %v4890_v55 = vpop.f32.mrb[129].mxu0 }
 0x5a0   : > { %9918 = vmatpush1.bf16.msra.mxu0 %v9917_v38 }
 0x5a1   : > { %v15951_v47 = vadd.f32 %v4868_v4, %v4644_v61  ;;  %9919 = vmatprep.subr.bf16.mxu0 %v18857_v54 }
 0x5a2   : > { %v4648_v34 = vpop.f32.mrb[122].mxu1  ;;  %v15953_v14 = vpop.f32.mrb[130].mxu0 }
 0x5a3   : > { %v4649_v58 = vadd.f32 %v15818_v62, %v4648_v34  ;;  %v4650_v30 = vpop.f32.mrb[123].mxu1  ;;  %v4895_v37 = vpop.f32.mrb[131].mxu0 }
 0x5a5   : > { %v15963_v56 = vadd.f32 %v4873_v27, %v4649_v58  ;;  %v9920_v27 = vpack.c.bf16 %v8834_v17, %v8833_v3 }
 0x5a6   : > { %v4653_v7 = vpop.f32.mrb[124].mxu1  ;;  %v9367_v4 = vpop.f32.mrb[132].mxu0 }
 0x5a7   : > { %v4654_v9 = vadd.f32 %v15818_v62, %v4653_v7  ;;  %v5039_v5 = vadd.f32 %v9367_v4, %v15830_v13  ;;  %v4655_v16 = vpop.f32.mrb[125].mxu1  ;;  %v5033_v33 = vpop.f32.mrb[133].mxu0  ;;  %v8835_v13 = vld [vmem:[%s18563_s1 + $0x7b0] sm:$0xff]  ;;  %9921 = vmatpush1.bf16.msra.mxu0 %v9920_v27 }
 0x5a8   : > { %v5034_v2 = vadd.f32 %v5033_v33, %v15821_v53  ;;  %v15987_v53 = vld [vmem:[#allocation3] sm:$0xff]  ;;  %v9923_v19 = vpack.c.bf16 %v8836_v0, %v8835_v13  ;;  %9922 = vmatprep.subr.bf16.mxu0 %v18857_v54 }
 0x5a9   : > { %v5193_v51 = vmax.f32 %v5039_v5, 0.0  ;;  %v15977_v18 = vadd.f32 %v4878_v12, %v4654_v9  ;;  %v5358_v57 = vrot.slane %v15987_v53, 1 }
 0x5aa   : > { %v5192_v11 = vmax.f32 %v5034_v2, 0.0  ;;  %v4658_v10 = vpop.f32.mrb[126].mxu1  ;;  %v9370_v26 = vpop.f32.mrb[134].mxu0 }
 0x5ab   : > { %5225 = vst.msk [vmem:[#allocation3 + $0x21] sm:$0xff] %vm171_vm0, %v5193_v51  ;;  %v4659_v12 = vadd.f32 %v15818_v62, %v4658_v10  ;;  %v5049_v1 = vadd.f32 %v9370_v26, %v15850_v46  ;;  %v4660_v40 = vpop.f32.mrb[127].mxu1  ;;  %v5043_v39 = vpop.f32.mrb[135].mxu0  ;;  %9924 = vmatpush1.bf16.msra.mxu0 %v9923_v19  ;;  %v5360_v32 = vsel %vm449_vm3, %v5358_v57, %v5359_v29 }
 0x5ac   : > { %5224 = vst.msk [vmem:[#allocation3 + $0x19] sm:$0xff] %vm171_vm0, %v5192_v11  ;;  %v5044_v8 = vadd.f32 %v5043_v39, %v15840_v23  ;;  %9925 = vmatprep.subr.bf16.mxu0 %v18857_v54 }
 0x5ad   : > { %v5195_v22 = vmax.f32 %v5049_v1, 0.0  ;;  %v15999_v36 = vadd.f32 %v15929_v49, %v4659_v12 }
 0x5ae   : > { %v5194_v24 = vmax.f32 %v5044_v8, 0.0  ;;  %v4663_v46 = vpop.f32.mrb[128].mxu1  ;;  %v9373_v48 = vpop.f32.mrb[136].mxu0 }
 0x5af   : > { %5227 = vst.msk [vmem:[#allocation3 + $0x39] sm:$0xff] %vm171_vm0, %v5195_v22  ;;  %v4664_v63 = vadd.f32 %v15818_v62, %v4663_v46  ;;  %v5059_v23 = vadd.f32 %v9373_v48, %v15877_v20  ;;  %v4665_v61 = vpop.f32.mrb[129].mxu1  ;;  %v5053_v28 = vpop.f32.mrb[137].mxu0 }
 0x5b0   : > { %5226 = vst.msk [vmem:[#allocation3 + $0x31] sm:$0xff] %vm171_vm0, %v5194_v24  ;;  %v5054_v55 = vadd.f32 %v5053_v28, %v15867_v60 }
 0x5b1   : > { %v5197_v49 = vmax.f32 %v5059_v23, 0.0  ;;  %v16010_v59 = vadd.f32 %v15941_v42, %v4664_v63 }
 0x5b2   : > { %v5196_v34 = vmax.f32 %v5054_v55, 0.0  ;;  %v4668_v58 = vpop.f32.mrb[130].mxu1  ;;  %v9376_v30 = vpop.f32.mrb[138].mxu0  ;;  %v16012_v20 = vld [vmem:[#allocation3 + $0x28] sm:$0x3] }
 0x5b3   : > { %5229 = vst.msk [vmem:[#allocation3 + $0x51] sm:$0xff] %vm171_vm0, %v5197_v49  ;;  %v4669_v37 = vadd.f32 %v15818_v62, %v4668_v58  ;;  %v5069_v31 = vadd.f32 %v9376_v30, %v15897_v50  ;;  %v4670_v60 = vpop.f32.mrb[131].mxu1  ;;  %v5063_v41 = vpop.f32.mrb[139].mxu0  ;;  %v16017_v38 = vld [vmem:[#allocation3 + $0x20] sm:$0xff]  ;;  %v16019_v7 = vld [vmem:[#allocation3 + $0x18] sm:$0xff]  ;;  %v5366_v42 = vrot.slane %v16012_v20, 1 }
 0x5b4   : > { %5228 = vst.msk [vmem:[#allocation3 + $0x49] sm:$0xff] %vm171_vm0, %v5196_v34  ;;  %v5064_v4 = vadd.f32 %v5063_v41, %v15887_v25  ;;  %v11176_v9 = vpack.i.bf16 %v5362_v15, %v16017_v38  ;;  %v11171_v5 = vpack.i.bf16 %v5360_v32, %v16019_v7  ;;  %v5364_v16 = vrot.slane %v16017_v38, 1 }
 0x5b5   : > { %v5199_v33 = vmax.f32 %v5069_v31, 0.0  ;;  %v5363_v50 = vrot.slane %v16019_v7, 1  ;;  %v16029_v3 = vadd.f32 %v15953_v14, %v4669_v37 }
 0x5b6   : > { %v5198_v17 = vmax.f32 %v5064_v4, 0.0  ;;  %v9379_v2 = vpop.f32.mrb[140].mxu0  ;;  %11177 = vrot.lane.b32.xlu0 %v11176_v9, %s11588_s14  ;;  %11172 = vrot.lane.b32.xlu1 %v11171_v5, %s11588_s14  ;;  %v16034_v25 = vsel %vm449_vm3, %v5364_v16, %v5366_v42  ;;  %v5264_v27 = vld [vmem:[#allocation3 + $0x40] sm:$0x3] }
 0x5b7   : > { %19156 = vst [vmem:[#allocation42_spill] sm:$0xff] %v16034_v25  ;;  %5231 = vst.msk [vmem:[#allocation3 + $0x69] sm:$0xff] %vm171_vm0, %v5199_v33  ;;  %v5079_v51 = vadd.f32 %v9379_v2, %v15917_v44  ;;  %v5073_v13 = vpop.f32.mrb[141].mxu0  ;;  %v16038_v0 = vld [vmem:[#allocation3 + $0x38] sm:$0xff]  ;;  %v16040_v11 = vld [vmem:[#allocation3 + $0x30] sm:$0xff]  ;;  %v16043_v14 = vsel %vm449_vm3, %v5363_v50, %v5364_v16  ;;  %v5547_v10 = vrot.slane %v5264_v27, 2 }
 0x5b8   : > { %19157 = vst [vmem:[#allocation9_spill] sm:$0xff] %v16043_v14  ;;  %v5371_v26 = vrot.slane %v5264_v27, 1  ;;  %5230 = vst.msk [vmem:[#allocation3 + $0x61] sm:$0xff] %vm171_vm0, %v5198_v17  ;;  %v5074_v19 = vadd.f32 %v5073_v13, %v15907_v21  ;;  %v11186_v12 = vpack.i.bf16 %v16034_v25, %v16038_v0  ;;  %v11181_v44 = vpack.i.bf16 %v16043_v14, %v16040_v11 }
 0x5b9   : > { %v5544_v1 = vrot.slane %v16040_v11, 2  ;;  %v5201_v40 = vmax.f32 %v5079_v51, 0.0  ;;  %v5545_v39 = vrot.slane %v16038_v0, 2  ;;  %v5369_v8 = vrot.slane %v16038_v0, 1 }
 0x5ba   : > { %v5368_v29 = vrot.slane %v16040_v11, 1  ;;  %v5200_v22 = vmax.f32 %v5074_v19, 0.0  ;;  %v9382_v6 = vpop.f32.mrb[142].mxu0  ;;  %11187 = vrot.lane.b32.xlu0 %v11186_v12, %s11588_s14  ;;  %11182 = vrot.lane.b32.xlu1 %v11181_v44, %s11588_s14  ;;  %v5267_v21 = vld [vmem:[#allocation3 + $0x58] sm:$0x3] }
 0x5bb   : > { %5233 = vst.msk [vmem:[#allocation3 + $0x81] sm:$0xff] %vm171_vm0, %v5201_v40  ;;  %v5089_v57 = vadd.f32 %v9382_v6, %v15939_v43  ;;  %v5083_v24 = vpop.f32.mrb[143].mxu0  ;;  %v16060_v46 = vsel %vm626_vm4, %v5544_v1, %v5545_v39  ;;  %v16063_v48 = vsel %vm626_vm4, %v5545_v39, %v5547_v10  ;;  %v16065_v63 = vld [vmem:[#allocation3 + $0x50] sm:$0xff]  ;;  %v16068_v23 = vsel %vm449_vm3, %v5369_v8, %v5371_v26  ;;  %v16070_v61 = vld [vmem:[#allocation3 + $0x48] sm:$0xff] }
 0x5bc   : > { %19158 = vst [vmem:[#allocation48_spill] sm:$0xff] %v16068_v23  ;;  %5232 = vst.msk [vmem:[#allocation3 + $0x79] sm:$0xff] %vm171_vm0, %v5200_v22  ;;  %v5084_v28 = vadd.f32 %v5083_v24, %v15927_v35  ;;  %9429 = vmatprep.mubr.msk.f32.mxu1 %vm171_vm0, %v16060_v46  ;;  %v11196_v43 = vpack.i.bf16 %v16068_v23, %v16065_v63  ;;  %v16079_v55 = vsel %vm449_vm3, %v5368_v29, %v5369_v8 }
 0x5bd   : > { %19159 = vst [vmem:[#allocation46_spill] sm:$0xff] %v16079_v55  ;;  %v5549_v49 = vrot.slane %v16070_v61, 2  ;;  %v5203_v15 = vmax.f32 %v5089_v57, 0.0  ;;  %9430 = vmatmul.mubr.msk.f32.vlgmr.msra.gmra.mrb[160].mxu1 %vm171_vm0, %v16063_v48  ;;  %v11191_v32 = vpack.i.bf16 %v16079_v55, %v16070_v61  ;;  %v5550_v35 = vrot.slane %v16065_v63, 2 }
 0x5be   : > { %v5376_v34 = vrot.slane %v5267_v21, 1  ;;  %v5202_v58 = vmax.f32 %v5084_v28, 0.0  ;;  %v9385_v30 = vpop.f32.mrb[144].mxu0  ;;  %11197 = vrot.lane.b32.xlu0 %v11196_v43, %s11588_s14  ;;  %v5552_v37 = vrot.slane %v5267_v21, 2  ;;  %v5374_v31 = vrot.slane %v16065_v63, 1 }
 0x5bf   : > { %v5373_v60 = vrot.slane %v16070_v61, 1  ;;  %5235 = vst.msk [vmem:[#allocation3 + $0x99] sm:$0xff] %vm171_vm0, %v5203_v15  ;;  %v5099_v41 = vadd.f32 %v9385_v30, %v15963_v56  ;;  %11192 = vrot.lane.b32.xlu1 %v11191_v32, %s11588_s14  ;;  %v5093_v42 = vpop.f32.mrb[145].mxu0  ;;  %v16094_v4 = vsel %vm626_vm4, %v5549_v49, %v5550_v35  ;;  %v16096_v9 = vld [vmem:[#allocation3 + $0x68] sm:$0xff]  ;;  %v16098_v5 = vld [vmem:[#allocation3 + $0x60] sm:$0xff] }
 0x5c0   : > { %v5270_v16 = vld [vmem:[#allocation3 + $0x70] sm:$0x3]  ;;  %5234 = vst.msk [vmem:[#allocation3 + $0x91] sm:$0xff] %vm171_vm0, %v5202_v58  ;;  %v5094_v33 = vadd.f32 %v5093_v42, %v15951_v47  ;;  %9432 = vmatprep.mubr.msk.f32.mxu1 %vm171_vm0, %v16094_v4  ;;  %v16105_v56 = vsel %vm626_vm4, %v5550_v35, %v5552_v37  ;;  %v16108_v50 = vsel %vm449_vm3, %v5374_v31, %v5376_v34  ;;  %v5554_v51 = vrot.slane %v16098_v5, 2 }
 0x5c1   : > { %19160 = vst [vmem:[#allocation44_spill] sm:$0xff] %v16108_v50  ;;  %v16111_v17 = vsel %vm449_vm3, %v5373_v60, %v5374_v31  ;;  %v5205_v2 = vmax.f32 %v5099_v41, 0.0  ;;  %9433 = vmatmul.mubr.msk.f32.gmra.mrb[162].mxu1 %vm171_vm0, %v16105_v56  ;;  %v11206_v27 = vpack.i.bf16 %v16108_v50, %v16096_v9  ;;  %v5555_v26 = vrot.slane %v16096_v9, 2 }
 0x5c2   : > { %19161 = vst [vmem:[#allocation11_spill] sm:$0xff] %v16111_v17  ;;  %v11201_v47 = vpack.i.bf16 %v16111_v17, %v16098_v5  ;;  %v5204_v13 = vmax.f32 %v5094_v33, 0.0  ;;  %v9388_v10 = vpop.f32.mrb[146].mxu0  ;;  %v5381_v19 = vrot.slane %v5270_v16, 1  ;;  %v5557_v12 = vrot.slane %v5270_v16, 2 }
 0x5c3   : > { %5237 = vst.msk [vmem:[#allocation3 + $0xb1] sm:$0xff] %vm171_vm0, %v5205_v2  ;;  %v5109_v44 = vadd.f32 %v9388_v10, %v15999_v36  ;;  %11207 = vrot.lane.b32.xlu0 %v11206_v27, %s11588_s14  ;;  %v5103_v1 = vpop.f32.mrb[147].mxu0  ;;  %v5272_v40 = vld [vmem:[#allocation3 + $0x80] sm:$0xff]  ;;  %v5379_v39 = vrot.slane %v16096_v9, 1  ;;  %v16126_v8 = vld [vmem:[#allocation3 + $0x78] sm:$0xff]  ;;  %v5378_v29 = vrot.slane %v16098_v5, 1  ;;  %v16132_v6 = vsel %vm626_vm4, %v5554_v51, %v5555_v26 }
 0x5c4   : > { %11202 = vrot.lane.b32.xlu1 %v11201_v47, %s11588_s14  ;;  %5236 = vst.msk [vmem:[#allocation3 + $0xa9] sm:$0xff] %vm171_vm0, %v5204_v13  ;;  %v5104_v22 = vadd.f32 %v5103_v1, %v15977_v18  ;;  %v16135_v36 = vsel %vm626_vm4, %v5555_v26, %v5557_v12  ;;  %v5559_v21 = vrot.slane %v16126_v8, 2  ;;  %v5273_v57 = vld [vmem:[#allocation3 + $0x88] sm:$0x3]  ;;  %9435 = vmatprep.mubr.msk.f32.mxu1 %vm171_vm0, %v16132_v6  ;;  %v5560_v18 = vrot.slane %v5272_v40, 2 }
 0x5c5   : > { %v5207_v24 = vmax.f32 %v5109_v44, 0.0  ;;  %v16141_v28 = vsel %vm449_vm3, %v5379_v39, %v5381_v19  ;;  %v16144_v43 = vsel %vm449_vm3, %v5378_v29, %v5379_v39  ;;  %9436 = vmatmul.mubr.msk.f32.gmra.mrb[164].mxu1 %vm171_vm0, %v16135_v36  ;;  %v5386_v34 = vrot.slane %v5273_v57, 1 }
 0x5c6   : > { %19162 = vst [vmem:[#allocation13_spill] sm:$0xff] %v16141_v28  ;;  %19163 = vst [vmem:[#allocation37_spill] sm:$0xff] %v16144_v43  ;;  %v5206_v49 = vmax.f32 %v5104_v22, 0.0  ;;  %v9391_v15 = vpop.f32.mrb[148].mxu0  ;;  %v11216_v32 = vpack.i.bf16 %v16141_v28, %v5272_v40  ;;  %v11211_v35 = vpack.i.bf16 %v16144_v43, %v16126_v8  ;;  %v5276_v58 = vld [vmem:[#allocation3 + $0xa0] sm:$0x3]  ;;  %v16154_v31 = vsel %vm626_vm4, %v5559_v21, %v5560_v18 }
 0x5c7   : > { %5239 = vst.msk [vmem:[#allocation3 + $0xc9] sm:$0xff] %vm171_vm0, %v5207_v24  ;;  %v5119_v30 = vadd.f32 %v9391_v15, %v16029_v3  ;;  %v5113_v37 = vpop.f32.mrb[149].mxu0  ;;  %v5562_v60 = vrot.slane %v5273_v57, 2  ;;  %v5275_v41 = vld [vmem:[#allocation3 + $0x98] sm:$0xff]  ;;  %v5384_v42 = vrot.slane %v5272_v40, 1  ;;  %v16156_v16 = vld [vmem:[#allocation3 + $0x90] sm:$0xff]  ;;  %9438 = vmatprep.mubr.msk.f32.mxu1 %vm171_vm0, %v16154_v31 }
 0x5c8   : > { %5238 = vst.msk [vmem:[#allocation3 + $0xc1] sm:$0xff] %vm171_vm0, %v5206_v49  ;;  %11217 = vrot.lane.b32.xlu0 %v11216_v32, %s11588_s14  ;;  %11212 = vrot.lane.b32.xlu1 %v11211_v35, %s11588_s14  ;;  %v5114_v33 = vadd.f32 %v5113_v37, %v16010_v59  ;;  %v5383_v2 = vrot.slane %v16126_v8, 1  ;;  %v5564_v3 = vrot.slane %v16156_v16, 2  ;;  %v5565_v27 = vrot.slane %v5275_v41, 2 }
 0x5c9   : > { %v5209_v47 = vmax.f32 %v5119_v30, 0.0  ;;  %v16167_v51 = vsel %vm626_vm4, %v5560_v18, %v5562_v60  ;;  %v16170_v13 = vsel %vm449_vm3, %v5384_v42, %v5386_v34  ;;  %v5391_v10 = vrot.slane %v5276_v58, 1 }
 0x5ca   : > { %19164 = vst [vmem:[#allocation4_spill] sm:$0xff] %v16170_v13  ;;  %v5208_v26 = vmax.f32 %v5114_v33, 0.0  ;;  %9439 = vmatmul.mubr.msk.f32.gmra.mrb[166].mxu1 %vm171_vm0, %v16167_v51  ;;  %v16174_v59 = vpop.f32.mrb[150].mxu0  ;;  %v11226_v19 = vpack.i.bf16 %v16170_v13, %v5275_v41  ;;  %v16178_v12 = vsel %vm449_vm3, %v5383_v2, %v5384_v42  ;;  %v16181_v44 = vsel %vm626_vm4, %v5564_v3, %v5565_v27  ;;  %v5279_v1 = vld [vmem:[#allocation3 + $0xb8] sm:$0x3] }
 0x5cb   : > { %19165 = vst [vmem:[#allocation41_spill] sm:$0xff] %v16178_v12  ;;  %5241 = vst.msk [vmem:[#allocation3 + $0xe1] sm:$0xff] %vm171_vm0, %v5209_v47  ;;  %v11221_v40 = vpack.i.bf16 %v16178_v12, %v16156_v16  ;;  %v16186_v39 = vpop.f32.mrb[151].mxu0  ;;  %9441 = vmatprep.mubr.msk.f32.mxu1 %vm171_vm0, %v16181_v44  ;;  %v5567_v29 = vrot.slane %v5276_v58, 2  ;;  %v5278_v22 = vld [vmem:[#allocation3 + $0xb0] sm:$0xff]  ;;  %v5389_v21 = vrot.slane %v5275_v41, 1 }
 0x5cc   : > { %v16190_v57 = vld [vmem:[#allocation3 + $0xa8] sm:$0xff]  ;;  %v5388_v24 = vrot.slane %v16156_v16, 1  ;;  %5240 = vst.msk [vmem:[#allocation3 + $0xd9] sm:$0xff] %vm171_vm0, %v5208_v26  ;;  %11227 = vrot.lane.b32.xlu0 %v11226_v19, %s11588_s14  ;;  %v5570_v49 = vrot.slane %v5278_v22, 2  ;;  %v5396_v15 = vrot.slane %v5279_v1, 1  ;;  %v5572_v32 = vrot.slane %v5279_v1, 2 }
 0x5cd   : > { %v5569_v18 = vrot.slane %v16190_v57, 2  ;;  %11222 = vrot.lane.b32.xlu1 %v11221_v40, %s11588_s14  ;;  %v16198_v35 = vsel %vm626_vm4, %v5565_v27, %v5567_v29  ;;  %v16201_v34 = vsel %vm449_vm3, %v5389_v21, %v5391_v10  ;;  %v5394_v30 = vrot.slane %v5278_v22, 1 }
 0x5ce   : > { %19166 = vst [vmem:[#allocation38_spill] sm:$0xff] %v16201_v34  ;;  %v16204_v58 = vsel %vm449_vm3, %v5388_v24, %v5389_v21  ;;  %9442 = vmatmul.mubr.msk.f32.gmra.mrb[168].mxu1 %vm171_vm0, %v16198_v35  ;;  %v16208_v37 = vpop.f32.mrb[152].mxu0  ;;  %v11236_v60 = vpack.i.bf16 %v16201_v34, %v5278_v22  ;;  %v16217_v33 = vsel %vm626_vm4, %v5570_v49, %v5572_v32  ;;  %v5282_v2 = vld [vmem:[#allocation3 + $0xd0] sm:$0x3]  ;;  %v5393_v26 = vrot.slane %v16190_v57, 1 }
 0x5cf   : > { %19167 = vst [vmem:[#allocation15_spill] sm:$0xff] %v16204_v58  ;;  %v11231_v41 = vpack.i.bf16 %v16204_v58, %v16190_v57  ;;  %v16214_v42 = vsel %vm626_vm4, %v5569_v18, %v5570_v49  ;;  %v16219_v3 = vpop.f32.mrb[153].mxu0  ;;  %v5281_v27 = vld [vmem:[#allocation3 + $0xc8] sm:$0xff]  ;;  %v16224_v47 = vsel %vm449_vm3, %v5394_v30, %v5396_v15  ;;  %v5280_v10 = vld [vmem:[#allocation3 + $0xc0] sm:$0xff]  ;;  %v5401_v19 = vrot.slane %v5282_v2, 1 }
 0x5d0   : > { %9444 = vmatprep.mubr.msk.f32.mxu1 %vm171_vm0, %v16214_v42  ;;  %19168 = vst [vmem:[#allocation6_spill] sm:$0xff] %v16224_v47  ;;  %v5577_v1 = vrot.slane %v5282_v2, 2  ;;  %11237 = vrot.lane.b32.xlu0 %v11236_v60, %s11588_s14  ;;  %v11246_v40 = vpack.i.bf16 %v16224_v47, %v5281_v27  ;;  %v5574_v29 = vrot.slane %v5280_v10, 2  ;;  %v5575_v22 = vrot.slane %v5281_v27, 2 }
 0x5d1   : > { %v5399_v21 = vrot.slane %v5281_v27, 1  ;;  %11232 = vrot.lane.b32.xlu1 %v11231_v41, %s11588_s14  ;;  %v16231_v24 = vsel %vm449_vm3, %v5393_v26, %v5394_v30  ;;  %v5398_v18 = vrot.slane %v5280_v10, 1 }
 0x5d2   : > { %19169 = vst [vmem:[#allocation32_spill] sm:$0xff] %v16231_v24  ;;  %9445 = vmatmul.mubr.msk.f32.gmra.mrb[170].mxu1 %vm171_vm0, %v16217_v33  ;;  %v16235_v49 = vpop.f32.mrb[154].mxu0  ;;  %v11241_v15 = vpack.i.bf16 %v16231_v24, %v5280_v10  ;;  %v16239_v32 = vsel %vm626_vm4, %v5574_v29, %v5575_v22  ;;  %v16244_v2 = vld [vmem:[#allocation3 + $0xe8] sm:$0x3]  ;;  %v16251_v30 = vsel %vm626_vm4, %v5575_v22, %v5577_v1 }
 0x5d3   : > { %v16242_v60 = vsel %vm449_vm3, %v5399_v21, %v5401_v19  ;;  %v16246_v41 = vpop.f32.mrb[155].mxu0  ;;  %9447 = vmatprep.mubr.msk.f32.mxu1 %vm171_vm0, %v16239_v32  ;;  %v5284_v27 = vld [vmem:[#allocation3 + $0xe0] sm:$0xff]  ;;  %v16253_v26 = vld [vmem:[#allocation3 + $0xd8] sm:$0xff]  ;;  %v16256_v10 = vsel %vm449_vm3, %v5398_v18, %v5399_v21  ;;  %v5582_v29 = vrot.slane %v16244_v2, 2 }
 0x5d4   : > { %19170 = vst [vmem:[#allocation17_spill] sm:$0xff] %v16242_v60  ;;  %19171 = vst [vmem:[#allocation39_spill] sm:$0xff] %v16253_v26  ;;  %11247 = vrot.lane.b32.xlu0 %v11246_v40, %s11588_s14  ;;  %v11256_v19 = vpack.i.bf16 %v16242_v60, %v5284_v27  ;;  %v5579_v47 = vrot.slane %v16253_v26, 2  ;;  %v5580_v24 = vrot.slane %v5284_v27, 2  ;;  %v11251_v1 = vpack.i.bf16 %v16256_v10, %v16253_v26 }
 0x5d5   : > { %19172 = vst [vmem:[#allocation12_spill] sm:$0xff] %v16256_v10  ;;  %11242 = vrot.lane.b32.xlu1 %v11241_v15, %s11588_s14  ;;  %v5403_v14 = vrot.slane %v16253_v26, 1 }
 0x5d6   : > { %9448 = vmatmul.mubr.msk.f32.gmra.mrb[172].mxu1 %vm171_vm0, %v16251_v30  ;;  %v16267_v22 = vpop.f32.mrb[156].mxu0  ;;  %v16270_v21 = vsel %vm626_vm4, %v5579_v47, %v5580_v24  ;;  %v16277_v40 = vsel %vm626_vm4, %v5580_v24, %v5582_v29 }
 0x5d7   : > { %v16272_v18 = vpop.f32.mrb[157].mxu0  ;;  %9450 = vmatprep.mubr.msk.f32.mxu1 %vm171_vm0, %v16270_v21 }
 0x5d8   : > { %11257 = vrot.lane.b32.xlu0 %v11256_v19, %s11588_s14 }
 0x5d9   : > { %11252 = vrot.lane.b32.xlu1 %v11251_v1, %s11588_s14 }
 0x5da   : > { %9451 = vmatmul.mubr.msk.f32.gmra.mrb[174].mxu1 %vm171_vm0, %v16277_v40  ;;  %v16283_v15 = vpop.f32.mrb[158].mxu0 }
 0x5db   : > { %v16285_v60 = vpop.f32.mrb[159].mxu0 }
 0x5de   : > { %v16287_v47 = vpop.f32.mrb[160].mxu0 }
 0x5df   : > { %v16289_v10 = vpop.f32.mrb[161].mxu0 }
 0x5e2   : > { %v16291_v34 = vpop.f32.mrb[162].mxu0 }
 0x5e3   : > { %v16293_v58 = vpop.f32.mrb[163].mxu0 }
 0x5ee   : > { %v4898_v24 = vpop.f32.mrb[132].mxu1 }
 0x5ef   : > { %v10233_v29 = vadd.f32 %v15818_v62, %v4898_v24  ;;  %v4900_v19 = vpop.f32.mrb[133].mxu1  ;;  %v5404_v24 = vrot.slane %v5284_v27, 1 }
 0x5f1   : > { %v5124_v1 = vadd.f32 %v10233_v29, %v16186_v39 }
 0x5f2   : > { %v4903_v13 = vpop.f32.mrb[134].mxu1 }
 0x5f3   : > { %v5210_v12 = vmax.f32 %v5124_v1, 0.0  ;;  %v10234_v28 = vadd.f32 %v15818_v62, %v4903_v13  ;;  %v4905_v43 = vpop.f32.mrb[135].mxu1 }
 0x5f5   : > { %5242 = vst.msk [vmem:[#allocation3 + $0xf1] sm:$0xff] %vm171_vm0, %v5210_v12  ;;  %v5129_v50 = vadd.f32 %v10234_v28, %v16174_v59  ;;  %v5406_v12 = vrot.slane %v16244_v2, 1 }
 0x5f6   : > { %v4908_v17 = vpop.f32.mrb[136].mxu1 }
 0x5f7   : > { %v5211_v23 = vmax.f32 %v5129_v50, 0.0  ;;  %v10235_v55 = vadd.f32 %v15818_v62, %v4908_v17  ;;  %v4910_v25 = vpop.f32.mrb[137].mxu1  ;;  %v16309_v50 = vsel %vm449_vm3, %v5403_v14, %v5404_v24  ;;  %v16320_v27 = vsel %vm449_vm3, %v5404_v24, %v5406_v12 }
 0x5f8   : > { %19174 = vst [vmem:[#allocation26_spill] sm:$0xff] %v16309_v50  ;;  %19176 = vst [vmem:[#allocation18_spill] sm:$0xff] %v16320_v27 }
 0x5f9   : > { %5243 = vst.msk [vmem:[#allocation3 + $0xf9] sm:$0xff] %vm171_vm0, %v5211_v23  ;;  %v5134_v39 = vadd.f32 %v10235_v55, %v16219_v3 }
 0x5fa   : > { %v4913_v29 = vpop.f32.mrb[138].mxu1 }
 0x5fb   : > { %v5212_v19 = vmax.f32 %v5134_v39, 0.0  ;;  %v10236_v43 = vadd.f32 %v15818_v62, %v4913_v29  ;;  %v4915_v13 = vpop.f32.mrb[139].mxu1 }
 0x5fc   : > { %v16306_v28 = vld [vmem:[#allocation3 + $0xf0] sm:$0xff] }
 0x5fd   : > { %19173 = vst [vmem:[#allocation8_spill] sm:$0xff] %v16306_v28  ;;  %5244 = vst.msk [vmem:[#allocation3 + $0x109] sm:$0xff] %vm171_vm0, %v5212_v19  ;;  %v5139_v25 = vadd.f32 %v10236_v43, %v16208_v37  ;;  %v11261_v23 = vpack.i.bf16 %v16309_v50, %v16306_v28  ;;  %v5584_v39 = vrot.slane %v16306_v28, 2  ;;  %v5408_v13 = vrot.slane %v16306_v28, 1 }
 0x5fe   : > { %v4918_v55 = vpop.f32.mrb[140].mxu1 }
 0x5ff   : > { %v5213_v17 = vmax.f32 %v5139_v25, 0.0  ;;  %v10237_v59 = vadd.f32 %v15818_v62, %v4918_v55  ;;  %v4920_v3 = vpop.f32.mrb[141].mxu1  ;;  %11262 = vrot.lane.b32.xlu1 %v11261_v23, %s11588_s14 }
 0x600   : > { %v16317_v2 = vld [vmem:[#allocation3 + $0xf8] sm:$0xff]  ;;  %v5288_v14 = vld [vmem:[#allocation3 + $0x100] sm:$0x3] }
 0x601   : > { %19175 = vst [vmem:[#allocation19_spill] sm:$0xff] %v16317_v2  ;;  %5245 = vst.msk [vmem:[#allocation3 + $0x111] sm:$0xff] %vm171_vm0, %v5213_v17  ;;  %v5144_v37 = vadd.f32 %v10237_v59, %v16246_v41  ;;  %v11266_v1 = vpack.i.bf16 %v16320_v27, %v16317_v2  ;;  %v5585_v29 = vrot.slane %v16317_v2, 2  ;;  %v5587_v43 = vrot.slane %v5288_v14, 2 }
 0x602   : > { %v4923_v19 = vpop.f32.mrb[142].mxu1  ;;  %v5409_v25 = vrot.slane %v16317_v2, 1  ;;  %v5411_v55 = vrot.slane %v5288_v14, 1 }
 0x603   : > { %v5214_v24 = vmax.f32 %v5144_v37, 0.0  ;;  %v10238_v12 = vadd.f32 %v15818_v62, %v4923_v19  ;;  %v4925_v23 = vpop.f32.mrb[143].mxu1  ;;  %11267 = vrot.lane.b32.xlu0 %v11266_v1, %s11588_s14  ;;  %v16333_v41 = vsel %vm626_vm4, %v5584_v39, %v5585_v29  ;;  %v16338_v17 = vsel %vm626_vm4, %v5585_v29, %v5587_v43 }
 0x604   : > { %9453 = vmatprep.mubr.msk.f32.mxu1 %vm171_vm0, %v16333_v41  ;;  %v16340_v59 = vld [vmem:[#allocation3 + $0x108] sm:$0xff]  ;;  %v16343_v3 = vsel %vm449_vm3, %v5408_v13, %v5409_v25  ;;  %v16356_v13 = vsel %vm449_vm3, %v5409_v25, %v5411_v55  ;;  %v16369_v55 = vld [vmem:[%s18564_s2 + $0x2] ss:$0 sm:$0xff] }
 0x605   : > { %19177 = vst [vmem:[#allocation10_spill] sm:$0xff] %v16340_v59  ;;  %19178 = vst [vmem:[#allocation21_spill] sm:$0xff] %v16343_v3  ;;  %v5149_v37 = vadd.f32 %v10238_v12, %v16235_v49  ;;  %9454 = vmatmul.mubr.msk.f32.gmra.mrb[176].mxu1 %vm171_vm0, %v16338_v17  ;;  %v11271_v1 = vpack.i.bf16 %v16343_v3, %v16340_v59  ;;  %v5589_v23 = vrot.slane %v16340_v59, 2 }
 0x606   : > { %5246 = vst.msk [vmem:[#allocation3 + $0x121] sm:$0xff] %vm171_vm0, %v5214_v24  ;;  %v4928_v39 = vpop.f32.mrb[144].mxu1  ;;  %19180 = vst [vmem:[#allocation24_spill] sm:$0xff] %v16356_v13 }
 0x607   : > { %v5215_v14 = vmax.f32 %v5149_v37, 0.0  ;;  %v10239_v29 = vadd.f32 %v15818_v62, %v4928_v39  ;;  %v4930_v19 = vpop.f32.mrb[145].mxu1  ;;  %11272 = vrot.lane.b32.xlu1 %v11271_v1, %s11588_s14  ;;  %v5413_v1 = vrot.slane %v16340_v59, 1 }
 0x608   : > { %v16353_v43 = vld [vmem:[#allocation3 + $0x110] sm:$0xff]  ;;  %v5291_v24 = vld [vmem:[#allocation3 + $0x118] sm:$0x3] }
 0x609   : > { %19179 = vst [vmem:[#allocation29_spill] sm:$0xff] %v16353_v43  ;;  %5247 = vst.msk [vmem:[#allocation3 + $0x129] sm:$0xff] %vm171_vm0, %v5215_v14  ;;  %v5154_v49 = vadd.f32 %v10239_v29, %v16272_v18  ;;  %v11276_v12 = vpack.i.bf16 %v16356_v13, %v16353_v43  ;;  %v5590_v62 = vrot.slane %v16353_v43, 2  ;;  %v5592_v39 = vrot.slane %v5291_v24, 2 }
 0x60a   : > { %v4933_v37 = vpop.f32.mrb[146].mxu1  ;;  %v5414_v19 = vrot.slane %v16353_v43, 1  ;;  %v5416_v13 = vrot.slane %v5291_v24, 1 }
 0x60b   : > { %v5216_v25 = vmax.f32 %v5154_v49, 0.0  ;;  %v10240_v18 = vadd.f32 %v16369_v55, %v4933_v37  ;;  %v4935_v14 = vpop.f32.mrb[147].mxu1  ;;  %11277 = vrot.lane.b32.xlu0 %v11276_v12, %s11588_s14  ;;  %v16374_v29 = vsel %vm626_vm4, %v5589_v23, %v5590_v62  ;;  %v16379_v3 = vsel %vm626_vm4, %v5590_v62, %v5592_v39 }
 0x60c   : > { %9456 = vmatprep.mubr.msk.f32.mxu1 %vm171_vm0, %v16374_v29  ;;  %v16384_v27 = vsel %vm449_vm3, %v5413_v1, %v5414_v19  ;;  %v16397_v1 = vsel %vm449_vm3, %v5414_v19, %v5416_v13 }
 0x60d   : > { %v16381_v49 = vld [vmem:[#allocation3 + $0x120] sm:$0xff]  ;;  %19182 = vst [vmem:[#allocation5_spill] sm:$0xff] %v16384_v27  ;;  %5248 = vst.msk [vmem:[#allocation3 + $0x139] sm:$0xff] %vm171_vm0, %v5216_v25  ;;  %v5159_v37 = vadd.f32 %v10240_v18, %v16267_v22  ;;  %9457 = vmatmul.mubr.msk.f32.gmra.mrb[178].mxu1 %vm171_vm0, %v16379_v3 }
 0x60e   : > { %19181 = vst [vmem:[#allocation20_spill] sm:$0xff] %v16381_v49  ;;  %v11281_v12 = vpack.i.bf16 %v16384_v27, %v16381_v49  ;;  %v4938_v23 = vpop.f32.mrb[148].mxu1  ;;  %19184 = vst [vmem:[#allocation30_spill] sm:$0xff] %v16397_v1 }
 0x60f   : > { %v5217_v24 = vmax.f32 %v5159_v37, 0.0  ;;  %v10241_v62 = vadd.f32 %v16369_v55, %v4938_v23  ;;  %v4940_v39 = vpop.f32.mrb[149].mxu1  ;;  %v5594_v37 = vrot.slane %v16381_v49, 2 }
 0x610   : > { %11282 = vrot.lane.b32.xlu1 %v11281_v12, %s11588_s14  ;;  %v16394_v14 = vld [vmem:[#allocation3 + $0x128] sm:$0xff]  ;;  %v5294_v25 = vld [vmem:[#allocation3 + $0x130] sm:$0x3]  ;;  %v5418_v12 = vrot.slane %v16381_v49, 1 }
 0x611   : > { %19183 = vst [vmem:[#allocation23_spill] sm:$0xff] %v16394_v14  ;;  %5249 = vst.msk [vmem:[#allocation3 + $0x141] sm:$0xff] %vm171_vm0, %v5217_v24  ;;  %v5164_v22 = vadd.f32 %v10241_v62, %v16285_v60  ;;  %v11286_v18 = vpack.i.bf16 %v16397_v1, %v16394_v14  ;;  %v5595_v23 = vrot.slane %v16394_v14, 2  ;;  %v5597_v27 = vrot.slane %v5294_v25, 2 }
 0x612   : > { %v4943_v39 = vpop.f32.mrb[150].mxu1  ;;  %v5419_v50 = vrot.slane %v16394_v14, 1  ;;  %v5421_v24 = vrot.slane %v5294_v25, 1 }
 0x613   : > { %v5218_v13 = vmax.f32 %v5164_v22, 0.0  ;;  %v10242_v19 = vadd.f32 %v16369_v55, %v4943_v39  ;;  %v4945_v43 = vpop.f32.mrb[151].mxu1  ;;  %11287 = vrot.lane.b32.xlu0 %v11286_v18, %s11588_s14  ;;  %v16410_v60 = vsel %vm626_vm4, %v5594_v37, %v5595_v23  ;;  %v16415_v62 = vsel %vm626_vm4, %v5595_v23, %v5597_v27 }
 0x614   : > { %9459 = vmatprep.mubr.msk.f32.mxu1 %vm171_vm0, %v16410_v60  ;;  %v16417_v1 = vld [vmem:[#allocation3 + $0x138] sm:$0xff]  ;;  %v16420_v14 = vsel %vm449_vm3, %v5418_v12, %v5419_v50  ;;  %v16433_v39 = vsel %vm449_vm3, %v5419_v50, %v5421_v24 }
 0x615   : > { %19185 = vst [vmem:[#allocation22_spill] sm:$0xff] %v16417_v1  ;;  %19186 = vst [vmem:[#allocation25_spill] sm:$0xff] %v16420_v14  ;;  %v5169_v43 = vadd.f32 %v10242_v19, %v16283_v15  ;;  %9460 = vmatmul.mubr.msk.f32.gmra.mrb[180].mxu1 %vm171_vm0, %v16415_v62  ;;  %v11291_v22 = vpack.i.bf16 %v16420_v14, %v16417_v1  ;;  %v5599_v19 = vrot.slane %v16417_v1, 2 }
 0x616   : > { %5250 = vst.msk [vmem:[#allocation3 + $0x151] sm:$0xff] %vm171_vm0, %v5218_v13  ;;  %v4948_v18 = vpop.f32.mrb[152].mxu1  ;;  %19188 = vst [vmem:[#allocation43_spill] sm:$0xff] %v16433_v39 }
 0x617   : > { %v5219_v25 = vmax.f32 %v5169_v43, 0.0  ;;  %v10243_v27 = vadd.f32 %v16369_v55, %v4948_v18  ;;  %v4950_v37 = vpop.f32.mrb[153].mxu1  ;;  %11292 = vrot.lane.b32.xlu1 %v11291_v22, %s11588_s14  ;;  %v5423_v22 = vrot.slane %v16417_v1, 1 }
 0x618   : > { %v16430_v23 = vld [vmem:[#allocation3 + $0x140] sm:$0xff]  ;;  %v5297_v12 = vld [vmem:[#allocation3 + $0x148] sm:$0x3] }
 0x619   : > { %19187 = vst [vmem:[#allocation7_spill] sm:$0xff] %v16430_v23  ;;  %5251 = vst.msk [vmem:[#allocation3 + $0x159] sm:$0xff] %vm171_vm0, %v5219_v25  ;;  %v5174_v15 = vadd.f32 %v10243_v27, %v16289_v10  ;;  %v11296_v13 = vpack.i.bf16 %v16433_v39, %v16430_v23  ;;  %v5600_v43 = vrot.slane %v16430_v23, 2  ;;  %v5602_v37 = vrot.slane %v5297_v12, 2 }
 0x61a   : > { %v4953_v18 = vpop.f32.mrb[154].mxu1  ;;  %v5424_v14 = vrot.slane %v16430_v23, 1  ;;  %v5426_v25 = vrot.slane %v5297_v12, 1 }
 0x61b   : > { %v5220_v50 = vmax.f32 %v5174_v15, 0.0  ;;  %v10244_v24 = vadd.f32 %v16369_v55, %v4953_v18  ;;  %v4955_v49 = vpop.f32.mrb[155].mxu1  ;;  %11297 = vrot.lane.b32.xlu0 %v11296_v13, %s11588_s14  ;;  %v16446_v10 = vsel %vm626_vm4, %v5599_v19, %v5600_v43  ;;  %v16451_v27 = vsel %vm626_vm4, %v5600_v43, %v5602_v37 }
 0x61c   : > { %9462 = vmatprep.mubr.msk.f32.mxu1 %vm171_vm0, %v16446_v10  ;;  %v16456_v23 = vsel %vm449_vm3, %v5423_v22, %v5424_v14  ;;  %v16469_v37 = vsel %vm449_vm3, %v5424_v14, %v5426_v25 }
 0x61d   : > { %v16453_v39 = vld [vmem:[#allocation3 + $0x150] sm:$0xff]  ;;  %19190 = vst [vmem:[#allocation14_spill] sm:$0xff] %v16456_v23  ;;  %5252 = vst.msk [vmem:[#allocation3 + $0x169] sm:$0xff] %vm171_vm0, %v5220_v50  ;;  %v5179_v49 = vadd.f32 %v10244_v24, %v16287_v47  ;;  %9463 = vmatmul.mubr.msk.f32.gmra.mrb[182].mxu1 %vm171_vm0, %v16451_v27 }
 0x61e   : > { %19189 = vst [vmem:[#allocation35_spill] sm:$0xff] %v16453_v39  ;;  %v11301_v15 = vpack.i.bf16 %v16456_v23, %v16453_v39  ;;  %v4958_v13 = vpop.f32.mrb[156].mxu1  ;;  %19192 = vst [vmem:[#allocation49_spill] sm:$0xff] %v16469_v37  ;;  %v5604_v24 = vrot.slane %v16453_v39, 2 }
 0x61f   : > { %v5221_v12 = vmax.f32 %v5179_v49, 0.0  ;;  %v10245_v19 = vadd.f32 %v16369_v55, %v4958_v13  ;;  %v4960_v43 = vpop.f32.mrb[157].mxu1 }
 0x620   : > { %11302 = vrot.lane.b32.xlu1 %v11301_v15, %s11588_s14  ;;  %v16466_v18 = vld [vmem:[#allocation3 + $0x158] sm:$0xff]  ;;  %v5300_v22 = vld [vmem:[#allocation3 + $0x160] sm:$0x3]  ;;  %v5428_v15 = vrot.slane %v16453_v39, 1  ;;  %v5539_v39 = vrot.slane %v16019_v7, 2 }
 0x621   : > { %19191 = vst [vmem:[#allocation28_spill] sm:$0xff] %v16466_v18  ;;  %5253 = vst.msk [vmem:[#allocation3 + $0x171] sm:$0xff] %vm171_vm0, %v5221_v12  ;;  %v5184_v47 = vadd.f32 %v10245_v19, %v16293_v58  ;;  %v11306_v50 = vpack.i.bf16 %v16469_v37, %v16466_v18  ;;  %v5605_v49 = vrot.slane %v16466_v18, 2  ;;  %v5607_v43 = vrot.slane %v5300_v22, 2 }
 0x622   : > { %v4963_v13 = vpop.f32.mrb[158].mxu1  ;;  %v5429_v23 = vrot.slane %v16466_v18, 1  ;;  %v5534_v12 = vrot.slane %v15987_v53, 2 }
 0x623   : > { %v5222_v14 = vmax.f32 %v5184_v47, 0.0  ;;  %v10246_v25 = vadd.f32 %v16369_v55, %v4963_v13  ;;  %v4965_v1 = vpop.f32.mrb[159].mxu1  ;;  %11307 = vrot.lane.b32.xlu0 %v11306_v50, %s11588_s14  ;;  %v16482_v58 = vsel %vm626_vm4, %v5604_v24, %v5605_v49  ;;  %v16488_v19 = vsel %vm626_vm4, %v5605_v49, %v5607_v43  ;;  %v8837_v13 = vld [vmem:[%s18563_s1 + $0x7c0] sm:$0xff]  ;;  %v8838_v43 = vld [vmem:[%s18563_s1 + $0x7c8] sm:$0xff] }
 0x624   : > { %9465 = vmatprep.mubr.msk.f32.mxu1 %vm171_vm0, %v16482_v58  ;;  %19193 = vst [vmem:[#allocation40_spill] sm:$0xff] %v16488_v19  ;;  %v16490_v37 = vld [vmem:[#allocation3 + $0x168] sm:$0xff]  ;;  %v16493_v47 = vsel %vm449_vm3, %v5428_v15, %v5429_v23  ;;  %v5535_v55 = vrot.slane %v15975_v52, 2  ;;  %v5537_v1 = vrot.slane %v15985_v45, 2  ;;  %v5431_v24 = vrot.slane %v5300_v22, 1 }
 0x625   : > { %19194 = vst [vmem:[#allocation16_spill] sm:$0xff] %v16493_v47  ;;  %5254 = vst.msk [vmem:[#allocation3 + $0x181] sm:$0xff] %vm171_vm0, %v5222_v14  ;;  %v5189_v50 = vadd.f32 %v10246_v25, %v16291_v34  ;;  %9466 = vmatmul.mubr.msk.f32.gmra.mrb[184].mxu1 %vm171_vm0, %v16488_v19  ;;  %v11311_v49 = vpack.i.bf16 %v16493_v47, %v16490_v37  ;;  %v9926_v18 = vpack.c.bf16 %v8838_v43, %v8837_v13 }
 0x626   : > { %v5536_v14 = vsel %vm626_vm4, %v5534_v12, %v5535_v55  ;;  %v5538_v47 = vsel %vm626_vm4, %v5535_v55, %v5537_v1  ;;  %v5609_v26 = vrot.slane %v16490_v37, 2  ;;  %v5540_v43 = vrot.slane %v16017_v38, 2 }
 0x627   : > { %v5223_v45 = vmax.f32 %v5189_v50, 0.0  ;;  %11312 = vrot.lane.b32.xlu1 %v11311_v49, %s11588_s14  ;;  %v16517_v50 = vsel %vm449_vm3, %v5429_v23, %v5431_v24 }
 0x628   : > { %v11178_v15 = vpop.permute.xlu0 %11177  ;;  %v11173_v34 = vpop.permute.xlu1 %11172  ;;  %v16510_v22 = vld [vmem:[#allocation3 + $0x170] sm:$0xff]  ;;  %v5303_v25 = vld [vmem:[#allocation3 + $0x178] sm:$0x3]  ;;  %19196 = vst [vmem:[#allocation27_spill] sm:$0xff] %v16517_v50 }
 0x629   : > { %19195 = vst [vmem:[#allocation31_spill] sm:$0xff] %v16510_v22  ;;  %5255 = vst.msk [vmem:[#allocation3 + $0x189] sm:$0xff] %vm171_vm0, %v5223_v45  ;;  %v11179_v59 = vunpack.i.l.bf16 %v11178_v15  ;;  %v11175_v2 = vunpack.i.h.bf16 %v11173_v34  ;;  %v11174_v28 = vunpack.i.l.bf16 %v11173_v34  ;;  %v11316_v49 = vpack.i.bf16 %v16517_v50, %v16510_v22 }
 0x62a   : > { %v5610_v12 = vrot.slane %v16510_v22, 2  ;;  %v5612_v19 = vrot.slane %v5303_v25, 2  ;;  %v5434_v13 = vrot.slane %v16510_v22, 1  ;;  %v11180_v45 = vunpack.i.h.bf16 %v11178_v15 }
 0x62b   : > { %v5940_v55 = vsel %vm171_vm0, %v5536_v14, %v11174_v28  ;;  %v5908_v1 = vsel %vm171_vm0, %v15987_v53, %v11175_v2  ;;  %11317 = vrot.lane.b32.xlu0 %v11316_v49, %s11588_s14  ;;  %v5433_v28 = vrot.slane %v16490_v37, 1  ;;  %v8839_v53 = vld [vmem:[%s18563_s1 + $0x7d0] sm:$0xff]  ;;  %v8840_v2 = vld [vmem:[%s18563_s1 + $0x7d8] sm:$0xff]  ;;  %v5941_v15 = vsel %vm171_vm0, %v5538_v47, %v11179_v59 }
 0x62c   : > { %v16529_v23 = vld [vmem:[#allocation3 + $0x180] sm:$0xff]  ;;  %v16532_v24 = vsel %vm626_vm4, %v5609_v26, %v5610_v12  ;;  %6217 = vmatprep.mubr.f32.mxu0 %v5940_v55  ;;  %v11183_v34 = vpop.permute.xlu1 %11182  ;;  %v16535_v50 = vsel %vm626_vm4, %v5610_v12, %v5612_v19  ;;  %v5436_v26 = vrot.slane %v5303_v25, 1  ;;  %v11188_v49 = vpop.permute.xlu0 %11187  ;;  %v9929_v55 = vpack.c.bf16 %v8840_v2, %v8839_v53  ;;  %v8841_v2 = vld [vmem:[%s18563_s1 + $0x7e0] sm:$0xff] }
 0x62d   : > { %9468 = vmatprep.mubr.msk.f32.mxu1 %vm171_vm0, %v16532_v24  ;;  %6218 = vmatmul.mubr.f32.vlgmr.msra.gmra.mrb[164].mxu0 %v5908_v1  ;;  %v11184_v14 = vunpack.i.l.bf16 %v11183_v34  ;;  %v16550_v19 = vsel %vm449_vm3, %v5433_v28, %v5434_v13  ;;  %v5909_v59 = vsel %vm171_vm0, %v15975_v52, %v11180_v45  ;;  %v5541_v47 = vsel %vm626_vm4, %v5539_v39, %v5540_v43  ;;  %v8842_v52 = vld [vmem:[%s18563_s1 + $0x7e8] sm:$0xff] }
 0x62e   : > { %9469 = vmatmul.mubr.msk.f32.gmra.mrb[186].mxu1 %vm171_vm0, %v16535_v50  ;;  %6222 = vmatprep.mubr.f32.mxu0 %v5941_v15  ;;  %v11321_v12 = vpack.i.bf16 %v16550_v19, %v16529_v23  ;;  %v11185_v25 = vunpack.i.h.bf16 %v11183_v34  ;;  %v16565_v28 = vsel %vm449_vm3, %v5434_v13, %v5436_v26  ;;  %v5542_v53 = vrot.slane %v16012_v20, 2 }
 0x62f   : > { %9927 = vmatpush1.bf16.msra.mxu0 %v9926_v18  ;;  %v5942_v18 = vsel %vm171_vm0, %v5541_v47, %v11184_v14  ;;  %v11189_v39 = vunpack.i.l.bf16 %v11188_v49  ;;  %v5782_v34 = vrot.slane %v16529_v23, 2  ;;  %v9932_v14 = vpack.c.bf16 %v8842_v52, %v8841_v2  ;;  %v8845_v52 = vld [vmem:[%s18563_s1 + $0x800] sm:$0xff] }
 0x630   : > { %v16554_v22 = vld [vmem:[#allocation3 + $0x188] sm:$0xff]  ;;  %v16556_v1 = vld [vmem:[#allocation3 + $0x190] sm:$0x3]  ;;  %9928 = vmatprep.subr.bf16.mxu0 %v18857_v54  ;;  %11322 = vrot.lane.b32.xlu1 %v11321_v12, %s11588_s14  ;;  %v11190_v12 = vunpack.i.h.bf16 %v11188_v49 }
 0x631   : > { %6223 = vmatmul.mubr.f32.gmra.mrb[166].mxu0 %v5909_v59  ;;  %v11326_v45 = vpack.i.bf16 %v16565_v28, %v16554_v22  ;;  %v5783_v13 = vrot.slane %v16554_v22, 2  ;;  %v11193_v26 = vpop.permute.xlu1 %11192  ;;  %v5785_v20 = vrot.slane %v16556_v1, 2  ;;  %v5910_v59 = vsel %vm171_vm0, %v16019_v7, %v11185_v25  ;;  %v8844_v49 = vld [vmem:[%s18563_s1 + $0x7f8] sm:$0xff]  ;;  %v11198_v25 = vpop.permute.xlu0 %11197 }
 0x632   : > { %6227 = vmatprep.mubr.f32.mxu0 %v5942_v18  ;;  %v5911_v2 = vsel %vm171_vm0, %v16017_v38, %v11190_v12  ;;  %v8848_v12 = vld [vmem:[%s18563_s1 + $0x818] sm:$0xff] }
 0x633   : > { %9930 = vmatpush1.bf16.msra.mxu0 %v9929_v55  ;;  %11327 = vrot.lane.b32.xlu0 %v11326_v45, %s11588_s14  ;;  %v16581_v15 = vsel %vm626_vm4, %v5782_v34, %v5783_v13  ;;  %v16589_v18 = vsel %vm626_vm4, %v5783_v13, %v5785_v20  ;;  %v5543_v55 = vsel %vm626_vm4, %v5540_v43, %v5542_v53  ;;  %v8843_v45 = vld [vmem:[%s18563_s1 + $0x7f0] sm:$0xff]  ;;  %v11195_v53 = vunpack.i.h.bf16 %v11193_v26 }
 0x634   : > { %5787 = vrot.lane.b32.xlu1 %v5541_v47, %s11588_s14  ;;  %9471 = vmatprep.mubr.msk.f32.mxu1 %vm171_vm0, %v16581_v15  ;;  %v11194_v47 = vunpack.i.l.bf16 %v11193_v26  ;;  %v5943_v7 = vsel %vm171_vm0, %v5543_v55, %v11189_v39  ;;  %v9935_v43 = vpack.c.bf16 %v8844_v49, %v8843_v45  ;;  %v8846_v39 = vld [vmem:[%s18563_s1 + $0x808] sm:$0xff]  ;;  %v11199_v34 = vunpack.i.l.bf16 %v11198_v25 }
 0x635   : > { %6228 = vmatmul.mubr.f32.gmra.mrb[168].mxu0 %v5910_v59  ;;  %9472 = vmatmul.mubr.msk.f32.gmra.mrb[188].mxu1 %vm171_vm0, %v16589_v18  ;;  %v9938_v38 = vpack.c.bf16 %v8846_v39, %v8845_v52  ;;  %v11200_v20 = vunpack.i.h.bf16 %v11198_v25  ;;  %v11208_v45 = vpop.permute.xlu0 %11207  ;;  %v8852_v39 = vld [vmem:[%s18563_s1 + $0x838] sm:$0xff] }
 0x636   : > { %6232 = vmatprep.mubr.f32.mxu0 %v5943_v7  ;;  %9931 = vmatprep.subr.bf16.mxu0 %v18857_v54  ;;  %v5944_v13 = vsel %vm171_vm0, %v16060_v46, %v11194_v47  ;;  %v11203_v26 = vpop.permute.xlu1 %11202  ;;  %v8850_v7 = vld [vmem:[%s18563_s1 + $0x828] sm:$0xff]  ;;  %v11209_v25 = vunpack.i.l.bf16 %v11208_v45 }
 0x637   : > { %5789 = vrot.lane.b32.xlu0 %v5543_v55, %s11588_s14  ;;  %9933 = vmatpush1.bf16.msra.mxu0 %v9932_v14  ;;  %v16622_v14 = vsel %vm171_vm0, %v16040_v11, %v11195_v53  ;;  %v11204_v59 = vunpack.i.l.bf16 %v11203_v26  ;;  %v5945_v55 = vsel %vm171_vm0, %v16063_v48, %v11199_v34  ;;  %v11205_v49 = vunpack.i.h.bf16 %v11203_v26 }
 0x638   : > { %5791 = vrot.lane.b32.xlu1 %v16060_v46, %s11588_s14  ;;  %9934 = vmatprep.subr.bf16.mxu0 %v18857_v54  ;;  %v8847_v46 = vld [vmem:[%s18563_s1 + $0x810] sm:$0xff]  ;;  %v16640_v47 = vsel %vm171_vm0, %v16038_v0, %v11200_v20 }
 0x639   : > { %6233 = vmatmul.mubr.f32.gmra.mrb[170].mxu0 %v5911_v2  ;;  %v9941_v11 = vpack.c.bf16 %v8848_v12, %v8847_v46  ;;  %v11210_v2 = vunpack.i.h.bf16 %v11208_v45  ;;  %v16658_v52 = vsel %vm171_vm0, %v16070_v61, %v11205_v49  ;;  %v8854_v46 = vld [vmem:[%s18563_s1 + $0x848] sm:$0xff]  ;;  %v8856_v49 = vld [vmem:[%s18563_s1 + $0x858] sm:$0xff] }
 0x63a   : > { %6237 = vmatprep.mubr.f32.mxu0 %v5944_v13  ;;  %v11213_v53 = vpop.permute.xlu1 %11212  ;;  %v5947_v13 = vsel %vm171_vm0, %v16105_v56, %v11209_v25  ;;  %v11218_v26 = vpop.permute.xlu0 %11217 }
 0x63b   : > { %5793 = vrot.lane.b32.xlu0 %v16063_v48, %s11588_s14  ;;  %9936 = vmatpush1.bf16.msra.mxu0 %v9935_v43  ;;  %v8849_v48 = vld [vmem:[%s18563_s1 + $0x820] sm:$0xff]  ;;  %v5946_v43 = vsel %vm171_vm0, %v16094_v4, %v11204_v59  ;;  %v11214_v34 = vunpack.i.l.bf16 %v11213_v53  ;;  %v16676_v20 = vsel %vm171_vm0, %v16065_v63, %v11210_v2  ;;  %v11219_v12 = vunpack.i.l.bf16 %v11218_v26 }
 0x63c   : > { %5795 = vrot.lane.b32.xlu1 %v16094_v4, %s11588_s14  ;;  %9937 = vmatprep.subr.bf16.mxu0 %v18857_v54  ;;  %v9944_v0 = vpack.c.bf16 %v8850_v7, %v8849_v48  ;;  %v8851_v4 = vld [vmem:[%s18563_s1 + $0x830] sm:$0xff]  ;;  %v11220_v45 = vunpack.i.h.bf16 %v11218_v26  ;;  %v8860_v26 = vld [vmem:[%s18563_s1 + $0x878] sm:$0xff] }
 0x63d   : > { %6238 = vmatmul.mubr.f32.gmra.mrb[172].mxu0 %v16622_v14  ;;  %v9947_v61 = vpack.c.bf16 %v8852_v39, %v8851_v4  ;;  %v5948_v59 = vsel %vm171_vm0, %v16132_v6, %v11214_v34  ;;  %v5949_v7 = vsel %vm171_vm0, %v16135_v36, %v11219_v12  ;;  %v11567_v12 = vld [vmem:[#allocation3 + $0x80] sm:$0xff] }
 0x63e   : > { %6242 = vmatprep.mubr.f32.mxu0 %v5945_v55  ;;  %v11228_v25 = vpop.permute.xlu0 %11227 }
 0x63f   : > { %5797 = vrot.lane.b32.xlu0 %v16105_v56, %s11588_s14  ;;  %9939 = vmatpush1.bf16.msra.mxu0 %v9938_v38  ;;  %v11215_v38 = vunpack.i.h.bf16 %v11213_v53  ;;  %v8853_v56 = vld [vmem:[%s18563_s1 + $0x840] sm:$0xff]  ;;  %v11223_v55 = vpop.permute.xlu1 %11222  ;;  %v16712_v53 = vsel %vm171_vm0, %v16096_v9, %v11220_v45  ;;  %v11229_v2 = vunpack.i.l.bf16 %v11228_v25  ;;  %v11230_v34 = vunpack.i.h.bf16 %v11228_v25  ;;  %v8864_v25 = vld [vmem:[%s18563_s1 + $0x898] sm:$0xff] }
 0x640   : > { %5799 = vrot.lane.b32.xlu1 %v16132_v6, %s11588_s14  ;;  %9940 = vmatprep.subr.bf16.mxu0 %v18857_v54  ;;  %v9950_v63 = vpack.c.bf16 %v8854_v46, %v8853_v56  ;;  %v8855_v6 = vld [vmem:[%s18563_s1 + $0x850] sm:$0xff]  ;;  %v11224_v48 = vunpack.i.l.bf16 %v11223_v55 }
 0x641   : > { %6243 = vmatmul.mubr.f32.gmra.mrb[174].mxu0 %v16640_v47 }
 0x642   : > { %6247 = vmatprep.mubr.f32.mxu0 %v5946_v43  ;;  %v11225_v43 = vunpack.i.h.bf16 %v11223_v55  ;;  %v5950_v4 = vsel %vm171_vm0, %v16154_v31, %v11224_v48  ;;  %v11238_v56 = vpop.permute.xlu0 %11237  ;;  %v8862_v55 = vld [vmem:[%s18563_s1 + $0x888] sm:$0xff] }
 0x643   : > { %5801 = vrot.lane.b32.xlu0 %v16135_v36, %s11588_s14  ;;  %9942 = vmatpush1.bf16.msra.mxu0 %v9941_v11  ;;  %v16694_v11 = vsel %vm171_vm0, %v16098_v5, %v11215_v38  ;;  %v9953_v5 = vpack.c.bf16 %v8856_v49, %v8855_v6  ;;  %v8857_v36 = vld [vmem:[%s18563_s1 + $0x860] sm:$0xff]  ;;  %v11233_v39 = vpop.permute.xlu1 %11232  ;;  %v5951_v38 = vsel %vm171_vm0, %v16167_v51, %v11229_v2  ;;  %v11240_v48 = vunpack.i.h.bf16 %v11238_v56  ;;  %v11568_v2 = vld [vmem:[#allocation3 + $0x98] sm:$0xff] }
 0x644   : > { %5803 = vrot.lane.b32.xlu1 %v16154_v31, %s11588_s14  ;;  %9943 = vmatprep.subr.bf16.mxu0 %v18857_v54  ;;  %v8859_v31 = vld [vmem:[%s18563_s1 + $0x870] sm:$0xff]  ;;  %v11235_v46 = vunpack.i.h.bf16 %v11233_v39 }
 0x645   : > { %6248 = vmatmul.mubr.f32.gmra.mrb[176].mxu0 %v16658_v52 }
 0x646   : > { %6252 = vmatprep.mubr.f32.mxu0 %v5947_v13  ;;  %v16730_v13 = vsel %vm171_vm0, %v16126_v8, %v11225_v43  ;;  %v9959_v8 = vpack.c.bf16 %v8860_v26, %v8859_v31  ;;  %v5746_v26 = vrot.slane %v16554_v22, 1  ;;  %v8867_v22 = vld [vmem:[%s18563_s1 + $0x8b0] sm:$0xff] }
 0x647   : > { %5805 = vrot.lane.b32.xlu0 %v16167_v51, %s11588_s14  ;;  %9945 = vmatpush1.bf16.msra.mxu0 %v9944_v0  ;;  %v8858_v0 = vld [vmem:[%s18563_s1 + $0x868] sm:$0xff]  ;;  %v8861_v51 = vld [vmem:[%s18563_s1 + $0x880] sm:$0xff]  ;;  %v11243_v6 = vpop.permute.xlu1 %11242 }
 0x648   : > { %5807 = vrot.lane.b32.xlu1 %v16181_v44, %s11588_s14  ;;  %9946 = vmatprep.subr.bf16.mxu0 %v18857_v54  ;;  %v9956_v9 = vpack.c.bf16 %v8858_v0, %v8857_v36  ;;  %v9962_v49 = vpack.c.bf16 %v8862_v55, %v8861_v51  ;;  %v11248_v36 = vpop.permute.xlu0 %11247  ;;  %v11245_v0 = vunpack.i.h.bf16 %v11243_v6 }
 0x649   : > { %6253 = vmatmul.mubr.f32.gmra.mrb[178].mxu0 %v16676_v20 }
 0x64a   : > { %6257 = vmatprep.mubr.f32.mxu0 %v5948_v59  ;;  %v16747_v59 = vsel %vm171_vm0, %v11567_v12, %v11230_v34  ;;  %v5745_v12 = vrot.slane %v16529_v23, 1 }
 0x64b   : > { %5809 = vrot.lane.b32.xlu0 %v16198_v35, %s11588_s14  ;;  %9948 = vmatpush1.bf16.msra.mxu0 %v9947_v61  ;;  %v11234_v61 = vunpack.i.l.bf16 %v11233_v39  ;;  %v8866_v39 = vld [vmem:[%s18563_s1 + $0x8a8] sm:$0xff]  ;;  %v11253_v31 = vpop.permute.xlu1 %11252 }
 0x64c   : > { %5811 = vrot.lane.b32.xlu1 %v16214_v42, %s11588_s14  ;;  %9949 = vmatprep.subr.bf16.mxu0 %v18857_v54  ;;  %v11254_v51 = vunpack.i.l.bf16 %v11253_v31 }
 0x64d   : > { %6258 = vmatmul.mubr.f32.gmra.mrb[180].mxu0 %v16694_v11  ;;  %v5952_v45 = vsel %vm171_vm0, %v16181_v44, %v11234_v61  ;;  %v8863_v44 = vld [vmem:[%s18563_s1 + $0x890] sm:$0xff]  ;;  %v16795_v61 = vld [vmem:[#allocation3 + $0x198] sm:$0xff] }
 0x64e   : > { %6262 = vmatprep.mubr.f32.mxu0 %v5949_v7  ;;  %v16765_v7 = vsel %vm171_vm0, %v16156_v16, %v11235_v46  ;;  %v9965_v16 = vpack.c.bf16 %v8864_v25, %v8863_v44  ;;  %v8868_v46 = vld [vmem:[%s18563_s1 + $0x8b8] sm:$0xff]  ;;  %v11255_v44 = vunpack.i.h.bf16 %v11253_v31 }
 0x64f   : > { %5813 = vrot.lane.b32.xlu0 %v16217_v33, %s11588_s14  ;;  %9951 = vmatpush1.bf16.msra.mxu0 %v9950_v63  ;;  %v11239_v63 = vunpack.i.l.bf16 %v11238_v56  ;;  %v16799_v56 = vld [vmem:[#allocation3 + $0x1a0] sm:$0xff]  ;;  %v9971_v23 = vpack.c.bf16 %v8868_v46, %v8867_v22 }
 0x650   : > { %5815 = vrot.lane.b32.xlu1 %v16239_v32, %s11588_s14  ;;  %9952 = vmatprep.subr.bf16.mxu0 %v18857_v54 }
 0x651   : > { %6263 = vmatmul.mubr.f32.gmra.mrb[182].mxu0 %v16712_v53  ;;  %v5953_v43 = vsel %vm171_vm0, %v16198_v35, %v11239_v63  ;;  %v8865_v35 = vld [vmem:[%s18563_s1 + $0x8a0] sm:$0xff]  ;;  %v11258_v63 = vpop.permute.xlu0 %11257 }
 0x652   : > { %6267 = vmatprep.mubr.f32.mxu0 %v5950_v4  ;;  %v16782_v4 = vsel %vm171_vm0, %v11568_v2, %v11240_v48  ;;  %v16824_v48 = vld [vmem:[#allocation3 + $0x1a8] sm:$0x3]  ;;  %v11259_v25 = vunpack.i.l.bf16 %v11258_v63  ;;  %v19197_v2 = vld [vmem:[#allocation40_spill] sm:$0xff] }
 0x653   : > { %5817 = vrot.lane.b32.xlu0 %v16251_v30, %s11588_s14  ;;  %9954 = vmatpush1.bf16.msra.mxu0 %v9953_v5  ;;  %v11244_v5 = vunpack.i.l.bf16 %v11243_v6  ;;  %v5886_v6 = vrot.slane %v16795_v61, 1 }
 0x654   : > { %5819 = vrot.lane.b32.xlu1 %v16270_v21, %s11588_s14  ;;  %9955 = vmatprep.subr.bf16.mxu0 %v18857_v54 }
 0x655   : > { %6268 = vmatmul.mubr.f32.gmra.mrb[184].mxu0 %v16730_v13  ;;  %v5954_v34 = vsel %vm171_vm0, %v16214_v42, %v11244_v5  ;;  %v16805_v42 = vsel %vm171_vm0, %v16190_v57, %v11245_v0  ;;  %v5748_v57 = vrot.slane %v16556_v1, 1  ;;  %v5956_v5 = vsel %vm171_vm0, %v16239_v32, %v11254_v51 }
 0x656   : > { %6272 = vmatprep.mubr.f32.mxu0 %v5951_v38  ;;  %v9968_v38 = vpack.c.bf16 %v8866_v39, %v8865_v35  ;;  %v11260_v35 = vunpack.i.h.bf16 %v11258_v63  ;;  %v11570_v39 = vld [vmem:[#allocation3 + $0xc0] sm:$0xff] }
 0x657   : > { %5821 = vrot.lane.b32.xlu0 %v16277_v40, %s11588_s14  ;;  %9957 = vmatpush1.bf16.msra.mxu0 %v9956_v9  ;;  %v11249_v9 = vunpack.i.l.bf16 %v11248_v36  ;;  %v16848_v32 = vsel %vm171_vm0, %v11570_v39, %v11255_v44  ;;  %v19200_v39 = vld [vmem:[#allocation19_spill] sm:$0xff] }
 0x658   : > { %5823 = vrot.lane.b32.xlu1 %v16333_v41, %s11588_s14  ;;  %9958 = vmatprep.subr.bf16.mxu0 %v18857_v54 }
 0x659   : > { %6273 = vmatmul.mubr.f32.gmra.mrb[186].mxu0 %v16747_v59  ;;  %v5955_v55 = vsel %vm171_vm0, %v16217_v33, %v11249_v9  ;;  %v11569_v33 = vld [vmem:[#allocation3 + $0xb0] sm:$0xff] }
 0x65a   : > { %6277 = vmatprep.mubr.f32.mxu0 %v5952_v45  ;;  %v16820_v45 = vsel %vm449_vm3, %v5745_v12, %v5746_v26 }
 0x65b   : > { %5825 = vrot.lane.b32.xlu0 %v16338_v17, %s11588_s14  ;;  %9960 = vmatpush1.bf16.msra.mxu0 %v9959_v8  ;;  %v11250_v8 = vunpack.i.h.bf16 %v11248_v36  ;;  %v16840_v36 = vsel %vm449_vm3, %v5746_v26, %v5748_v57 }
 0x65c   : > { %5827 = vrot.lane.b32.xlu1 %v16374_v29, %s11588_s14  ;;  %9961 = vmatprep.subr.bf16.mxu0 %v18857_v54  ;;  %v11336_v9 = vpack.i.bf16 %v16535_v50, %v16840_v36 }
 0x65d   : > { %6278 = vmatmul.mubr.f32.gmra.mrb[188].mxu0 %v16765_v7  ;;  %v16831_v1 = vsel %vm171_vm0, %v11569_v33, %v11250_v8  ;;  %v11571_v8 = vld [vmem:[#allocation3 + $0xc8] sm:$0xff] }
 0x65e   : > { %6282 = vmatprep.mubr.f32.mxu0 %v5953_v43  ;;  %v11331_v43 = vpack.i.bf16 %v16532_v24, %v16820_v45  ;;  %v16860_v22 = vsel %vm171_vm0, %v11571_v8, %v11260_v35 }
 0x65f   : > { %5829 = vrot.lane.b32.xlu0 %v16379_v3, %s11588_s14  ;;  %9963 = vmatpush1.bf16.msra.mxu0 %v9962_v49  ;;  %v5887_v49 = vrot.slane %v16799_v56, 1 }
 0x660   : > { %5831 = vrot.lane.b32.xlu1 %v16410_v60, %s11588_s14  ;;  %9964 = vmatprep.subr.bf16.mxu0 %v18857_v54 }
 0x661   : > { %6283 = vmatmul.mubr.f32.gmra.mrb[190].mxu0 %v16782_v4  ;;  %v5888_v0 = vsel %vm449_vm3, %v5886_v6, %v5887_v49 }
 0x662   : > { %6287 = vmatprep.mubr.f32.mxu0 %v5954_v34  ;;  %v5957_v34 = vsel %vm171_vm0, %v16251_v30, %v11259_v25  ;;  %v11341_v31 = vpack.i.bf16 %v16581_v15, %v5888_v0  ;;  %v19198_v15 = vld [vmem:[#allocation39_spill] sm:$0xff] }
 0x663   : > { %5833 = vrot.lane.b32.xlu0 %v16415_v62, %s11588_s14  ;;  %9966 = vmatpush1.bf16.msra.mxu0 %v9965_v16  ;;  %v5889_v16 = vrot.slane %v16824_v48, 1 }
 0x664   : > { %5835 = vrot.lane.b32.xlu1 %v16446_v10, %s11588_s14  ;;  %9967 = vmatprep.subr.bf16.mxu0 %v18857_v54 }
 0x665   : > { %6288 = vmatmul.mubr.f32.gmra.mrb[192].mxu0 %v16805_v42  ;;  %v5890_v26 = vsel %vm449_vm3, %v5887_v49, %v5889_v16  ;;  %v11572_v49 = vld [vmem:[#allocation3 + $0xe0] sm:$0xff] }
 0x666   : > { %6292 = vmatprep.mubr.f32.mxu0 %v5955_v55  ;;  %v11346_v46 = vpack.i.bf16 %v16589_v18, %v5890_v26 }
 0x667   : > { %5837 = vrot.lane.b32.xlu0 %v16451_v27, %s11588_s14  ;;  %9969 = vmatpush1.bf16.msra.mxu0 %v9968_v38 }
 0x668   : > { %5839 = vrot.lane.b32.xlu1 %v16482_v58, %s11588_s14  ;;  %9970 = vmatprep.subr.bf16.mxu0 %v18857_v54 }
 0x669   : > { %6293 = vmatmul.mubr.f32.gmra.mrb[194].mxu0 %v16831_v1 }
 0x66a   : > { %6297 = vmatprep.mubr.f32.mxu0 %v5956_v5  ;;  %v19199_v5 = vld [vmem:[#allocation8_spill] sm:$0xff] }
 0x66b   : > { %5841 = vrot.lane.b32.xlu0 %v19197_v2, %s11588_s14  ;;  %9972 = vmatpush1.bf16.msra.mxu0 %v9971_v23 }
 0x66c   : > { %11332 = vrot.lane.b32.xlu1 %v11331_v43, %s11588_s14 }
 0x66d   : > { %6298 = vmatmul.mubr.f32.gmra.mrb[196].mxu0 %v16848_v32 }
 0x66e   : > { %6302 = vmatprep.mubr.f32.mxu0 %v5957_v34 }
 0x66f   : > { %11337 = vrot.lane.b32.xlu0 %v11336_v9, %s11588_s14 }
 0x670   : > { %11342 = vrot.lane.b32.xlu1 %v11341_v31, %s11588_s14 }
 0x671   : > { %v11263_v38 = vpop.permute.xlu1 %11262  ;;  %6303 = vmatmul.mubr.f32.gmra.mrb[198].mxu0 %v16860_v22 }
 0x672   : > { %v11265_v12 = vunpack.i.h.bf16 %v11263_v38  ;;  %v11264_v51 = vunpack.i.l.bf16 %v11263_v38  ;;  %v19201_v38 = vld [vmem:[#allocation10_spill] sm:$0xff] }
 0x673   : > { %11347 = vrot.lane.b32.xlu0 %v11346_v46, %s11588_s14 }
 0x674   : > { %v5958_v30 = vsel %vm171_vm0, %v16270_v21, %v11264_v51  ;;  %v16869_v55 = vsel %vm171_vm0, %v19198_v15, %v11265_v12 }
 0x675   : > { %v11268_v57 = vpop.permute.xlu0 %11267  ;;  %6307 = vmatprep.mubr.f32.mxu0 %v5958_v30  ;;  %v19202_v30 = vld [vmem:[#allocation29_spill] sm:$0xff] }
 0x676   : > { %v11270_v63 = vunpack.i.h.bf16 %v11268_v57  ;;  %v11269_v6 = vunpack.i.l.bf16 %v11268_v57  ;;  %6308 = vmatmul.mubr.f32.gmra.mrb[200].mxu0 %v16869_v55 }
 0x678   : > { %v5959_v18 = vsel %vm171_vm0, %v16277_v40, %v11269_v6  ;;  %v16875_v23 = vsel %vm171_vm0, %v11572_v49, %v11270_v63 }
 0x679   : > { %v11273_v44 = vpop.permute.xlu1 %11272  ;;  %6312 = vmatprep.mubr.f32.mxu0 %v5959_v18  ;;  %v19203_v18 = vld [vmem:[#allocation20_spill] sm:$0xff] }
 0x67a   : > { %v11275_v21 = vunpack.i.h.bf16 %v11273_v44  ;;  %v11274_v33 = vunpack.i.l.bf16 %v11273_v44  ;;  %6313 = vmatmul.mubr.f32.gmra.mrb[202].mxu0 %v16875_v23 }
 0x67c   : > { %v5960_v25 = vsel %vm171_vm0, %v16333_v41, %v11274_v33  ;;  %v16882_v43 = vsel %vm171_vm0, %v19199_v5, %v11275_v21  ;;  %v19204_v5 = vld [vmem:[#allocation23_spill] sm:$0xff] }
 0x67d   : > { %v11278_v16 = vpop.permute.xlu0 %11277  ;;  %6317 = vmatprep.mubr.f32.mxu0 %v5960_v25 }
 0x67e   : > { %v11280_v40 = vunpack.i.h.bf16 %v11278_v16  ;;  %v11279_v0 = vunpack.i.l.bf16 %v11278_v16  ;;  %6318 = vmatmul.mubr.f32.gmra.mrb[204].mxu0 %v16882_v43 }
 0x680   : > { %v5961_v35 = vsel %vm171_vm0, %v16338_v17, %v11279_v0  ;;  %v16889_v9 = vsel %vm171_vm0, %v19200_v39, %v11280_v40 }
 0x681   : > { %6322 = vmatprep.mubr.f32.mxu0 %v5961_v35 }
 0x682   : > { %v11283_v34 = vpop.permute.xlu1 %11282  ;;  %6323 = vmatmul.mubr.f32.gmra.mrb[206].mxu0 %v16889_v9 }
 0x683   : > { %v11285_v41 = vunpack.i.h.bf16 %v11283_v34  ;;  %v11284_v31 = vunpack.i.l.bf16 %v11283_v34 }
 0x685   : > { %v5962_v26 = vsel %vm171_vm0, %v16374_v29, %v11284_v31  ;;  %v16896_v8 = vsel %vm171_vm0, %v19201_v38, %v11285_v41  ;;  %v11288_v46 = vpop.permute.xlu0 %11287  ;;  %v19205_v41 = vld [vmem:[#allocation22_spill] sm:$0xff] }
 0x686   : > { %6327 = vmatprep.mubr.f32.mxu0 %v5962_v26  ;;  %v11290_v17 = vunpack.i.h.bf16 %v11288_v46  ;;  %v11289_v12 = vunpack.i.l.bf16 %v11288_v46 }
 0x687   : > { %6328 = vmatmul.mubr.f32.gmra.mrb[208].mxu0 %v16896_v8 }
 0x688   : > { %v5963_v51 = vsel %vm171_vm0, %v16379_v3, %v11289_v12  ;;  %v16903_v15 = vsel %vm171_vm0, %v19202_v30, %v11290_v17  ;;  %v19206_v12 = vld [vmem:[#allocation7_spill] sm:$0xff] }
 0x689   : > { %v11293_v57 = vpop.permute.xlu1 %11292  ;;  %6332 = vmatprep.mubr.f32.mxu0 %v5963_v51 }
 0x68a   : > { %v11295_v29 = vunpack.i.h.bf16 %v11293_v57  ;;  %v11294_v63 = vunpack.i.l.bf16 %v11293_v57 }
 0x68b   : > { %6333 = vmatmul.mubr.f32.gmra.mrb[210].mxu0 %v16903_v15 }
 0x68c   : > { %v5964_v6 = vsel %vm171_vm0, %v16410_v60, %v11294_v63  ;;  %v16910_v49 = vsel %vm171_vm0, %v19203_v18, %v11295_v29  ;;  %v19207_v18 = vld [vmem:[#allocation35_spill] sm:$0xff] }
 0x68d   : > { %v11298_v44 = vpop.permute.xlu0 %11297  ;;  %6337 = vmatprep.mubr.f32.mxu0 %v5964_v6 }
 0x68e   : > { %v11300_v3 = vunpack.i.h.bf16 %v11298_v44  ;;  %v11299_v21 = vunpack.i.l.bf16 %v11298_v44 }
 0x68f   : > { %6338 = vmatmul.mubr.f32.gmra.mrb[212].mxu0 %v16910_v49 }
 0x690   : > { %v16913_v33 = vpop.f32.mrb[160].mxu1  ;;  %v5965_v25 = vsel %vm171_vm0, %v16415_v62, %v11299_v21  ;;  %v16919_v16 = vsel %vm171_vm0, %v19204_v5, %v11300_v3 }
 0x691   : > { %v16921_v60 = vpop.f32.mrb[161].mxu1  ;;  %6342 = vmatprep.mubr.f32.mxu0 %v5965_v25 }
 0x692   : > { %v11303_v40 = vpop.permute.xlu1 %11302 }
 0x693   : > { %v11305_v0 = vunpack.i.h.bf16 %v11303_v40  ;;  %v11304_v35 = vunpack.i.l.bf16 %v11303_v40  ;;  %6343 = vmatmul.mubr.f32.gmra.mrb[214].mxu0 %v16919_v16 }
 0x694   : > { %v16924_v39 = vpop.f32.mrb[162].mxu1 }
 0x695   : > { %v5966_v34 = vsel %vm171_vm0, %v16446_v10, %v11304_v35  ;;  %v16930_v62 = vsel %vm171_vm0, %v19205_v41, %v11305_v0  ;;  %v16932_v31 = vpop.f32.mrb[163].mxu1  ;;  %v11308_v26 = vpop.permute.xlu0 %11307 }
 0x696   : > { %6347 = vmatprep.mubr.f32.mxu0 %v5966_v34  ;;  %v11310_v38 = vunpack.i.h.bf16 %v11308_v26  ;;  %v11309_v46 = vunpack.i.l.bf16 %v11308_v26 }
 0x697   : > { %6348 = vmatmul.mubr.f32.gmra.mrb[216].mxu0 %v16930_v62 }
 0x698   : > { %v5967_v17 = vsel %vm171_vm0, %v16451_v27, %v11309_v46  ;;  %v16939_v51 = vsel %vm171_vm0, %v19206_v12, %v11310_v38  ;;  %v16941_v10 = vpop.f32.mrb[164].mxu1  ;;  %v5904_v12 = vrot.slane %v16799_v56, 2 }
 0x699   : > { %v11313_v30 = vpop.permute.xlu1 %11312  ;;  %6352 = vmatprep.mubr.f32.mxu0 %v5967_v17  ;;  %v16943_v57 = vpop.f32.mrb[165].mxu1  ;;  %v5903_v17 = vrot.slane %v16795_v61, 2 }
 0x69a   : > { %v11315_v29 = vunpack.i.h.bf16 %v11313_v30  ;;  %v11314_v63 = vunpack.i.l.bf16 %v11313_v30 }
 0x69b   : > { %6353 = vmatmul.mubr.f32.gmra.mrb[218].mxu0 %v16939_v51 }
 0x69c   : > { %v5968_v6 = vsel %vm171_vm0, %v16482_v58, %v11314_v63  ;;  %v16950_v27 = vsel %vm171_vm0, %v19207_v18, %v11315_v29  ;;  %v19208_v58 = vld [vmem:[#allocation28_spill] sm:$0xff] }
 0x69d   : > { %v16952_v44 = vpop.f32.mrb[166].mxu1  ;;  %6357 = vmatprep.mubr.f32.mxu0 %v5968_v6  ;;  %v11318_v21 = vpop.permute.xlu0 %11317 }
 0x69e   : > { %v16954_v3 = vpop.f32.mrb[167].mxu1  ;;  %v11320_v25 = vunpack.i.h.bf16 %v11318_v21  ;;  %v11319_v5 = vunpack.i.l.bf16 %v11318_v21  ;;  %v5905_v21 = vsel %vm626_vm4, %v5903_v17, %v5904_v12 }
 0x69f   : > { %6358 = vmatmul.mubr.f32.gmra.mrb[220].mxu0 %v16950_v27  ;;  %9474 = vmatprep.mubr.msk.f32.mxu1 %vm171_vm0, %v5905_v21 }
 0x6a0   : > { %v5969_v0 = vsel %vm171_vm0, %v19197_v2, %v11319_v5  ;;  %v16963_v35 = vsel %vm171_vm0, %v19208_v58, %v11320_v25  ;;  %v5906_v25 = vrot.slane %v16824_v48, 2 }
 0x6a1   : > { %v16957_v40 = vpop.f32.mrb[168].mxu1  ;;  %6362 = vmatprep.mubr.f32.mxu0 %v5969_v0  ;;  %v19209_v0 = vld [vmem:[#allocation31_spill] sm:$0xff] }
 0x6a2   : > { %v16965_v34 = vpop.f32.mrb[169].mxu1  ;;  %v11323_v41 = vpop.permute.xlu1 %11322 }
 0x6a3   : > { %6363 = vmatmul.mubr.f32.gmra.mrb[222].mxu0 %v16963_v35  ;;  %v11325_v26 = vunpack.i.h.bf16 %v11323_v41  ;;  %v11324_v38 = vunpack.i.l.bf16 %v11323_v41  ;;  %v5907_v41 = vsel %vm626_vm4, %v5904_v12, %v5906_v25  ;;  %v19213_v25 = vld [vmem:[#allocation48_spill] sm:$0xff] }
 0x6a4   : > { %9475 = vmatmul.mubr.msk.f32.gmra.mrb[190].mxu1 %vm171_vm0, %v5907_v41 }
 0x6a5   : > { %v16968_v46 = vpop.f32.mrb[170].mxu1  ;;  %v11328_v2 = vpop.permute.xlu0 %11327  ;;  %v5970_v29 = vsel %vm171_vm0, %v16532_v24, %v11324_v38  ;;  %v16978_v63 = vsel %vm171_vm0, %v16490_v37, %v11325_v26 }
 0x6a6   : > { %v16972_v30 = vpop.f32.mrb[171].mxu1  ;;  %v11330_v6 = vunpack.i.h.bf16 %v11328_v2  ;;  %v11329_v18 = vunpack.i.l.bf16 %v11328_v2  ;;  %6367 = vmatprep.mubr.f32.mxu0 %v5970_v29  ;;  %v5788_v26 = vpop.permute.xlu1 %5787  ;;  %v19211_v29 = vld [vmem:[#allocation42_spill] sm:$0xff] }
 0x6a7   : > { %6368 = vmatmul.mubr.f32.gmra.mrb[224].mxu0 %v16978_v63 }
 0x6a8   : > { %v5971_v24 = vsel %vm171_vm0, %v16535_v50, %v11329_v18  ;;  %v16990_v37 = vsel %vm171_vm0, %v19209_v0, %v11330_v6  ;;  %v19210_v50 = vld [vmem:[#allocation9_spill] sm:$0xff]  ;;  %v19212_v18 = vld [vmem:[#allocation46_spill] sm:$0xff] }
 0x6a9   : > { %v16984_v5 = vpop.f32.mrb[172].mxu1  ;;  %6372 = vmatprep.mubr.f32.mxu0 %v5971_v24  ;;  %v5972_v17 = vsel %vm171_vm0, %v19210_v50, %v5788_v26  ;;  %v5790_v2 = vpop.permute.xlu0 %5789 }
 0x6aa   : > { %v16992_v58 = vpop.f32.mrb[173].mxu1  ;;  %v5973_v12 = vsel %vm171_vm0, %v19211_v29, %v5790_v2  ;;  %v5792_v6 = vpop.permute.xlu1 %5791 }
 0x6ab   : > { %6373 = vmatmul.mubr.f32.gmra.mrb[226].mxu0 %v16990_v37 }
 0x6ac   : > { %6442 = vmatprep.mubr.f32.mxu0 %v16622_v14  ;;  %v5974_v14 = vsel %vm171_vm0, %v19212_v18, %v5792_v6 }
 0x6ad   : > { %v16998_v48 = vpop.f32.mrb[174].mxu1  ;;  %v5794_v21 = vpop.permute.xlu0 %5793 }
 0x6ae   : > { %v17000_v38 = vpop.f32.mrb[175].mxu1  ;;  %v5975_v24 = vsel %vm171_vm0, %v19213_v25, %v5794_v21  ;;  %v5796_v0 = vpop.permute.xlu1 %5795 }
 0x6af   : > { %6443 = vmatmul.mubr.f32.vlgmr.msra.gmra.mrb[164].mxu0 %v5972_v17 }
 0x6b0   : > { %6447 = vmatprep.mubr.f32.mxu0 %v16640_v47  ;;  %v19214_v47 = vld [vmem:[#allocation11_spill] sm:$0xff] }
 0x6b1   : > { %v5976_v41 = vsel %vm171_vm0, %v19214_v47, %v5796_v0  ;;  %v5798_v26 = vpop.permute.xlu0 %5797 }
 0x6b2   : > { %v5800_v17 = vpop.permute.xlu1 %5799 }
 0x6b3   : > { %6448 = vmatmul.mubr.f32.gmra.mrb[166].mxu0 %v5973_v12 }
 0x6b4   : > { %6452 = vmatprep.mubr.f32.mxu0 %v16658_v52  ;;  %v19215_v52 = vld [vmem:[#allocation44_spill] sm:$0xff] }
 0x6b5   : > { %v5977_v50 = vsel %vm171_vm0, %v19215_v52, %v5798_v26  ;;  %v5802_v29 = vpop.permute.xlu0 %5801  ;;  %v19222_v52 = vld [vmem:[#allocation32_spill] sm:$0xff] }
 0x6b6   : > { %v5804_v6 = vpop.permute.xlu1 %5803 }
 0x6b7   : > { %6453 = vmatmul.mubr.f32.gmra.mrb[168].mxu0 %v5974_v14 }
 0x6b8   : > { %6457 = vmatprep.mubr.f32.mxu0 %v16676_v20  ;;  %v19216_v20 = vld [vmem:[#allocation37_spill] sm:$0xff] }
 0x6b9   : > { %v5978_v2 = vsel %vm171_vm0, %v19216_v20, %v5800_v17  ;;  %v5806_v14 = vpop.permute.xlu0 %5805 }
 0x6ba   : > { %v5808_v25 = vpop.permute.xlu1 %5807 }
 0x6bb   : > { %6458 = vmatmul.mubr.f32.gmra.mrb[170].mxu0 %v5975_v24 }
 0x6bc   : > { %6462 = vmatprep.mubr.f32.mxu0 %v16694_v11  ;;  %v19217_v11 = vld [vmem:[#allocation13_spill] sm:$0xff] }
 0x6bd   : > { %v5979_v12 = vsel %vm171_vm0, %v19217_v11, %v5802_v29  ;;  %v5810_v0 = vpop.permute.xlu0 %5809  ;;  %v19224_v11 = vld [vmem:[#allocation12_spill] sm:$0xff] }
 0x6be   : > { %v5812_v26 = vpop.permute.xlu1 %5811 }
 0x6bf   : > { %6463 = vmatmul.mubr.f32.gmra.mrb[172].mxu0 %v5976_v41  ;;  %v19221_v41 = vld [vmem:[#allocation38_spill] sm:$0xff] }
 0x6c0   : > { %6467 = vmatprep.mubr.f32.mxu0 %v16712_v53  ;;  %v19218_v53 = vld [vmem:[#allocation41_spill] sm:$0xff] }
 0x6c1   : > { %v5980_v18 = vsel %vm171_vm0, %v19218_v53, %v5804_v6 }
 0x6c2   : > { %v5816_v29 = vpop.permute.xlu1 %5815 }
 0x6c3   : > { %6468 = vmatmul.mubr.f32.gmra.mrb[174].mxu0 %v5977_v50  ;;  %v5814_v50 = vpop.permute.xlu0 %5813 }
 0x6c4   : > { %6472 = vmatprep.mubr.f32.mxu0 %v16730_v13  ;;  %v19219_v13 = vld [vmem:[#allocation4_spill] sm:$0xff] }
 0x6c5   : > { %v5981_v21 = vsel %vm171_vm0, %v19219_v13, %v5806_v14  ;;  %v19226_v13 = vld [vmem:[#allocation26_spill] sm:$0xff] }
 0x6c6   : > { %v5820_v14 = vpop.permute.xlu1 %5819 }
 0x6c7   : > { %6473 = vmatmul.mubr.f32.gmra.mrb[176].mxu0 %v5978_v2 }
 0x6c8   : > { %6477 = vmatprep.mubr.f32.mxu0 %v16747_v59  ;;  %v19220_v59 = vld [vmem:[#allocation15_spill] sm:$0xff] }
 0x6c9   : > { %v5982_v24 = vsel %vm171_vm0, %v19220_v59, %v5808_v25 }
 0x6cb   : > { %6478 = vmatmul.mubr.f32.gmra.mrb[178].mxu0 %v5979_v12  ;;  %v5818_v12 = vpop.permute.xlu0 %5817 }
 0x6cc   : > { %6482 = vmatprep.mubr.f32.mxu0 %v16765_v7 }
 0x6cf   : > { %6483 = vmatmul.mubr.f32.gmra.mrb[180].mxu0 %v5980_v18 }
 0x6d0   : > { %6487 = vmatprep.mubr.f32.mxu0 %v16782_v4  ;;  %v5983_v4 = vsel %vm171_vm0, %v19221_v41, %v5810_v0  ;;  %v5824_v0 = vpop.permute.xlu1 %5823  ;;  %v19228_v41 = vld [vmem:[#allocation21_spill] sm:$0xff] }
 0x6d3   : > { %6488 = vmatmul.mubr.f32.gmra.mrb[182].mxu0 %v5981_v21  ;;  %v5822_v21 = vpop.permute.xlu0 %5821 }
 0x6d4   : > { %6492 = vmatprep.mubr.f32.mxu0 %v16805_v42  ;;  %v5984_v42 = vsel %vm171_vm0, %v19222_v52, %v5812_v26 }
 0x6d7   : > { %6493 = vmatmul.mubr.f32.gmra.mrb[184].mxu0 %v5982_v24 }
 0x6d8   : > { %v17034_v7 = vpop.f32.mrb[176].mxu1  ;;  %6497 = vmatprep.mubr.f32.mxu0 %v16831_v1  ;;  %v19223_v1 = vld [vmem:[#allocation6_spill] sm:$0xff] }
 0x6d9   : > { %v17037_v47 = vpop.f32.mrb[177].mxu1  ;;  %v5985_v2 = vsel %vm171_vm0, %v19223_v1, %v5814_v50  ;;  %v5828_v50 = vpop.permute.xlu1 %5827  ;;  %v19230_v1 = vld [vmem:[#allocation5_spill] sm:$0xff] }
 0x6db   : > { %6498 = vmatmul.mubr.f32.gmra.mrb[186].mxu0 %v5983_v4  ;;  %v5826_v4 = vpop.permute.xlu0 %5825 }
 0x6dc   : > { %6502 = vmatprep.mubr.f32.mxu0 %v16848_v32  ;;  %v5986_v32 = vsel %vm171_vm0, %v19224_v11, %v5816_v29 }
 0x6df   : > { %6503 = vmatmul.mubr.f32.gmra.mrb[188].mxu0 %v5984_v42 }
 0x6e0   : > { %v17044_v17 = vpop.f32.mrb[178].mxu1  ;;  %6507 = vmatprep.mubr.f32.mxu0 %v16860_v22  ;;  %v19225_v22 = vld [vmem:[#allocation17_spill] sm:$0xff] }
 0x6e1   : > { %v17047_v20 = vpop.f32.mrb[179].mxu1  ;;  %v5987_v18 = vsel %vm171_vm0, %v19225_v22, %v5818_v12 }
 0x6e3   : > { %6508 = vmatmul.mubr.f32.gmra.mrb[190].mxu0 %v5985_v2  ;;  %v5830_v2 = vpop.permute.xlu0 %5829 }
 0x6e4   : > { %6512 = vmatprep.mubr.f32.mxu0 %v16869_v55  ;;  %v5988_v55 = vsel %vm171_vm0, %v19226_v13, %v5820_v14 }
 0x6e7   : > { %6513 = vmatmul.mubr.f32.gmra.mrb[192].mxu0 %v5986_v32  ;;  %v19231_v32 = vld [vmem:[#allocation30_spill] sm:$0xff]  ;;  %v5834_v22 = vpop.permute.xlu0 %5833 }
 0x6e8   : > { %v17054_v6 = vpop.f32.mrb[180].mxu1  ;;  %6517 = vmatprep.mubr.f32.mxu0 %v16875_v23  ;;  %v19227_v23 = vld [vmem:[#allocation18_spill] sm:$0xff]  ;;  %v5993_v12 = vsel %vm171_vm0, %v19231_v32, %v5830_v2 }
 0x6e9   : > { %v17057_v53 = vpop.f32.mrb[181].mxu1  ;;  %v5989_v24 = vsel %vm171_vm0, %v19227_v23, %v5822_v21 }
 0x6eb   : > { %6518 = vmatmul.mubr.f32.gmra.mrb[194].mxu0 %v5987_v18  ;;  %v5838_v23 = vpop.permute.xlu0 %5837 }
 0x6ec   : > { %6522 = vmatprep.mubr.f32.mxu0 %v16882_v43  ;;  %v5990_v43 = vsel %vm171_vm0, %v19228_v41, %v5824_v0 }
 0x6ef   : > { %6523 = vmatmul.mubr.f32.gmra.mrb[196].mxu0 %v5988_v55  ;;  %v19233_v55 = vld [vmem:[#allocation43_spill] sm:$0xff]  ;;  %v5842_v41 = vpop.permute.xlu0 %5841 }
 0x6f0   : > { %v17064_v25 = vpop.f32.mrb[182].mxu1  ;;  %6527 = vmatprep.mubr.f32.mxu0 %v16889_v9  ;;  %v19229_v9 = vld [vmem:[#allocation24_spill] sm:$0xff]  ;;  %v5995_v21 = vsel %vm171_vm0, %v19233_v55, %v5834_v22 }
 0x6f1   : > { %v17067_v59 = vpop.f32.mrb[183].mxu1  ;;  %v5991_v42 = vsel %vm171_vm0, %v19229_v9, %v5826_v4  ;;  %v8975_v9 = vld [vmem:[%s18563_s1 + $0xb00] sm:$0xff] }
 0x6f2   : > { %v8979_v55 = vld [vmem:[%s18563_s1 + $0xb20] sm:$0xff] }
 0x6f3   : > { %6528 = vmatmul.mubr.f32.gmra.mrb[198].mxu0 %v5989_v24  ;;  %v19234_v24 = vld [vmem:[#allocation14_spill] sm:$0xff] }
 0x6f4   : > { %6532 = vmatprep.mubr.f32.mxu0 %v16896_v8  ;;  %v5992_v8 = vsel %vm171_vm0, %v19230_v1, %v5828_v50 }
 0x6f7   : > { %6533 = vmatmul.mubr.f32.gmra.mrb[200].mxu0 %v5990_v43 }
 0x6f8   : > { %v17074_v26 = vpop.f32.mrb[184].mxu1  ;;  %6537 = vmatprep.mubr.f32.mxu0 %v16903_v15  ;;  %v5832_v15 = vpop.permute.xlu1 %5831 }
 0x6f9   : > { %v17077_v52 = vpop.f32.mrb[185].mxu1 }
 0x6fb   : > { %6538 = vmatmul.mubr.f32.gmra.mrb[202].mxu0 %v5991_v42  ;;  %v19236_v42 = vld [vmem:[#allocation16_spill] sm:$0xff] }
 0x6fc   : > { %6542 = vmatprep.mubr.f32.mxu0 %v16910_v49  ;;  %v19232_v49 = vld [vmem:[#allocation25_spill] sm:$0xff]  ;;  %v5836_v14 = vpop.permute.xlu1 %5835 }
 0x6fd   : > { %v5994_v18 = vsel %vm171_vm0, %v19232_v49, %v5832_v15  ;;  %v5996_v0 = vsel %vm171_vm0, %v19234_v24, %v5836_v14  ;;  %v19237_v15 = vld [vmem:[#allocation27_spill] sm:$0xff]  ;;  %v11573_v49 = vld [vmem:[#allocation3 + $0x180] sm:$0xff] }
 0x6fe   : > { %v5999_v32 = vsel %vm171_vm0, %v19237_v15, %v5842_v41  ;;  %v11574_v41 = vld [vmem:[#allocation3 + $0x188] sm:$0xff] }
 0x6ff   : > { %6543 = vmatmul.mubr.f32.gmra.mrb[204].mxu0 %v5992_v8  ;;  %v11338_v8 = vpop.permute.xlu0 %11337 }
 0x700   : > { %6547 = vmatprep.mubr.f32.mxu0 %v16919_v16  ;;  %v11339_v22 = vunpack.i.l.bf16 %v11338_v8 }
 0x701   : > { %v17085_v29 = vpop.f32.mrb[186].mxu1 }
 0x702   : > { %v17087_v11 = vpop.f32.mrb[187].mxu1 }
 0x703   : > { %6548 = vmatmul.mubr.f32.gmra.mrb[206].mxu0 %v5993_v12  ;;  %v8978_v12 = vld [vmem:[%s18563_s1 + $0xb18] sm:$0xff] }
 0x704   : > { %6552 = vmatprep.mubr.f32.mxu0 %v16930_v62  ;;  %v5840_v62 = vpop.permute.xlu1 %5839 }
 0x705   : > { %v5998_v50 = vsel %vm171_vm0, %v19236_v42, %v5840_v62 }
 0x707   : > { %6553 = vmatmul.mubr.f32.gmra.mrb[208].mxu0 %v5994_v18 }
 0x708   : > { %6557 = vmatprep.mubr.f32.mxu0 %v16939_v51  ;;  %v17095_v16 = vpop.f32.mrb[188].mxu1  ;;  %v19235_v51 = vld [vmem:[#allocation49_spill] sm:$0xff]  ;;  %v11333_v4 = vpop.permute.xlu1 %11332 }
 0x709   : > { %v17097_v13 = vpop.f32.mrb[189].mxu1  ;;  %v5997_v43 = vsel %vm171_vm0, %v19235_v51, %v5838_v23  ;;  %v11334_v1 = vunpack.i.l.bf16 %v11333_v4  ;;  %v11335_v2 = vunpack.i.h.bf16 %v11333_v4  ;;  %v11340_v23 = vunpack.i.h.bf16 %v11338_v8  ;;  %v8981_v4 = vld [vmem:[%s18563_s1 + $0xb30] sm:$0xff] }
 0x70a   : > { %v6005_v51 = vsel %vm171_vm0, %v11574_v41, %v11339_v22  ;;  %v8924_v41 = vld [vmem:[%s18563_s1 + $0x968] sm:$0xff] }
 0x70b   : > { %6558 = vmatmul.mubr.f32.gmra.mrb[210].mxu0 %v5995_v21  ;;  %v6004_v18 = vsel %vm171_vm0, %v11573_v49, %v11334_v1  ;;  %v8980_v21 = vld [vmem:[%s18563_s1 + $0xb28] sm:$0xff]  ;;  %v6000_v62 = vsel %vm171_vm0, %v16550_v19, %v11335_v2  ;;  %v6001_v19 = vsel %vm171_vm0, %v16565_v28, %v11340_v23  ;;  %v8917_v49 = vld [vmem:[%s18563_s1 + $0x930] sm:$0xff] }
 0x70c   : > { %6562 = vmatprep.mubr.f32.mxu0 %v16950_v27  ;;  %v8976_v27 = vld [vmem:[%s18563_s1 + $0xb08] sm:$0xff]  ;;  %v11343_v14 = vpop.permute.xlu1 %11342  ;;  %v10093_v24 = vpack.c.bf16 %v8980_v21, %v8979_v55  ;;  %v8921_v23 = vld [vmem:[%s18563_s1 + $0x950] sm:$0xff] }
 0x70d   : > { %v8912_v2 = vld [vmem:[%s18563_s1 + $0x908] sm:$0xff] }
 0x70e   : > { %v8920_v55 = vld [vmem:[%s18563_s1 + $0x948] sm:$0xff] }
 0x70f   : > { %6563 = vmatmul.mubr.f32.gmra.mrb[212].mxu0 %v5996_v0  ;;  %v11344_v0 = vunpack.i.l.bf16 %v11343_v14 }
 0x710   : > { %6567 = vmatprep.mubr.f32.mxu0 %v16963_v35  ;;  %v10085_v35 = vpack.c.bf16 %v8976_v27, %v8975_v9  ;;  %v8982_v9 = vld [vmem:[%s18563_s1 + $0xb38] sm:$0xff]  ;;  %v11345_v27 = vunpack.i.h.bf16 %v11343_v14  ;;  %v8919_v14 = vld [vmem:[%s18563_s1 + $0x940] sm:$0xff] }
 0x711   : > { %v10097_v42 = vpack.c.bf16 %v8982_v9, %v8981_v4  ;;  %v10002_v21 = vpack.c.bf16 %v8920_v55, %v8919_v14  ;;  %v8926_v4 = vld [vmem:[%s18563_s1 + $0x978] sm:$0xff]  ;;  %v8937_v55 = vld [vmem:[%s18563_s1 + $0x9d0] sm:$0xff] }
 0x712   : > { %10086 = vmatprep.subr.bf16.mxu0 %v10085_v35  ;;  %v6002_v8 = vsel %vm171_vm0, %v16820_v45, %v11345_v27  ;;  %v8914_v45 = vld [vmem:[%s18563_s1 + $0x918] sm:$0xff]  ;;  %v8927_v27 = vld [vmem:[%s18563_s1 + $0x980] sm:$0xff] }
 0x713   : > { %6568 = vmatmul.mubr.f32.gmra.mrb[214].mxu0 %v5997_v43  ;;  %v11348_v43 = vpop.permute.xlu0 %11347 }
 0x714   : > { %6572 = vmatprep.mubr.f32.mxu0 %v16978_v63  ;;  %10088 = vmatpush3.bf16.msra.mxu0 %v10085_v35  ;;  %v8977_v63 = vld [vmem:[%s18563_s1 + $0xb10] sm:$0xff]  ;;  %v6006_v35 = vsel %vm171_vm0, %v16795_v61, %v11344_v0  ;;  %v11350_v1 = vunpack.i.h.bf16 %v11348_v43  ;;  %v8911_v61 = vld [vmem:[%s18563_s1 + $0x900] sm:$0xff] }
 0x715   : > { %v9990_v15 = vpack.c.bf16 %v8912_v2, %v8911_v61  ;;  %v8923_v0 = vld [vmem:[%s18563_s1 + $0x960] sm:$0xff]  ;;  %v8933_v61 = vld [vmem:[%s18563_s1 + $0x9b0] sm:$0xff]  ;;  %v8934_v2 = vld [vmem:[%s18563_s1 + $0x9b8] sm:$0xff] }
 0x716   : > { %v6003_v28 = vsel %vm171_vm0, %v16840_v36, %v11350_v1 }
 0x717   : > { %6573 = vmatmul.mubr.f32.gmra.mrb[216].mxu0 %v5998_v50  ;;  %v11349_v50 = vunpack.i.l.bf16 %v11348_v43  ;;  %9991 = vmatpush1.bf16.msra.mxu1 %v9990_v15  ;;  %v8925_v43 = vld [vmem:[%s18563_s1 + $0x970] sm:$0xff] }
 0x718   : > { %6577 = vmatprep.mubr.f32.mxu0 %v16990_v37  ;;  %v10089_v37 = vpack.c.bf16 %v8978_v12, %v8977_v63  ;;  %9992 = vmatprep.subr.bf16.mxu1 %v18857_v54  ;;  %v8916_v12 = vld [vmem:[%s18563_s1 + $0x928] sm:$0xff]  ;;  %v10011_v9 = vpack.c.bf16 %v8926_v4, %v8925_v43  ;;  %v17266_v43 = vld [vmem:[#allocation2] sm:$0xff] }
 0x719   : > { %v6007_v63 = vsel %vm171_vm0, %v16799_v56, %v11349_v50  ;;  %v8913_v56 = vld [vmem:[%s18563_s1 + $0x910] sm:$0xff]  ;;  %v17268_v4 = vld [vmem:[#allocation2 + $0x8] sm:$0xff] }
 0x71a   : > { %10090 = vmatprep.subr.bf16.mxu0 %v10089_v37  ;;  %v9993_v36 = vpack.c.bf16 %v8914_v45, %v8913_v56  ;;  %v8929_v50 = vld [vmem:[%s18563_s1 + $0x990] sm:$0xff]  ;;  %v8935_v56 = vld [vmem:[%s18563_s1 + $0x9c0] sm:$0xff]  ;;  %v10023_v45 = vpack.c.bf16 %v8934_v2, %v8933_v61 }
 0x71b   : > { %6578 = vmatmul.mubr.f32.gmra.mrb[218].mxu0 %v5999_v32  ;;  %v8915_v32 = vld [vmem:[%s18563_s1 + $0x920] sm:$0xff] }
 0x71c   : > { %6582 = vmatprep.mubr.f32.mxu0 %v6004_v18  ;;  %10092 = vmatpush3.bf16.msra.mxu0 %v10089_v37  ;;  %v9996_v22 = vpack.c.bf16 %v8916_v12, %v8915_v32  ;;  %v8918_v18 = vld [vmem:[%s18563_s1 + $0x938] sm:$0xff]  ;;  %v17247_v12 = vld [vmem:[%s18564_s2 + $0x3] ss:$0 sm:$0xff] }
 0x71d   : > { %10094 = vmatprep.subr.bf16.mxu0 %v10093_v24  ;;  %9994 = vmatpush1.bf16.msra.mxu1 %v9993_v36  ;;  %v9999_v37 = vpack.c.bf16 %v8918_v18, %v8917_v49  ;;  %v8936_v36 = vld [vmem:[%s18563_s1 + $0x9c8] sm:$0xff] }
 0x71e   : > { %9995 = vmatprep.subr.bf16.mxu1 %v18857_v54 }
 0x71f   : > { %6583 = vmatmul.mubr.f32.gmra.mrb[220].mxu0 %v6000_v62  ;;  %v8922_v62 = vld [vmem:[%s18563_s1 + $0x958] sm:$0xff] }
 0x720   : > { %6587 = vmatprep.mubr.f32.mxu0 %v6005_v51  ;;  %10096 = vmatpush3.bf16.msra.mxu0 %v10093_v24  ;;  %v10005_v24 = vpack.c.bf16 %v8922_v62, %v8921_v23  ;;  %v10008_v51 = vpack.c.bf16 %v8924_v41, %v8923_v0  ;;  %v8939_v23 = vld [vmem:[%s18563_s1 + $0x9e0] sm:$0xff] }
 0x721   : > { %10098 = vmatprep.subr.bf16.mxu0 %v10097_v42  ;;  %9997 = vmatpush1.bf16.msra.mxu1 %v9996_v22  ;;  %v10026_v22 = vpack.c.bf16 %v8936_v36, %v8935_v56 }
 0x722   : > { %9998 = vmatprep.subr.bf16.mxu1 %v18857_v54 }
 0x723   : > { %6588 = vmatmul.mubr.f32.gmra.mrb[222].mxu0 %v6001_v19  ;;  %v8928_v19 = vld [vmem:[%s18563_s1 + $0x988] sm:$0xff] }
 0x724   : > { %6592 = vmatprep.mubr.f32.mxu0 %v6006_v35  ;;  %10100 = vmatpush3.bf16.msra.mxu0 %v10097_v42  ;;  %v10014_v42 = vpack.c.bf16 %v8928_v19, %v8927_v27  ;;  %v8930_v35 = vld [vmem:[%s18563_s1 + $0x998] sm:$0xff]  ;;  %v8941_v19 = vld [vmem:[%s18563_s1 + $0x9f0] sm:$0xff] }
 0x725   : > { %10000 = vmatpush1.bf16.msra.mxu1 %v9999_v37  ;;  %v10017_v1 = vpack.c.bf16 %v8930_v35, %v8929_v50  ;;  %v6994_v35 = vrot.slane %v17266_v43, 1 }
 0x726   : > { %10001 = vmatprep.subr.bf16.mxu1 %v18857_v54 }
 0x727   : > { %6593 = vmatmul.mubr.f32.gmra.mrb[224].mxu0 %v6002_v8  ;;  %v8931_v8 = vld [vmem:[%s18563_s1 + $0x9a0] sm:$0xff] }
 0x728   : > { %6597 = vmatprep.mubr.f32.mxu0 %v6007_v63  ;;  %v8932_v63 = vld [vmem:[%s18563_s1 + $0x9a8] sm:$0xff] }
 0x729   : > { %10003 = vmatpush1.bf16.msra.mxu1 %v10002_v21  ;;  %v8938_v21 = vld [vmem:[%s18563_s1 + $0x9d8] sm:$0xff] }
 0x72a   : > { %10004 = vmatprep.subr.bf16.mxu1 %v18857_v54 }
 0x72b   : > { %6598 = vmatmul.mubr.f32.gmra.mrb[226].mxu0 %v6003_v28  ;;  %v10020_v28 = vpack.c.bf16 %v8932_v63, %v8931_v8 }
 0x72d   : > { %10006 = vmatpush1.bf16.msra.mxu1 %v10005_v24  ;;  %v10029_v24 = vpack.c.bf16 %v8938_v21, %v8937_v55 }
 0x72e   : > { %10007 = vmatprep.subr.bf16.mxu1 %v18857_v54 }
 0x731   : > { %10009 = vmatpush1.bf16.msra.mxu1 %v10008_v51 }
 0x732   : > { %10010 = vmatprep.subr.bf16.mxu1 %v18857_v54 }
 0x735   : > { %10012 = vmatpush1.bf16.msra.mxu1 %v10011_v9 }
 0x736   : > { %10013 = vmatprep.subr.bf16.mxu1 %v18857_v54 }
 0x739   : > { %10015 = vmatpush1.bf16.msra.mxu1 %v10014_v42  ;;  %v8942_v42 = vld [vmem:[%s18563_s1 + $0x9f8] sm:$0xff] }
 0x73a   : > { %10016 = vmatprep.subr.bf16.mxu1 %v18857_v54  ;;  %v10035_v61 = vpack.c.bf16 %v8942_v42, %v8941_v19 }
 0x73d   : > { %10018 = vmatpush1.bf16.msra.mxu1 %v10017_v1  ;;  %v6995_v1 = vrot.slane %v17268_v4, 1 }
 0x73e   : > { %10019 = vmatprep.subr.bf16.mxu1 %v18857_v54 }
 0x741   : > { %10021 = vmatpush1.bf16.msra.mxu1 %v10020_v28 }
 0x742   : > { %10022 = vmatprep.subr.bf16.mxu1 %v18857_v54 }
 0x745   : > { %10024 = vmatpush1.bf16.msra.mxu1 %v10023_v45  ;;  %v6996_v45 = vsel %vm449_vm3, %v6994_v35, %v6995_v1 }
 0x746   : > { %10025 = vmatprep.subr.bf16.mxu1 %v18857_v54 }
 0x749   : > { %10027 = vmatpush1.bf16.msra.mxu1 %v10026_v22 }
 0x74a   : > { %10028 = vmatprep.subr.bf16.mxu1 %v18857_v54 }
 0x74d   : > { %10030 = vmatpush1.bf16.msra.mxu1 %v10029_v24 }
 0x74e   : > { %10031 = vmatprep.subr.bf16.mxu1 %v18857_v54 }
 0x777   : > { %v17234_v15 = vpop.f32.mrb[190].mxu1 }
 0x778   : > { %v17242_v32 = vpop.f32.mrb[191].mxu1 }
 0x782   : > { %v6444_v49 = vpop.f32.mrb[164].mxu0 }
 0x783   : > { %v10247_v18 = vadd.f32 %v17247_v12, %v6444_v49  ;;  %v6446_v37 = vpop.f32.mrb[165].mxu0 }
 0x785   : > { %v6670_v14 = vadd.f32 %v10247_v18, %v16921_v60  ;;  %v8940_v60 = vld [vmem:[%s18563_s1 + $0x9e8] sm:$0xff] }
 0x786   : > { %v6449_v62 = vpop.f32.mrb[166].mxu0  ;;  %v10032_v9 = vpack.c.bf16 %v8940_v60, %v8939_v23 }
 0x787   : > { %v6828_v0 = vmax.f32 %v6670_v14, 0.0  ;;  %v10248_v41 = vadd.f32 %v17247_v12, %v6449_v62  ;;  %v6451_v51 = vpop.f32.mrb[167].mxu0 }
 0x788   : > { %10033 = vmatpush1.bf16.msra.mxu1 %v10032_v9 }
 0x789   : > { %6860 = vst.msk [vmem:[#allocation2 + $0x19] sm:$0xff] %vm171_vm0, %v6828_v0  ;;  %v6675_v27 = vadd.f32 %v10248_v41, %v16913_v33  ;;  %v17282_v33 = vld [vmem:[#allocation2 + $0x10] sm:$0x3]  ;;  %10034 = vmatprep.subr.bf16.mxu1 %v18857_v54 }
 0x78a   : > { %v6454_v50 = vpop.f32.mrb[168].mxu0  ;;  %v6997_v36 = vrot.slane %v17282_v33, 1 }
 0x78b   : > { %v6829_v8 = vmax.f32 %v6675_v27, 0.0  ;;  %v10249_v63 = vadd.f32 %v17247_v12, %v6454_v50  ;;  %v6456_v28 = vpop.f32.mrb[169].mxu0 }
 0x78c   : > { %10036 = vmatpush1.bf16.msra.mxu1 %v10035_v61  ;;  %v6998_v21 = vsel %vm449_vm3, %v6995_v1, %v6997_v36 }
 0x78d   : > { %6861 = vst.msk [vmem:[#allocation2 + $0x21] sm:$0xff] %vm171_vm0, %v6829_v8  ;;  %v6680_v2 = vadd.f32 %v10249_v63, %v16932_v31  ;;  %10037 = vmatprep.subr.bf16.mxu1 %v18857_v54 }
 0x78e   : > { %v6459_v56 = vpop.f32.mrb[170].mxu0 }
 0x78f   : > { %v6830_v22 = vmax.f32 %v6680_v2, 0.0  ;;  %v10250_v49 = vadd.f32 %v17247_v12, %v6459_v56  ;;  %v6461_v18 = vpop.f32.mrb[171].mxu0 }
 0x790   : > { %v17290_v37 = vld [vmem:[#allocation2 + $0x18] sm:$0xff] }
 0x791   : > { %6862 = vst.msk [vmem:[#allocation2 + $0x31] sm:$0xff] %vm171_vm0, %v6830_v22  ;;  %v6685_v14 = vadd.f32 %v10250_v49, %v16924_v39  ;;  %v11351_v31 = vpack.i.bf16 %v6996_v45, %v17290_v37  ;;  %v6999_v41 = vrot.slane %v17290_v37, 1 }
 0x792   : > { %v6464_v55 = vpop.f32.mrb[172].mxu0 }
 0x793   : > { %v6831_v23 = vmax.f32 %v6685_v14, 0.0  ;;  %v10251_v62 = vadd.f32 %v17247_v12, %v6464_v55  ;;  %v6466_v24 = vpop.f32.mrb[173].mxu0  ;;  %11352 = vrot.lane.b32.xlu1 %v11351_v31, %s11588_s14 }
 0x794   : > { %v17299_v60 = vld [vmem:[#allocation2 + $0x20] sm:$0xff]  ;;  %v17306_v9 = vld [vmem:[#allocation2 + $0x28] sm:$0x3] }
 0x795   : > { %6863 = vst.msk [vmem:[#allocation2 + $0x39] sm:$0xff] %vm171_vm0, %v6831_v23  ;;  %v6690_v0 = vadd.f32 %v10251_v62, %v16943_v57  ;;  %v11356_v39 = vpack.i.bf16 %v6998_v21, %v17299_v60  ;;  %v7000_v51 = vrot.slane %v17299_v60, 1  ;;  %v7002_v57 = vrot.slane %v17306_v9, 1 }
 0x796   : > { %v6469_v27 = vpop.f32.mrb[174].mxu0 }
 0x797   : > { %v6832_v19 = vmax.f32 %v6690_v0, 0.0  ;;  %v10252_v42 = vadd.f32 %v17247_v12, %v6469_v27  ;;  %v6471_v50 = vpop.f32.mrb[175].mxu0  ;;  %11357 = vrot.lane.b32.xlu0 %v11356_v39, %s11588_s14  ;;  %v17311_v35 = vsel %vm449_vm3, %v6999_v41, %v7000_v51  ;;  %v17323_v36 = vsel %vm449_vm3, %v7000_v51, %v7002_v57 }
 0x798   : > { %19238 = vst [vmem:[#allocation34_spill] sm:$0xff] %v17311_v35  ;;  %v17313_v1 = vld [vmem:[#allocation2 + $0x30] sm:$0xff]  ;;  %19239 = vst [vmem:[#allocation33_spill] sm:$0xff] %v17323_v36 }
 0x799   : > { %6864 = vst.msk [vmem:[#allocation2 + $0x49] sm:$0xff] %vm171_vm0, %v6832_v19  ;;  %v6695_v8 = vadd.f32 %v10252_v42, %v16941_v10  ;;  %v11361_v63 = vpack.i.bf16 %v17311_v35, %v17313_v1  ;;  %v7180_v22 = vrot.slane %v17313_v1, 2  ;;  %v7004_v21 = vrot.slane %v17313_v1, 1 }
 0x79a   : > { %v6474_v28 = vpop.f32.mrb[176].mxu0 }
 0x79b   : > { %v6833_v61 = vmax.f32 %v6695_v8, 0.0  ;;  %v10253_v2 = vadd.f32 %v17247_v12, %v6474_v28  ;;  %v6476_v56 = vpop.f32.mrb[177].mxu0  ;;  %11362 = vrot.lane.b32.xlu1 %v11361_v63, %s11588_s14 }
 0x79c   : > { %v6899_v45 = vld [vmem:[#allocation2 + $0x38] sm:$0xff]  ;;  %v6900_v49 = vld [vmem:[#allocation2 + $0x40] sm:$0x3] }
 0x79d   : > { %6865 = vst.msk [vmem:[#allocation2 + $0x51] sm:$0xff] %vm171_vm0, %v6833_v61  ;;  %v6700_v10 = vadd.f32 %v10253_v2, %v16954_v3  ;;  %v11366_v18 = vpack.i.bf16 %v17323_v36, %v6899_v45  ;;  %v7181_v14 = vrot.slane %v6899_v45, 2  ;;  %v7183_v31 = vrot.slane %v6900_v49, 2 }
 0x79e   : > { %v6479_v55 = vpop.f32.mrb[178].mxu0  ;;  %v7005_v23 = vrot.slane %v6899_v45, 1  ;;  %v7007_v27 = vrot.slane %v6900_v49, 1 }
 0x79f   : > { %v6834_v62 = vmax.f32 %v6700_v10, 0.0  ;;  %v10254_v24 = vadd.f32 %v17247_v12, %v6479_v55  ;;  %v6481_v0 = vpop.f32.mrb[179].mxu0  ;;  %11367 = vrot.lane.b32.xlu0 %v11366_v18, %s11588_s14  ;;  %v17333_v39 = vsel %vm626_vm4, %v7180_v22, %v7181_v14  ;;  %v17336_v41 = vsel %vm626_vm4, %v7181_v14, %v7183_v31 }
 0x7a0   : > { %9493 = vmatprep.mubr.msk.f32.mxu0 %vm171_vm0, %v17333_v39  ;;  %v17340_v3 = vld [vmem:[#allocation2 + $0x48] sm:$0xff]  ;;  %v17343_v51 = vsel %vm449_vm3, %v7004_v21, %v7005_v23  ;;  %v17356_v61 = vsel %vm449_vm3, %v7005_v23, %v7007_v27 }
 0x7a1   : > { %19240 = vst [vmem:[#allocation36_spill] sm:$0xff] %v17343_v51  ;;  %6866 = vst.msk [vmem:[#allocation2 + $0x61] sm:$0xff] %vm171_vm0, %v6834_v62  ;;  %v6705_v19 = vadd.f32 %v10254_v24, %v16952_v44  ;;  %9494 = vmatmul.mubr.msk.f32.vlgmr.msra.gmra.mrb[228].mxu0 %vm171_vm0, %v17336_v41  ;;  %v11371_v42 = vpack.i.bf16 %v17343_v51, %v17340_v3  ;;  %v7185_v45 = vrot.slane %v17340_v3, 2  ;;  %v7009_v18 = vrot.slane %v17340_v3, 1 }
 0x7a2   : > { %v6484_v50 = vpop.f32.mrb[180].mxu0  ;;  %19241 = vst [vmem:[#allocation45_spill] sm:$0xff] %v17356_v61 }
 0x7a3   : > { %v6835_v57 = vmax.f32 %v6705_v19, 0.0  ;;  %v10255_v8 = vadd.f32 %v17247_v12, %v6484_v50  ;;  %v6486_v63 = vpop.f32.mrb[181].mxu0  ;;  %11372 = vrot.lane.b32.xlu1 %v11371_v42, %s11588_s14 }
 0x7a4   : > { %v17353_v28 = vld [vmem:[#allocation2 + $0x50] sm:$0xff]  ;;  %v6903_v2 = vld [vmem:[#allocation2 + $0x58] sm:$0x3] }
 0x7a5   : > { %6867 = vst.msk [vmem:[#allocation2 + $0x69] sm:$0xff] %vm171_vm0, %v6835_v57  ;;  %v6710_v44 = vadd.f32 %v10255_v8, %v16965_v34  ;;  %v11376_v56 = vpack.i.bf16 %v17356_v61, %v17353_v28  ;;  %v7186_v22 = vrot.slane %v17353_v28, 2  ;;  %v7188_v10 = vrot.slane %v6903_v2, 2 }
 0x7a6   : > { %v6489_v49 = vpop.f32.mrb[182].mxu0  ;;  %v7010_v14 = vrot.slane %v17353_v28, 1  ;;  %v7012_v23 = vrot.slane %v6903_v2, 1 }
 0x7a7   : > { %v6836_v31 = vmax.f32 %v6710_v44, 0.0  ;;  %v10256_v55 = vadd.f32 %v17247_v12, %v6489_v49  ;;  %v6491_v21 = vpop.f32.mrb[183].mxu0  ;;  %11377 = vrot.lane.b32.xlu0 %v11376_v56, %s11588_s14  ;;  %v17369_v34 = vsel %vm626_vm4, %v7185_v45, %v7186_v22  ;;  %v17374_v62 = vsel %vm626_vm4, %v7186_v22, %v7188_v10 }
 0x7a8   : > { %9496 = vmatprep.mubr.msk.f32.mxu0 %vm171_vm0, %v17369_v34  ;;  %v17376_v24 = vld [vmem:[#allocation2 + $0x60] sm:$0xff]  ;;  %v17379_v0 = vsel %vm449_vm3, %v7009_v18, %v7010_v14  ;;  %v17392_v2 = vsel %vm449_vm3, %v7010_v14, %v7012_v23 }
 0x7a9   : > { %19242 = vst [vmem:[#allocation47_spill] sm:$0xff] %v17379_v0  ;;  %6868 = vst.msk [vmem:[#allocation2 + $0x79] sm:$0xff] %vm171_vm0, %v6836_v31  ;;  %v6715_v27 = vadd.f32 %v10256_v55, %v16957_v40  ;;  %9497 = vmatmul.mubr.msk.f32.gmra.mrb[230].mxu0 %vm171_vm0, %v17374_v62  ;;  %v11381_v19 = vpack.i.bf16 %v17379_v0, %v17376_v24  ;;  %v7190_v45 = vrot.slane %v17376_v24, 2  ;;  %v7014_v18 = vrot.slane %v17376_v24, 1 }
 0x7aa   : > { %v6494_v42 = vpop.f32.mrb[184].mxu0  ;;  %19243 = vst [vmem:[#allocation52_spill] sm:$0xff] %v17392_v2 }
 0x7ab   : > { %v6837_v50 = vmax.f32 %v6715_v27, 0.0  ;;  %v10257_v57 = vadd.f32 %v17247_v12, %v6494_v42  ;;  %v6496_v8 = vpop.f32.mrb[185].mxu0  ;;  %11382 = vrot.lane.b32.xlu1 %v11381_v19, %s11588_s14 }
 0x7ac   : > { %v17389_v63 = vld [vmem:[#allocation2 + $0x68] sm:$0xff]  ;;  %v6906_v44 = vld [vmem:[#allocation2 + $0x70] sm:$0x3] }
 0x7ad   : > { %6869 = vst.msk [vmem:[#allocation2 + $0x81] sm:$0xff] %vm171_vm0, %v6837_v50  ;;  %v6720_v40 = vadd.f32 %v10257_v57, %v16972_v30  ;;  %v11386_v56 = vpack.i.bf16 %v17392_v2, %v17389_v63  ;;  %v7191_v22 = vrot.slane %v17389_v63, 2  ;;  %v7193_v10 = vrot.slane %v6906_v44, 2 }
 0x7ae   : > { %v6499_v49 = vpop.f32.mrb[186].mxu0  ;;  %v7015_v31 = vrot.slane %v17389_v63, 1  ;;  %v7017_v23 = vrot.slane %v6906_v44, 1 }
 0x7af   : > { %v6838_v14 = vmax.f32 %v6720_v40, 0.0  ;;  %v10258_v55 = vadd.f32 %v17247_v12, %v6499_v49  ;;  %v6501_v21 = vpop.f32.mrb[187].mxu0  ;;  %11387 = vrot.lane.b32.xlu0 %v11386_v56, %s11588_s14  ;;  %v17405_v30 = vsel %vm626_vm4, %v7190_v45, %v7191_v22  ;;  %v17410_v27 = vsel %vm626_vm4, %v7191_v22, %v7193_v10 }
 0x7b0   : > { %9499 = vmatprep.mubr.msk.f32.mxu0 %vm171_vm0, %v17405_v30  ;;  %v17412_v19 = vld [vmem:[#allocation2 + $0x78] sm:$0xff]  ;;  %v17415_v42 = vsel %vm449_vm3, %v7014_v18, %v7015_v31  ;;  %v17428_v22 = vsel %vm449_vm3, %v7015_v31, %v7017_v23 }
 0x7b1   : > { %19244 = vst [vmem:[#allocation68_spill] sm:$0xff] %v17415_v42  ;;  %6870 = vst.msk [vmem:[#allocation2 + $0x91] sm:$0xff] %vm171_vm0, %v6838_v14  ;;  %v6725_v50 = vadd.f32 %v10258_v55, %v16968_v46  ;;  %9500 = vmatmul.mubr.msk.f32.gmra.mrb[232].mxu0 %vm171_vm0, %v17410_v27  ;;  %v11391_v57 = vpack.i.bf16 %v17415_v42, %v17412_v19  ;;  %v7195_v18 = vrot.slane %v17412_v19, 2 }
 0x7b2   : > { %v6504_v8 = vpop.f32.mrb[188].mxu0  ;;  %19245 = vst [vmem:[#allocation73_spill] sm:$0xff] %v17428_v22 }
 0x7b3   : > { %v6839_v44 = vmax.f32 %v6725_v50, 0.0  ;;  %v10259_v40 = vadd.f32 %v17247_v12, %v6504_v8  ;;  %v6506_v56 = vpop.f32.mrb[189].mxu0  ;;  %11392 = vrot.lane.b32.xlu1 %v11391_v57, %s11588_s14  ;;  %v7019_v50 = vrot.slane %v17412_v19, 1 }
 0x7b4   : > { %v17425_v45 = vld [vmem:[#allocation2 + $0x80] sm:$0xff]  ;;  %v6909_v49 = vld [vmem:[#allocation2 + $0x88] sm:$0x3] }
 0x7b5   : > { %6871 = vst.msk [vmem:[#allocation2 + $0x99] sm:$0xff] %vm171_vm0, %v6839_v44  ;;  %v6730_v46 = vadd.f32 %v10259_v40, %v16992_v58  ;;  %v11396_v10 = vpack.i.bf16 %v17428_v22, %v17425_v45  ;;  %v7196_v14 = vrot.slane %v17425_v45, 2  ;;  %v7198_v21 = vrot.slane %v6909_v49, 2 }
 0x7b6   : > { %v6509_v55 = vpop.f32.mrb[190].mxu0  ;;  %v7020_v57 = vrot.slane %v17425_v45, 1  ;;  %v7022_v44 = vrot.slane %v6909_v49, 1 }
 0x7b7   : > { %v6840_v31 = vmax.f32 %v6730_v46, 0.0  ;;  %v10260_v23 = vadd.f32 %v17247_v12, %v6509_v55  ;;  %v6511_v8 = vpop.f32.mrb[191].mxu0  ;;  %11397 = vrot.lane.b32.xlu0 %v11396_v10, %s11588_s14  ;;  %v17441_v58 = vsel %vm626_vm4, %v7195_v18, %v7196_v14  ;;  %v17446_v40 = vsel %vm626_vm4, %v7196_v14, %v7198_v21 }
 0x7b8   : > { %9502 = vmatprep.mubr.msk.f32.mxu0 %vm171_vm0, %v17441_v58  ;;  %v17448_v56 = vld [vmem:[#allocation2 + $0x90] sm:$0xff]  ;;  %v17451_v22 = vsel %vm449_vm3, %v7019_v50, %v7020_v57  ;;  %v17464_v50 = vsel %vm449_vm3, %v7020_v57, %v7022_v44 }
 0x7b9   : > { %19246 = vst [vmem:[#allocation72_spill] sm:$0xff] %v17451_v22  ;;  %6872 = vst.msk [vmem:[#allocation2 + $0xa9] sm:$0xff] %vm171_vm0, %v6840_v31  ;;  %v6735_v46 = vadd.f32 %v10260_v23, %v16984_v5  ;;  %9503 = vmatmul.mubr.msk.f32.gmra.mrb[234].mxu0 %vm171_vm0, %v17446_v40  ;;  %v11401_v10 = vpack.i.bf16 %v17451_v22, %v17448_v56  ;;  %v7200_v8 = vrot.slane %v17448_v56, 2 }
 0x7ba   : > { %v6514_v18 = vpop.f32.mrb[192].mxu0  ;;  %19247 = vst [vmem:[#allocation54_spill] sm:$0xff] %v17464_v50 }
 0x7bb   : > { %v6841_v49 = vmax.f32 %v6735_v46, 0.0  ;;  %v10261_v14 = vadd.f32 %v17247_v12, %v6514_v18  ;;  %v6516_v55 = vpop.f32.mrb[193].mxu0  ;;  %11402 = vrot.lane.b32.xlu1 %v11401_v10, %s11588_s14  ;;  %v7024_v10 = vrot.slane %v17448_v56, 1 }
 0x7bc   : > { %v17461_v21 = vld [vmem:[#allocation2 + $0x98] sm:$0xff]  ;;  %v6912_v31 = vld [vmem:[#allocation2 + $0xa0] sm:$0x3] }
 0x7bd   : > { %6873 = vst.msk [vmem:[#allocation2 + $0xb1] sm:$0xff] %vm171_vm0, %v6841_v49  ;;  %v6740_v5 = vadd.f32 %v10261_v14, %v17000_v38  ;;  %v11406_v23 = vpack.i.bf16 %v17464_v50, %v17461_v21  ;;  %v7201_v46 = vrot.slane %v17461_v21, 2  ;;  %v7203_v55 = vrot.slane %v6912_v31, 2 }
 0x7be   : > { %v6519_v18 = vpop.f32.mrb[194].mxu0  ;;  %v7025_v22 = vrot.slane %v17461_v21, 1  ;;  %v7027_v49 = vrot.slane %v6912_v31, 1 }
 0x7bf   : > { %v6842_v57 = vmax.f32 %v6740_v5, 0.0  ;;  %v10262_v44 = vadd.f32 %v17247_v12, %v6519_v18  ;;  %v6521_v42 = vpop.f32.mrb[195].mxu0  ;;  %11407 = vrot.lane.b32.xlu0 %v11406_v23, %s11588_s14  ;;  %v17477_v38 = vsel %vm626_vm4, %v7200_v8, %v7201_v46  ;;  %v17482_v14 = vsel %vm626_vm4, %v7201_v46, %v7203_v55 }
 0x7c0   : > { %9505 = vmatprep.mubr.msk.f32.mxu0 %vm171_vm0, %v17477_v38  ;;  %v17484_v50 = vld [vmem:[#allocation2 + $0xa8] sm:$0xff]  ;;  %v17487_v2 = vsel %vm449_vm3, %v7024_v10, %v7025_v22  ;;  %v17500_v55 = vsel %vm449_vm3, %v7025_v22, %v7027_v49 }
 0x7c1   : > { %19248 = vst [vmem:[#allocation75_spill] sm:$0xff] %v17487_v2  ;;  %6874 = vst.msk [vmem:[#allocation2 + $0xc1] sm:$0xff] %vm171_vm0, %v6842_v57  ;;  %v6745_v42 = vadd.f32 %v10262_v44, %v16998_v48  ;;  %9506 = vmatmul.mubr.msk.f32.gmra.mrb[236].mxu0 %vm171_vm0, %v17482_v14  ;;  %v11411_v5 = vpack.i.bf16 %v17487_v2, %v17484_v50  ;;  %v7205_v44 = vrot.slane %v17484_v50, 2 }
 0x7c2   : > { %v6524_v23 = vpop.f32.mrb[196].mxu0  ;;  %19249 = vst [vmem:[#allocation53_spill] sm:$0xff] %v17500_v55 }
 0x7c3   : > { %v6843_v31 = vmax.f32 %v6745_v42, 0.0  ;;  %v10263_v8 = vadd.f32 %v17247_v12, %v6524_v23  ;;  %v6526_v46 = vpop.f32.mrb[197].mxu0  ;;  %11412 = vrot.lane.b32.xlu1 %v11411_v5, %s11588_s14  ;;  %v7029_v5 = vrot.slane %v17484_v50, 1 }
 0x7c4   : > { %v17497_v18 = vld [vmem:[#allocation2 + $0xb0] sm:$0xff]  ;;  %v6915_v10 = vld [vmem:[#allocation2 + $0xb8] sm:$0x3] }
 0x7c5   : > { %6875 = vst.msk [vmem:[#allocation2 + $0xc9] sm:$0xff] %vm171_vm0, %v6843_v31  ;;  %v6750_v48 = vadd.f32 %v10263_v8, %v17037_v47  ;;  %v11416_v57 = vpack.i.bf16 %v17500_v55, %v17497_v18  ;;  %v7206_v42 = vrot.slane %v17497_v18, 2  ;;  %v7208_v46 = vrot.slane %v6915_v10, 2 }
 0x7c6   : > { %v6529_v23 = vpop.f32.mrb[198].mxu0  ;;  %v7030_v2 = vrot.slane %v17497_v18, 1  ;;  %v7032_v31 = vrot.slane %v6915_v10, 1 }
 0x7c7   : > { %v6844_v22 = vmax.f32 %v6750_v48, 0.0  ;;  %v10264_v49 = vadd.f32 %v17247_v12, %v6529_v23  ;;  %v6531_v0 = vpop.f32.mrb[199].mxu0  ;;  %11417 = vrot.lane.b32.xlu0 %v11416_v57, %s11588_s14  ;;  %v17513_v47 = vsel %vm626_vm4, %v7205_v44, %v7206_v42  ;;  %v17518_v8 = vsel %vm626_vm4, %v7206_v42, %v7208_v46 }
 0x7c8   : > { %9508 = vmatprep.mubr.msk.f32.mxu0 %vm171_vm0, %v17513_v47  ;;  %v17520_v55 = vld [vmem:[#allocation2 + $0xc0] sm:$0xff]  ;;  %v17523_v61 = vsel %vm449_vm3, %v7029_v5, %v7030_v2  ;;  %v17536_v46 = vsel %vm449_vm3, %v7030_v2, %v7032_v31 }
 0x7c9   : > { %19250 = vst [vmem:[#allocation74_spill] sm:$0xff] %v17520_v55  ;;  %19251 = vst [vmem:[#allocation56_spill] sm:$0xff] %v17523_v61  ;;  %v6755_v0 = vadd.f32 %v10264_v49, %v17034_v7  ;;  %9509 = vmatmul.mubr.msk.f32.gmra.mrb[238].mxu0 %vm171_vm0, %v17518_v8  ;;  %v11421_v48 = vpack.i.bf16 %v17523_v61, %v17520_v55  ;;  %v7210_v49 = vrot.slane %v17520_v55, 2 }
 0x7ca   : > { %6876 = vst.msk [vmem:[#allocation2 + $0xd9] sm:$0xff] %vm171_vm0, %v6844_v22  ;;  %v6534_v57 = vpop.f32.mrb[200].mxu0  ;;  %19253 = vst [vmem:[#allocation69_spill] sm:$0xff] %v17536_v46 }
 0x7cb   : > { %v6845_v10 = vmax.f32 %v6755_v0, 0.0  ;;  %v10265_v44 = vadd.f32 %v17247_v12, %v6534_v57  ;;  %v6536_v42 = vpop.f32.mrb[201].mxu0  ;;  %11422 = vrot.lane.b32.xlu1 %v11421_v48, %s11588_s14  ;;  %v7034_v48 = vrot.slane %v17520_v55, 1 }
 0x7cc   : > { %v17533_v23 = vld [vmem:[#allocation2 + $0xc8] sm:$0xff]  ;;  %v6918_v5 = vld [vmem:[#allocation2 + $0xd0] sm:$0x3] }
 0x7cd   : > { %19252 = vst [vmem:[#allocation55_spill] sm:$0xff] %v17533_v23  ;;  %6877 = vst.msk [vmem:[#allocation2 + $0xe1] sm:$0xff] %vm171_vm0, %v6845_v10  ;;  %v6760_v7 = vadd.f32 %v10265_v44, %v17047_v20  ;;  %v11426_v22 = vpack.i.bf16 %v17536_v46, %v17533_v23  ;;  %v7211_v0 = vrot.slane %v17533_v23, 2  ;;  %v7213_v42 = vrot.slane %v6918_v5, 2 }
 0x7ce   : > { %v6539_v57 = vpop.f32.mrb[202].mxu0  ;;  %v7035_v61 = vrot.slane %v17533_v23, 1  ;;  %v7037_v10 = vrot.slane %v6918_v5, 1 }
 0x7cf   : > { %v6846_v2 = vmax.f32 %v6760_v7, 0.0  ;;  %v10266_v31 = vadd.f32 %v17247_v12, %v6539_v57  ;;  %v6541_v51 = vpop.f32.mrb[203].mxu0  ;;  %11427 = vrot.lane.b32.xlu0 %v11426_v22, %s11588_s14  ;;  %v17549_v20 = vsel %vm626_vm4, %v7210_v49, %v7211_v0  ;;  %v17554_v44 = vsel %vm626_vm4, %v7211_v0, %v7213_v42 }
 0x7d0   : > { %9511 = vmatprep.mubr.msk.f32.mxu0 %vm171_vm0, %v17549_v20  ;;  %v17559_v36 = vsel %vm449_vm3, %v7034_v48, %v7035_v61  ;;  %v17572_v42 = vsel %vm449_vm3, %v7035_v61, %v7037_v10 }
 0x7d1   : > { %v17556_v46 = vld [vmem:[#allocation2 + $0xd8] sm:$0xff]  ;;  %19255 = vst [vmem:[#allocation58_spill] sm:$0xff] %v17559_v36  ;;  %6878 = vst.msk [vmem:[#allocation2 + $0xf1] sm:$0xff] %vm171_vm0, %v6846_v2  ;;  %v6765_v51 = vadd.f32 %v10266_v31, %v17044_v17  ;;  %9512 = vmatmul.mubr.msk.f32.gmra.mrb[240].mxu0 %vm171_vm0, %v17554_v44 }
 0x7d2   : > { %19254 = vst [vmem:[#allocation70_spill] sm:$0xff] %v17556_v46  ;;  %v11431_v7 = vpack.i.bf16 %v17559_v36, %v17556_v46  ;;  %v6544_v22 = vpop.f32.mrb[204].mxu0  ;;  %19257 = vst [vmem:[#allocation50_spill] sm:$0xff] %v17572_v42  ;;  %v7215_v31 = vrot.slane %v17556_v46, 2 }
 0x7d3   : > { %v6847_v5 = vmax.f32 %v6765_v51, 0.0  ;;  %v10267_v49 = vadd.f32 %v17247_v12, %v6544_v22  ;;  %v6546_v0 = vpop.f32.mrb[205].mxu0 }
 0x7d4   : > { %11432 = vrot.lane.b32.xlu1 %v11431_v7, %s11588_s14  ;;  %v17569_v57 = vld [vmem:[#allocation2 + $0xe0] sm:$0xff]  ;;  %v6921_v48 = vld [vmem:[#allocation2 + $0xe8] sm:$0x3]  ;;  %v7039_v7 = vrot.slane %v17556_v46, 1 }
 0x7d5   : > { %19256 = vst [vmem:[#allocation71_spill] sm:$0xff] %v17569_v57  ;;  %6879 = vst.msk [vmem:[#allocation2 + $0xf9] sm:$0xff] %vm171_vm0, %v6847_v5  ;;  %v6770_v17 = vadd.f32 %v10267_v49, %v17057_v53  ;;  %v11436_v2 = vpack.i.bf16 %v17572_v42, %v17569_v57  ;;  %v7216_v51 = vrot.slane %v17569_v57, 2  ;;  %v7218_v0 = vrot.slane %v6921_v48, 2 }
 0x7d6   : > { %v6549_v22 = vpop.f32.mrb[206].mxu0  ;;  %v7040_v36 = vrot.slane %v17569_v57, 1  ;;  %v7042_v5 = vrot.slane %v6921_v48, 1 }
 0x7d7   : > { %v6848_v61 = vmax.f32 %v6770_v17, 0.0  ;;  %v10268_v10 = vadd.f32 %v17247_v12, %v6549_v22  ;;  %v6551_v35 = vpop.f32.mrb[207].mxu0  ;;  %11437 = vrot.lane.b32.xlu0 %v11436_v2, %s11588_s14  ;;  %v17585_v53 = vsel %vm626_vm4, %v7215_v31, %v7216_v51  ;;  %v17590_v49 = vsel %vm626_vm4, %v7216_v51, %v7218_v0 }
 0x7d8   : > { %9514 = vmatprep.mubr.msk.f32.mxu0 %vm171_vm0, %v17585_v53  ;;  %v17592_v42 = vld [vmem:[#allocation2 + $0xf0] sm:$0xff]  ;;  %v17595_v57 = vsel %vm449_vm3, %v7039_v7, %v7040_v36  ;;  %v17608_v0 = vsel %vm449_vm3, %v7040_v36, %v7042_v5 }
 0x7d9   : > { %19258 = vst [vmem:[#allocation51_spill] sm:$0xff] %v17592_v42  ;;  %19259 = vst [vmem:[#allocation57_spill] sm:$0xff] %v17595_v57  ;;  %v6775_v35 = vadd.f32 %v10268_v10, %v17054_v6  ;;  %9515 = vmatmul.mubr.msk.f32.gmra.mrb[242].mxu0 %vm171_vm0, %v17590_v49  ;;  %v11441_v17 = vpack.i.bf16 %v17595_v57, %v17592_v42  ;;  %v7220_v10 = vrot.slane %v17592_v42, 2 }
 0x7da   : > { %6880 = vst.msk [vmem:[#allocation2 + $0x109] sm:$0xff] %vm171_vm0, %v6848_v61  ;;  %v6554_v2 = vpop.f32.mrb[208].mxu0  ;;  %19261 = vst [vmem:[#allocation59_spill] sm:$0xff] %v17608_v0 }
 0x7db   : > { %v6849_v48 = vmax.f32 %v6775_v35, 0.0  ;;  %v10269_v31 = vadd.f32 %v17247_v12, %v6554_v2  ;;  %v6556_v51 = vpop.f32.mrb[209].mxu0  ;;  %11442 = vrot.lane.b32.xlu1 %v11441_v17, %s11588_s14  ;;  %v7044_v17 = vrot.slane %v17592_v42, 1 }
 0x7dc   : > { %v17605_v22 = vld [vmem:[#allocation2 + $0xf8] sm:$0xff]  ;;  %v6924_v7 = vld [vmem:[#allocation2 + $0x100] sm:$0x3] }
 0x7dd   : > { %19260 = vst [vmem:[#allocation60_spill] sm:$0xff] %v17605_v22  ;;  %6881 = vst.msk [vmem:[#allocation2 + $0x111] sm:$0xff] %vm171_vm0, %v6849_v48  ;;  %v6780_v6 = vadd.f32 %v10269_v31, %v17067_v59  ;;  %v11446_v61 = vpack.i.bf16 %v17608_v0, %v17605_v22  ;;  %v7221_v35 = vrot.slane %v17605_v22, 2  ;;  %v7223_v51 = vrot.slane %v6924_v7, 2 }
 0x7de   : > { %v6559_v2 = vpop.f32.mrb[210].mxu0  ;;  %v7045_v57 = vrot.slane %v17605_v22, 1  ;;  %v7047_v48 = vrot.slane %v6924_v7, 1 }
 0x7df   : > { %v6850_v36 = vmax.f32 %v6780_v6, 0.0  ;;  %v10270_v5 = vadd.f32 %v17247_v12, %v6559_v2  ;;  %v6561_v46 = vpop.f32.mrb[211].mxu0  ;;  %11447 = vrot.lane.b32.xlu0 %v11446_v61, %s11588_s14  ;;  %v17621_v59 = vsel %vm626_vm4, %v7220_v10, %v7221_v35  ;;  %v17626_v31 = vsel %vm626_vm4, %v7221_v35, %v7223_v51 }
 0x7e0   : > { %9517 = vmatprep.mubr.msk.f32.mxu0 %vm171_vm0, %v17621_v59  ;;  %v17631_v22 = vsel %vm449_vm3, %v7044_v17, %v7045_v57  ;;  %v17644_v51 = vsel %vm449_vm3, %v7045_v57, %v7047_v48 }
 0x7e1   : > { %v17628_v0 = vld [vmem:[#allocation2 + $0x108] sm:$0xff]  ;;  %19263 = vst [vmem:[#allocation61_spill] sm:$0xff] %v17631_v22  ;;  %6882 = vst.msk [vmem:[#allocation2 + $0x121] sm:$0xff] %vm171_vm0, %v6850_v36  ;;  %v6785_v46 = vadd.f32 %v10270_v5, %v17064_v25  ;;  %9518 = vmatmul.mubr.msk.f32.gmra.mrb[244].mxu0 %vm171_vm0, %v17626_v31 }
 0x7e2   : > { %19262 = vst [vmem:[#allocation62_spill] sm:$0xff] %v17628_v0  ;;  %v11451_v6 = vpack.i.bf16 %v17631_v22, %v17628_v0  ;;  %v6564_v61 = vpop.f32.mrb[212].mxu0  ;;  %19265 = vst [vmem:[#allocation64_spill] sm:$0xff] %v17644_v51  ;;  %v7225_v5 = vrot.slane %v17628_v0, 2 }
 0x7e3   : > { %v6851_v7 = vmax.f32 %v6785_v46, 0.0  ;;  %v10271_v10 = vadd.f32 %v17247_v12, %v6564_v61  ;;  %v6566_v35 = vpop.f32.mrb[213].mxu0 }
 0x7e4   : > { %11452 = vrot.lane.b32.xlu1 %v11451_v6, %s11588_s14  ;;  %v17641_v2 = vld [vmem:[#allocation2 + $0x110] sm:$0xff]  ;;  %v6927_v17 = vld [vmem:[#allocation2 + $0x118] sm:$0x3]  ;;  %v7049_v6 = vrot.slane %v17628_v0, 1 }
 0x7e5   : > { %19264 = vst [vmem:[#allocation63_spill] sm:$0xff] %v17641_v2  ;;  %6883 = vst.msk [vmem:[#allocation2 + $0x129] sm:$0xff] %vm171_vm0, %v6851_v7  ;;  %v6790_v25 = vadd.f32 %v10271_v10, %v17077_v52  ;;  %v11456_v36 = vpack.i.bf16 %v17644_v51, %v17641_v2  ;;  %v7226_v46 = vrot.slane %v17641_v2, 2  ;;  %v7228_v35 = vrot.slane %v6927_v17, 2 }
 0x7e6   : > { %v6569_v61 = vpop.f32.mrb[214].mxu0  ;;  %v7050_v22 = vrot.slane %v17641_v2, 1  ;;  %v7052_v7 = vrot.slane %v6927_v17, 1 }
 0x7e7   : > { %v6852_v57 = vmax.f32 %v6790_v25, 0.0  ;;  %v10272_v48 = vadd.f32 %v17247_v12, %v6569_v61  ;;  %v6571_v42 = vpop.f32.mrb[215].mxu0  ;;  %11457 = vrot.lane.b32.xlu0 %v11456_v36, %s11588_s14  ;;  %v17657_v52 = vsel %vm626_vm4, %v7225_v5, %v7226_v46  ;;  %v17662_v10 = vsel %vm626_vm4, %v7226_v46, %v7228_v35 }
 0x7e8   : > { %9520 = vmatprep.mubr.msk.f32.mxu0 %vm171_vm0, %v17657_v52  ;;  %v17664_v51 = vld [vmem:[#allocation2 + $0x120] sm:$0xff]  ;;  %v17667_v2 = vsel %vm449_vm3, %v7049_v6, %v7050_v22  ;;  %v17680_v35 = vsel %vm449_vm3, %v7050_v22, %v7052_v7 }
 0x7e9   : > { %19266 = vst [vmem:[#allocation65_spill] sm:$0xff] %v17664_v51  ;;  %19267 = vst [vmem:[#allocation66_spill] sm:$0xff] %v17667_v2  ;;  %v6795_v42 = vadd.f32 %v10272_v48, %v17074_v26  ;;  %9521 = vmatmul.mubr.msk.f32.gmra.mrb[246].mxu0 %vm171_vm0, %v17662_v10  ;;  %v11461_v25 = vpack.i.bf16 %v17667_v2, %v17664_v51  ;;  %v7230_v48 = vrot.slane %v17664_v51, 2 }
 0x7ea   : > { %6884 = vst.msk [vmem:[#allocation2 + $0x139] sm:$0xff] %vm171_vm0, %v6852_v57  ;;  %v6574_v36 = vpop.f32.mrb[216].mxu0  ;;  %19269 = vst [vmem:[#allocation40_spill] sm:$0xff] %v17680_v35 }
 0x7eb   : > { %v6853_v17 = vmax.f32 %v6795_v42, 0.0  ;;  %v10273_v5 = vadd.f32 %v17247_v12, %v6574_v36  ;;  %v6576_v46 = vpop.f32.mrb[217].mxu0  ;;  %11462 = vrot.lane.b32.xlu1 %v11461_v25, %s11588_s14  ;;  %v7054_v25 = vrot.slane %v17664_v51, 1 }
 0x7ec   : > { %v17677_v61 = vld [vmem:[#allocation2 + $0x128] sm:$0xff]  ;;  %v6930_v6 = vld [vmem:[#allocation2 + $0x130] sm:$0x3] }
 0x7ed   : > { %19268 = vst [vmem:[#allocation67_spill] sm:$0xff] %v17677_v61  ;;  %6885 = vst.msk [vmem:[#allocation2 + $0x141] sm:$0xff] %vm171_vm0, %v6853_v17  ;;  %v6800_v26 = vadd.f32 %v10273_v5, %v17087_v11  ;;  %v11466_v57 = vpack.i.bf16 %v17680_v35, %v17677_v61  ;;  %v7231_v42 = vrot.slane %v17677_v61, 2  ;;  %v7233_v46 = vrot.slane %v6930_v6, 2 }
 0x7ee   : > { %v6579_v36 = vpop.f32.mrb[218].mxu0  ;;  %v7055_v2 = vrot.slane %v17677_v61, 1  ;;  %v7057_v17 = vrot.slane %v6930_v6, 1 }
 0x7ef   : > { %v6854_v22 = vmax.f32 %v6800_v26, 0.0  ;;  %v10274_v7 = vadd.f32 %v17247_v12, %v6579_v36  ;;  %v6581_v0 = vpop.f32.mrb[219].mxu0  ;;  %11467 = vrot.lane.b32.xlu0 %v11466_v57, %s11588_s14  ;;  %v17693_v11 = vsel %vm626_vm4, %v7230_v48, %v7231_v42  ;;  %v17698_v5 = vsel %vm626_vm4, %v7231_v42, %v7233_v46 }
 0x7f0   : > { %9523 = vmatprep.mubr.msk.f32.mxu0 %vm171_vm0, %v17693_v11  ;;  %v17703_v61 = vsel %vm449_vm3, %v7054_v25, %v7055_v2  ;;  %v17716_v46 = vsel %vm449_vm3, %v7055_v2, %v7057_v17 }
 0x7f1   : > { %v17700_v35 = vld [vmem:[#allocation2 + $0x138] sm:$0xff]  ;;  %19271 = vst [vmem:[#allocation8_spill] sm:$0xff] %v17703_v61  ;;  %6886 = vst.msk [vmem:[#allocation2 + $0x151] sm:$0xff] %vm171_vm0, %v6854_v22  ;;  %v6805_v0 = vadd.f32 %v10274_v7, %v17085_v29  ;;  %9524 = vmatmul.mubr.msk.f32.gmra.mrb[248].mxu0 %vm171_vm0, %v17698_v5 }
 0x7f2   : > { %19270 = vst [vmem:[#allocation39_spill] sm:$0xff] %v17700_v35  ;;  %v11471_v26 = vpack.i.bf16 %v17703_v61, %v17700_v35  ;;  %v6584_v57 = vpop.f32.mrb[220].mxu0  ;;  %19273 = vst [vmem:[#allocation10_spill] sm:$0xff] %v17716_v46  ;;  %v7235_v7 = vrot.slane %v17700_v35, 2 }
 0x7f3   : > { %v6855_v6 = vmax.f32 %v6805_v0, 0.0  ;;  %v10275_v48 = vadd.f32 %v17247_v12, %v6584_v57  ;;  %v6586_v42 = vpop.f32.mrb[221].mxu0 }
 0x7f4   : > { %11472 = vrot.lane.b32.xlu1 %v11471_v26, %s11588_s14  ;;  %v17713_v36 = vld [vmem:[#allocation2 + $0x140] sm:$0xff]  ;;  %v6933_v25 = vld [vmem:[#allocation2 + $0x148] sm:$0x3]  ;;  %v7059_v26 = vrot.slane %v17700_v35, 1 }
 0x7f5   : > { %19272 = vst [vmem:[#allocation19_spill] sm:$0xff] %v17713_v36  ;;  %6887 = vst.msk [vmem:[#allocation2 + $0x159] sm:$0xff] %vm171_vm0, %v6855_v6  ;;  %v6810_v29 = vadd.f32 %v10275_v48, %v17097_v13  ;;  %v11476_v22 = vpack.i.bf16 %v17716_v46, %v17713_v36  ;;  %v7236_v0 = vrot.slane %v17713_v36, 2  ;;  %v7238_v42 = vrot.slane %v6933_v25, 2 }
 0x7f6   : > { %v6589_v57 = vpop.f32.mrb[222].mxu0  ;;  %v7060_v61 = vrot.slane %v17713_v36, 1  ;;  %v7062_v6 = vrot.slane %v6933_v25, 1 }
 0x7f7   : > { %v6856_v2 = vmax.f32 %v6810_v29, 0.0  ;;  %v10276_v17 = vadd.f32 %v17247_v12, %v6589_v57  ;;  %v6591_v51 = vpop.f32.mrb[223].mxu0  ;;  %11477 = vrot.lane.b32.xlu0 %v11476_v22, %s11588_s14  ;;  %v17729_v13 = vsel %vm626_vm4, %v7235_v7, %v7236_v0  ;;  %v17734_v48 = vsel %vm626_vm4, %v7236_v0, %v7238_v42 }
 0x7f8   : > { %9526 = vmatprep.mubr.msk.f32.mxu0 %vm171_vm0, %v17729_v13  ;;  %v17736_v46 = vld [vmem:[#allocation2 + $0x150] sm:$0xff]  ;;  %v17739_v36 = vsel %vm449_vm3, %v7059_v26, %v7060_v61  ;;  %v17752_v42 = vsel %vm449_vm3, %v7060_v61, %v7062_v6 }
 0x7f9   : > { %19274 = vst [vmem:[#allocation29_spill] sm:$0xff] %v17736_v46  ;;  %19275 = vst [vmem:[#allocation20_spill] sm:$0xff] %v17739_v36  ;;  %v6815_v51 = vadd.f32 %v10276_v17, %v17095_v16  ;;  %9527 = vmatmul.mubr.msk.f32.gmra.mrb[250].mxu0 %vm171_vm0, %v17734_v48  ;;  %v11481_v29 = vpack.i.bf16 %v17739_v36, %v17736_v46  ;;  %v7240_v17 = vrot.slane %v17736_v46, 2 }
 0x7fa   : > { %6888 = vst.msk [vmem:[#allocation2 + $0x169] sm:$0xff] %vm171_vm0, %v6856_v2  ;;  %v6594_v22 = vpop.f32.mrb[224].mxu0  ;;  %19277 = vst [vmem:[#allocation22_spill] sm:$0xff] %v17752_v42 }
 0x7fb   : > { %v6857_v25 = vmax.f32 %v6815_v51, 0.0  ;;  %v10277_v7 = vadd.f32 %v17247_v12, %v6594_v22  ;;  %v6596_v0 = vpop.f32.mrb[225].mxu0  ;;  %11482 = vrot.lane.b32.xlu1 %v11481_v29, %s11588_s14  ;;  %v7064_v29 = vrot.slane %v17736_v46, 1 }
 0x7fc   : > { %v17749_v57 = vld [vmem:[#allocation2 + $0x158] sm:$0xff]  ;;  %v6936_v26 = vld [vmem:[#allocation2 + $0x160] sm:$0x3] }
 0x7fd   : > { %19276 = vst [vmem:[#allocation23_spill] sm:$0xff] %v17749_v57  ;;  %6889 = vst.msk [vmem:[#allocation2 + $0x171] sm:$0xff] %vm171_vm0, %v6857_v25  ;;  %v6820_v16 = vadd.f32 %v10277_v7, %v17242_v32  ;;  %v11486_v2 = vpack.i.bf16 %v17752_v42, %v17749_v57  ;;  %v7241_v51 = vrot.slane %v17749_v57, 2  ;;  %v7243_v0 = vrot.slane %v6936_v26, 2 }
 0x7fe   : > { %v6599_v22 = vpop.f32.mrb[226].mxu0  ;;  %v7065_v36 = vrot.slane %v17749_v57, 1  ;;  %v7170_v25 = vrot.slane %v17266_v43, 2  ;;  %v7067_v7 = vrot.slane %v6936_v26, 1 }
 0x7ff   : > { %v6858_v61 = vmax.f32 %v6820_v16, 0.0  ;;  %v10278_v6 = vadd.f32 %v17247_v12, %v6599_v22  ;;  %v6601_v35 = vpop.f32.mrb[227].mxu0  ;;  %11487 = vrot.lane.b32.xlu0 %v11486_v2, %s11588_s14  ;;  %v17765_v32 = vsel %vm626_vm4, %v7240_v17, %v7241_v51  ;;  %v17771_v42 = vsel %vm626_vm4, %v7241_v51, %v7243_v0  ;;  %v8943_v17 = vld [vmem:[%s18563_s1 + $0xa00] sm:$0xff] }
 0x800   : > { %9529 = vmatprep.mubr.msk.f32.mxu0 %vm171_vm0, %v17765_v32  ;;  %19278 = vst [vmem:[#allocation7_spill] sm:$0xff] %v17771_v42  ;;  %v17776_v16 = vsel %vm449_vm3, %v7064_v29, %v7065_v36  ;;  %v7171_v12 = vrot.slane %v17268_v4, 2  ;;  %v17792_v22 = vsel %vm449_vm3, %v7065_v36, %v7067_v7  ;;  %v8944_v29 = vld [vmem:[%s18563_s1 + $0xa08] sm:$0xff] }
 0x801   : > { %v17773_v46 = vld [vmem:[#allocation2 + $0x168] sm:$0xff]  ;;  %19280 = vst [vmem:[#allocation28_spill] sm:$0xff] %v17776_v16  ;;  %6890 = vst.msk [vmem:[#allocation2 + $0x181] sm:$0xff] %vm171_vm0, %v6858_v61  ;;  %v6825_v35 = vadd.f32 %v10278_v6, %v17234_v15  ;;  %9530 = vmatmul.mubr.msk.f32.gmra.mrb[252].mxu0 %vm171_vm0, %v17771_v42  ;;  %v7173_v61 = vrot.slane %v17282_v33, 2 }
 0x802   : > { %19279 = vst [vmem:[#allocation35_spill] sm:$0xff] %v17773_v46  ;;  %v11491_v26 = vpack.i.bf16 %v17776_v16, %v17773_v46  ;;  %19282 = vst [vmem:[#allocation9_spill] sm:$0xff] %v17792_v22  ;;  %v7172_v15 = vsel %vm626_vm4, %v7170_v25, %v7171_v12  ;;  %v7069_v25 = vrot.slane %v17773_v46, 1 }
 0x803   : > { %v6859_v2 = vmax.f32 %v6825_v35, 0.0 }
 0x804   : > { %11492 = vrot.lane.b32.xlu1 %v11491_v26, %s11588_s14  ;;  %v17789_v51 = vld [vmem:[#allocation2 + $0x170] sm:$0xff]  ;;  %v6939_v0 = vld [vmem:[#allocation2 + $0x178] sm:$0x3]  ;;  %v7245_v26 = vrot.slane %v17773_v46, 2 }
 0x805   : > { %19281 = vst [vmem:[#allocation31_spill] sm:$0xff] %v17789_v51  ;;  %6891 = vst.msk [vmem:[#allocation2 + $0x189] sm:$0xff] %vm171_vm0, %v6859_v2  ;;  %v11353_v6 = vpop.permute.xlu1 %11352  ;;  %v11496_v35 = vpack.i.bf16 %v17792_v22, %v17789_v51  ;;  %v7246_v36 = vrot.slane %v17789_v51, 2  ;;  %v7248_v7 = vrot.slane %v6939_v0, 2  ;;  %v7070_v23 = vrot.slane %v17789_v51, 1 }
 0x806   : > { %v11355_v16 = vunpack.i.h.bf16 %v11353_v6  ;;  %v11354_v57 = vunpack.i.l.bf16 %v11353_v6  ;;  %v10038_v22 = vpack.c.bf16 %v8944_v29, %v8943_v17  ;;  %v7072_v42 = vrot.slane %v6939_v0, 1 }
 0x807   : > { %11497 = vrot.lane.b32.xlu0 %v11496_v35, %s11588_s14  ;;  %v17808_v33 = vsel %vm626_vm4, %v7245_v26, %v7246_v36  ;;  %v17811_v2 = vsel %vm626_vm4, %v7246_v36, %v7248_v7  ;;  %v17821_v35 = vsel %vm449_vm3, %v7069_v25, %v7070_v23  ;;  %v7174_v29 = vsel %vm626_vm4, %v7171_v12, %v7173_v61 }
 0x808   : > { %v17813_v55 = vld [vmem:[#allocation2 + $0x180] sm:$0xff]  ;;  %9532 = vmatprep.mubr.msk.f32.mxu0 %vm171_vm0, %v17808_v33  ;;  %v7576_v6 = vsel %vm171_vm0, %v7172_v15, %v11354_v57  ;;  %v7544_v51 = vsel %vm171_vm0, %v17266_v43, %v11355_v16  ;;  %19283 = vst [vmem:[#allocation42_spill] sm:$0xff] %v17821_v35  ;;  %v8945_v57 = vld [vmem:[%s18563_s1 + $0xa10] sm:$0xff]  ;;  %v8946_v43 = vld [vmem:[%s18563_s1 + $0xa18] sm:$0xff]  ;;  %v7176_v15 = vrot.slane %v17299_v60, 2  ;;  %v7175_v36 = vrot.slane %v17290_v37, 2 }
 0x809   : > { %9533 = vmatmul.mubr.msk.f32.gmra.mrb[254].mxu0 %vm171_vm0, %v17811_v2  ;;  %v11358_v26 = vpop.permute.xlu0 %11357  ;;  %7853 = vmatprep.mubr.f32.mxu1 %v7576_v6  ;;  %v11501_v17 = vpack.i.bf16 %v17821_v35, %v17813_v55  ;;  %v17845_v6 = vsel %vm449_vm3, %v7070_v23, %v7072_v42  ;;  %v8947_v42 = vld [vmem:[%s18563_s1 + $0xa20] sm:$0xff] }
 0x80a   : > { %v11360_v16 = vunpack.i.h.bf16 %v11358_v26  ;;  %v11359_v0 = vunpack.i.l.bf16 %v11358_v26  ;;  %7854 = vmatmul.mubr.f32.vlgmr.msra.gmra.mrb[192].mxu1 %v7544_v51  ;;  %v10041_v51 = vpack.c.bf16 %v8946_v43, %v8945_v57  ;;  %v8948_v57 = vld [vmem:[%s18563_s1 + $0xa28] sm:$0xff] }
 0x80b   : > { %10039 = vmatpush1.bf16.msra.mxu1 %v10038_v22  ;;  %11502 = vrot.lane.b32.xlu1 %v11501_v17, %s11588_s14  ;;  %v7418_v17 = vrot.slane %v17813_v55, 2 }
 0x80c   : > { %v17837_v7 = vld [vmem:[#allocation2 + $0x188] sm:$0xff]  ;;  %v17839_v12 = vld [vmem:[#allocation2 + $0x190] sm:$0x3]  ;;  %v7577_v61 = vsel %vm171_vm0, %v7174_v29, %v11359_v0  ;;  %v7545_v25 = vsel %vm171_vm0, %v17268_v4, %v11360_v16  ;;  %10040 = vmatprep.subr.bf16.mxu1 %v18857_v54  ;;  %v7178_v29 = vrot.slane %v17306_v9, 2  ;;  %v7177_v4 = vsel %vm626_vm4, %v7175_v36, %v7176_v15 }
 0x80d   : > { %7858 = vmatprep.mubr.f32.mxu1 %v7577_v61  ;;  %v11363_v22 = vpop.permute.xlu1 %11362  ;;  %v11506_v26 = vpack.i.bf16 %v17845_v6, %v17837_v7  ;;  %v7419_v35 = vrot.slane %v17837_v7, 2  ;;  %v7421_v23 = vrot.slane %v17839_v12, 2 }
 0x80e   : > { %v11365_v0 = vunpack.i.h.bf16 %v11363_v22  ;;  %v11364_v46 = vunpack.i.l.bf16 %v11363_v22  ;;  %7859 = vmatmul.mubr.f32.gmra.mrb[194].mxu1 %v7545_v25  ;;  %v10044_v25 = vpack.c.bf16 %v8948_v57, %v8947_v42  ;;  %v8952_v42 = vld [vmem:[%s18563_s1 + $0xa48] sm:$0xff] }
 0x80f   : > { %11507 = vrot.lane.b32.xlu0 %v11506_v26, %s11588_s14  ;;  %7423 = vrot.lane.b32.xlu1 %v7177_v4, %s11588_s14  ;;  %v17864_v9 = vsel %vm626_vm4, %v7418_v17, %v7419_v35  ;;  %v17869_v43 = vsel %vm626_vm4, %v7419_v35, %v7421_v23  ;;  %v7179_v17 = vsel %vm626_vm4, %v7176_v15, %v7178_v29  ;;  %v8949_v35 = vld [vmem:[%s18563_s1 + $0xa30] sm:$0xff]  ;;  %v8951_v23 = vld [vmem:[%s18563_s1 + $0xa40] sm:$0xff] }
 0x810   : > { %9535 = vmatprep.mubr.msk.f32.mxu0 %vm171_vm0, %v17864_v9  ;;  %v7578_v36 = vsel %vm171_vm0, %v7177_v4, %v11364_v46  ;;  %v7546_v61 = vsel %vm171_vm0, %v17290_v37, %v11365_v0  ;;  %10042 = vmatpush1.bf16.msra.mxu1 %v10041_v51  ;;  %v8950_v46 = vld [vmem:[%s18563_s1 + $0xa38] sm:$0xff] }
 0x811   : > { %9536 = vmatmul.mubr.msk.f32.gmra.mrb[0].mxu0 %vm171_vm0, %v17869_v43  ;;  %v11368_v16 = vpop.permute.xlu0 %11367  ;;  %7863 = vmatprep.mubr.f32.mxu1 %v7578_v36  ;;  %v10047_v29 = vpack.c.bf16 %v8950_v46, %v8949_v35  ;;  %v10050_v36 = vpack.c.bf16 %v8952_v42, %v8951_v23 }
 0x812   : > { %v11370_v22 = vunpack.i.h.bf16 %v11368_v16  ;;  %v11369_v26 = vunpack.i.l.bf16 %v11368_v16  ;;  %10043 = vmatprep.subr.bf16.mxu1 %v18857_v54  ;;  %7864 = vmatmul.mubr.f32.gmra.mrb[196].mxu1 %v7546_v61 }
 0x813   : > { %7425 = vrot.lane.b32.xlu0 %v7179_v17, %s11588_s14  ;;  %7427 = vrot.lane.b32.xlu1 %v17333_v39, %s11588_s14 }
 0x814   : > { %v7579_v37 = vsel %vm171_vm0, %v7179_v17, %v11369_v26  ;;  %v7547_v15 = vsel %vm171_vm0, %v17299_v60, %v11370_v22  ;;  %10045 = vmatpush1.bf16.msra.mxu1 %v10044_v25  ;;  %v8953_v22 = vld [vmem:[%s18563_s1 + $0xa50] sm:$0xff]  ;;  %v11575_v26 = vld [vmem:[#allocation2 + $0x38] sm:$0xff] }
 0x815   : > { %v11373_v51 = vpop.permute.xlu1 %11372  ;;  %7868 = vmatprep.mubr.f32.mxu1 %v7579_v37  ;;  %10046 = vmatprep.subr.bf16.mxu1 %v18857_v54 }
 0x816   : > { %v11375_v0 = vunpack.i.h.bf16 %v11373_v51  ;;  %v11374_v4 = vunpack.i.l.bf16 %v11373_v51  ;;  %7869 = vmatmul.mubr.f32.gmra.mrb[198].mxu1 %v7547_v15  ;;  %v8955_v51 = vld [vmem:[%s18563_s1 + $0xa60] sm:$0xff] }
 0x817   : > { %7429 = vrot.lane.b32.xlu0 %v17336_v41, %s11588_s14  ;;  %7431 = vrot.lane.b32.xlu1 %v17369_v34, %s11588_s14 }
 0x818   : > { %v7580_v60 = vsel %vm171_vm0, %v17333_v39, %v11374_v4  ;;  %v17905_v57 = vsel %vm171_vm0, %v17313_v1, %v11375_v0  ;;  %10048 = vmatpush1.bf16.msra.mxu1 %v10047_v29  ;;  %v8954_v39 = vld [vmem:[%s18563_s1 + $0xa58] sm:$0xff] }
 0x819   : > { %v11378_v16 = vpop.permute.xlu0 %11377  ;;  %7873 = vmatprep.mubr.f32.mxu1 %v7580_v60  ;;  %10049 = vmatprep.subr.bf16.mxu1 %v18857_v54  ;;  %v10053_v46 = vpack.c.bf16 %v8954_v39, %v8953_v22 }
 0x81a   : > { %v11380_v61 = vunpack.i.h.bf16 %v11378_v16  ;;  %v11379_v25 = vunpack.i.l.bf16 %v11378_v16  ;;  %7874 = vmatmul.mubr.f32.gmra.mrb[200].mxu1 %v17905_v57  ;;  %v8957_v16 = vld [vmem:[%s18563_s1 + $0xa70] sm:$0xff] }
 0x81b   : > { %7433 = vrot.lane.b32.xlu0 %v17374_v62, %s11588_s14  ;;  %7435 = vrot.lane.b32.xlu1 %v17405_v30, %s11588_s14 }
 0x81c   : > { %v7581_v1 = vsel %vm171_vm0, %v17336_v41, %v11379_v25  ;;  %v17922_v17 = vsel %vm171_vm0, %v11575_v26, %v11380_v61  ;;  %10051 = vmatpush1.bf16.msra.mxu1 %v10050_v36  ;;  %v8956_v41 = vld [vmem:[%s18563_s1 + $0xa68] sm:$0xff] }
 0x81d   : > { %v11383_v35 = vpop.permute.xlu1 %11382  ;;  %7878 = vmatprep.mubr.f32.mxu1 %v7581_v1  ;;  %10052 = vmatprep.subr.bf16.mxu1 %v18857_v54  ;;  %v10056_v23 = vpack.c.bf16 %v8956_v41, %v8955_v51  ;;  %v8959_v1 = vld [vmem:[%s18563_s1 + $0xa80] sm:$0xff]  ;;  %v8961_v51 = vld [vmem:[%s18563_s1 + $0xa90] sm:$0xff] }
 0x81e   : > { %v11385_v37 = vunpack.i.h.bf16 %v11383_v35  ;;  %v11384_v15 = vunpack.i.l.bf16 %v11383_v35  ;;  %7879 = vmatmul.mubr.f32.gmra.mrb[202].mxu1 %v17922_v17 }
 0x81f   : > { %7437 = vrot.lane.b32.xlu0 %v17410_v27, %s11588_s14  ;;  %7439 = vrot.lane.b32.xlu1 %v17441_v58, %s11588_s14 }
 0x820   : > { %v7582_v29 = vsel %vm171_vm0, %v17369_v34, %v11384_v15  ;;  %v17940_v0 = vsel %vm171_vm0, %v17340_v3, %v11385_v37  ;;  %10054 = vmatpush1.bf16.msra.mxu1 %v10053_v46  ;;  %v8958_v34 = vld [vmem:[%s18563_s1 + $0xa78] sm:$0xff] }
 0x821   : > { %v11388_v4 = vpop.permute.xlu0 %11387  ;;  %7883 = vmatprep.mubr.f32.mxu1 %v7582_v29  ;;  %10055 = vmatprep.subr.bf16.mxu1 %v18857_v54  ;;  %v10059_v25 = vpack.c.bf16 %v8958_v34, %v8957_v16 }
 0x822   : > { %v11390_v42 = vunpack.i.h.bf16 %v11388_v4  ;;  %v11389_v60 = vunpack.i.l.bf16 %v11388_v4  ;;  %7884 = vmatmul.mubr.f32.gmra.mrb[204].mxu1 %v17940_v0 }
 0x823   : > { %7441 = vrot.lane.b32.xlu0 %v17446_v40, %s11588_s14  ;;  %7443 = vrot.lane.b32.xlu1 %v17477_v38, %s11588_s14 }
 0x824   : > { %v7583_v3 = vsel %vm171_vm0, %v17374_v62, %v11389_v60  ;;  %v17958_v36 = vsel %vm171_vm0, %v17353_v28, %v11390_v42  ;;  %10057 = vmatpush1.bf16.msra.mxu1 %v10056_v23  ;;  %v8960_v62 = vld [vmem:[%s18563_s1 + $0xa88] sm:$0xff]  ;;  %v8963_v60 = vld [vmem:[%s18563_s1 + $0xaa0] sm:$0xff] }
 0x825   : > { %v11393_v61 = vpop.permute.xlu1 %11392  ;;  %7888 = vmatprep.mubr.f32.mxu1 %v7583_v3  ;;  %10058 = vmatprep.subr.bf16.mxu1 %v18857_v54  ;;  %v10062_v46 = vpack.c.bf16 %v8960_v62, %v8959_v1 }
 0x826   : > { %v11395_v22 = vunpack.i.h.bf16 %v11393_v61  ;;  %v11394_v39 = vunpack.i.l.bf16 %v11393_v61  ;;  %7889 = vmatmul.mubr.f32.gmra.mrb[206].mxu1 %v17958_v36 }
 0x827   : > { %7445 = vrot.lane.b32.xlu0 %v17482_v14, %s11588_s14  ;;  %7447 = vrot.lane.b32.xlu1 %v17513_v47, %s11588_s14 }
 0x828   : > { %v7584_v28 = vsel %vm171_vm0, %v17405_v30, %v11394_v39  ;;  %v17976_v26 = vsel %vm171_vm0, %v17376_v24, %v11395_v22  ;;  %10060 = vmatpush1.bf16.msra.mxu1 %v10059_v25  ;;  %v8962_v30 = vld [vmem:[%s18563_s1 + $0xa98] sm:$0xff]  ;;  %v8965_v22 = vld [vmem:[%s18563_s1 + $0xab0] sm:$0xff] }
 0x829   : > { %v11398_v35 = vpop.permute.xlu0 %11397  ;;  %7893 = vmatprep.mubr.f32.mxu1 %v7584_v28  ;;  %10061 = vmatprep.subr.bf16.mxu1 %v18857_v54  ;;  %v10065_v4 = vpack.c.bf16 %v8962_v30, %v8961_v51 }
 0x82a   : > { %v11400_v37 = vunpack.i.h.bf16 %v11398_v35  ;;  %v11399_v15 = vunpack.i.l.bf16 %v11398_v35  ;;  %7894 = vmatmul.mubr.f32.gmra.mrb[208].mxu1 %v17976_v26 }
 0x82b   : > { %7449 = vrot.lane.b32.xlu0 %v17518_v8, %s11588_s14  ;;  %7451 = vrot.lane.b32.xlu1 %v17549_v20, %s11588_s14 }
 0x82c   : > { %v7585_v24 = vsel %vm171_vm0, %v17410_v27, %v11399_v15  ;;  %v17994_v41 = vsel %vm171_vm0, %v17389_v63, %v11400_v37  ;;  %10063 = vmatpush1.bf16.msra.mxu1 %v10062_v46  ;;  %v8964_v27 = vld [vmem:[%s18563_s1 + $0xaa8] sm:$0xff]  ;;  %v8967_v46 = vld [vmem:[%s18563_s1 + $0xac0] sm:$0xff] }
 0x82d   : > { %v11403_v29 = vpop.permute.xlu1 %11402  ;;  %7898 = vmatprep.mubr.f32.mxu1 %v7585_v24  ;;  %10064 = vmatprep.subr.bf16.mxu1 %v18857_v54  ;;  %v10068_v3 = vpack.c.bf16 %v8964_v27, %v8963_v60 }
 0x82e   : > { %v11405_v23 = vunpack.i.h.bf16 %v11403_v29  ;;  %v11404_v42 = vunpack.i.l.bf16 %v11403_v29  ;;  %7899 = vmatmul.mubr.f32.gmra.mrb[210].mxu1 %v17994_v41  ;;  %v8969_v29 = vld [vmem:[%s18563_s1 + $0xad0] sm:$0xff] }
 0x82f   : > { %7453 = vrot.lane.b32.xlu0 %v17554_v44, %s11588_s14  ;;  %7455 = vrot.lane.b32.xlu1 %v17585_v53, %s11588_s14 }
 0x830   : > { %v7586_v63 = vsel %vm171_vm0, %v17441_v58, %v11404_v42  ;;  %v18012_v16 = vsel %vm171_vm0, %v17412_v19, %v11405_v23  ;;  %10066 = vmatpush1.bf16.msra.mxu1 %v10065_v4  ;;  %v8966_v58 = vld [vmem:[%s18563_s1 + $0xab8] sm:$0xff] }
 0x831   : > { %v11408_v34 = vpop.permute.xlu0 %11407  ;;  %7903 = vmatprep.mubr.f32.mxu1 %v7586_v63  ;;  %10067 = vmatprep.subr.bf16.mxu1 %v18857_v54  ;;  %v10071_v62 = vpack.c.bf16 %v8966_v58, %v8965_v22  ;;  %v8971_v63 = vld [vmem:[%s18563_s1 + $0xae0] sm:$0xff] }
 0x832   : > { %v11410_v61 = vunpack.i.h.bf16 %v11408_v34  ;;  %v11409_v25 = vunpack.i.l.bf16 %v11408_v34  ;;  %7904 = vmatmul.mubr.f32.gmra.mrb[212].mxu1 %v18012_v16  ;;  %v7382_v34 = vrot.slane %v17837_v7, 1  ;;  %v7381_v7 = vrot.slane %v17813_v55, 1 }
 0x833   : > { %7457 = vrot.lane.b32.xlu0 %v17590_v49, %s11588_s14  ;;  %7459 = vrot.lane.b32.xlu1 %v17621_v59, %s11588_s14 }
 0x834   : > { %v7587_v19 = vsel %vm171_vm0, %v17446_v40, %v11409_v25  ;;  %v18030_v39 = vsel %vm171_vm0, %v17425_v45, %v11410_v61  ;;  %10069 = vmatpush1.bf16.msra.mxu1 %v10068_v3  ;;  %v8968_v40 = vld [vmem:[%s18563_s1 + $0xac8] sm:$0xff]  ;;  %v18081_v3 = vld [vmem:[#allocation2 + $0x1a0] sm:$0xff]  ;;  %v18103_v55 = vsel %vm449_vm3, %v7381_v7, %v7382_v34 }
 0x835   : > { %v11413_v1 = vpop.permute.xlu1 %11412  ;;  %7908 = vmatprep.mubr.f32.mxu1 %v7587_v19  ;;  %10070 = vmatprep.subr.bf16.mxu1 %v18857_v54  ;;  %v10074_v51 = vpack.c.bf16 %v8968_v40, %v8967_v46  ;;  %v7384_v19 = vrot.slane %v17839_v12, 1  ;;  %v7523_v12 = vrot.slane %v18081_v3, 1 }
 0x836   : > { %v11415_v28 = vunpack.i.h.bf16 %v11413_v1  ;;  %v11414_v35 = vunpack.i.l.bf16 %v11413_v1  ;;  %7909 = vmatmul.mubr.f32.gmra.mrb[214].mxu1 %v18030_v39 }
 0x837   : > { %7461 = vrot.lane.b32.xlu0 %v17626_v31, %s11588_s14  ;;  %7463 = vrot.lane.b32.xlu1 %v17657_v52, %s11588_s14 }
 0x838   : > { %v7588_v45 = vsel %vm171_vm0, %v17477_v38, %v11414_v35  ;;  %v18048_v37 = vsel %vm171_vm0, %v17448_v56, %v11415_v28  ;;  %10072 = vmatpush1.bf16.msra.mxu1 %v10071_v62  ;;  %v8970_v38 = vld [vmem:[%s18563_s1 + $0xad8] sm:$0xff]  ;;  %v18093_v28 = vld [vmem:[#allocation2 + $0x1a8] sm:$0x3] }
 0x839   : > { %v11418_v15 = vpop.permute.xlu0 %11417  ;;  %7913 = vmatprep.mubr.f32.mxu1 %v7588_v45  ;;  %10073 = vmatprep.subr.bf16.mxu1 %v18857_v54  ;;  %v10077_v42 = vpack.c.bf16 %v8970_v38, %v8969_v29 }
 0x83a   : > { %v11420_v30 = vunpack.i.h.bf16 %v11418_v15  ;;  %v11419_v24 = vunpack.i.l.bf16 %v11418_v15  ;;  %7914 = vmatmul.mubr.f32.gmra.mrb[216].mxu1 %v18048_v37  ;;  %v7525_v15 = vrot.slane %v18093_v28, 1 }
 0x83b   : > { %7465 = vrot.lane.b32.xlu0 %v17662_v10, %s11588_s14  ;;  %7467 = vrot.lane.b32.xlu1 %v17693_v11, %s11588_s14 }
 0x83c   : > { %v7589_v56 = vsel %vm171_vm0, %v17482_v14, %v11419_v24  ;;  %v18066_v4 = vsel %vm171_vm0, %v17461_v21, %v11420_v30  ;;  %10075 = vmatpush1.bf16.msra.mxu1 %v10074_v51  ;;  %v8972_v14 = vld [vmem:[%s18563_s1 + $0xae8] sm:$0xff]  ;;  %v18079_v21 = vld [vmem:[#allocation2 + $0x198] sm:$0xff]  ;;  %v11511_v30 = vpack.i.bf16 %v17808_v33, %v18103_v55  ;;  %v18122_v24 = vsel %vm449_vm3, %v7382_v34, %v7384_v19 }
 0x83d   : > { %v11423_v23 = vpop.permute.xlu1 %11422  ;;  %7918 = vmatprep.mubr.f32.mxu1 %v7589_v56  ;;  %10076 = vmatprep.subr.bf16.mxu1 %v18857_v54  ;;  %v10080_v58 = vpack.c.bf16 %v8972_v14, %v8971_v63  ;;  %v7522_v35 = vrot.slane %v18079_v21, 1  ;;  %v7526_v34 = vsel %vm449_vm3, %v7523_v12, %v7525_v15 }
 0x83e   : > { %v11425_v60 = vunpack.i.h.bf16 %v11423_v23  ;;  %v11424_v27 = vunpack.i.l.bf16 %v11423_v23  ;;  %7919 = vmatmul.mubr.f32.gmra.mrb[218].mxu1 %v18066_v4  ;;  %v19285_v23 = vld [vmem:[#allocation74_spill] sm:$0xff] }
 0x83f   : > { %7469 = vrot.lane.b32.xlu0 %v17698_v5, %s11588_s14  ;;  %7471 = vrot.lane.b32.xlu1 %v17729_v13, %s11588_s14 }
 0x840   : > { %v7590_v61 = vsel %vm171_vm0, %v17513_v47, %v11424_v27  ;;  %v18089_v25 = vsel %vm171_vm0, %v17484_v50, %v11425_v60  ;;  %10078 = vmatpush1.bf16.msra.mxu1 %v10077_v42  ;;  %v8973_v47 = vld [vmem:[%s18563_s1 + $0xaf0] sm:$0xff]  ;;  %v8974_v50 = vld [vmem:[%s18563_s1 + $0xaf8] sm:$0xff]  ;;  %v11516_v60 = vpack.i.bf16 %v17811_v2, %v18122_v24 }
 0x841   : > { %v11428_v22 = vpop.permute.xlu0 %11427  ;;  %7923 = vmatprep.mubr.f32.mxu1 %v7590_v61  ;;  %10079 = vmatprep.subr.bf16.mxu1 %v18857_v54  ;;  %v10083_v51 = vpack.c.bf16 %v8974_v50, %v8973_v47  ;;  %v19286_v61 = vld [vmem:[#allocation55_spill] sm:$0xff] }
 0x842   : > { %v11430_v1 = vunpack.i.h.bf16 %v11428_v22  ;;  %v11429_v62 = vunpack.i.l.bf16 %v11428_v22  ;;  %7924 = vmatmul.mubr.f32.gmra.mrb[220].mxu1 %v18089_v25 }
 0x843   : > { %7473 = vrot.lane.b32.xlu0 %v17734_v48, %s11588_s14  ;;  %7475 = vrot.lane.b32.xlu1 %v17765_v32, %s11588_s14 }
 0x844   : > { %v7591_v46 = vsel %vm171_vm0, %v17518_v8, %v11429_v62  ;;  %v18116_v40 = vsel %vm171_vm0, %v17497_v18, %v11430_v1  ;;  %10081 = vmatpush1.bf16.msra.mxu1 %v10080_v58  ;;  %v7524_v8 = vsel %vm449_vm3, %v7522_v35, %v7523_v12  ;;  %v19284_v18 = vld [vmem:[#allocation7_spill] sm:$0xff]  ;;  %v19287_v62 = vld [vmem:[#allocation70_spill] sm:$0xff] }
 0x845   : > { %7928 = vmatprep.mubr.f32.mxu1 %v7591_v46  ;;  %10082 = vmatprep.subr.bf16.mxu1 %v18857_v54  ;;  %v11521_v27 = vpack.i.bf16 %v17864_v9, %v7524_v8  ;;  %v11526_v9 = vpack.i.bf16 %v17869_v43, %v7526_v34  ;;  %v19288_v12 = vld [vmem:[#allocation71_spill] sm:$0xff] }
 0x846   : > { %v11433_v45 = vpop.permute.xlu1 %11432  ;;  %7929 = vmatmul.mubr.f32.gmra.mrb[222].mxu1 %v18116_v40 }
 0x847   : > { %v11435_v29 = vunpack.i.h.bf16 %v11433_v45  ;;  %v11434_v38 = vunpack.i.l.bf16 %v11433_v45  ;;  %7477 = vrot.lane.b32.xlu0 %v19284_v18, %s11588_s14  ;;  %11512 = vrot.lane.b32.xlu1 %v11511_v30, %s11588_s14  ;;  %v19289_v30 = vld [vmem:[#allocation51_spill] sm:$0xff] }
 0x848   : > { %10084 = vmatpush1.bf16.msra.mxu1 %v10083_v51 }
 0x849   : > { %v7592_v56 = vsel %vm171_vm0, %v17549_v20, %v11434_v38  ;;  %v18134_v42 = vsel %vm171_vm0, %v19285_v23, %v11435_v29  ;;  %v11438_v54 = vpop.permute.xlu0 %11437  ;;  %v19290_v23 = vld [vmem:[#allocation60_spill] sm:$0xff] }
 0x84a   : > { %7933 = vmatprep.mubr.f32.mxu1 %v7592_v56  ;;  %v11440_v63 = vunpack.i.h.bf16 %v11438_v54  ;;  %v11439_v14 = vunpack.i.l.bf16 %v11438_v54 }
 0x84b   : > { %7934 = vmatmul.mubr.f32.gmra.mrb[224].mxu1 %v18134_v42  ;;  %11517 = vrot.lane.b32.xlu0 %v11516_v60, %s11588_s14 }
 0x84c   : > { %11522 = vrot.lane.b32.xlu1 %v11521_v27, %s11588_s14  ;;  %v7593_v20 = vsel %vm171_vm0, %v17554_v44, %v11439_v14  ;;  %v18147_v7 = vsel %vm171_vm0, %v19286_v61, %v11440_v63  ;;  %v19291_v14 = vld [vmem:[#allocation62_spill] sm:$0xff] }
 0x84d   : > { %v11443_v22 = vpop.permute.xlu1 %11442  ;;  %7938 = vmatprep.mubr.f32.mxu1 %v7593_v20 }
 0x84e   : > { %v11445_v58 = vunpack.i.h.bf16 %v11443_v22  ;;  %v11444_v19 = vunpack.i.l.bf16 %v11443_v22 }
 0x84f   : > { %7939 = vmatmul.mubr.f32.gmra.mrb[226].mxu1 %v18147_v7  ;;  %11527 = vrot.lane.b32.xlu0 %v11526_v9, %s11588_s14  ;;  %v19292_v9 = vld [vmem:[#allocation63_spill] sm:$0xff] }
 0x850   : > { %v7594_v1 = vsel %vm171_vm0, %v17585_v53, %v11444_v19  ;;  %v18156_v44 = vsel %vm171_vm0, %v19287_v62, %v11445_v58 }
 0x851   : > { %v11448_v47 = vpop.permute.xlu0 %11447  ;;  %7943 = vmatprep.mubr.f32.mxu1 %v7594_v1 }
 0x852   : > { %v11450_v50 = vunpack.i.h.bf16 %v11448_v47  ;;  %v11449_v35 = vunpack.i.l.bf16 %v11448_v47  ;;  %v19293_v47 = vld [vmem:[#allocation65_spill] sm:$0xff] }
 0x853   : > { %7944 = vmatmul.mubr.f32.gmra.mrb[228].mxu1 %v18156_v44 }
 0x854   : > { %v7595_v43 = vsel %vm171_vm0, %v17590_v49, %v11449_v35  ;;  %v18163_v46 = vsel %vm171_vm0, %v19288_v12, %v11450_v50 }
 0x855   : > { %7948 = vmatprep.mubr.f32.mxu1 %v7595_v43 }
 0x856   : > { %v11453_v45 = vpop.permute.xlu1 %11452 }
 0x857   : > { %v11455_v53 = vunpack.i.h.bf16 %v11453_v45  ;;  %v11454_v15 = vunpack.i.l.bf16 %v11453_v45  ;;  %7949 = vmatmul.mubr.f32.gmra.mrb[230].mxu1 %v18163_v46  ;;  %v19294_v45 = vld [vmem:[#allocation67_spill] sm:$0xff] }
 0x859   : > { %v7596_v51 = vsel %vm171_vm0, %v17621_v59, %v11454_v15  ;;  %v18170_v29 = vsel %vm171_vm0, %v19289_v30, %v11455_v53  ;;  %v11458_v38 = vpop.permute.xlu0 %11457 }
 0x85a   : > { %7953 = vmatprep.mubr.f32.mxu1 %v7596_v51  ;;  %v11460_v49 = vunpack.i.h.bf16 %v11458_v38  ;;  %v11459_v8 = vunpack.i.l.bf16 %v11458_v38  ;;  %v19295_v38 = vld [vmem:[#allocation39_spill] sm:$0xff] }
 0x85b   : > { %7954 = vmatmul.mubr.f32.gmra.mrb[232].mxu1 %v18170_v29 }
 0x85c   : > { %v7597_v56 = vsel %vm171_vm0, %v17626_v31, %v11459_v8  ;;  %v18177_v60 = vsel %vm171_vm0, %v19290_v23, %v11460_v49 }
 0x85d   : > { %v11463_v54 = vpop.permute.xlu1 %11462  ;;  %7958 = vmatprep.mubr.f32.mxu1 %v7597_v56 }
 0x85e   : > { %v11465_v59 = vunpack.i.h.bf16 %v11463_v54  ;;  %v11464_v27 = vunpack.i.l.bf16 %v11463_v54 }
 0x85f   : > { %7959 = vmatmul.mubr.f32.gmra.mrb[234].mxu1 %v18177_v60 }
 0x860   : > { %v7598_v63 = vsel %vm171_vm0, %v17657_v52, %v11464_v27  ;;  %v18184_v34 = vsel %vm171_vm0, %v19291_v14, %v11465_v59  ;;  %v19296_v59 = vld [vmem:[#allocation19_spill] sm:$0xff] }
 0x861   : > { %v11468_v20 = vpop.permute.xlu0 %11467  ;;  %7963 = vmatprep.mubr.f32.mxu1 %v7598_v63 }
 0x862   : > { %v11470_v31 = vunpack.i.h.bf16 %v11468_v20  ;;  %v11469_v61 = vunpack.i.l.bf16 %v11468_v20 }
 0x863   : > { %7964 = vmatmul.mubr.f32.gmra.mrb[236].mxu1 %v18184_v34 }
 0x864   : > { %v7599_v22 = vsel %vm171_vm0, %v17662_v10, %v11469_v61  ;;  %v18191_v58 = vsel %vm171_vm0, %v19292_v9, %v11470_v31  ;;  %v19297_v61 = vld [vmem:[#allocation29_spill] sm:$0xff] }
 0x865   : > { %7968 = vmatprep.mubr.f32.mxu1 %v7599_v22 }
 0x866   : > { %v11473_v19 = vpop.permute.xlu1 %11472 }
 0x867   : > { %v11475_v52 = vunpack.i.h.bf16 %v11473_v19  ;;  %v11474_v1 = vunpack.i.l.bf16 %v11473_v19  ;;  %7969 = vmatmul.mubr.f32.gmra.mrb[238].mxu1 %v18191_v58 }
 0x869   : > { %v7600_v62 = vsel %vm171_vm0, %v17693_v11, %v11474_v1  ;;  %v18198_v50 = vsel %vm171_vm0, %v19293_v47, %v11475_v52  ;;  %v11478_v35 = vpop.permute.xlu0 %11477 }
 0x86a   : > { %7973 = vmatprep.mubr.f32.mxu1 %v7600_v62  ;;  %v11480_v10 = vunpack.i.h.bf16 %v11478_v35  ;;  %v11479_v43 = vunpack.i.l.bf16 %v11478_v35  ;;  %v19298_v62 = vld [vmem:[#allocation23_spill] sm:$0xff] }
 0x86b   : > { %7974 = vmatmul.mubr.f32.gmra.mrb[240].mxu1 %v18198_v50 }
 0x86c   : > { %v7601_v12 = vsel %vm171_vm0, %v17698_v5, %v11479_v43  ;;  %v18205_v53 = vsel %vm171_vm0, %v19294_v45, %v11480_v10  ;;  %v19299_v45 = vld [vmem:[#allocation35_spill] sm:$0xff] }
 0x86d   : > { %v11483_v15 = vpop.permute.xlu1 %11482  ;;  %7978 = vmatprep.mubr.f32.mxu1 %v7601_v12 }
 0x86e   : > { %v11485_v11 = vunpack.i.h.bf16 %v11483_v15  ;;  %v11484_v51 = vunpack.i.l.bf16 %v11483_v15 }
 0x86f   : > { %7979 = vmatmul.mubr.f32.gmra.mrb[242].mxu1 %v18205_v53 }
 0x870   : > { %v7602_v30 = vsel %vm171_vm0, %v17729_v13, %v11484_v51  ;;  %v18212_v49 = vsel %vm171_vm0, %v19295_v38, %v11485_v11  ;;  %v7540_v38 = vrot.slane %v18081_v3, 2 }
 0x871   : > { %v11488_v8 = vpop.permute.xlu0 %11487  ;;  %7983 = vmatprep.mubr.f32.mxu1 %v7602_v30  ;;  %v7539_v30 = vrot.slane %v18079_v21, 2 }
 0x872   : > { %v11490_v5 = vunpack.i.h.bf16 %v11488_v8  ;;  %v11489_v56 = vunpack.i.l.bf16 %v11488_v8 }
 0x873   : > { %7984 = vmatmul.mubr.f32.gmra.mrb[244].mxu1 %v18212_v49 }
 0x874   : > { %v18215_v23 = vpop.f32.mrb[228].mxu0  ;;  %v7603_v54 = vsel %vm171_vm0, %v17734_v48, %v11489_v56  ;;  %v18221_v27 = vsel %vm171_vm0, %v19296_v59, %v11490_v5 }
 0x875   : > { %v18223_v13 = vpop.f32.mrb[229].mxu0  ;;  %7988 = vmatprep.mubr.f32.mxu1 %v7603_v54  ;;  %v7542_v54 = vrot.slane %v18093_v28, 2 }
 0x876   : > { %v11493_v63 = vpop.permute.xlu1 %11492 }
 0x877   : > { %v11495_v14 = vunpack.i.h.bf16 %v11493_v63  ;;  %v11494_v20 = vunpack.i.l.bf16 %v11493_v63  ;;  %7989 = vmatmul.mubr.f32.gmra.mrb[246].mxu1 %v18221_v27  ;;  %v7541_v63 = vsel %vm626_vm4, %v7539_v30, %v7540_v38  ;;  %v19306_v30 = vld [vmem:[#allocation52_spill] sm:$0xff] }
 0x878   : > { %9538 = vmatprep.mubr.msk.f32.mxu0 %vm171_vm0, %v7541_v63 }
 0x879   : > { %v7604_v31 = vsel %vm171_vm0, %v17765_v32, %v11494_v20  ;;  %v18230_v22 = vsel %vm171_vm0, %v19297_v61, %v11495_v14  ;;  %v11498_v48 = vpop.permute.xlu0 %11497  ;;  %v7543_v14 = vsel %vm626_vm4, %v7540_v38, %v7542_v54 }
 0x87a   : > { %7993 = vmatprep.mubr.f32.mxu1 %v7604_v31  ;;  %v11500_v9 = vunpack.i.h.bf16 %v11498_v48  ;;  %v11499_v19 = vunpack.i.l.bf16 %v11498_v48  ;;  %9539 = vmatmul.mubr.msk.f32.gmra.mrb[2].mxu0 %vm171_vm0, %v7543_v14  ;;  %v19308_v14 = vld [vmem:[#allocation73_spill] sm:$0xff] }
 0x87b   : > { %7994 = vmatmul.mubr.f32.gmra.mrb[248].mxu1 %v18230_v22 }
 0x87c   : > { %v18233_v52 = vpop.f32.mrb[230].mxu0  ;;  %v7605_v1 = vsel %vm171_vm0, %v19284_v18, %v11499_v19  ;;  %v18239_v47 = vsel %vm171_vm0, %v19298_v62, %v11500_v9  ;;  %v19302_v9 = vld [vmem:[#allocation33_spill] sm:$0xff]  ;;  %v19303_v62 = vld [vmem:[#allocation36_spill] sm:$0xff] }
 0x87d   : > { %v18241_v32 = vpop.f32.mrb[231].mxu0  ;;  %v11503_v35 = vpop.permute.xlu1 %11502  ;;  %7998 = vmatprep.mubr.f32.mxu1 %v7605_v1 }
 0x87e   : > { %v11505_v10 = vunpack.i.h.bf16 %v11503_v35  ;;  %v11504_v43 = vunpack.i.l.bf16 %v11503_v35 }
 0x87f   : > { %7999 = vmatmul.mubr.f32.gmra.mrb[250].mxu1 %v18239_v47 }
 0x880   : > { %v7606_v12 = vsel %vm171_vm0, %v17808_v33, %v11504_v43  ;;  %v18248_v15 = vsel %vm171_vm0, %v19299_v45, %v11505_v10  ;;  %v19300_v33 = vld [vmem:[#allocation31_spill] sm:$0xff]  ;;  %v19304_v43 = vld [vmem:[#allocation45_spill] sm:$0xff] }
 0x881   : > { %v11508_v18 = vpop.permute.xlu0 %11507  ;;  %8003 = vmatprep.mubr.f32.mxu1 %v7606_v12  ;;  %v7424_v20 = vpop.permute.xlu1 %7423 }
 0x882   : > { %v11510_v11 = vunpack.i.h.bf16 %v11508_v18  ;;  %v11509_v51 = vunpack.i.l.bf16 %v11508_v18  ;;  %v19305_v18 = vld [vmem:[#allocation47_spill] sm:$0xff] }
 0x883   : > { %8004 = vmatmul.mubr.f32.gmra.mrb[252].mxu1 %v18248_v15 }
 0x884   : > { %v18253_v8 = vpop.f32.mrb[232].mxu0  ;;  %v7607_v5 = vsel %vm171_vm0, %v17811_v2, %v11509_v51  ;;  %v18259_v56 = vsel %vm171_vm0, %v19300_v33, %v11510_v11  ;;  %v19301_v2 = vld [vmem:[#allocation34_spill] sm:$0xff]  ;;  %v19307_v33 = vld [vmem:[#allocation68_spill] sm:$0xff] }
 0x885   : > { %v18262_v59 = vpop.f32.mrb[233].mxu0  ;;  %8008 = vmatprep.mubr.f32.mxu1 %v7607_v5  ;;  %v7608_v31 = vsel %vm171_vm0, %v19301_v2, %v7424_v20  ;;  %v7426_v28 = vpop.permute.xlu0 %7425 }
 0x886   : > { %v7609_v19 = vsel %vm171_vm0, %v19302_v9, %v7426_v28  ;;  %v7428_v1 = vpop.permute.xlu1 %7427 }
 0x887   : > { %8009 = vmatmul.mubr.f32.gmra.mrb[254].mxu1 %v18259_v56 }
 0x888   : > { %8078 = vmatprep.mubr.f32.mxu1 %v17905_v57  ;;  %v7610_v57 = vsel %vm171_vm0, %v19303_v62, %v7428_v1 }
 0x889   : > { %v7430_v35 = vpop.permute.xlu0 %7429 }
 0x88a   : > { %v7611_v12 = vsel %vm171_vm0, %v19304_v43, %v7430_v35  ;;  %v7432_v45 = vpop.permute.xlu1 %7431 }
 0x88b   : > { %8079 = vmatmul.mubr.f32.vlgmr.msra.gmra.mrb[192].mxu1 %v7608_v31  ;;  %v19309_v31 = vld [vmem:[#allocation72_spill] sm:$0xff] }
 0x88c   : > { %8083 = vmatprep.mubr.f32.mxu1 %v17922_v17  ;;  %v18273_v61 = vpop.f32.mrb[234].mxu0 }
 0x88d   : > { %v18275_v48 = vpop.f32.mrb[235].mxu0  ;;  %v7434_v11 = vpop.permute.xlu0 %7433 }
 0x88e   : > { %v7613_v38 = vsel %vm171_vm0, %v19306_v30, %v7434_v11  ;;  %v7436_v5 = vpop.permute.xlu1 %7435 }
 0x88f   : > { %8084 = vmatmul.mubr.f32.gmra.mrb[194].mxu1 %v7609_v19  ;;  %v19310_v19 = vld [vmem:[#allocation54_spill] sm:$0xff] }
 0x890   : > { %8088 = vmatprep.mubr.f32.mxu1 %v17940_v0  ;;  %v7612_v0 = vsel %vm171_vm0, %v19305_v18, %v7432_v45 }
 0x891   : > { %v7438_v54 = vpop.permute.xlu0 %7437 }
 0x892   : > { %v7615_v20 = vsel %vm171_vm0, %v19308_v14, %v7438_v54  ;;  %v7440_v2 = vpop.permute.xlu1 %7439 }
 0x893   : > { %8089 = vmatmul.mubr.f32.gmra.mrb[196].mxu1 %v7610_v57  ;;  %v19311_v57 = vld [vmem:[#allocation75_spill] sm:$0xff] }
 0x894   : > { %8093 = vmatprep.mubr.f32.mxu1 %v17958_v36  ;;  %v18283_v10 = vpop.f32.mrb[236].mxu0 }
 0x895   : > { %v18285_v17 = vpop.f32.mrb[237].mxu0  ;;  %v7442_v28 = vpop.permute.xlu0 %7441 }
 0x896   : > { %v7617_v1 = vsel %vm171_vm0, %v19310_v19, %v7442_v28  ;;  %v7444_v62 = vpop.permute.xlu1 %7443 }
 0x897   : > { %8094 = vmatmul.mubr.f32.gmra.mrb[198].mxu1 %v7611_v12  ;;  %v19312_v12 = vld [vmem:[#allocation53_spill] sm:$0xff] }
 0x898   : > { %8098 = vmatprep.mubr.f32.mxu1 %v17976_v26  ;;  %v7614_v26 = vsel %vm171_vm0, %v19307_v33, %v7436_v5 }
 0x899   : > { %v7446_v35 = vpop.permute.xlu0 %7445 }
 0x89a   : > { %v7619_v45 = vsel %vm171_vm0, %v19312_v12, %v7446_v35  ;;  %v7448_v18 = vpop.permute.xlu1 %7447 }
 0x89b   : > { %8099 = vmatmul.mubr.f32.gmra.mrb[200].mxu1 %v7612_v0  ;;  %v19313_v0 = vld [vmem:[#allocation56_spill] sm:$0xff] }
 0x89c   : > { %8103 = vmatprep.mubr.f32.mxu1 %v17994_v41  ;;  %v18293_v51 = vpop.f32.mrb[238].mxu0 }
 0x89d   : > { %v18295_v36 = vpop.f32.mrb[239].mxu0  ;;  %v7450_v11 = vpop.permute.xlu0 %7449 }
 0x89e   : > { %v7452_v33 = vpop.permute.xlu1 %7451 }
 0x89f   : > { %8104 = vmatmul.mubr.f32.gmra.mrb[202].mxu1 %v7613_v38  ;;  %v19314_v38 = vld [vmem:[#allocation69_spill] sm:$0xff] }
 0x8a0   : > { %8108 = vmatprep.mubr.f32.mxu1 %v18012_v16  ;;  %v7616_v16 = vsel %vm171_vm0, %v19309_v31, %v7440_v2  ;;  %v7621_v5 = vsel %vm171_vm0, %v19314_v38, %v7450_v11 }
 0x8a1   : > { %v7454_v54 = vpop.permute.xlu0 %7453 }
 0x8a2   : > { %v7456_v31 = vpop.permute.xlu1 %7455 }
 0x8a3   : > { %8109 = vmatmul.mubr.f32.gmra.mrb[204].mxu1 %v7614_v26  ;;  %v19315_v26 = vld [vmem:[#allocation58_spill] sm:$0xff] }
 0x8a4   : > { %8113 = vmatprep.mubr.f32.mxu1 %v18030_v39  ;;  %v18303_v63 = vpop.f32.mrb[240].mxu0 }
 0x8a5   : > { %v18305_v41 = vpop.f32.mrb[241].mxu0  ;;  %v7458_v28 = vpop.permute.xlu0 %7457 }
 0x8a7   : > { %8114 = vmatmul.mubr.f32.gmra.mrb[206].mxu1 %v7615_v20  ;;  %v19316_v20 = vld [vmem:[#allocation50_spill] sm:$0xff] }
 0x8a8   : > { %8118 = vmatprep.mubr.f32.mxu1 %v18048_v37  ;;  %v7618_v37 = vsel %vm171_vm0, %v19311_v57, %v7444_v62  ;;  %v7623_v2 = vsel %vm171_vm0, %v19316_v20, %v7454_v54  ;;  %v7460_v57 = vpop.permute.xlu1 %7459 }
 0x8a9   : > { %v7462_v35 = vpop.permute.xlu0 %7461 }
 0x8ab   : > { %8119 = vmatmul.mubr.f32.gmra.mrb[208].mxu1 %v7616_v16  ;;  %v19317_v16 = vld [vmem:[#allocation57_spill] sm:$0xff] }
 0x8ac   : > { %8123 = vmatprep.mubr.f32.mxu1 %v18066_v4  ;;  %v18313_v9 = vpop.f32.mrb[242].mxu0 }
 0x8ad   : > { %v18315_v39 = vpop.f32.mrb[243].mxu0  ;;  %v7466_v11 = vpop.permute.xlu0 %7465 }
 0x8af   : > { %8124 = vmatmul.mubr.f32.gmra.mrb[210].mxu1 %v7617_v1  ;;  %v19318_v1 = vld [vmem:[#allocation59_spill] sm:$0xff] }
 0x8b0   : > { %8128 = vmatprep.mubr.f32.mxu1 %v18089_v25  ;;  %v7620_v25 = vsel %vm171_vm0, %v19313_v0, %v7448_v18  ;;  %v7625_v62 = vsel %vm171_vm0, %v19318_v1, %v7458_v28  ;;  %v7464_v0 = vpop.permute.xlu1 %7463  ;;  %v19325_v28 = vld [vmem:[#allocation20_spill] sm:$0xff] }
 0x8b3   : > { %8129 = vmatmul.mubr.f32.gmra.mrb[212].mxu1 %v7618_v37  ;;  %v19319_v37 = vld [vmem:[#allocation61_spill] sm:$0xff] }
 0x8b4   : > { %8133 = vmatprep.mubr.f32.mxu1 %v18116_v40  ;;  %v18323_v43 = vpop.f32.mrb[244].mxu0 }
 0x8b5   : > { %v18325_v4 = vpop.f32.mrb[245].mxu0 }
 0x8b7   : > { %8134 = vmatmul.mubr.f32.gmra.mrb[214].mxu1 %v7619_v45  ;;  %v19320_v45 = vld [vmem:[#allocation64_spill] sm:$0xff] }
 0x8b8   : > { %8138 = vmatprep.mubr.f32.mxu1 %v18134_v42  ;;  %v7622_v42 = vsel %vm171_vm0, %v19315_v26, %v7452_v33  ;;  %v7627_v18 = vsel %vm171_vm0, %v19320_v45, %v7462_v35  ;;  %v19322_v33 = vld [vmem:[#allocation40_spill] sm:$0xff] }
 0x8b9   : > { %v7629_v26 = vsel %vm171_vm0, %v19322_v33, %v7466_v11  ;;  %v19329_v33 = vld [vmem:[#allocation42_spill] sm:$0xff] }
 0x8bb   : > { %8139 = vmatmul.mubr.f32.gmra.mrb[216].mxu1 %v7620_v25  ;;  %v19321_v25 = vld [vmem:[#allocation66_spill] sm:$0xff] }
 0x8bc   : > { %8143 = vmatprep.mubr.f32.mxu1 %v18147_v7  ;;  %v18333_v30 = vpop.f32.mrb[246].mxu0 }
 0x8bd   : > { %v18335_v40 = vpop.f32.mrb[247].mxu0 }
 0x8bf   : > { %8144 = vmatmul.mubr.f32.gmra.mrb[218].mxu1 %v7621_v5  ;;  %v7468_v5 = vpop.permute.xlu1 %7467 }
 0x8c0   : > { %8148 = vmatprep.mubr.f32.mxu1 %v18156_v44  ;;  %v7624_v44 = vsel %vm171_vm0, %v19317_v16, %v7456_v31  ;;  %v19324_v31 = vld [vmem:[#allocation10_spill] sm:$0xff] }
 0x8c3   : > { %8149 = vmatmul.mubr.f32.gmra.mrb[220].mxu1 %v7622_v42  ;;  %v7470_v42 = vpop.permute.xlu0 %7469  ;;  %v7472_v20 = vpop.permute.xlu1 %7471 }
 0x8c4   : > { %8153 = vmatprep.mubr.f32.mxu1 %v18163_v46  ;;  %v18343_v14 = vpop.f32.mrb[248].mxu0  ;;  %v7631_v16 = vsel %vm171_vm0, %v19324_v31, %v7470_v42  ;;  %v7632_v1 = vsel %vm171_vm0, %v19325_v28, %v7472_v20 }
 0x8c5   : > { %v18345_v7 = vpop.f32.mrb[249].mxu0 }
 0x8c7   : > { %8154 = vmatmul.mubr.f32.gmra.mrb[222].mxu1 %v7623_v2 }
 0x8c8   : > { %8158 = vmatprep.mubr.f32.mxu1 %v18170_v29  ;;  %v7626_v29 = vsel %vm171_vm0, %v19319_v37, %v7460_v57 }
 0x8cb   : > { %8159 = vmatmul.mubr.f32.gmra.mrb[224].mxu1 %v7624_v44  ;;  %v7474_v44 = vpop.permute.xlu0 %7473 }
 0x8cc   : > { %8163 = vmatprep.mubr.f32.mxu1 %v18177_v60  ;;  %v18353_v19 = vpop.f32.mrb[250].mxu0 }
 0x8cd   : > { %v18355_v46 = vpop.f32.mrb[251].mxu0 }
 0x8cf   : > { %8164 = vmatmul.mubr.f32.gmra.mrb[226].mxu1 %v7625_v62  ;;  %v7478_v62 = vpop.permute.xlu0 %7477 }
 0x8d0   : > { %8168 = vmatprep.mubr.f32.mxu1 %v18184_v34  ;;  %v7628_v34 = vsel %vm171_vm0, %v19321_v25, %v7464_v0  ;;  %v19328_v0 = vld [vmem:[#allocation9_spill] sm:$0xff] }
 0x8d3   : > { %8169 = vmatmul.mubr.f32.gmra.mrb[228].mxu1 %v7626_v29  ;;  %v19327_v29 = vld [vmem:[#allocation28_spill] sm:$0xff] }
 0x8d4   : > { %8173 = vmatprep.mubr.f32.mxu1 %v18191_v58  ;;  %v18363_v12 = vpop.f32.mrb[252].mxu0 }
 0x8d5   : > { %v18365_v60 = vpop.f32.mrb[253].mxu0 }
 0x8d7   : > { %8174 = vmatmul.mubr.f32.gmra.mrb[230].mxu1 %v7627_v18 }
 0x8d8   : > { %8178 = vmatprep.mubr.f32.mxu1 %v18198_v50  ;;  %v19323_v50 = vld [vmem:[#allocation8_spill] sm:$0xff] }
 0x8d9   : > { %v7630_v54 = vsel %vm171_vm0, %v19323_v50, %v7468_v5  ;;  %v11577_v50 = vld [vmem:[#allocation2 + $0x188] sm:$0xff] }
 0x8db   : > { %8179 = vmatmul.mubr.f32.gmra.mrb[232].mxu1 %v7628_v34  ;;  %v11576_v34 = vld [vmem:[#allocation2 + $0x180] sm:$0xff] }
 0x8dc   : > { %8183 = vmatprep.mubr.f32.mxu1 %v18205_v53  ;;  %v18373_v38 = vpop.f32.mrb[254].mxu0 }
 0x8dd   : > { %v18375_v58 = vpop.f32.mrb[255].mxu0 }
 0x8df   : > { %8184 = vmatmul.mubr.f32.gmra.mrb[234].mxu1 %v7629_v26 }
 0x8e0   : > { %8188 = vmatprep.mubr.f32.mxu1 %v18212_v49  ;;  %v7476_v49 = vpop.permute.xlu1 %7475 }
 0x8e1   : > { %v7634_v35 = vsel %vm171_vm0, %v19327_v29, %v7476_v49 }
 0x8e3   : > { %8189 = vmatmul.mubr.f32.gmra.mrb[236].mxu1 %v7630_v54 }
 0x8e4   : > { %8193 = vmatprep.mubr.f32.mxu1 %v18221_v27  ;;  %v18383_v53 = vpop.f32.mrb[0].mxu0  ;;  %v19326_v27 = vld [vmem:[#allocation22_spill] sm:$0xff]  ;;  %v11513_v37 = vpop.permute.xlu1 %11512 }
 0x8e5   : > { %v18385_v2 = vpop.f32.mrb[1].mxu0  ;;  %v7633_v57 = vsel %vm171_vm0, %v19326_v27, %v7474_v44  ;;  %v11514_v45 = vunpack.i.l.bf16 %v11513_v37  ;;  %v11515_v18 = vunpack.i.h.bf16 %v11513_v37 }
 0x8e7   : > { %8194 = vmatmul.mubr.f32.gmra.mrb[238].mxu1 %v7631_v16  ;;  %v7640_v11 = vsel %vm171_vm0, %v11576_v34, %v11514_v45  ;;  %v7636_v26 = vsel %vm171_vm0, %v19329_v33, %v11515_v18 }
 0x8e8   : > { %8198 = vmatprep.mubr.f32.mxu1 %v18230_v22  ;;  %v11518_v22 = vpop.permute.xlu0 %11517  ;;  %v11523_v5 = vpop.permute.xlu1 %11522 }
 0x8e9   : > { %v11519_v25 = vunpack.i.l.bf16 %v11518_v22  ;;  %v11524_v42 = vunpack.i.l.bf16 %v11523_v5  ;;  %v11525_v20 = vunpack.i.h.bf16 %v11523_v5 }
 0x8eb   : > { %8199 = vmatmul.mubr.f32.gmra.mrb[240].mxu1 %v7632_v1  ;;  %v7642_v44 = vsel %vm171_vm0, %v18079_v21, %v11524_v42  ;;  %v7638_v28 = vsel %vm171_vm0, %v18103_v55, %v11525_v20  ;;  %v18422_v21 = vld [vmem:[%s18564_s2 + $0x4] ss:$0 sm:$0xff] }
 0x8ec   : > { %8203 = vmatprep.mubr.f32.mxu1 %v18239_v47  ;;  %v7635_v47 = vsel %vm171_vm0, %v19328_v0, %v7478_v62  ;;  %v11528_v54 = vpop.permute.xlu0 %11527 }
 0x8ed   : > { %v11529_v16 = vunpack.i.l.bf16 %v11528_v54  ;;  %v11530_v49 = vunpack.i.h.bf16 %v11528_v54 }
 0x8ef   : > { %8204 = vmatmul.mubr.f32.gmra.mrb[242].mxu1 %v7633_v57  ;;  %v7643_v1 = vsel %vm171_vm0, %v18081_v3, %v11529_v16  ;;  %v7639_v62 = vsel %vm171_vm0, %v18122_v24, %v11530_v49 }
 0x8f0   : > { %8208 = vmatprep.mubr.f32.mxu1 %v18248_v15  ;;  %v11520_v15 = vunpack.i.h.bf16 %v11518_v22 }
 0x8f2   : > { %v7637_v31 = vsel %vm171_vm0, %v17845_v6, %v11520_v15 }
 0x8f3   : > { %8209 = vmatmul.mubr.f32.gmra.mrb[244].mxu1 %v7634_v35 }
 0x8f4   : > { %8213 = vmatprep.mubr.f32.mxu1 %v18259_v56  ;;  %v7641_v56 = vsel %vm171_vm0, %v11577_v50, %v11519_v25 }
 0x8f7   : > { %8214 = vmatmul.mubr.f32.gmra.mrb[246].mxu1 %v7635_v47 }
 0x8f8   : > { %8218 = vmatprep.mubr.f32.mxu1 %v7640_v11 }
 0x8fb   : > { %8219 = vmatmul.mubr.f32.gmra.mrb[248].mxu1 %v7636_v26 }
 0x8fc   : > { %8223 = vmatprep.mubr.f32.mxu1 %v7641_v56 }
 0x8ff   : > { %8224 = vmatmul.mubr.f32.gmra.mrb[250].mxu1 %v7637_v31 }
 0x900   : > { %8228 = vmatprep.mubr.f32.mxu1 %v7642_v44 }
 0x903   : > { %8229 = vmatmul.mubr.f32.gmra.mrb[252].mxu1 %v7638_v28 }
 0x904   : > { %8233 = vmatprep.mubr.f32.mxu1 %v7643_v1 }
 0x907   : > { %8234 = vmatmul.mubr.f32.gmra.mrb[254].mxu1 %v7639_v62 }
 0x94d   : > { %v18415_v6 = vpop.f32.mrb[2].mxu0 }
 0x94e   : > { %v18417_v27 = vpop.f32.mrb[3].mxu0 }
 0x95e   : > { %v8080_v57 = vpop.f32.mrb[192].mxu1 }
 0x95f   : > { %v10279_v55 = vadd.f32 %v18422_v21, %v8080_v57  ;;  %v8082_v37 = vpop.f32.mrb[193].mxu1 }
 0x961   : > { %v8306_v3 = vadd.f32 %v10279_v55, %v18223_v13 }
 0x962   : > { %v8085_v24 = vpop.f32.mrb[194].mxu1 }
 0x963   : > { %8464 = vst.msk [vmem:[%s18430_s15] sm:$0xff] %vm314_vm2, %v8306_v3  ;;  %v10280_v29 = vadd.f32 %v18422_v21, %v8085_v24  ;;  %v8087_v35 = vpop.f32.mrb[195].mxu1 }
 0x965   : > { %v8311_v45 = vadd.f32 %v10280_v29, %v18215_v23 }
 0x966   : > { %v8090_v22 = vpop.f32.mrb[196].mxu1 }
 0x967   : > { %8465 = vst.msk [vmem:[%s18430_s15 + $0x8] sm:$0xff] %vm314_vm2, %v8311_v45  ;;  %v10281_v18 = vadd.f32 %v18422_v21, %v8090_v22  ;;  %v8092_v0 = vpop.f32.mrb[197].mxu1 }
 0x969   : > { %v8316_v47 = vadd.f32 %v10281_v18, %v18241_v32 }
 0x96a   : > { %v8095_v25 = vpop.f32.mrb[198].mxu1 }
 0x96b   : > { %8466 = vst.msk [vmem:[%s18430_s15 + $0x10] sm:$0xff] %vm314_vm2, %v8316_v47  ;;  %v10282_v13 = vadd.f32 %v18422_v21, %v8095_v25  ;;  %v8097_v34 = vpop.f32.mrb[199].mxu1 }
 0x96d   : > { %v8321_v11 = vadd.f32 %v10282_v13, %v18233_v52 }
 0x96e   : > { %v8100_v5 = vpop.f32.mrb[200].mxu1 }
 0x96f   : > { %8467 = vst.msk [vmem:[%s18430_s15 + $0x18] sm:$0xff] %vm314_vm2, %v8321_v11  ;;  %v10283_v23 = vadd.f32 %v18422_v21, %v8100_v5  ;;  %v8102_v15 = vpop.f32.mrb[201].mxu1 }
 0x971   : > { %v8326_v33 = vadd.f32 %v10283_v23, %v18262_v59 }
 0x972   : > { %v8105_v26 = vpop.f32.mrb[202].mxu1 }
 0x973   : > { %8468 = vst.msk [vmem:[%s18430_s15 + $0x20] sm:$0xff] %vm314_vm2, %v8326_v33  ;;  %v10284_v32 = vadd.f32 %v18422_v21, %v8105_v26  ;;  %v8107_v42 = vpop.f32.mrb[203].mxu1 }
 0x975   : > { %v8331_v50 = vadd.f32 %v10284_v32, %v18253_v8 }
 0x976   : > { %v8110_v56 = vpop.f32.mrb[204].mxu1 }
 0x977   : > { %8469 = vst.msk [vmem:[%s18430_s15 + $0x28] sm:$0xff] %vm314_vm2, %v8331_v50  ;;  %v10285_v52 = vadd.f32 %v18422_v21, %v8110_v56  ;;  %v8112_v54 = vpop.f32.mrb[205].mxu1 }
 0x979   : > { %v8336_v20 = vadd.f32 %v10285_v52, %v18275_v48 }
 0x97a   : > { %v8115_v31 = vpop.f32.mrb[206].mxu1 }
 0x97b   : > { %8470 = vst.msk [vmem:[%s18430_s15 + $0x30] sm:$0xff] %vm314_vm2, %v8336_v20  ;;  %v10286_v59 = vadd.f32 %v18422_v21, %v8115_v31  ;;  %v8117_v16 = vpop.f32.mrb[207].mxu1 }
 0x97d   : > { %v8341_v44 = vadd.f32 %v10286_v59, %v18273_v61 }
 0x97e   : > { %v8120_v49 = vpop.f32.mrb[208].mxu1 }
 0x97f   : > { %8471 = vst.msk [vmem:[%s18430_s15 + $0x38] sm:$0xff] %vm314_vm2, %v8341_v44  ;;  %v10287_v8 = vadd.f32 %v18422_v21, %v8120_v49  ;;  %v8122_v28 = vpop.f32.mrb[209].mxu1 }
 0x981   : > { %v8346_v1 = vadd.f32 %v10287_v8, %v18285_v17 }
 0x982   : > { %v8125_v62 = vpop.f32.mrb[210].mxu1 }
 0x983   : > { %8472 = vst.msk [vmem:[%s18430_s15 + $0x40] sm:$0xff] %vm314_vm2, %v8346_v1  ;;  %v10288_v48 = vadd.f32 %v18422_v21, %v8125_v62  ;;  %v8127_v57 = vpop.f32.mrb[211].mxu1 }
 0x985   : > { %v8351_v55 = vadd.f32 %v10288_v48, %v18283_v10 }
 0x986   : > { %v8130_v37 = vpop.f32.mrb[212].mxu1 }
 0x987   : > { %8473 = vst.msk [vmem:[%s18430_s15 + $0x48] sm:$0xff] %vm314_vm2, %v8351_v55  ;;  %v10289_v61 = vadd.f32 %v18422_v21, %v8130_v37  ;;  %v8132_v3 = vpop.f32.mrb[213].mxu1 }
 0x989   : > { %v8356_v24 = vadd.f32 %v10289_v61, %v18295_v36 }
 0x98a   : > { %v8135_v29 = vpop.f32.mrb[214].mxu1 }
 0x98b   : > { %8474 = vst.msk [vmem:[%s18430_s15 + $0x50] sm:$0xff] %vm314_vm2, %v8356_v24  ;;  %v10290_v17 = vadd.f32 %v18422_v21, %v8135_v29  ;;  %v8137_v35 = vpop.f32.mrb[215].mxu1 }
 0x98d   : > { %v8361_v45 = vadd.f32 %v10290_v17, %v18293_v51 }
 0x98e   : > { %v8140_v22 = vpop.f32.mrb[216].mxu1 }
 0x98f   : > { %8475 = vst.msk [vmem:[%s18430_s15 + $0x58] sm:$0xff] %vm314_vm2, %v8361_v45  ;;  %v10291_v10 = vadd.f32 %v18422_v21, %v8140_v22  ;;  %v8142_v18 = vpop.f32.mrb[217].mxu1 }
 0x991   : > { %v8366_v0 = vadd.f32 %v10291_v10, %v18305_v41 }
 0x992   : > { %v8145_v47 = vpop.f32.mrb[218].mxu1 }
 0x993   : > { %8476 = vst.msk [vmem:[%s18430_s15 + $0x60] sm:$0xff] %vm314_vm2, %v8366_v0  ;;  %v10292_v36 = vadd.f32 %v18422_v21, %v8145_v47  ;;  %v8147_v25 = vpop.f32.mrb[219].mxu1 }
 0x995   : > { %v8371_v13 = vadd.f32 %v10292_v36, %v18303_v63 }
 0x996   : > { %v8150_v34 = vpop.f32.mrb[220].mxu1 }
 0x997   : > { %8477 = vst.msk [vmem:[%s18430_s15 + $0x68] sm:$0xff] %vm314_vm2, %v8371_v13  ;;  %v10293_v51 = vadd.f32 %v18422_v21, %v8150_v34  ;;  %v8152_v11 = vpop.f32.mrb[221].mxu1 }
 0x999   : > { %v8376_v5 = vadd.f32 %v10293_v51, %v18315_v39 }
 0x99a   : > { %v8155_v23 = vpop.f32.mrb[222].mxu1 }
 0x99b   : > { %8478 = vst.msk [vmem:[%s18430_s15 + $0x70] sm:$0xff] %vm314_vm2, %v8376_v5  ;;  %v10294_v41 = vadd.f32 %v18422_v21, %v8155_v23  ;;  %v8157_v15 = vpop.f32.mrb[223].mxu1 }
 0x99d   : > { %v8381_v33 = vadd.f32 %v10294_v41, %v18313_v9 }
 0x99e   : > { %v8160_v26 = vpop.f32.mrb[224].mxu1 }
 0x99f   : > { %8479 = vst.msk [vmem:[%s18430_s15 + $0x78] sm:$0xff] %vm314_vm2, %v8381_v33  ;;  %v10295_v63 = vadd.f32 %v18422_v21, %v8160_v26  ;;  %v8162_v32 = vpop.f32.mrb[225].mxu1 }
 0x9a1   : > { %v8386_v42 = vadd.f32 %v10295_v63, %v18325_v4 }
 0x9a2   : > { %v8165_v50 = vpop.f32.mrb[226].mxu1 }
 0x9a3   : > { %8480 = vst.msk [vmem:[%s18430_s15 + $0x80] sm:$0xff] %vm314_vm2, %v8386_v42  ;;  %v10296_v39 = vadd.f32 %v18422_v21, %v8165_v50  ;;  %v8167_v56 = vpop.f32.mrb[227].mxu1 }
 0x9a5   : > { %v8391_v52 = vadd.f32 %v10296_v39, %v18323_v43 }
 0x9a6   : > { %v8170_v54 = vpop.f32.mrb[228].mxu1 }
 0x9a7   : > { %8481 = vst.msk [vmem:[%s18430_s15 + $0x88] sm:$0xff] %vm314_vm2, %v8391_v52  ;;  %v10297_v9 = vadd.f32 %v18422_v21, %v8170_v54  ;;  %v8172_v20 = vpop.f32.mrb[229].mxu1 }
 0x9a9   : > { %v8396_v31 = vadd.f32 %v10297_v9, %v18335_v40 }
 0x9aa   : > { %v8175_v59 = vpop.f32.mrb[230].mxu1 }
 0x9ab   : > { %8482 = vst.msk [vmem:[%s18430_s15 + $0x90] sm:$0xff] %vm314_vm2, %v8396_v31  ;;  %v10298_v4 = vadd.f32 %v18422_v21, %v8175_v59  ;;  %v8177_v16 = vpop.f32.mrb[231].mxu1 }
 0x9ad   : > { %v8401_v44 = vadd.f32 %v10298_v4, %v18333_v30 }
 0x9ae   : > { %v8180_v49 = vpop.f32.mrb[232].mxu1 }
 0x9af   : > { %8483 = vst.msk [vmem:[%s18430_s15 + $0x98] sm:$0xff] %vm314_vm2, %v8401_v44  ;;  %v10299_v43 = vadd.f32 %v18422_v21, %v8180_v49  ;;  %v8182_v8 = vpop.f32.mrb[233].mxu1 }
 0x9b1   : > { %v8406_v28 = vadd.f32 %v10299_v43, %v18345_v7 }
 0x9b2   : > { %v8185_v1 = vpop.f32.mrb[234].mxu1 }
 0x9b3   : > { %8484 = vst.msk [vmem:[%s18430_s15 + $0xa0] sm:$0xff] %vm314_vm2, %v8406_v28  ;;  %v10300_v40 = vadd.f32 %v18422_v21, %v8185_v1  ;;  %v8187_v62 = vpop.f32.mrb[235].mxu1 }
 0x9b5   : > { %v8411_v48 = vadd.f32 %v10300_v40, %v18343_v14 }
 0x9b6   : > { %v8190_v57 = vpop.f32.mrb[236].mxu1 }
 0x9b7   : > { %8485 = vst.msk [vmem:[%s18430_s15 + $0xa8] sm:$0xff] %vm314_vm2, %v8411_v48  ;;  %v10301_v30 = vadd.f32 %v18422_v21, %v8190_v57  ;;  %v8192_v55 = vpop.f32.mrb[237].mxu1 }
 0x9b9   : > { %v8416_v37 = vadd.f32 %v10301_v30, %v18355_v46 }
 0x9ba   : > { %v8195_v61 = vpop.f32.mrb[238].mxu1 }
 0x9bb   : > { %8486 = vst.msk [vmem:[%s18430_s15 + $0xb0] sm:$0xff] %vm314_vm2, %v8416_v37  ;;  %v10302_v7 = vadd.f32 %v18422_v21, %v8195_v61  ;;  %v8197_v3 = vpop.f32.mrb[239].mxu1 }
 0x9bd   : > { %v8421_v24 = vadd.f32 %v10302_v7, %v18353_v19 }
 0x9be   : > { %v8200_v29 = vpop.f32.mrb[240].mxu1 }
 0x9bf   : > { %8487 = vst.msk [vmem:[%s18430_s15 + $0xb8] sm:$0xff] %vm314_vm2, %v8421_v24  ;;  %v10303_v14 = vadd.f32 %v18422_v21, %v8200_v29  ;;  %v8202_v17 = vpop.f32.mrb[241].mxu1 }
 0x9c1   : > { %v8426_v35 = vadd.f32 %v10303_v14, %v18365_v60 }
 0x9c2   : > { %v8205_v45 = vpop.f32.mrb[242].mxu1 }
 0x9c3   : > { %8488 = vst.msk [vmem:[%s18430_s15 + $0xc0] sm:$0xff] %vm314_vm2, %v8426_v35  ;;  %v10304_v46 = vadd.f32 %v18422_v21, %v8205_v45  ;;  %v8207_v22 = vpop.f32.mrb[243].mxu1 }
 0x9c5   : > { %v8431_v10 = vadd.f32 %v10304_v46, %v18363_v12 }
 0x9c6   : > { %v8210_v18 = vpop.f32.mrb[244].mxu1 }
 0x9c7   : > { %8489 = vst.msk [vmem:[%s18430_s15 + $0xc8] sm:$0xff] %vm314_vm2, %v8431_v10  ;;  %v10305_v19 = vadd.f32 %v18422_v21, %v8210_v18  ;;  %v8212_v0 = vpop.f32.mrb[245].mxu1 }
 0x9c9   : > { %v8436_v47 = vadd.f32 %v10305_v19, %v18375_v58 }
 0x9ca   : > { %v8215_v36 = vpop.f32.mrb[246].mxu1 }
 0x9cb   : > { %8490 = vst.msk [vmem:[%s18430_s15 + $0xd0] sm:$0xff] %vm314_vm2, %v8436_v47  ;;  %v10306_v60 = vadd.f32 %v18422_v21, %v8215_v36  ;;  %v8217_v25 = vpop.f32.mrb[247].mxu1 }
 0x9cd   : > { %v8441_v13 = vadd.f32 %v10306_v60, %v18373_v38 }
 0x9ce   : > { %v8220_v34 = vpop.f32.mrb[248].mxu1 }
 0x9cf   : > { %8491 = vst.msk [vmem:[%s18430_s15 + $0xd8] sm:$0xff] %vm314_vm2, %v8441_v13  ;;  %v10307_v12 = vadd.f32 %v18422_v21, %v8220_v34  ;;  %v8222_v51 = vpop.f32.mrb[249].mxu1 }
 0x9d1   : > { %v8446_v11 = vadd.f32 %v10307_v12, %v18385_v2 }
 0x9d2   : > { %v8225_v58 = vpop.f32.mrb[250].mxu1 }
 0x9d3   : > { %8492 = vst.msk [vmem:[%s18430_s15 + $0xe0] sm:$0xff] %vm314_vm2, %v8446_v11  ;;  %v10308_v5 = vadd.f32 %v18422_v21, %v8225_v58  ;;  %v8227_v23 = vpop.f32.mrb[251].mxu1 }
 0x9d5   : > { %v8451_v41 = vadd.f32 %v10308_v5, %v18383_v53 }
 0x9d6   : > { %v8230_v15 = vpop.f32.mrb[252].mxu1 }
 0x9d7   : > { %8493 = vst.msk [vmem:[%s18430_s15 + $0xe8] sm:$0xff] %vm314_vm2, %v8451_v41  ;;  %v10309_v38 = vadd.f32 %v18422_v21, %v8230_v15  ;;  %v8232_v33 = vpop.f32.mrb[253].mxu1 }
 0x9d9   : > { %v8456_v26 = vadd.f32 %v10309_v38, %v18417_v27 }
 0x9da   : > { %v8235_v63 = vpop.f32.mrb[254].mxu1 }
 0x9db   : > { %8494 = vst.msk [vmem:[%s18430_s15 + $0xf0] sm:$0xff] %vm314_vm2, %v8456_v26  ;;  %v10310_v2 = vadd.f32 %v18422_v21, %v8235_v63  ;;  %v8237_v32 = vpop.f32.mrb[255].mxu1 }
 0x9dd   : > { %v8461_v42 = vadd.f32 %v10310_v2, %v18415_v6 }
 0x9df   : > { %8495 = vst.msk [vmem:[%s18430_s15 + $0xf8] sm:$0xff] %vm314_vm2, %v8461_v42 }
 0x9e0 PF: > { %s13_s12 = sadd.s32 1, %s11584_s12  }
 0x9e1   : > { %p10_p4 = scmp.ge.s32.totalorder %s13_s12, 4  }
 0x9e3   :  { %12 = sbr.rel (!%p10_p4) target bundleno = 1 (0x1), region = 72 }

</bundles_post_ra>
